<compile_context>
chip_gen: v6e
topology: v6e:2x2x1
jax: 0.10.0
libtpu: 0.0.40
codegen_flags: <defaults>
</compile_context>

<pallas_src>
import jax
import jax.numpy as jnp
from jax.experimental import pallas as pl
from jax.experimental.pallas import tpu as pltpu

NC = 3
NF = 64
BN_EPS = 1e-5

# (cin, cout) of the four stride-2 conv + BN + ReLU blocks.  The final
# Conv2d(NF*8, 1, 4, 1, 0) + Sigmoid head is fused into layer 3's epilogue.
LAYER_CFG = [
    (NC, NF * 1),
    (NF * 1, NF * 2),
    (NF * 2, NF * 4),
    (NF * 4, NF * 8),
]

_PARALLEL = pltpu.CompilerParams(dimension_semantics=("parallel",))


# ---------------------------------------------------------------------------
# Kernels
# ---------------------------------------------------------------------------
def conv_stats_kernel(x_ref, w_ref, y_ref, s_ref):
    """Single long-K GEMM per grid step + per-block BN partial statistics.

    x_ref : (BR, K)      bf16  im2col rows (block of output positions)
    w_ref : (K, Cout)    bf16  resident weights
    y_ref : (BR, Cout)   bf16  conv output (pre-BN), written once
    s_ref : (2, Cout)    f32   [sum, sum of squares] over the block's rows
    """
    acc = jnp.dot(x_ref[...], w_ref[...], preferred_element_type=jnp.float32)
    y_ref[...] = acc.astype(y_ref.dtype)
    s_ref[0:1, :] = jnp.sum(acc, axis=0, keepdims=True)
    s_ref[1:2, :] = jnp.sum(acc * acc, axis=0, keepdims=True)


def bn_relu_kernel(y_ref, scale_ref, bias_ref, o_ref):
    """Fused BatchNorm (precomputed per-channel scale/bias) + ReLU, f32 math."""
    y = y_ref[...].astype(jnp.float32) * scale_ref[...] + bias_ref[...]
    o_ref[...] = jnp.maximum(y, 0.0).astype(o_ref.dtype)


def bn_relu_head_kernel(y_ref, scale_ref, bias_ref, w5_ref, o_ref):
    """Last block: BN + ReLU + fused 4x4 valid conv (Cout=1) + sigmoid."""
    a = jnp.maximum(
        y_ref[...].astype(jnp.float32) * scale_ref[...] + bias_ref[...], 0.0)
    partial = jnp.sum(a * w5_ref[...], axis=1, keepdims=True)   # lane reduce
    logit = jnp.sum(partial, axis=0, keepdims=True)             # sublane reduce
    o_ref[...] = jax.nn.sigmoid(logit)


# ---------------------------------------------------------------------------
# Wrapper-side layout helpers (cheap XLA ops; no Pallas relayouts needed)
# ---------------------------------------------------------------------------
def _im2col_s2(h):
    """(N, H, W, C) -> (N*OH*OW, 16*C) bf16 patches of the 4x4/stride-2/pad-1
    conv; row = output position, K order = (kh, kw) major, channel minor."""
    n, hh, ww, c = h.shape
    oh, ow = hh // 2, ww // 2
    hp = jnp.pad(h, ((0, 0), (1, 1), (1, 1), (0, 0)))
    taps = [hp[:, kh:kh + 2 * oh:2, kw:kw + 2 * ow:2, :]
            for kh in range(4) for kw in range(4)]
    x = jnp.concatenate(taps, axis=-1)                 # (N, OH, OW, 16*C)
    return x.reshape(n * oh * ow, 16 * c)


def _pack_weights(w):
    """(Cout, Cin, 4, 4) -> (16*Cin, Cout) bf16 in (kh, kw, cin) row order."""
    cout, cin = w.shape[0], w.shape[1]
    wt = jnp.transpose(w, (2, 3, 1, 0)).reshape(16 * cin, cout)
    return wt.astype(jnp.bfloat16)


def _pick_rows(total_rows, row_bytes, vmem_budget=2 << 20, max_rows=1024):
    """Largest power-of-two row block that (a) divides total_rows, (b) keeps the
    per-step LHS tile under ~2 MiB, and (c) leaves >= 2 grid steps so the
    'parallel' grid axis still spans both TensorCores on v7x."""
    if total_rows % 8 != 0:
        return total_rows
    target = max(16, min(max_rows, vmem_budget // max(row_bytes, 1)))
    br = 8
    while (br * 2 <= target and total_rows % (br * 2) == 0
           and total_rows // (br * 2) >= 2):
        br *= 2
    return br


def _bn_scale_bias(stats, gamma, beta, count, fold_pairs=False):
    """Tiny XLA reduction of per-block [sum, sumsq] -> per-channel scale/bias."""
    s = jnp.sum(stats, axis=0)                          # (2, C) (or (2, 2*C))
    if fold_pairs:                                      # lane-dense layer-0 layout
        c = s.shape[1] // 2
        s = s[:, :c] + s[:, c:]
    mean = s[0] / count
    var = jnp.maximum(s[1] / count - mean * mean, 0.0)  # biased batch variance
    inv = jax.lax.rsqrt(var + BN_EPS)
    scale = gamma * inv
    bias = beta - mean * scale
    return scale, bias


# ---------------------------------------------------------------------------
# pallas_call wrappers
# ---------------------------------------------------------------------------
def _conv_stats(lhs, w_k):
    r, k = lhs.shape
    cout = w_k.shape[1]
    br = _pick_rows(r, 2 * k)
    nb = r // br
    return pl.pallas_call(
        conv_stats_kernel,
        out_shape=(jax.ShapeDtypeStruct((r, cout), jnp.bfloat16),
                   jax.ShapeDtypeStruct((nb, 2, cout), jnp.float32)),
        grid=(nb,),
        in_specs=[pl.BlockSpec((br, k), lambda i: (i, 0)),
                  pl.BlockSpec((k, cout), lambda i: (0, 0))],  # resident weights
        out_specs=(pl.BlockSpec((br, cout), lambda i: (i, 0)),
                   pl.BlockSpec((None, 2, cout), lambda i: (i, 0, 0))),
        compiler_params=_PARALLEL,
    )(lhs, w_k)


def _bn_relu(y, scale, bias):
    r, c = y.shape
    br = _pick_rows(r, 4 * c)
    return pl.pallas_call(
        bn_relu_kernel,
        out_shape=jax.ShapeDtypeStruct((r, c), jnp.bfloat16),
        grid=(r // br,),
        in_specs=[pl.BlockSpec((br, c), lambda i: (i, 0)),
                  pl.BlockSpec((1, c), lambda i: (0, 0)),
                  pl.BlockSpec((1, c), lambda i: (0, 0))],
        out_specs=pl.BlockSpec((br, c), lambda i: (i, 0)),
        compiler_params=_PARALLEL,
    )(y, scale.reshape(1, c), bias.reshape(1, c))


def _bn_relu_head(y, scale, bias, w5_mat):
    n, m, c = y.shape
    return pl.pallas_call(
        bn_relu_head_kernel,
        out_shape=jax.ShapeDtypeStruct((n, 1, 1), jnp.float32),
        grid=(n,),
        in_specs=[pl.BlockSpec((None, m, c), lambda b: (b, 0, 0)),
                  pl.BlockSpec((1, c), lambda b: (0, 0)),
                  pl.BlockSpec((1, c), lambda b: (0, 0)),
                  pl.BlockSpec((m, c), lambda b: (0, 0))],
        out_specs=pl.BlockSpec((None, 1, 1), lambda b: (b, 0, 0)),
        compiler_params=_PARALLEL,
    )(y, scale, bias, w5_mat)


# ---------------------------------------------------------------------------
# Parameters & forward pass
# ---------------------------------------------------------------------------
def init_params(key):
    params = []
    for (cin, cout) in LAYER_CFG:
        key, sub = jax.random.split(key)
        w = 0.02 * jax.random.normal(sub, (cout, cin, 4, 4), dtype=jnp.float32)
        params.append({"w": w,
                       "gamma": jnp.ones((cout,), jnp.float32),   # BN defaults
                       "beta": jnp.zeros((cout,), jnp.float32)})
    key, sub = jax.random.split(key)
    w5 = 0.02 * jax.random.normal(sub, (1, NF * 8, 4, 4), dtype=jnp.float32)
    params.append({"w": w5})                                       # final head conv
    return params


@jax.jit
def discriminator_forward(x, params):
    """x: (N, 3, 64, 64) f32 NCHW.  Returns sigmoid scores of shape (N, 1, 1, 1)."""
    n = x.shape[0]
    h = jnp.transpose(x, (0, 2, 3, 1)).astype(jnp.bfloat16)   # NHWC bf16 operand

    out = None
    for l, (cin, cout) in enumerate(LAYER_CFG):
        oh, ow = h.shape[1] // 2, h.shape[2] // 2
        lhs = _im2col_s2(h)                            # (N*OH*OW, 16*Cin) bf16
        w_k = _pack_weights(params[l]["w"])            # (16*Cin, Cout) bf16

        fold = cout < 128
        if fold:
            # Lane-dense layer-0 trick: pack two consecutive output rows into one
            # 128-lane row via a byte-identical reshape of the LHS plus a
            # block-diagonal weight; output columns carry (row parity, channel).
            lhs = lhs.reshape(lhs.shape[0] // 2, 2 * lhs.shape[1])
            z = jnp.zeros_like(w_k)
            w_k = jnp.concatenate(
                [jnp.concatenate([w_k, z], axis=1),
                 jnp.concatenate([z, w_k], axis=1)], axis=0)   # (2K, 2*Cout)

        y, stats = _conv_stats(lhs, w_k)               # y bf16, stats f32
        scale, bias = _bn_scale_bias(stats, params[l]["gamma"], params[l]["beta"],
                                     n * oh * ow, fold_pairs=fold)
        if fold:
            scale = jnp.concatenate([scale, scale], axis=0)
            bias = jnp.concatenate([bias, bias], axis=0)

        if l < len(LAYER_CFG) - 1:
            a = _bn_relu(y, scale, bias)               # lane-dense bf16 rows
            h = a.reshape(n, oh, ow, cout)             # byte-identical reshape
        else:
            # Fused head: BN + ReLU + 4x4 valid conv (Cout=1) + sigmoid.
            w5 = params[-1]["w"]                       # (1, NF*8, 4, 4)
            w5_mat = jnp.transpose(w5[0], (1, 2, 0)).reshape(oh * ow, cout)
            out = _bn_relu_head(y.reshape(n, oh * ow, cout),
                                scale.reshape(1, cout), bias.reshape(1, cout),
                                w5_mat.astype(jnp.float32))
    return out.reshape(n, 1, 1, 1)


if __name__ == "__main__":
    key = jax.random.PRNGKey(0)
    pkey, xkey = jax.random.split(key)
    params = init_params(pkey)
    # DCGAN discriminator geometry: 64x64 RGB -> 1x1 score (the final 4x4 valid
    # conv requires the 4x4 feature map that a 64x64 input produces).
    x = jax.random.normal(xkey, (2, NC, 64, 64), dtype=jnp.float32)

    out = discriminator_forward(x, params)
    out = jax.block_until_ready(out)

    assert out.shape == (2, 1, 1, 1), out.shape
    assert bool(jnp.all(jnp.isfinite(out)))
    assert bool(jnp.all((out >= 0.0) & (out <= 1.0)))
    print("KERNEL_OK")
</pallas_src>

<mosaic_0001>
module attributes {stable_mosaic.version = 11 : i64} {
  func.func @conv_stats_kernel(%arg0: i32, %arg1: memref<512x96xbf16, #tpu.memory_space<vmem>>, %arg2: memref<96x128xbf16, #tpu.memory_space<vmem>>, %arg3: memref<512x128xbf16, #tpu.memory_space<vmem>>, %arg4: memref<1x2x128xf32, #tpu.memory_space<vmem>>) attributes {dimension_semantics = [#tpu.dimension_semantics<parallel>], iteration_bounds = array<i64: 2>, scalar_prefetch = 0 : i64, scratch_operands = 0 : i64, tpu.core_type = #tpu.core_type<tc>, window_params = [{transform_indices = @transform_0, window_bounds = array<i64: 512, 96>}, {pipeline_mode = #tpu.pipeline_mode<synchronous>, transform_indices = @transform_1, window_bounds = array<i64: 96, 128>}, {transform_indices = @transform_2, window_bounds = array<i64: 512, 128>}, {transform_indices = @transform_3, window_bounds = array<i64: 1, 2, 128>}]} {
    %c0 = arith.constant 0 : index
    %c0_0 = arith.constant 0 : index
    %0 = vector.load %arg1[%c0, %c0_0] : memref<512x96xbf16, #tpu.memory_space<vmem>>, vector<512x96xbf16>
    %c0_1 = arith.constant 0 : index
    %c0_2 = arith.constant 0 : index
    %1 = vector.load %arg2[%c0_1, %c0_2] : memref<96x128xbf16, #tpu.memory_space<vmem>>, vector<96x128xbf16>
    %cst = arith.constant dense<0.000000e+00> : vector<512x128xf32>
    %2 = tpu.matmul %0, %1, %cst {dimension_numbers = #tpu.dot_dimension_numbers<[1], [0], [0], [1], [0, 0, 1, 1], [], []>} : vector<512x96xbf16>, vector<96x128xbf16>, vector<512x128xf32> -> vector<512x128xf32>
    %3 = arith.truncf %2 : vector<512x128xf32> to vector<512x128xbf16>
    %c0_3 = arith.constant 0 : index
    %c0_4 = arith.constant 0 : index
    %4 = vector.load %arg3[%c0_3, %c0_4] : memref<512x128xbf16, #tpu.memory_space<vmem>>, vector<512x128xbf16>
    tpu.vector_store %arg3[%c0_3, %c0_4], %3 {strides = array<i32>} : memref<512x128xbf16, #tpu.memory_space<vmem>>, vector<512x128xbf16>,
    %cst_5 = arith.constant dense<0.000000e+00> : vector<128xf32>
    %5 = vector.multi_reduction <add>, %2, %cst_5 [0] : vector<512x128xf32> to vector<128xf32>
    %6 = vector.shape_cast %5 : vector<128xf32> to vector<1x128xf32>
    %c0_6 = arith.constant 0 : index
    %c0_7 = arith.constant 0 : index
    %c0_8 = arith.constant 0 : index
    %7 = vector.load %arg4[%c0_6, %c0_7, %c0_8] : memref<1x2x128xf32, #tpu.memory_space<vmem>>, vector<1x1x128xf32>
    %8 = vector.shape_cast %7 : vector<1x1x128xf32> to vector<1x128xf32>
    %9 = vector.shape_cast %6 : vector<1x128xf32> to vector<1x1x128xf32>
    tpu.vector_store %arg4[%c0_6, %c0_7, %c0_8], %9 {strides = array<i32>} : memref<1x2x128xf32, #tpu.memory_space<vmem>>, vector<1x1x128xf32>,
    %10 = arith.mulf %2, %2 : vector<512x128xf32>
    %cst_9 = arith.constant dense<0.000000e+00> : vector<128xf32>
    %11 = vector.multi_reduction <add>, %10, %cst_9 [0] : vector<512x128xf32> to vector<128xf32>
    %12 = vector.shape_cast %11 : vector<128xf32> to vector<1x128xf32>
    %c0_10 = arith.constant 0 : index
    %c1 = arith.constant 1 : index
    %c0_11 = arith.constant 0 : index
    %13 = vector.load %arg4[%c0_10, %c1, %c0_11] : memref<1x2x128xf32, #tpu.memory_space<vmem>>, vector<1x1x128xf32>
    %14 = vector.shape_cast %13 : vector<1x1x128xf32> to vector<1x128xf32>
    %15 = vector.shape_cast %12 : vector<1x128xf32> to vector<1x1x128xf32>
    tpu.vector_store %arg4[%c0_10, %c1, %c0_11], %15 {strides = array<i32>} : memref<1x2x128xf32, #tpu.memory_space<vmem>>, vector<1x1x128xf32>,
    return
  }
  func.func @transform_0(%arg0: i32) -> (i32, i32) {
    %c0_i32 = arith.constant 0 : i32
    %c0_i32_0 = arith.constant 0 : i32
    return %arg0, %c0_i32 : i32, i32
  }
  func.func @transform_1(%arg0: i32) -> (i32, i32) {
    %c0_i32 = arith.constant 0 : i32
    %c0_i32_0 = arith.constant 0 : i32
    %c0_i32_1 = arith.constant 0 : i32
    return %c0_i32, %c0_i32_0 : i32, i32
  }
  func.func @transform_2(%arg0: i32) -> (i32, i32) {
    %c0_i32 = arith.constant 0 : i32
    %c0_i32_0 = arith.constant 0 : i32
    return %arg0, %c0_i32 : i32, i32
  }
  func.func @transform_3(%arg0: i32) -> (i32, i32, i32) {
    %c0_i32 = arith.constant 0 : i32
    %c0_i32_0 = arith.constant 0 : i32
    %c0_i32_1 = arith.constant 0 : i32
    return %arg0, %c0_i32, %c0_i32_0 : i32, i32, i32
  }
}

module attributes {stable_mosaic.version = 11 : i64} {
  func.func @bn_relu_kernel(%arg0: i32, %arg1: memref<512x128xbf16, #tpu.memory_space<vmem>>, %arg2: memref<1x128xf32, #tpu.memory_space<vmem>>, %arg3: memref<1x128xf32, #tpu.memory_space<vmem>>, %arg4: memref<512x128xbf16, #tpu.memory_space<vmem>>) attributes {dimension_semantics = [#tpu.dimension_semantics<parallel>], iteration_bounds = array<i64: 2>, scalar_prefetch = 0 : i64, scratch_operands = 0 : i64, tpu.core_type = #tpu.core_type<tc>, window_params = [{transform_indices = @transform_0, window_bounds = array<i64: 512, 128>}, {pipeline_mode = #tpu.pipeline_mode<synchronous>, transform_indices = @transform_1, window_bounds = array<i64: 1, 128>}, {pipeline_mode = #tpu.pipeline_mode<synchronous>, transform_indices = @transform_2, window_bounds = array<i64: 1, 128>}, {transform_indices = @transform_3, window_bounds = array<i64: 512, 128>}]} {
    %c0 = arith.constant 0 : index
    %c0_0 = arith.constant 0 : index
    %0 = vector.load %arg1[%c0, %c0_0] : memref<512x128xbf16, #tpu.memory_space<vmem>>, vector<512x128xbf16>
    %1 = arith.extf %0 : vector<512x128xbf16> to vector<512x128xf32>
    %c0_1 = arith.constant 0 : index
    %c0_2 = arith.constant 0 : index
    %2 = vector.load %arg2[%c0_1, %c0_2] : memref<1x128xf32, #tpu.memory_space<vmem>>, vector<1x128xf32>
    %3 = vector.broadcast %2 : vector<1x128xf32> to vector<512x128xf32>
    %4 = arith.mulf %1, %3 : vector<512x128xf32>
    %c0_3 = arith.constant 0 : index
    %c0_4 = arith.constant 0 : index
    %5 = vector.load %arg3[%c0_3, %c0_4] : memref<1x128xf32, #tpu.memory_space<vmem>>, vector<1x128xf32>
    %6 = vector.broadcast %5 : vector<1x128xf32> to vector<512x128xf32>
    %7 = arith.addf %4, %6 : vector<512x128xf32>
    %cst = arith.constant 0.000000e+00 : f32
    %8 = vector.broadcast %cst : f32 to vector<512x128xf32>
    %9 = arith.maximumf %7, %8 : vector<512x128xf32>
    %10 = arith.truncf %9 : vector<512x128xf32> to vector<512x128xbf16>
    %c0_5 = arith.constant 0 : index
    %c0_6 = arith.constant 0 : index
    %11 = vector.load %arg4[%c0_5, %c0_6] : memref<512x128xbf16, #tpu.memory_space<vmem>>, vector<512x128xbf16>
    tpu.vector_store %arg4[%c0_5, %c0_6], %10 {strides = array<i32>} : memref<512x128xbf16, #tpu.memory_space<vmem>>, vector<512x128xbf16>,
    return
  }
  func.func @transform_0(%arg0: i32) -> (i32, i32) {
    %c0_i32 = arith.constant 0 : i32
    %c0_i32_0 = arith.constant 0 : i32
    return %arg0, %c0_i32 : i32, i32
  }
  func.func @transform_1(%arg0: i32) -> (i32, i32) {
    %c0_i32 = arith.constant 0 : i32
    %c0_i32_0 = arith.constant 0 : i32
    %c0_i32_1 = arith.constant 0 : i32
    return %c0_i32, %c0_i32_0 : i32, i32
  }
  func.func @transform_2(%arg0: i32) -> (i32, i32) {
    %c0_i32 = arith.constant 0 : i32
    %c0_i32_0 = arith.constant 0 : i32
    %c0_i32_1 = arith.constant 0 : i32
    return %c0_i32, %c0_i32_0 : i32, i32
  }
  func.func @transform_3(%arg0: i32) -> (i32, i32) {
    %c0_i32 = arith.constant 0 : i32
    %c0_i32_0 = arith.constant 0 : i32
    return %arg0, %c0_i32 : i32, i32
  }
}

module attributes {stable_mosaic.version = 11 : i64} {
  func.func @conv_stats_kernel(%arg0: i32, %arg1: memref<256x1024xbf16, #tpu.memory_space<vmem>>, %arg2: memref<1024x128xbf16, #tpu.memory_space<vmem>>, %arg3: memref<256x128xbf16, #tpu.memory_space<vmem>>, %arg4: memref<1x2x128xf32, #tpu.memory_space<vmem>>) attributes {dimension_semantics = [#tpu.dimension_semantics<parallel>], iteration_bounds = array<i64: 2>, scalar_prefetch = 0 : i64, scratch_operands = 0 : i64, tpu.core_type = #tpu.core_type<tc>, window_params = [{transform_indices = @transform_0, window_bounds = array<i64: 256, 1024>}, {pipeline_mode = #tpu.pipeline_mode<synchronous>, transform_indices = @transform_1, window_bounds = array<i64: 1024, 128>}, {transform_indices = @transform_2, window_bounds = array<i64: 256, 128>}, {transform_indices = @transform_3, window_bounds = array<i64: 1, 2, 128>}]} {
    %c0 = arith.constant 0 : index
    %c0_0 = arith.constant 0 : index
    %0 = vector.load %arg1[%c0, %c0_0] : memref<256x1024xbf16, #tpu.memory_space<vmem>>, vector<256x1024xbf16>
    %c0_1 = arith.constant 0 : index
    %c0_2 = arith.constant 0 : index
    %1 = vector.load %arg2[%c0_1, %c0_2] : memref<1024x128xbf16, #tpu.memory_space<vmem>>, vector<1024x128xbf16>
    %cst = arith.constant dense<0.000000e+00> : vector<256x128xf32>
    %2 = tpu.matmul %0, %1, %cst {dimension_numbers = #tpu.dot_dimension_numbers<[1], [0], [0], [1], [0, 0, 1, 1], [], []>} : vector<256x1024xbf16>, vector<1024x128xbf16>, vector<256x128xf32> -> vector<256x128xf32>
    %3 = arith.truncf %2 : vector<256x128xf32> to vector<256x128xbf16>
    %c0_3 = arith.constant 0 : index
    %c0_4 = arith.constant 0 : index
    %4 = vector.load %arg3[%c0_3, %c0_4] : memref<256x128xbf16, #tpu.memory_space<vmem>>, vector<256x128xbf16>
    tpu.vector_store %arg3[%c0_3, %c0_4], %3 {strides = array<i32>} : memref<256x128xbf16, #tpu.memory_space<vmem>>, vector<256x128xbf16>,
    %cst_5 = arith.constant dense<0.000000e+00> : vector<128xf32>
    %5 = vector.multi_reduction <add>, %2, %cst_5 [0] : vector<256x128xf32> to vector<128xf32>
    %6 = vector.shape_cast %5 : vector<128xf32> to vector<1x128xf32>
    %c0_6 = arith.constant 0 : index
    %c0_7 = arith.constant 0 : index
    %c0_8 = arith.constant 0 : index
    %7 = vector.load %arg4[%c0_6, %c0_7, %c0_8] : memref<1x2x128xf32, #tpu.memory_space<vmem>>, vector<1x1x128xf32>
    %8 = vector.shape_cast %7 : vector<1x1x128xf32> to vector<1x128xf32>
    %9 = vector.shape_cast %6 : vector<1x128xf32> to vector<1x1x128xf32>
    tpu.vector_store %arg4[%c0_6, %c0_7, %c0_8], %9 {strides = array<i32>} : memref<1x2x128xf32, #tpu.memory_space<vmem>>, vector<1x1x128xf32>,
    %10 = arith.mulf %2, %2 : vector<256x128xf32>
    %cst_9 = arith.constant dense<0.000000e+00> : vector<128xf32>
    %11 = vector.multi_reduction <add>, %10, %cst_9 [0] : vector<256x128xf32> to vector<128xf32>
    %12 = vector.shape_cast %11 : vector<128xf32> to vector<1x128xf32>
    %c0_10 = arith.constant 0 : index
    %c1 = arith.constant 1 : index
    %c0_11 = arith.constant 0 : index
    %13 = vector.load %arg4[%c0_10, %c1, %c0_11] : memref<1x2x128xf32, #tpu.memory_space<vmem>>, vector<1x1x128xf32>
    %14 = vector.shape_cast %13 : vector<1x1x128xf32> to vector<1x128xf32>
    %15 = vector.shape_cast %12 : vector<1x128xf32> to vector<1x1x128xf32>
    tpu.vector_store %arg4[%c0_10, %c1, %c0_11], %15 {strides = array<i32>} : memref<1x2x128xf32, #tpu.memory_space<vmem>>, vector<1x1x128xf32>,
    return
  }
  func.func @transform_0(%arg0: i32) -> (i32, i32) {
    %c0_i32 = arith.constant 0 : i32
    %c0_i32_0 = arith.constant 0 : i32
    return %arg0, %c0_i32 : i32, i32
  }
  func.func @transform_1(%arg0: i32) -> (i32, i32) {
    %c0_i32 = arith.constant 0 : i32
    %c0_i32_0 = arith.constant 0 : i32
    %c0_i32_1 = arith.constant 0 : i32
    return %c0_i32, %c0_i32_0 : i32, i32
  }
  func.func @transform_2(%arg0: i32) -> (i32, i32) {
    %c0_i32 = arith.constant 0 : i32
    %c0_i32_0 = arith.constant 0 : i32
    return %arg0, %c0_i32 : i32, i32
  }
  func.func @transform_3(%arg0: i32) -> (i32, i32, i32) {
    %c0_i32 = arith.constant 0 : i32
    %c0_i32_0 = arith.constant 0 : i32
    %c0_i32_1 = arith.constant 0 : i32
    return %arg0, %c0_i32, %c0_i32_0 : i32, i32, i32
  }
}

module attributes {stable_mosaic.version = 11 : i64} {
  func.func @bn_relu_kernel(%arg0: i32, %arg1: memref<256x128xbf16, #tpu.memory_space<vmem>>, %arg2: memref<1x128xf32, #tpu.memory_space<vmem>>, %arg3: memref<1x128xf32, #tpu.memory_space<vmem>>, %arg4: memref<256x128xbf16, #tpu.memory_space<vmem>>) attributes {dimension_semantics = [#tpu.dimension_semantics<parallel>], iteration_bounds = array<i64: 2>, scalar_prefetch = 0 : i64, scratch_operands = 0 : i64, tpu.core_type = #tpu.core_type<tc>, window_params = [{transform_indices = @transform_0, window_bounds = array<i64: 256, 128>}, {pipeline_mode = #tpu.pipeline_mode<synchronous>, transform_indices = @transform_1, window_bounds = array<i64: 1, 128>}, {pipeline_mode = #tpu.pipeline_mode<synchronous>, transform_indices = @transform_2, window_bounds = array<i64: 1, 128>}, {transform_indices = @transform_3, window_bounds = array<i64: 256, 128>}]} {
    %c0 = arith.constant 0 : index
    %c0_0 = arith.constant 0 : index
    %0 = vector.load %arg1[%c0, %c0_0] : memref<256x128xbf16, #tpu.memory_space<vmem>>, vector<256x128xbf16>
    %1 = arith.extf %0 : vector<256x128xbf16> to vector<256x128xf32>
    %c0_1 = arith.constant 0 : index
    %c0_2 = arith.constant 0 : index
    %2 = vector.load %arg2[%c0_1, %c0_2] : memref<1x128xf32, #tpu.memory_space<vmem>>, vector<1x128xf32>
    %3 = vector.broadcast %2 : vector<1x128xf32> to vector<256x128xf32>
    %4 = arith.mulf %1, %3 : vector<256x128xf32>
    %c0_3 = arith.constant 0 : index
    %c0_4 = arith.constant 0 : index
    %5 = vector.load %arg3[%c0_3, %c0_4] : memref<1x128xf32, #tpu.memory_space<vmem>>, vector<1x128xf32>
    %6 = vector.broadcast %5 : vector<1x128xf32> to vector<256x128xf32>
    %7 = arith.addf %4, %6 : vector<256x128xf32>
    %cst = arith.constant 0.000000e+00 : f32
    %8 = vector.broadcast %cst : f32 to vector<256x128xf32>
    %9 = arith.maximumf %7, %8 : vector<256x128xf32>
    %10 = arith.truncf %9 : vector<256x128xf32> to vector<256x128xbf16>
    %c0_5 = arith.constant 0 : index
    %c0_6 = arith.constant 0 : index
    %11 = vector.load %arg4[%c0_5, %c0_6] : memref<256x128xbf16, #tpu.memory_space<vmem>>, vector<256x128xbf16>
    tpu.vector_store %arg4[%c0_5, %c0_6], %10 {strides = array<i32>} : memref<256x128xbf16, #tpu.memory_space<vmem>>, vector<256x128xbf16>,
    return
  }
  func.func @transform_0(%arg0: i32) -> (i32, i32) {
    %c0_i32 = arith.constant 0 : i32
    %c0_i32_0 = arith.constant 0 : i32
    return %arg0, %c0_i32 : i32, i32
  }
  func.func @transform_1(%arg0: i32) -> (i32, i32) {
    %c0_i32 = arith.constant 0 : i32
    %c0_i32_0 = arith.constant 0 : i32
    %c0_i32_1 = arith.constant 0 : i32
    return %c0_i32, %c0_i32_0 : i32, i32
  }
  func.func @transform_2(%arg0: i32) -> (i32, i32) {
    %c0_i32 = arith.constant 0 : i32
    %c0_i32_0 = arith.constant 0 : i32
    %c0_i32_1 = arith.constant 0 : i32
    return %c0_i32, %c0_i32_0 : i32, i32
  }
  func.func @transform_3(%arg0: i32) -> (i32, i32) {
    %c0_i32 = arith.constant 0 : i32
    %c0_i32_0 = arith.constant 0 : i32
    return %arg0, %c0_i32 : i32, i32
  }
}

module attributes {stable_mosaic.version = 11 : i64} {
  func.func @conv_stats_kernel(%arg0: i32, %arg1: memref<64x2048xbf16, #tpu.memory_space<vmem>>, %arg2: memref<2048x256xbf16, #tpu.memory_space<vmem>>, %arg3: memref<64x256xbf16, #tpu.memory_space<vmem>>, %arg4: memref<1x2x256xf32, #tpu.memory_space<vmem>>) attributes {dimension_semantics = [#tpu.dimension_semantics<parallel>], iteration_bounds = array<i64: 2>, scalar_prefetch = 0 : i64, scratch_operands = 0 : i64, tpu.core_type = #tpu.core_type<tc>, window_params = [{transform_indices = @transform_0, window_bounds = array<i64: 64, 2048>}, {pipeline_mode = #tpu.pipeline_mode<synchronous>, transform_indices = @transform_1, window_bounds = array<i64: 2048, 256>}, {transform_indices = @transform_2, window_bounds = array<i64: 64, 256>}, {transform_indices = @transform_3, window_bounds = array<i64: 1, 2, 256>}]} {
    %c0 = arith.constant 0 : index
    %c0_0 = arith.constant 0 : index
    %0 = vector.load %arg1[%c0, %c0_0] : memref<64x2048xbf16, #tpu.memory_space<vmem>>, vector<64x2048xbf16>
    %c0_1 = arith.constant 0 : index
    %c0_2 = arith.constant 0 : index
    %1 = vector.load %arg2[%c0_1, %c0_2] : memref<2048x256xbf16, #tpu.memory_space<vmem>>, vector<2048x256xbf16>
    %cst = arith.constant dense<0.000000e+00> : vector<64x256xf32>
    %2 = tpu.matmul %0, %1, %cst {dimension_numbers = #tpu.dot_dimension_numbers<[1], [0], [0], [1], [0, 0, 1, 1], [], []>} : vector<64x2048xbf16>, vector<2048x256xbf16>, vector<64x256xf32> -> vector<64x256xf32>
    %3 = arith.truncf %2 : vector<64x256xf32> to vector<64x256xbf16>
    %c0_3 = arith.constant 0 : index
    %c0_4 = arith.constant 0 : index
    %4 = vector.load %arg3[%c0_3, %c0_4] : memref<64x256xbf16, #tpu.memory_space<vmem>>, vector<64x256xbf16>
    tpu.vector_store %arg3[%c0_3, %c0_4], %3 {strides = array<i32>} : memref<64x256xbf16, #tpu.memory_space<vmem>>, vector<64x256xbf16>,
    %cst_5 = arith.constant dense<0.000000e+00> : vector<256xf32>
    %5 = vector.multi_reduction <add>, %2, %cst_5 [0] : vector<64x256xf32> to vector<256xf32>
    %6 = vector.shape_cast %5 : vector<256xf32> to vector<1x256xf32>
    %c0_6 = arith.constant 0 : index
    %c0_7 = arith.constant 0 : index
    %c0_8 = arith.constant 0 : index
    %7 = vector.load %arg4[%c0_6, %c0_7, %c0_8] : memref<1x2x256xf32, #tpu.memory_space<vmem>>, vector<1x1x256xf32>
    %8 = vector.shape_cast %7 : vector<1x1x256xf32> to vector<1x256xf32>
    %9 = vector.shape_cast %6 : vector<1x256xf32> to vector<1x1x256xf32>
    tpu.vector_store %arg4[%c0_6, %c0_7, %c0_8], %9 {strides = array<i32>} : memref<1x2x256xf32, #tpu.memory_space<vmem>>, vector<1x1x256xf32>,
    %10 = arith.mulf %2, %2 : vector<64x256xf32>
    %cst_9 = arith.constant dense<0.000000e+00> : vector<256xf32>
    %11 = vector.multi_reduction <add>, %10, %cst_9 [0] : vector<64x256xf32> to vector<256xf32>
    %12 = vector.shape_cast %11 : vector<256xf32> to vector<1x256xf32>
    %c0_10 = arith.constant 0 : index
    %c1 = arith.constant 1 : index
    %c0_11 = arith.constant 0 : index
    %13 = vector.load %arg4[%c0_10, %c1, %c0_11] : memref<1x2x256xf32, #tpu.memory_space<vmem>>, vector<1x1x256xf32>
    %14 = vector.shape_cast %13 : vector<1x1x256xf32> to vector<1x256xf32>
    %15 = vector.shape_cast %12 : vector<1x256xf32> to vector<1x1x256xf32>
    tpu.vector_store %arg4[%c0_10, %c1, %c0_11], %15 {strides = array<i32>} : memref<1x2x256xf32, #tpu.memory_space<vmem>>, vector<1x1x256xf32>,
    return
  }
  func.func @transform_0(%arg0: i32) -> (i32, i32) {
    %c0_i32 = arith.constant 0 : i32
    %c0_i32_0 = arith.constant 0 : i32
    return %arg0, %c0_i32 : i32, i32
  }
  func.func @transform_1(%arg0: i32) -> (i32, i32) {
    %c0_i32 = arith.constant 0 : i32
    %c0_i32_0 = arith.constant 0 : i32
    %c0_i32_1 = arith.constant 0 : i32
    return %c0_i32, %c0_i32_0 : i32, i32
  }
  func.func @transform_2(%arg0: i32) -> (i32, i32) {
    %c0_i32 = arith.constant 0 : i32
    %c0_i32_0 = arith.constant 0 : i32
    return %arg0, %c0_i32 : i32, i32
  }
  func.func @transform_3(%arg0: i32) -> (i32, i32, i32) {
    %c0_i32 = arith.constant 0 : i32
    %c0_i32_0 = arith.constant 0 : i32
    %c0_i32_1 = arith.constant 0 : i32
    return %arg0, %c0_i32, %c0_i32_0 : i32, i32, i32
  }
}

module attributes {stable_mosaic.version = 11 : i64} {
  func.func @bn_relu_kernel(%arg0: i32, %arg1: memref<64x256xbf16, #tpu.memory_space<vmem>>, %arg2: memref<1x256xf32, #tpu.memory_space<vmem>>, %arg3: memref<1x256xf32, #tpu.memory_space<vmem>>, %arg4: memref<64x256xbf16, #tpu.memory_space<vmem>>) attributes {dimension_semantics = [#tpu.dimension_semantics<parallel>], iteration_bounds = array<i64: 2>, scalar_prefetch = 0 : i64, scratch_operands = 0 : i64, tpu.core_type = #tpu.core_type<tc>, window_params = [{transform_indices = @transform_0, window_bounds = array<i64: 64, 256>}, {pipeline_mode = #tpu.pipeline_mode<synchronous>, transform_indices = @transform_1, window_bounds = array<i64: 1, 256>}, {pipeline_mode = #tpu.pipeline_mode<synchronous>, transform_indices = @transform_2, window_bounds = array<i64: 1, 256>}, {transform_indices = @transform_3, window_bounds = array<i64: 64, 256>}]} {
    %c0 = arith.constant 0 : index
    %c0_0 = arith.constant 0 : index
    %0 = vector.load %arg1[%c0, %c0_0] : memref<64x256xbf16, #tpu.memory_space<vmem>>, vector<64x256xbf16>
    %1 = arith.extf %0 : vector<64x256xbf16> to vector<64x256xf32>
    %c0_1 = arith.constant 0 : index
    %c0_2 = arith.constant 0 : index
    %2 = vector.load %arg2[%c0_1, %c0_2] : memref<1x256xf32, #tpu.memory_space<vmem>>, vector<1x256xf32>
    %3 = vector.broadcast %2 : vector<1x256xf32> to vector<64x256xf32>
    %4 = arith.mulf %1, %3 : vector<64x256xf32>
    %c0_3 = arith.constant 0 : index
    %c0_4 = arith.constant 0 : index
    %5 = vector.load %arg3[%c0_3, %c0_4] : memref<1x256xf32, #tpu.memory_space<vmem>>, vector<1x256xf32>
    %6 = vector.broadcast %5 : vector<1x256xf32> to vector<64x256xf32>
    %7 = arith.addf %4, %6 : vector<64x256xf32>
    %cst = arith.constant 0.000000e+00 : f32
    %8 = vector.broadcast %cst : f32 to vector<64x256xf32>
    %9 = arith.maximumf %7, %8 : vector<64x256xf32>
    %10 = arith.truncf %9 : vector<64x256xf32> to vector<64x256xbf16>
    %c0_5 = arith.constant 0 : index
    %c0_6 = arith.constant 0 : index
    %11 = vector.load %arg4[%c0_5, %c0_6] : memref<64x256xbf16, #tpu.memory_space<vmem>>, vector<64x256xbf16>
    tpu.vector_store %arg4[%c0_5, %c0_6], %10 {strides = array<i32>} : memref<64x256xbf16, #tpu.memory_space<vmem>>, vector<64x256xbf16>,
    return
  }
  func.func @transform_0(%arg0: i32) -> (i32, i32) {
    %c0_i32 = arith.constant 0 : i32
    %c0_i32_0 = arith.constant 0 : i32
    return %arg0, %c0_i32 : i32, i32
  }
  func.func @transform_1(%arg0: i32) -> (i32, i32) {
    %c0_i32 = arith.constant 0 : i32
    %c0_i32_0 = arith.constant 0 : i32
    %c0_i32_1 = arith.constant 0 : i32
    return %c0_i32, %c0_i32_0 : i32, i32
  }
  func.func @transform_2(%arg0: i32) -> (i32, i32) {
    %c0_i32 = arith.constant 0 : i32
    %c0_i32_0 = arith.constant 0 : i32
    %c0_i32_1 = arith.constant 0 : i32
    return %c0_i32, %c0_i32_0 : i32, i32
  }
  func.func @transform_3(%arg0: i32) -> (i32, i32) {
    %c0_i32 = arith.constant 0 : i32
    %c0_i32_0 = arith.constant 0 : i32
    return %arg0, %c0_i32 : i32, i32
  }
}

module attributes {stable_mosaic.version = 11 : i64} {
  func.func @conv_stats_kernel(%arg0: i32, %arg1: memref<16x4096xbf16, #tpu.memory_space<vmem>>, %arg2: memref<4096x512xbf16, #tpu.memory_space<vmem>>, %arg3: memref<16x512xbf16, #tpu.memory_space<vmem>>, %arg4: memref<1x2x512xf32, #tpu.memory_space<vmem>>) attributes {dimension_semantics = [#tpu.dimension_semantics<parallel>], iteration_bounds = array<i64: 2>, scalar_prefetch = 0 : i64, scratch_operands = 0 : i64, tpu.core_type = #tpu.core_type<tc>, window_params = [{transform_indices = @transform_0, window_bounds = array<i64: 16, 4096>}, {pipeline_mode = #tpu.pipeline_mode<synchronous>, transform_indices = @transform_1, window_bounds = array<i64: 4096, 512>}, {transform_indices = @transform_2, window_bounds = array<i64: 16, 512>}, {transform_indices = @transform_3, window_bounds = array<i64: 1, 2, 512>}]} {
    %c0 = arith.constant 0 : index
    %c0_0 = arith.constant 0 : index
    %0 = vector.load %arg1[%c0, %c0_0] : memref<16x4096xbf16, #tpu.memory_space<vmem>>, vector<16x4096xbf16>
    %c0_1 = arith.constant 0 : index
    %c0_2 = arith.constant 0 : index
    %1 = vector.load %arg2[%c0_1, %c0_2] : memref<4096x512xbf16, #tpu.memory_space<vmem>>, vector<4096x512xbf16>
    %cst = arith.constant dense<0.000000e+00> : vector<16x512xf32>
    %2 = tpu.matmul %0, %1, %cst {dimension_numbers = #tpu.dot_dimension_numbers<[1], [0], [0], [1], [0, 0, 1, 1], [], []>} : vector<16x4096xbf16>, vector<4096x512xbf16>, vector<16x512xf32> -> vector<16x512xf32>
    %3 = arith.truncf %2 : vector<16x512xf32> to vector<16x512xbf16>
    %c0_3 = arith.constant 0 : index
    %c0_4 = arith.constant 0 : index
    %4 = vector.load %arg3[%c0_3, %c0_4] : memref<16x512xbf16, #tpu.memory_space<vmem>>, vector<16x512xbf16>
    tpu.vector_store %arg3[%c0_3, %c0_4], %3 {strides = array<i32>} : memref<16x512xbf16, #tpu.memory_space<vmem>>, vector<16x512xbf16>,
    %cst_5 = arith.constant dense<0.000000e+00> : vector<512xf32>
    %5 = vector.multi_reduction <add>, %2, %cst_5 [0] : vector<16x512xf32> to vector<512xf32>
    %6 = vector.shape_cast %5 : vector<512xf32> to vector<1x512xf32>
    %c0_6 = arith.constant 0 : index
    %c0_7 = arith.constant 0 : index
    %c0_8 = arith.constant 0 : index
    %7 = vector.load %arg4[%c0_6, %c0_7, %c0_8] : memref<1x2x512xf32, #tpu.memory_space<vmem>>, vector<1x1x512xf32>
    %8 = vector.shape_cast %7 : vector<1x1x512xf32> to vector<1x512xf32>
    %9 = vector.shape_cast %6 : vector<1x512xf32> to vector<1x1x512xf32>
    tpu.vector_store %arg4[%c0_6, %c0_7, %c0_8], %9 {strides = array<i32>} : memref<1x2x512xf32, #tpu.memory_space<vmem>>, vector<1x1x512xf32>,
    %10 = arith.mulf %2, %2 : vector<16x512xf32>
    %cst_9 = arith.constant dense<0.000000e+00> : vector<512xf32>
    %11 = vector.multi_reduction <add>, %10, %cst_9 [0] : vector<16x512xf32> to vector<512xf32>
    %12 = vector.shape_cast %11 : vector<512xf32> to vector<1x512xf32>
    %c0_10 = arith.constant 0 : index
    %c1 = arith.constant 1 : index
    %c0_11 = arith.constant 0 : index
    %13 = vector.load %arg4[%c0_10, %c1, %c0_11] : memref<1x2x512xf32, #tpu.memory_space<vmem>>, vector<1x1x512xf32>
    %14 = vector.shape_cast %13 : vector<1x1x512xf32> to vector<1x512xf32>
    %15 = vector.shape_cast %12 : vector<1x512xf32> to vector<1x1x512xf32>
    tpu.vector_store %arg4[%c0_10, %c1, %c0_11], %15 {strides = array<i32>} : memref<1x2x512xf32, #tpu.memory_space<vmem>>, vector<1x1x512xf32>,
    return
  }
  func.func @transform_0(%arg0: i32) -> (i32, i32) {
    %c0_i32 = arith.constant 0 : i32
    %c0_i32_0 = arith.constant 0 : i32
    return %arg0, %c0_i32 : i32, i32
  }
  func.func @transform_1(%arg0: i32) -> (i32, i32) {
    %c0_i32 = arith.constant 0 : i32
    %c0_i32_0 = arith.constant 0 : i32
    %c0_i32_1 = arith.constant 0 : i32
    return %c0_i32, %c0_i32_0 : i32, i32
  }
  func.func @transform_2(%arg0: i32) -> (i32, i32) {
    %c0_i32 = arith.constant 0 : i32
    %c0_i32_0 = arith.constant 0 : i32
    return %arg0, %c0_i32 : i32, i32
  }
  func.func @transform_3(%arg0: i32) -> (i32, i32, i32) {
    %c0_i32 = arith.constant 0 : i32
    %c0_i32_0 = arith.constant 0 : i32
    %c0_i32_1 = arith.constant 0 : i32
    return %arg0, %c0_i32, %c0_i32_0 : i32, i32, i32
  }
}

module attributes {stable_mosaic.version = 11 : i64} {
  func.func @bn_relu_head_kernel(%arg0: i32, %arg1: memref<1x16x512xbf16, #tpu.memory_space<vmem>>, %arg2: memref<1x512xf32, #tpu.memory_space<vmem>>, %arg3: memref<1x512xf32, #tpu.memory_space<vmem>>, %arg4: memref<16x512xf32, #tpu.memory_space<vmem>>, %arg5: memref<1x1x1xf32, #tpu.memory_space<vmem>>) attributes {dimension_semantics = [#tpu.dimension_semantics<parallel>], iteration_bounds = array<i64: 2>, scalar_prefetch = 0 : i64, scratch_operands = 0 : i64, tpu.core_type = #tpu.core_type<tc>, window_params = [{transform_indices = @transform_0, window_bounds = array<i64: 1, 16, 512>}, {pipeline_mode = #tpu.pipeline_mode<synchronous>, transform_indices = @transform_1, window_bounds = array<i64: 1, 512>}, {pipeline_mode = #tpu.pipeline_mode<synchronous>, transform_indices = @transform_2, window_bounds = array<i64: 1, 512>}, {pipeline_mode = #tpu.pipeline_mode<synchronous>, transform_indices = @transform_3, window_bounds = array<i64: 16, 512>}, {transform_indices = @transform_4, window_bounds = array<i64: 1, 1, 1>}]} {
    %c0 = arith.constant 0 : index
    %c0_0 = arith.constant 0 : index
    %c0_1 = arith.constant 0 : index
    %0 = vector.load %arg1[%c0, %c0_0, %c0_1] : memref<1x16x512xbf16, #tpu.memory_space<vmem>>, vector<1x16x512xbf16>
    %1 = vector.shape_cast %0 : vector<1x16x512xbf16> to vector<16x512xbf16>
    %2 = arith.extf %1 : vector<16x512xbf16> to vector<16x512xf32>
    %c0_2 = arith.constant 0 : index
    %c0_3 = arith.constant 0 : index
    %3 = vector.load %arg2[%c0_2, %c0_3] : memref<1x512xf32, #tpu.memory_space<vmem>>, vector<1x512xf32>
    %4 = vector.broadcast %3 : vector<1x512xf32> to vector<16x512xf32>
    %5 = arith.mulf %2, %4 : vector<16x512xf32>
    %c0_4 = arith.constant 0 : index
    %c0_5 = arith.constant 0 : index
    %6 = vector.load %arg3[%c0_4, %c0_5] : memref<1x512xf32, #tpu.memory_space<vmem>>, vector<1x512xf32>
    %7 = vector.broadcast %6 : vector<1x512xf32> to vector<16x512xf32>
    %8 = arith.addf %5, %7 : vector<16x512xf32>
    %cst = arith.constant 0.000000e+00 : f32
    %9 = vector.broadcast %cst : f32 to vector<16x512xf32>
    %10 = arith.maximumf %8, %9 : vector<16x512xf32>
    %c0_6 = arith.constant 0 : index
    %c0_7 = arith.constant 0 : index
    %11 = vector.load %arg4[%c0_6, %c0_7] : memref<16x512xf32, #tpu.memory_space<vmem>>, vector<16x512xf32>
    %12 = arith.mulf %10, %11 : vector<16x512xf32>
    %cst_8 = arith.constant dense<0.000000e+00> : vector<16xf32>
    %13 = vector.multi_reduction <add>, %12, %cst_8 [1] : vector<16x512xf32> to vector<16xf32>
    %14 = vector.shape_cast %13 : vector<16xf32> to vector<16x1xf32>
    %cst_9 = arith.constant dense<0.000000e+00> : vector<1xf32>
    %15 = vector.multi_reduction <add>, %14, %cst_9 [0] : vector<16x1xf32> to vector<1xf32>
    %16 = vector.shape_cast %15 : vector<1xf32> to vector<1x1xf32>
    %17 = arith.negf %16 : vector<1x1xf32>
    %18 = math.exp %17 : vector<1x1xf32>
    %cst_10 = arith.constant 1.000000e+00 : f32
    %19 = vector.broadcast %cst_10 : f32 to vector<1x1xf32>
    %20 = arith.addf %19, %18 : vector<1x1xf32>
    %21 = arith.divf %19, %20 : vector<1x1xf32>
    %c0_11 = arith.constant 0 : index
    %c0_12 = arith.constant 0 : index
    %c0_13 = arith.constant 0 : index
    %22 = vector.load %arg5[%c0_11, %c0_12, %c0_13] : memref<1x1x1xf32, #tpu.memory_space<vmem>>, vector<1x1x1xf32>
    %23 = vector.shape_cast %22 : vector<1x1x1xf32> to vector<1x1xf32>
    %24 = vector.shape_cast %21 : vector<1x1xf32> to vector<1x1x1xf32>
    tpu.vector_store %arg5[%c0_11, %c0_12, %c0_13], %24 {strides = array<i32>} : memref<1x1x1xf32, #tpu.memory_space<vmem>>, vector<1x1x1xf32>,
    return
  }
  func.func @transform_0(%arg0: i32) -> (i32, i32, i32) {
    %c0_i32 = arith.constant 0 : i32
    %c0_i32_0 = arith.constant 0 : i32
    %c0_i32_1 = arith.constant 0 : i32
    return %arg0, %c0_i32, %c0_i32_0 : i32, i32, i32
  }
  func.func @transform_1(%arg0: i32) -> (i32, i32) {
    %c0_i32 = arith.constant 0 : i32
    %c0_i32_0 = arith.constant 0 : i32
    %c0_i32_1 = arith.constant 0 : i32
    return %c0_i32, %c0_i32_0 : i32, i32
  }
  func.func @transform_2(%arg0: i32) -> (i32, i32) {
    %c0_i32 = arith.constant 0 : i32
    %c0_i32_0 = arith.constant 0 : i32
    %c0_i32_1 = arith.constant 0 : i32
    return %c0_i32, %c0_i32_0 : i32, i32
  }
  func.func @transform_3(%arg0: i32) -> (i32, i32) {
    %c0_i32 = arith.constant 0 : i32
    %c0_i32_0 = arith.constant 0 : i32
    %c0_i32_1 = arith.constant 0 : i32
    return %c0_i32, %c0_i32_0 : i32, i32
  }
  func.func @transform_4(%arg0: i32) -> (i32, i32, i32) {
    %c0_i32 = arith.constant 0 : i32
    %c0_i32_0 = arith.constant 0 : i32
    %c0_i32_1 = arith.constant 0 : i32
    return %arg0, %c0_i32, %c0_i32_0 : i32, i32, i32
  }
}

</mosaic_0001>

<bundles_post_ra>
// kernel: discriminator_forward.8
= control target key start
LH: loop header
LB: loop body
LE: loop exit
PB: predicated region body
PF: predicated region fallthrough
CT: control target
= control target key end

     0   :  { %s2056_s12 = smov 0   ;;  %s2398_s0 = inlined_call_operand.vmem [shape: bf16[1024,96], index: 0, kind: input, shape index: {}]   ;;  %s2399_s1 = inlined_call_operand.vmem [shape: bf16[96,128], index: 1, kind: input, shape index: {}]   ;;  %s2400_s2 = inlined_call_operand.vmem [shape: bf16[1024,128], index: 2, kind: output, shape index: {0}]   ;;  %s2401_s3 = inlined_call_operand.vmem [shape: f32[2,2,128], index: 3, kind: output, shape index: {1}]  }
   0x1 LB: > { %s2062_s13 = sadd.s32 4294967295, %s2034_s12   ;;  %p1459_p0 = scmp.ge.s32.totalorder %s2034_s12, 1  ;;  %s2034_s12 = sphi %s2056_s12, %s14_s12  }
   0x2   : > { %p141_p1 = scmp.lt.s32.totalorder %s2034_s12, 3 }
   0x4   : > { %p142_p2 = pnand %p1459_p0, %p141_p1 }
   0x5   : > { %s1460_s16 = sshll.u32 (!%p142_p2), %s2062_s13, 6  ;;  %p181_p4 = scmp.lt.s32.totalorder (!%p142_p2), %s2062_s13, 1 }
   0x6   : > { %145 = sbr.rel (%p142_p2) target bundleno = 376 (0x178), region = 28  ;;  %p170_p3 = scmp.lt.s32.totalorder (!%p142_p2), %s1460_s16, 127 }
   0xb   : > { %v1990_v0 = vld [vmem:[%s2399_s1 + $0x28] sm:$0xff]   ;;  %v1991_v1 = vld [vmem:[%s2399_s1 + $0x20] sm:$0xff]   ;;  %s2403_s16 = smov (!%p170_p3, %s1460_s16), 127  ;;  %v1992_v2 = vld [vmem:[%s2399_s1 + $0x18] sm:$0xff]   ;;  %vm458_vm0 = vcmask 785408   ;;  %s2405_s13 = smov (!%p181_p4, %s2062_s13), 1 }
   0xc   : > { %1894 = vmatprep.subr.bf16.mxu0 %v1990_v0  ;;  %1970 = vmatprep.subr.bf16.mxu1 %v1990_v0  ;;  %s1461_s21 = sshll.u32 %s2403_s16, 2  ;;  %v1993_v4 = vld [vmem:[%s2399_s1 + $0x10] sm:$0xff]   ;;  %v1994_v5 = vld [vmem:[%s2399_s1 + $0x8] sm:$0xff]   ;;  %v1995_v6 = vld [vmem:[%s2399_s1] sm:$0xff]   ;;  %s1464_s7 = sshll.u32 %s2405_s13, 1 }
   0xd   : > { %1895 = vmatpush3.bf16.msra.mxu0 %v1990_v0  ;;  %1976 = vmatpush3.bf16.msra.mxu1 %v1990_v0  ;;  %s2084_s24 = scalar_lea.vmem %s2398_s0, %s1461_s21  ;;  %s2168_s6 = scalar_lea.vmem %s2400_s2, %s1461_s21 }
   0xe   : > { %1896 = vmatprep.subr.bf16.mxu0 %v1991_v1  ;;  %1971 = vmatprep.subr.bf16.mxu1 %v1991_v1  ;;  %v1996_v3 = vld [vmem:[%s2084_s24] sm:$0xff]   ;;  %v1997_v7 = vld [vmem:[%s2084_s24 + $0x8] sm:$0xff]   ;;  %v1998_v8 = vld [vmem:[%s2084_s24 + $0x10] sm:$0xff]   ;;  %s184_s10 = scalar_lea.vmem %s2401_s3, %s1464_s7 }
   0xf   : > { %1906 = vmatprep.mubr.msk.bf16.mxu0 %vm458_vm0, %v1996_v3  ;;  %v2012_v9 = vld [vmem:[%s2084_s24 + $0x80] sm:$0xff]   ;;  %v2013_v10 = vld [vmem:[%s2084_s24 + $0x88] sm:$0xff]   ;;  %v2014_v11 = vld [vmem:[%s2084_s24 + $0x90] sm:$0xff]  }
  0x10   : > { %1938 = vmatprep.mubr.msk.bf16.mxu1 %vm458_vm0, %v2012_v9  ;;  %v1999_v12 = vld [vmem:[%s2084_s24 + $0x18] sm:$0xff]   ;;  %v2000_v13 = vld [vmem:[%s2084_s24 + $0x20] sm:$0xff]   ;;  %v2001_v16 = vld [vmem:[%s2084_s24 + $0x28] sm:$0xff]  }
  0x11   : > { %1897 = vmatpush3.bf16.msra.mxu0 %v1991_v1  ;;  %1977 = vmatpush3.bf16.msra.mxu1 %v1991_v1  ;;  %v2015_v14 = vld [vmem:[%s2084_s24 + $0x98] sm:$0xff]   ;;  %v2016_v15 = vld [vmem:[%s2084_s24 + $0xa0] sm:$0xff]   ;;  %v2017_v17 = vld [vmem:[%s2084_s24 + $0xa8] sm:$0xff]  }
  0x12   : > { %1898 = vmatprep.subr.bf16.mxu0 %v1992_v2  ;;  %1972 = vmatprep.subr.bf16.mxu1 %v1992_v2  ;;  %v2002_v18 = vld [vmem:[%s2084_s24 + $0x30] sm:$0xff]   ;;  %v2003_v20 = vld [vmem:[%s2084_s24 + $0x38] sm:$0xff]   ;;  %v2004_v22 = vld [vmem:[%s2084_s24 + $0x40] sm:$0xff]  }
  0x13   : > { %v2018_v19 = vld [vmem:[%s2084_s24 + $0xb0] sm:$0xff]   ;;  %v2019_v21 = vld [vmem:[%s2084_s24 + $0xb8] sm:$0xff]   ;;  %v2020_v23 = vld [vmem:[%s2084_s24 + $0xc0] sm:$0xff]  }
  0x14   : > { %v2005_v24 = vld [vmem:[%s2084_s24 + $0x48] sm:$0xff]   ;;  %v2006_v26 = vld [vmem:[%s2084_s24 + $0x50] sm:$0xff]   ;;  %v2007_v28 = vld [vmem:[%s2084_s24 + $0x58] sm:$0xff]  }
  0x15   : > { %1899 = vmatpush3.bf16.msra.mxu0 %v1992_v2  ;;  %1978 = vmatpush3.bf16.msra.mxu1 %v1992_v2  ;;  %v2021_v25 = vld [vmem:[%s2084_s24 + $0xc8] sm:$0xff]   ;;  %v2022_v27 = vld [vmem:[%s2084_s24 + $0xd0] sm:$0xff]   ;;  %v2023_v29 = vld [vmem:[%s2084_s24 + $0xd8] sm:$0xff]  }
  0x16   : > { %1900 = vmatprep.subr.bf16.mxu0 %v1993_v4  ;;  %1973 = vmatprep.subr.bf16.mxu1 %v1993_v4  ;;  %v2008_v30 = vld [vmem:[%s2084_s24 + $0x60] sm:$0xff]   ;;  %v2009_v32 = vld [vmem:[%s2084_s24 + $0x68] sm:$0xff]   ;;  %v2010_v34 = vld [vmem:[%s2084_s24 + $0x70] sm:$0xff]  }
  0x17   : > { %v2024_v31 = vld [vmem:[%s2084_s24 + $0xe0] sm:$0xff]   ;;  %v2025_v33 = vld [vmem:[%s2084_s24 + $0xe8] sm:$0xff]   ;;  %v2026_v35 = vld [vmem:[%s2084_s24 + $0xf0] sm:$0xff]  }
  0x18   : > { %v2011_v36 = vld [vmem:[%s2084_s24 + $0x78] sm:$0xff]  }
  0x19   : > { %1901 = vmatpush3.bf16.msra.mxu0 %v1993_v4  ;;  %1979 = vmatpush3.bf16.msra.mxu1 %v1993_v4  ;;  %v2027_v37 = vld [vmem:[%s2084_s24 + $0xf8] sm:$0xff]  }
  0x1a   : > { %1902 = vmatprep.subr.bf16.mxu0 %v1994_v5  ;;  %1974 = vmatprep.subr.bf16.mxu1 %v1994_v5 }
  0x1d   : > { %1903 = vmatpush3.bf16.msra.mxu0 %v1994_v5  ;;  %1980 = vmatpush3.bf16.msra.mxu1 %v1994_v5 }
  0x1e   : > { %1904 = vmatprep.subr.bf16.mxu0 %v1995_v6  ;;  %1975 = vmatprep.subr.bf16.mxu1 %v1995_v6 }
  0x21   : > { %1905 = vmatpush3.bf16.msra.mxu0 %v1995_v6  ;;  %1981 = vmatpush3.bf16.msra.mxu1 %v1995_v6 }
  0x24   : > { %1907 = vmatmul.mubr.msk.bf16.vlgmr.msra.gmra.mxu0 %vm458_vm0, %v1997_v7  ;;  %1939 = vmatmul.mubr.msk.bf16.vlgmr.msra.gmra.mxu1 %vm458_vm0, %v2013_v10 }
  0x25   : > { %1910 = vmatprep.mubr.msk.bf16.mxu0 %vm458_vm0, %v1998_v8  ;;  %1942 = vmatprep.mubr.msk.bf16.mxu1 %vm458_vm0, %v2014_v11 }
  0x2c   : > { %1911 = vmatmul.mubr.msk.bf16.gmra.mxu0 %vm458_vm0, %v1999_v12  ;;  %1943 = vmatmul.mubr.msk.bf16.gmra.mxu1 %vm458_vm0, %v2015_v14 }
  0x2d   : > { %1914 = vmatprep.mubr.msk.bf16.mxu0 %vm458_vm0, %v2000_v13  ;;  %1946 = vmatprep.mubr.msk.bf16.mxu1 %vm458_vm0, %v2016_v15 }
  0x34   : > { %1915 = vmatmul.mubr.msk.bf16.gmra.mxu0 %vm458_vm0, %v2001_v16  ;;  %1947 = vmatmul.mubr.msk.bf16.gmra.mxu1 %vm458_vm0, %v2017_v17 }
  0x35   : > { %1918 = vmatprep.mubr.msk.bf16.mxu0 %vm458_vm0, %v2002_v18  ;;  %1950 = vmatprep.mubr.msk.bf16.mxu1 %vm458_vm0, %v2018_v19 }
  0x3c   : > { %1919 = vmatmul.mubr.msk.bf16.gmra.mxu0 %vm458_vm0, %v2003_v20  ;;  %1951 = vmatmul.mubr.msk.bf16.gmra.mxu1 %vm458_vm0, %v2019_v21 }
  0x3d   : > { %1922 = vmatprep.mubr.msk.bf16.mxu0 %vm458_vm0, %v2004_v22  ;;  %1954 = vmatprep.mubr.msk.bf16.mxu1 %vm458_vm0, %v2020_v23 }
  0x44   : > { %1923 = vmatmul.mubr.msk.bf16.gmra.mxu0 %vm458_vm0, %v2005_v24  ;;  %1955 = vmatmul.mubr.msk.bf16.gmra.mxu1 %vm458_vm0, %v2021_v25 }
  0x45   : > { %1926 = vmatprep.mubr.msk.bf16.mxu0 %vm458_vm0, %v2006_v26  ;;  %1958 = vmatprep.mubr.msk.bf16.mxu1 %vm458_vm0, %v2022_v27 }
  0x4c   : > { %1927 = vmatmul.mubr.msk.bf16.gmra.mxu0 %vm458_vm0, %v2007_v28  ;;  %1959 = vmatmul.mubr.msk.bf16.gmra.mxu1 %vm458_vm0, %v2023_v29 }
  0x4d   : > { %1930 = vmatprep.mubr.msk.bf16.mxu0 %vm458_vm0, %v2008_v30  ;;  %1962 = vmatprep.mubr.msk.bf16.mxu1 %vm458_vm0, %v2024_v31 }
  0x54   : > { %1931 = vmatmul.mubr.msk.bf16.gmra.mxu0 %vm458_vm0, %v2009_v32  ;;  %1963 = vmatmul.mubr.msk.bf16.gmra.mxu1 %vm458_vm0, %v2025_v33 }
  0x55   : > { %1934 = vmatprep.mubr.msk.bf16.mxu0 %vm458_vm0, %v2010_v34  ;;  %1966 = vmatprep.mubr.msk.bf16.mxu1 %vm458_vm0, %v2026_v35 }
  0x5c   : > { %1935 = vmatmul.mubr.msk.bf16.gmra.mxu0 %vm458_vm0, %v2011_v36  ;;  %1967 = vmatmul.mubr.msk.bf16.gmra.mxu1 %vm458_vm0, %v2027_v37 }
  0xe4   : > { %v1908_v38 = vpop.f32.mrf.mxu0  ;;  %v2159_v39 = vpop.f32.mrf.mxu1 }
  0xe5   : > { %v1236_v55 = vmul.f32 %v1908_v38, %v1908_v38 }
  0xe6   : > { %v589_v40 = vpop.f32.mrf.mxu0  ;;  %v2161_v41 = vpop.f32.mrf.mxu1 }
  0xe7   : > { %v1234_v46 = vmul.f32 %v589_v40, %v589_v40 }
  0xe8   : > { %v1909_v42 = vpop.f32.mrf.mxu0  ;;  %v2170_v43 = vpop.f32.mrf.mxu1 }
  0xe9   : > { %v1673_v44 = vpack.c.bf16 %v1909_v42, %v1908_v38  ;;  %v1753_v45 = vpack.c.bf16 %v2170_v43, %v2159_v39  ;;  %v1237_v60 = vmul.f32 %v1909_v42, %v1909_v42 }
  0xea   : > { %v592_v47 = vpop.f32.mrf.mxu0  ;;  %v2174_v48 = vpop.f32.mrf.mxu1 }
  0xeb   : > { %1825 = vst [vmem:[%s2168_s6 + $0x8] sm:$0xff] %v1673_v44   ;;  %v1668_v49 = vpack.c.bf16 %v592_v47, %v589_v40  ;;  %v1164_v50 = vadd.f32 %v592_v47, %v589_v40  ;;  %v1235_v51 = vmul.f32 %v592_v47, %v592_v47  ;;  %1841 = vst [vmem:[%s2168_s6 + $0x88] sm:$0xff] %v1753_v45  }
  0xec   : > { %v1748_v52 = vpack.c.bf16 %v2174_v48, %v2161_v41  ;;  %v1912_v53 = vpop.f32.mrf.mxu0  ;;  %v2180_v54 = vpop.f32.mrf.mxu1 }
  0xed   : > { %1669 = vst [vmem:[%s2168_s6] sm:$0xff] %v1668_v49   ;;  %v1165_v56 = vadd.f32 %v1908_v38, %v1164_v50  ;;  %v1298_v57 = vadd.f32 %v1235_v51, %v1234_v46  ;;  %v1240_v15 = vmul.f32 %v1912_v53, %v1912_v53 }
  0xee   : > { %1840 = vst [vmem:[%s2168_s6 + $0x80] sm:$0xff] %v1748_v52   ;;  %v605_v58 = vpop.f32.mrf.mxu0  ;;  %v2184_v59 = vpop.f32.mrf.mxu1 }
  0xef   : > { %v1299_v61 = vadd.f32 %v1298_v57, %v1236_v55  ;;  %v1166_v62 = vadd.f32 %v1909_v42, %v1165_v56  ;;  %v1238_v2 = vmul.f32 %v605_v58, %v605_v58 }
  0xf0   : > { %v1913_v63 = vpop.f32.mrf.mxu0  ;;  %v2186_v0 = vpop.f32.mrf.mxu1 }
  0xf1   : > { %v1167_v1 = vadd.f32 %v1166_v62, %v605_v58  ;;  %v1300_v3 = vadd.f32 %v1299_v61, %v1237_v60  ;;  %v1683_v4 = vpack.c.bf16 %v1913_v63, %v1912_v53  ;;  %v1763_v6 = vpack.c.bf16 %v2186_v0, %v2180_v54 }
  0xf2   : > { %v608_v5 = vpop.f32.mrf.mxu0  ;;  %v2190_v7 = vpop.f32.mrf.mxu1  ;;  %v1241_v20 = vmul.f32 %v1913_v63, %v1913_v63 }
  0xf3   : > { %v1301_v8 = vadd.f32 %v1300_v3, %v1238_v2  ;;  %1827 = vst [vmem:[%s2168_s6 + $0x18] sm:$0xff] %v1683_v4   ;;  %v1678_v9 = vpack.c.bf16 %v608_v5, %v605_v58  ;;  %v1168_v10 = vadd.f32 %v1167_v1, %v608_v5  ;;  %v1239_v11 = vmul.f32 %v608_v5, %v608_v5 }
  0xf4   : > { %v1916_v12 = vpop.f32.mrf.mxu0  ;;  %1843 = vst [vmem:[%s2168_s6 + $0x98] sm:$0xff] %v1763_v6   ;;  %v1758_v13 = vpack.c.bf16 %v2190_v7, %v2184_v59  ;;  %v2196_v14 = vpop.f32.mrf.mxu1 }
  0xf5   : > { %1826 = vst [vmem:[%s2168_s6 + $0x10] sm:$0xff] %v1678_v9   ;;  %v1169_v16 = vadd.f32 %v1912_v53, %v1168_v10  ;;  %v1302_v17 = vadd.f32 %v1301_v8, %v1239_v11  ;;  %v1244_v40 = vmul.f32 %v1916_v12, %v1916_v12 }
  0xf6   : > { %v621_v18 = vpop.f32.mrf.mxu0  ;;  %1842 = vst [vmem:[%s2168_s6 + $0x90] sm:$0xff] %v1758_v13   ;;  %v2200_v19 = vpop.f32.mrf.mxu1 }
  0xf7   : > { %v1303_v21 = vadd.f32 %v1302_v17, %v1240_v15  ;;  %v1170_v22 = vadd.f32 %v1913_v63, %v1169_v16  ;;  %v1242_v26 = vmul.f32 %v621_v18, %v621_v18 }
  0xf8   : > { %v1917_v23 = vpop.f32.mrf.mxu0  ;;  %v2202_v24 = vpop.f32.mrf.mxu1 }
  0xf9   : > { %v1171_v25 = vadd.f32 %v1170_v22, %v621_v18  ;;  %v1304_v27 = vadd.f32 %v1303_v21, %v1241_v20  ;;  %v1693_v28 = vpack.c.bf16 %v1917_v23, %v1916_v12  ;;  %v1773_v30 = vpack.c.bf16 %v2202_v24, %v2196_v14 }
  0xfa   : > { %v624_v29 = vpop.f32.mrf.mxu0  ;;  %v2206_v31 = vpop.f32.mrf.mxu1  ;;  %v1245_v47 = vmul.f32 %v1917_v23, %v1917_v23 }
  0xfb   : > { %v1305_v32 = vadd.f32 %v1304_v27, %v1242_v26  ;;  %1829 = vst [vmem:[%s2168_s6 + $0x28] sm:$0xff] %v1693_v28   ;;  %v1688_v33 = vpack.c.bf16 %v624_v29, %v621_v18  ;;  %v1172_v34 = vadd.f32 %v1171_v25, %v624_v29  ;;  %v1243_v35 = vmul.f32 %v624_v29, %v624_v29 }
  0xfc   : > { %v1920_v36 = vpop.f32.mrf.mxu0  ;;  %1845 = vst [vmem:[%s2168_s6 + $0xa8] sm:$0xff] %v1773_v30   ;;  %v1768_v37 = vpack.c.bf16 %v2206_v31, %v2200_v19  ;;  %v2212_v38 = vpop.f32.mrf.mxu1 }
  0xfd   : > { %1828 = vst [vmem:[%s2168_s6 + $0x20] sm:$0xff] %v1688_v33   ;;  %v1173_v42 = vadd.f32 %v1916_v12, %v1172_v34  ;;  %v1306_v44 = vadd.f32 %v1305_v32, %v1243_v35  ;;  %v1248_v6 = vmul.f32 %v1920_v36, %v1920_v36 }
  0xfe   : > { %v637_v45 = vpop.f32.mrf.mxu0  ;;  %1844 = vst [vmem:[%s2168_s6 + $0xa0] sm:$0xff] %v1768_v37   ;;  %v2216_v46 = vpop.f32.mrf.mxu1 }
  0xff   : > { %v1307_v49 = vadd.f32 %v1306_v44, %v1244_v40  ;;  %v1174_v50 = vadd.f32 %v1917_v23, %v1173_v42  ;;  %v1246_v55 = vmul.f32 %v637_v45, %v637_v45 }
 0x100   : > { %v1921_v51 = vpop.f32.mrf.mxu0  ;;  %v2218_v52 = vpop.f32.mrf.mxu1 }
 0x101   : > { %v1175_v53 = vadd.f32 %v1174_v50, %v637_v45  ;;  %v1308_v56 = vadd.f32 %v1307_v49, %v1245_v47  ;;  %v1703_v57 = vpack.c.bf16 %v1921_v51, %v1920_v36  ;;  %v1783_v60 = vpack.c.bf16 %v2218_v52, %v2212_v38 }
 0x102   : > { %v640_v58 = vpop.f32.mrf.mxu0  ;;  %v2222_v61 = vpop.f32.mrf.mxu1  ;;  %v1249_v12 = vmul.f32 %v1921_v51, %v1921_v51 }
 0x103   : > { %v1309_v62 = vadd.f32 %v1308_v56, %v1246_v55  ;;  %1831 = vst [vmem:[%s2168_s6 + $0x38] sm:$0xff] %v1703_v57   ;;  %v1698_v63 = vpack.c.bf16 %v640_v58, %v637_v45  ;;  %v1176_v1 = vadd.f32 %v1175_v53, %v640_v58  ;;  %v1247_v2 = vmul.f32 %v640_v58, %v640_v58 }
 0x104   : > { %v1924_v3 = vpop.f32.mrf.mxu0  ;;  %1847 = vst [vmem:[%s2168_s6 + $0xb8] sm:$0xff] %v1783_v60   ;;  %v1778_v4 = vpack.c.bf16 %v2222_v61, %v2216_v46  ;;  %v2228_v5 = vpop.f32.mrf.mxu1 }
 0x105   : > { %1830 = vst [vmem:[%s2168_s6 + $0x30] sm:$0xff] %v1698_v63   ;;  %v1177_v8 = vadd.f32 %v1920_v36, %v1176_v1  ;;  %v1310_v9 = vadd.f32 %v1309_v62, %v1247_v2  ;;  %v1252_v35 = vmul.f32 %v1924_v3, %v1924_v3 }
 0x106   : > { %v653_v10 = vpop.f32.mrf.mxu0  ;;  %1846 = vst [vmem:[%s2168_s6 + $0xb0] sm:$0xff] %v1778_v4   ;;  %v2232_v11 = vpop.f32.mrf.mxu1 }
 0x107   : > { %v1311_v13 = vadd.f32 %v1310_v9, %v1248_v6  ;;  %v1178_v15 = vadd.f32 %v1921_v51, %v1177_v8  ;;  %v1250_v20 = vmul.f32 %v653_v10, %v653_v10 }
 0x108   : > { %v1925_v16 = vpop.f32.mrf.mxu0  ;;  %v2234_v17 = vpop.f32.mrf.mxu1 }
 0x109   : > { %v1179_v18 = vadd.f32 %v1178_v15, %v653_v10  ;;  %v1312_v21 = vadd.f32 %v1311_v13, %v1249_v12  ;;  %v1713_v22 = vpack.c.bf16 %v1925_v16, %v1924_v3  ;;  %v1793_v25 = vpack.c.bf16 %v2234_v17, %v2228_v5 }
 0x10a   : > { %v656_v23 = vpop.f32.mrf.mxu0  ;;  %v2238_v26 = vpop.f32.mrf.mxu1  ;;  %v1253_v44 = vmul.f32 %v1925_v16, %v1925_v16 }
 0x10b   : > { %v1313_v27 = vadd.f32 %v1312_v21, %v1250_v20  ;;  %1833 = vst [vmem:[%s2168_s6 + $0x48] sm:$0xff] %v1713_v22   ;;  %v1708_v28 = vpack.c.bf16 %v656_v23, %v653_v10  ;;  %v1180_v29 = vadd.f32 %v1179_v18, %v656_v23  ;;  %v1251_v30 = vmul.f32 %v656_v23, %v656_v23 }
 0x10c   : > { %v1928_v32 = vpop.f32.mrf.mxu0  ;;  %1849 = vst [vmem:[%s2168_s6 + $0xc8] sm:$0xff] %v1793_v25   ;;  %v1788_v33 = vpack.c.bf16 %v2238_v26, %v2232_v11  ;;  %v2244_v34 = vpop.f32.mrf.mxu1 }
 0x10d   : > { %1832 = vst [vmem:[%s2168_s6 + $0x40] sm:$0xff] %v1708_v28   ;;  %v1181_v36 = vadd.f32 %v1924_v3, %v1180_v29  ;;  %v1314_v37 = vadd.f32 %v1313_v27, %v1251_v30  ;;  %v1256_v8 = vmul.f32 %v1928_v32, %v1928_v32 }
 0x10e   : > { %v669_v40 = vpop.f32.mrf.mxu0  ;;  %1848 = vst [vmem:[%s2168_s6 + $0xc0] sm:$0xff] %v1788_v33   ;;  %v2248_v42 = vpop.f32.mrf.mxu1 }
 0x10f   : > { %v1315_v45 = vadd.f32 %v1314_v37, %v1252_v35  ;;  %v1182_v47 = vadd.f32 %v1925_v16, %v1181_v36  ;;  %v1254_v53 = vmul.f32 %v669_v40, %v669_v40 }
 0x110   : > { %v1929_v49 = vpop.f32.mrf.mxu0  ;;  %v2250_v50 = vpop.f32.mrf.mxu1 }
 0x111   : > { %v1183_v51 = vadd.f32 %v1182_v47, %v669_v40  ;;  %v1316_v55 = vadd.f32 %v1315_v45, %v1253_v44  ;;  %v1723_v56 = vpack.c.bf16 %v1929_v49, %v1928_v32  ;;  %v1803_v58 = vpack.c.bf16 %v2250_v50, %v2244_v34 }
 0x112   : > { %v672_v57 = vpop.f32.mrf.mxu0  ;;  %v2254_v60 = vpop.f32.mrf.mxu1  ;;  %v1257_v15 = vmul.f32 %v1929_v49, %v1929_v49 }
 0x113   : > { %v1317_v62 = vadd.f32 %v1316_v55, %v1254_v53  ;;  %1835 = vst [vmem:[%s2168_s6 + $0x58] sm:$0xff] %v1723_v56   ;;  %v1718_v63 = vpack.c.bf16 %v672_v57, %v669_v40  ;;  %v1184_v1 = vadd.f32 %v1183_v51, %v672_v57  ;;  %v1255_v2 = vmul.f32 %v672_v57, %v672_v57 }
 0x114   : > { %v1932_v3 = vpop.f32.mrf.mxu0  ;;  %1851 = vst [vmem:[%s2168_s6 + $0xd8] sm:$0xff] %v1803_v58   ;;  %v1798_v4 = vpack.c.bf16 %v2254_v60, %v2248_v42  ;;  %v2260_v6 = vpop.f32.mrf.mxu1 }
 0x115   : > { %1834 = vst [vmem:[%s2168_s6 + $0x50] sm:$0xff] %v1718_v63   ;;  %v1185_v9 = vadd.f32 %v1928_v32, %v1184_v1  ;;  %v1318_v10 = vadd.f32 %v1317_v62, %v1255_v2  ;;  %v1260_v45 = vmul.f32 %v1932_v3, %v1932_v3 }
 0x116   : > { %v685_v12 = vpop.f32.mrf.mxu0  ;;  %1850 = vst [vmem:[%s2168_s6 + $0xd0] sm:$0xff] %v1798_v4   ;;  %v2264_v13 = vpop.f32.mrf.mxu1 }
 0x117   : > { %v1319_v16 = vadd.f32 %v1318_v10, %v1256_v8  ;;  %v1186_v18 = vadd.f32 %v1929_v49, %v1185_v9  ;;  %v1258_v23 = vmul.f32 %v685_v12, %v685_v12 }
 0x118   : > { %v1933_v20 = vpop.f32.mrf.mxu0  ;;  %v2266_v21 = vpop.f32.mrf.mxu1 }
 0x119   : > { %v1187_v22 = vadd.f32 %v1186_v18, %v685_v12  ;;  %v1320_v25 = vadd.f32 %v1319_v16, %v1257_v15  ;;  %v1733_v27 = vpack.c.bf16 %v1933_v20, %v1932_v3  ;;  %v1813_v29 = vpack.c.bf16 %v2266_v21, %v2260_v6 }
 0x11a   : > { %v688_v28 = vpop.f32.mrf.mxu0  ;;  %v2270_v30 = vpop.f32.mrf.mxu1  ;;  %v1261_v55 = vmul.f32 %v1933_v20, %v1933_v20 }
 0x11b   : > { %v1321_v32 = vadd.f32 %v1320_v25, %v1258_v23  ;;  %1837 = vst [vmem:[%s2168_s6 + $0x68] sm:$0xff] %v1733_v27   ;;  %v1728_v33 = vpack.c.bf16 %v688_v28, %v685_v12  ;;  %v1188_v35 = vadd.f32 %v1187_v22, %v688_v28  ;;  %v1259_v36 = vmul.f32 %v688_v28, %v688_v28 }
 0x11c   : > { %v1936_v37 = vpop.f32.mrf.mxu0  ;;  %1853 = vst [vmem:[%s2168_s6 + $0xe8] sm:$0xff] %v1813_v29   ;;  %v1808_v40 = vpack.c.bf16 %v2270_v30, %v2264_v13  ;;  %v2276_v44 = vpop.f32.mrf.mxu1  ;;  %v1266_v29 = vmul.f32 %v2161_v41, %v2161_v41 }
 0x11d   : > { %1836 = vst [vmem:[%s2168_s6 + $0x60] sm:$0xff] %v1728_v33   ;;  %v1189_v47 = vadd.f32 %v1932_v3, %v1188_v35  ;;  %v1322_v49 = vadd.f32 %v1321_v32, %v1259_v36  ;;  %v1267_v36 = vmul.f32 %v2174_v48, %v2174_v48 }
 0x11e   : > { %v701_v51 = vpop.f32.mrf.mxu0  ;;  %1852 = vst [vmem:[%s2168_s6 + $0xe0] sm:$0xff] %v1808_v40   ;;  %v2280_v53 = vpop.f32.mrf.mxu1 }
 0x11f   : > { %v1323_v56 = vadd.f32 %v1322_v49, %v1260_v45  ;;  %v1190_v57 = vadd.f32 %v1933_v20, %v1189_v47  ;;  %v1262_v1 = vmul.f32 %v701_v51, %v701_v51  ;;  %v1264_v20 = vmul.f32 %v1936_v37, %v1936_v37 }
 0x120   : > { %v1937_v58 = vpop.f32.mrf.mxu0  ;;  %v2282_v62 = vpop.f32.mrf.mxu1  ;;  %v1269_v49 = vmul.f32 %v2170_v43, %v2170_v43 }
 0x121   : > { %v1191_v63 = vadd.f32 %v1190_v57, %v701_v51  ;;  %v1324_v2 = vadd.f32 %v1323_v56, %v1261_v55  ;;  %v1743_v4 = vpack.c.bf16 %v1937_v58, %v1936_v37  ;;  %v1823_v8 = vpack.c.bf16 %v2282_v62, %v2276_v44 }
 0x122   : > { %v704_v3 = vpop.f32.mrf.mxu0  ;;  %v2286_v9 = vpop.f32.mrf.mxu1  ;;  %v1265_v25 = vmul.f32 %v1937_v58, %v1937_v58  ;;  %v1270_v56 = vmul.f32 %v2184_v59, %v2184_v59 }
 0x123   : > { %v1325_v10 = vadd.f32 %v1324_v2, %v1262_v1  ;;  %1839 = vst [vmem:[%s2168_s6 + $0x78] sm:$0xff] %v1743_v4   ;;  %v1738_v12 = vpack.c.bf16 %v704_v3, %v701_v51  ;;  %v1192_v15 = vadd.f32 %v1191_v63, %v704_v3  ;;  %v1263_v16 = vmul.f32 %v704_v3, %v704_v3 }
 0x124   : > { %1855 = vst [vmem:[%s2168_s6 + $0xf8] sm:$0xff] %v1823_v8   ;;  %v1818_v18 = vpack.c.bf16 %v2286_v9, %v2280_v53  ;;  %v1271_v63 = vmul.f32 %v2190_v7, %v2190_v7  ;;  %v1274_v8 = vmul.f32 %v2200_v19, %v2200_v19 }
 0x125   : > { %1838 = vst [vmem:[%s2168_s6 + $0x70] sm:$0xff] %v1738_v12   ;;  %v1193_v22 = vadd.f32 %v1936_v37, %v1192_v15  ;;  %v1326_v23 = vadd.f32 %v1325_v10, %v1263_v16  ;;  %v1268_v37 = vmul.f32 %v2159_v39, %v2159_v39  ;;  %v1275_v15 = vmul.f32 %v2206_v31, %v2206_v31 }
 0x126   : > { %1854 = vst [vmem:[%s2168_s6 + $0xf0] sm:$0xff] %v1818_v18  }
 0x127   : > { %v1194_v27 = vadd.f32 %v1937_v58, %v1193_v22  ;;  %v1327_v28 = vadd.f32 %v1326_v23, %v1264_v20  ;;  %v1278_v23 = vmul.f32 %v2216_v46, %v2216_v46 }
 0x129   : > { %v1328_v32 = vadd.f32 %v1327_v28, %v1265_v25  ;;  %v1195_v33 = vadd.f32 %v1194_v27, %v2161_v41  ;;  %v1279_v28 = vmul.f32 %v2222_v61, %v2222_v61 }
 0x12b   : > { %v1196_v35 = vadd.f32 %v1195_v33, %v2174_v48  ;;  %v1329_v40 = vadd.f32 %v1328_v32, %v1266_v29 }
 0x12d   : > { %v1197_v45 = vadd.f32 %v2159_v39, %v1196_v35  ;;  %v1330_v47 = vadd.f32 %v1329_v40, %v1267_v36  ;;  %v1272_v39 = vmul.f32 %v2180_v54, %v2180_v54  ;;  %v1282_v36 = vmul.f32 %v2232_v11, %v2232_v11 }
 0x12f   : > { %v1331_v51 = vadd.f32 %v1330_v47, %v1268_v37  ;;  %v1198_v55 = vadd.f32 %v2170_v43, %v1197_v45  ;;  %v1273_v43 = vmul.f32 %v2186_v0, %v2186_v0  ;;  %v1283_v45 = vmul.f32 %v2238_v26, %v2238_v26 }
 0x131   : > { %v1199_v41 = vadd.f32 %v1198_v55, %v2184_v59  ;;  %v1332_v57 = vadd.f32 %v1331_v51, %v1269_v49 }
 0x133   : > { %v1333_v48 = vadd.f32 %v1332_v57, %v1270_v56  ;;  %v1200_v58 = vadd.f32 %v1199_v41, %v2190_v7  ;;  %v1286_v41 = vmul.f32 %v2248_v42, %v2248_v42 }
 0x135   : > { %v1201_v1 = vadd.f32 %v2180_v54, %v1200_v58  ;;  %v1334_v2 = vadd.f32 %v1333_v48, %v1271_v63  ;;  %v1276_v54 = vmul.f32 %v2196_v14, %v2196_v14  ;;  %v1287_v48 = vmul.f32 %v2254_v60, %v2254_v60 }
 0x137   : > { %v1335_v4 = vadd.f32 %v1334_v2, %v1272_v39  ;;  %v1202_v3 = vadd.f32 %v2186_v0, %v1201_v1  ;;  %v1277_v0 = vmul.f32 %v2202_v24, %v2202_v24  ;;  %v1290_v2 = vmul.f32 %v2264_v13, %v2264_v13 }
 0x139   : > { %v1203_v59 = vadd.f32 %v1202_v3, %v2200_v19  ;;  %v1336_v10 = vadd.f32 %v1335_v4, %v1273_v43  ;;  %v1291_v3 = vmul.f32 %v2270_v30, %v2270_v30 }
 0x13b   : > { %v1337_v12 = vadd.f32 %v1336_v10, %v1274_v8  ;;  %v1204_v7 = vadd.f32 %v1203_v59, %v2206_v31 }
 0x13d   : > { %v1205_v16 = vadd.f32 %v2196_v14, %v1204_v7  ;;  %v1338_v18 = vadd.f32 %v1337_v12, %v1275_v15  ;;  %v1280_v14 = vmul.f32 %v2212_v38, %v2212_v38  ;;  %v1294_v7 = vmul.f32 %v2280_v53, %v2280_v53 }
 0x13f   : > { %v1339_v20 = vadd.f32 %v1338_v18, %v1276_v54  ;;  %v1206_v22 = vadd.f32 %v2202_v24, %v1205_v16  ;;  %v1281_v24 = vmul.f32 %v2218_v52, %v2218_v52  ;;  %v1296_v16 = vmul.f32 %v2276_v44, %v2276_v44 }
 0x141   : > { %v1207_v19 = vadd.f32 %v1206_v22, %v2216_v46  ;;  %v1340_v25 = vadd.f32 %v1339_v20, %v1277_v0 }
 0x143   : > { %v1341_v27 = vadd.f32 %v1340_v25, %v1278_v23  ;;  %v1208_v31 = vadd.f32 %v1207_v19, %v2222_v61 }
 0x145   : > { %v1209_v29 = vadd.f32 %v2212_v38, %v1208_v31  ;;  %v1342_v32 = vadd.f32 %v1341_v27, %v1279_v28  ;;  %v1284_v38 = vmul.f32 %v2228_v5, %v2228_v5 }
 0x147   : > { %v1343_v33 = vadd.f32 %v1342_v32, %v1280_v14  ;;  %v1210_v35 = vadd.f32 %v2218_v52, %v1209_v29  ;;  %v1285_v52 = vmul.f32 %v2234_v17, %v2234_v17 }
 0x149   : > { %v1211_v46 = vadd.f32 %v1210_v35, %v2232_v11  ;;  %v1344_v40 = vadd.f32 %v1343_v33, %v1281_v24 }
 0x14b   : > { %v1345_v37 = vadd.f32 %v1344_v40, %v1282_v36  ;;  %v1212_v61 = vadd.f32 %v1211_v46, %v2238_v26 }
 0x14d   : > { %v1213_v47 = vadd.f32 %v2228_v5, %v1212_v61  ;;  %v1346_v49 = vadd.f32 %v1345_v37, %v1283_v45  ;;  %v1288_v5 = vmul.f32 %v2244_v34, %v2244_v34 }
 0x14f   : > { %v1347_v51 = vadd.f32 %v1346_v49, %v1284_v38  ;;  %v1214_v55 = vadd.f32 %v2234_v17, %v1213_v47  ;;  %v1289_v17 = vmul.f32 %v2250_v50, %v2250_v50 }
 0x151   : > { %v1215_v11 = vadd.f32 %v1214_v55, %v2248_v42  ;;  %v1348_v56 = vadd.f32 %v1347_v51, %v1285_v52 }
 0x153   : > { %v1349_v57 = vadd.f32 %v1348_v56, %v1286_v41  ;;  %v1216_v26 = vadd.f32 %v1215_v11, %v2254_v60 }
 0x155   : > { %v1217_v58 = vadd.f32 %v2244_v34, %v1216_v26  ;;  %v1350_v63 = vadd.f32 %v1349_v57, %v1287_v48  ;;  %v1292_v34 = vmul.f32 %v2260_v6, %v2260_v6 }
 0x157   : > { %v1351_v39 = vadd.f32 %v1350_v63, %v1288_v5  ;;  %v1218_v1 = vadd.f32 %v2250_v50, %v1217_v58  ;;  %v1293_v50 = vmul.f32 %v2266_v21, %v2266_v21 }
 0x159   : > { %v1219_v42 = vadd.f32 %v1218_v1, %v2264_v13  ;;  %v1352_v43 = vadd.f32 %v1351_v39, %v1289_v17 }
 0x15b   : > { %v1353_v4 = vadd.f32 %v1352_v43, %v1290_v2  ;;  %v1220_v60 = vadd.f32 %v1219_v42, %v2270_v30 }
 0x15d   : > { %v1221_v59 = vadd.f32 %v2260_v6, %v1220_v60  ;;  %v1354_v8 = vadd.f32 %v1353_v4, %v1291_v3  ;;  %v1295_v6 = vmul.f32 %v2286_v9, %v2286_v9 }
 0x15f   : > { %v1355_v10 = vadd.f32 %v1354_v8, %v1292_v34  ;;  %v1222_v13 = vadd.f32 %v2266_v21, %v1221_v59  ;;  %v1297_v21 = vmul.f32 %v2282_v62, %v2282_v62 }
 0x161   : > { %v1223_v12 = vadd.f32 %v1222_v13, %v2280_v53  ;;  %v1356_v30 = vadd.f32 %v1355_v10, %v1293_v50 }
 0x163   : > { %v1357_v15 = vadd.f32 %v1356_v30, %v1294_v7  ;;  %v1224_v54 = vadd.f32 %v1223_v12, %v2286_v9 }
 0x165   : > { %v1225_v18 = vadd.f32 %v2276_v44, %v1224_v54  ;;  %v1358_v0 = vadd.f32 %v1357_v15, %v1295_v6 }
 0x167   : > { %v1226_v20 = vadd.f32 %v2282_v62, %v1225_v18  ;;  %v1359_v53 = vadd.f32 %v1358_v0, %v1296_v16 }
 0x169   : > { %v1227_v22 = vrot.slane %v1226_v20, 4  ;;  %v1360_v19 = vadd.f32 %v1359_v53, %v1297_v21 }
 0x16b   : > { %v1228_v23 = vadd.f32 %v1227_v22, %v1226_v20  ;;  %v1361_v25 = vrot.slane %v1360_v19, 4 }
 0x16d   : > { %v1229_v27 = vrot.slane %v1228_v23, 2  ;;  %v1362_v9 = vadd.f32 %v1361_v25, %v1360_v19 }
 0x16f   : > { %v1230_v31 = vadd.f32 %v1229_v27, %v1228_v23  ;;  %v1363_v28 = vrot.slane %v1362_v9, 2 }
 0x171   : > { %v1231_v14 = vrot.slane %v1230_v31, 1  ;;  %v1364_v44 = vadd.f32 %v1363_v28, %v1362_v9 }
 0x173   : > { %v1232_v29 = vadd.f32 %v1231_v14, %v1230_v31  ;;  %v1365_v32 = vrot.slane %v1364_v44, 1 }
 0x175   : > { %1233 = vst [vmem:[%s184_s10] sm:$0x1] %v1232_v29  ;;  %v1366_v62 = vadd.f32 %v1365_v32, %v1364_v44 }
 0x177   : > { %1367 = vst [vmem:[%s184_s10 + $0x1] sm:$0x1] %v1366_v62 }
 0x178 PF: > { %s14_s12 = sadd.s32 1, %s2034_s12  }
 0x179   : > { %p11_p5 = scmp.ge.s32.totalorder %s14_s12, 4  }
 0x17b   :  { %13 = sbr.rel (!%p11_p5) target bundleno = 1 (0x1), region = 70 }

// kernel: discriminator_forward.9
= control target key start
LH: loop header
LB: loop body
LE: loop exit
PB: predicated region body
PF: predicated region fallthrough
CT: control target
= control target key end

     0   :  { %s1411_s12 = smov 0   ;;  %s1641_s0 = inlined_call_operand.vmem [shape: bf16[1024,128], index: 0, kind: input, shape index: {}]   ;;  %s1642_s1 = inlined_call_operand.vmem [shape: f32[1,128], index: 1, kind: input, shape index: {}]   ;;  %s1643_s2 = inlined_call_operand.vmem [shape: f32[1,128], index: 2, kind: input, shape index: {}]   ;;  %s1644_s3 = inlined_call_operand.vmem [shape: bf16[1024,128], index: 3, kind: output, shape index: {}]  }
   0x1 LB: > { %s884_s13 = sadd.s32 4294967295, %s1389_s12   ;;  %p888_p0 = scmp.ge.s32.totalorder %s1389_s12, 1  ;;  %s1389_s12 = sphi %s1411_s12, %s13_s12  }
   0x2   : > { %p138_p1 = scmp.lt.s32.totalorder %s1389_s12, 3 }
   0x4   : > { %p139_p2 = pnand %p888_p0, %p138_p1 }
   0x5   : > { %s889_s14 = sshll.u32 (!%p139_p2), %s884_s13, 6 }
   0x6   : > { %142 = sbr.rel (%p139_p2) target bundleno = 93 (0x5d), region = 32  ;;  %p163_p3 = scmp.lt.s32.totalorder (!%p139_p2), %s889_s14, 127 }
   0xb   : > { %s1646_s14 = smov (!%p163_p3, %s889_s14), 127  ;;  %v1432_v0 = vld [vmem:[%s1642_s1] ss:$0 sm:$0xff] }
   0xc   : > { %s890_s15 = sshll.u32 %s1646_s14, 2  ;;  %v1441_v9 = vld [vmem:[%s1643_s2] ss:$0 sm:$0xff] }
   0xd   : > { %s1427_s18 = scalar_lea.vmem %s1641_s0, %s890_s15  ;;  %s1466_s25 = scalar_lea.vmem %s1644_s3, %s890_s15 }
   0xe   : > { %v1026_v1 = vld [vmem:[%s1427_s18] sm:$0xff]   ;;  %v1313_v2 = vld [vmem:[%s1427_s18 + $0x8] sm:$0xff]   ;;  %v1314_v3 = vld [vmem:[%s1427_s18 + $0x10] sm:$0xff]  }
   0xf   : > { %v1027_v4 = vunpack.c.l.bf16 %v1026_v1  ;;  %v1028_v5 = vunpack.c.h.bf16 %v1026_v1  ;;  %v1031_v6 = vunpack.c.l.bf16 %v1313_v2  ;;  %v1032_v7 = vunpack.c.h.bf16 %v1313_v2  ;;  %v1315_v8 = vld [vmem:[%s1427_s18 + $0x18] sm:$0xff]   ;;  %v1316_v30 = vld [vmem:[%s1427_s18 + $0x20] sm:$0xff]   ;;  %v1317_v35 = vld [vmem:[%s1427_s18 + $0x28] sm:$0xff]  }
  0x10   : > { %v1035_v10 = vunpack.c.l.bf16 %v1314_v3  ;;  %v1036_v11 = vunpack.c.h.bf16 %v1314_v3  ;;  %v1039_v12 = vunpack.c.l.bf16 %v1315_v8  ;;  %v1040_v13 = vunpack.c.h.bf16 %v1315_v8  ;;  %v1318_v40 = vld [vmem:[%s1427_s18 + $0x30] sm:$0xff]   ;;  %v1319_v45 = vld [vmem:[%s1427_s18 + $0x38] sm:$0xff]   ;;  %v1320_v3 = vld [vmem:[%s1427_s18 + $0x40] sm:$0xff]  }
  0x11   : > { %v309_v14 = vmul.f32 %v1027_v4, %v1432_v0  ;;  %v310_v15 = vmul.f32 %v1028_v5, %v1432_v0  ;;  %v311_v16 = vmul.f32 %v1031_v6, %v1432_v0  ;;  %v312_v17 = vmul.f32 %v1032_v7, %v1432_v0 }
  0x12   : > { %v313_v18 = vmul.f32 %v1035_v10, %v1432_v0  ;;  %v314_v19 = vmul.f32 %v1036_v11, %v1432_v0  ;;  %v315_v20 = vmul.f32 %v1039_v12, %v1432_v0  ;;  %v316_v21 = vmul.f32 %v1040_v13, %v1432_v0  ;;  %v1321_v13 = vld [vmem:[%s1427_s18 + $0x48] sm:$0xff]  }
  0x13   : > { %v380_v22 = vadd.f32 %v1441_v9, %v309_v14  ;;  %v381_v23 = vadd.f32 %v1441_v9, %v310_v15  ;;  %v382_v24 = vadd.f32 %v1441_v9, %v311_v16  ;;  %v383_v25 = vadd.f32 %v1441_v9, %v312_v17 }
  0x14   : > { %v384_v26 = vadd.f32 %v1441_v9, %v313_v18  ;;  %v385_v27 = vadd.f32 %v1441_v9, %v314_v19  ;;  %v386_v28 = vadd.f32 %v1441_v9, %v315_v20  ;;  %v387_v29 = vadd.f32 %v1441_v9, %v316_v21  ;;  %v1322_v18 = vld [vmem:[%s1427_s18 + $0x50] sm:$0xff]  }
  0x15   : > { %v444_v31 = vmax.f32 %v380_v22, 0.0  ;;  %v445_v32 = vmax.f32 %v381_v23, 0.0  ;;  %v446_v33 = vmax.f32 %v382_v24, 0.0  ;;  %v447_v34 = vmax.f32 %v383_v25, 0.0  ;;  %v1323_v23 = vld [vmem:[%s1427_s18 + $0x58] sm:$0xff]  }
  0x16   : > { %v448_v36 = vmax.f32 %v384_v26, 0.0  ;;  %v449_v37 = vmax.f32 %v385_v27, 0.0  ;;  %v450_v38 = vmax.f32 %v386_v28, 0.0  ;;  %v451_v39 = vmax.f32 %v387_v29, 0.0 }
  0x17   : > { %v1156_v41 = vpack.c.bf16 %v445_v32, %v444_v31  ;;  %v1161_v42 = vpack.c.bf16 %v447_v34, %v446_v33  ;;  %v1043_v43 = vunpack.c.l.bf16 %v1316_v30  ;;  %v1044_v44 = vunpack.c.h.bf16 %v1316_v30 }
  0x18   : > { %v1166_v46 = vpack.c.bf16 %v449_v37, %v448_v36  ;;  %v1171_v47 = vpack.c.bf16 %v451_v39, %v450_v38  ;;  %v1047_v48 = vunpack.c.l.bf16 %v1317_v35  ;;  %v1048_v49 = vunpack.c.h.bf16 %v1317_v35 }
  0x19   : > { %1157 = vst [vmem:[%s1466_s25] sm:$0xff] %v1156_v41   ;;  %1344 = vst [vmem:[%s1466_s25 + $0x8] sm:$0xff] %v1161_v42   ;;  %v317_v50 = vmul.f32 %v1043_v43, %v1432_v0  ;;  %v318_v51 = vmul.f32 %v1044_v44, %v1432_v0  ;;  %v1051_v52 = vunpack.c.l.bf16 %v1318_v40  ;;  %v1052_v53 = vunpack.c.h.bf16 %v1318_v40  ;;  %v1324_v40 = vld [vmem:[%s1427_s18 + $0x60] sm:$0xff]  }
  0x1a   : > { %1345 = vst [vmem:[%s1466_s25 + $0x10] sm:$0xff] %v1166_v46   ;;  %1346 = vst [vmem:[%s1466_s25 + $0x18] sm:$0xff] %v1171_v47   ;;  %v319_v54 = vmul.f32 %v1047_v48, %v1432_v0  ;;  %v320_v55 = vmul.f32 %v1048_v49, %v1432_v0  ;;  %v1055_v56 = vunpack.c.l.bf16 %v1319_v45  ;;  %v1056_v57 = vunpack.c.h.bf16 %v1319_v45 }
  0x1b   : > { %v388_v58 = vadd.f32 %v1441_v9, %v317_v50  ;;  %v389_v59 = vadd.f32 %v1441_v9, %v318_v51  ;;  %v321_v60 = vmul.f32 %v1051_v52, %v1432_v0  ;;  %v322_v61 = vmul.f32 %v1052_v53, %v1432_v0  ;;  %v1325_v53 = vld [vmem:[%s1427_s18 + $0x68] sm:$0xff]  }
  0x1c   : > { %v390_v62 = vadd.f32 %v1441_v9, %v319_v54  ;;  %v391_v63 = vadd.f32 %v1441_v9, %v320_v55  ;;  %v323_v1 = vmul.f32 %v1055_v56, %v1432_v0  ;;  %v324_v2 = vmul.f32 %v1056_v57, %v1432_v0 }
  0x1d   : > { %v452_v4 = vmax.f32 %v388_v58, 0.0  ;;  %v453_v5 = vmax.f32 %v389_v59, 0.0  ;;  %v392_v6 = vadd.f32 %v1441_v9, %v321_v60  ;;  %v393_v7 = vadd.f32 %v1441_v9, %v322_v61  ;;  %v1326_v58 = vld [vmem:[%s1427_s18 + $0x70] sm:$0xff]  }
  0x1e   : > { %v454_v8 = vmax.f32 %v390_v62, 0.0  ;;  %v455_v10 = vmax.f32 %v391_v63, 0.0  ;;  %v394_v11 = vadd.f32 %v1441_v9, %v323_v1  ;;  %v395_v12 = vadd.f32 %v1441_v9, %v324_v2  ;;  %v1327_v63 = vld [vmem:[%s1427_s18 + $0x78] sm:$0xff]  }
  0x1f   : > { %v1176_v14 = vpack.c.bf16 %v453_v5, %v452_v4  ;;  %v456_v15 = vmax.f32 %v392_v6, 0.0  ;;  %v457_v16 = vmax.f32 %v393_v7, 0.0  ;;  %v1059_v17 = vunpack.c.l.bf16 %v1320_v3 }
  0x20   : > { %v1181_v19 = vpack.c.bf16 %v455_v10, %v454_v8  ;;  %v458_v20 = vmax.f32 %v394_v11, 0.0  ;;  %v459_v21 = vmax.f32 %v395_v12, 0.0  ;;  %v1060_v22 = vunpack.c.h.bf16 %v1320_v3 }
  0x21   : > { %1347 = vst [vmem:[%s1466_s25 + $0x20] sm:$0xff] %v1176_v14   ;;  %v1186_v24 = vpack.c.bf16 %v457_v16, %v456_v15  ;;  %v325_v25 = vmul.f32 %v1059_v17, %v1432_v0  ;;  %v1063_v26 = vunpack.c.l.bf16 %v1321_v13  ;;  %v1064_v27 = vunpack.c.h.bf16 %v1321_v13  ;;  %v1328_v14 = vld [vmem:[%s1427_s18 + $0x80] sm:$0xff]  }
  0x22   : > { %1348 = vst [vmem:[%s1466_s25 + $0x28] sm:$0xff] %v1181_v19   ;;  %v1191_v28 = vpack.c.bf16 %v459_v21, %v458_v20  ;;  %v326_v29 = vmul.f32 %v1060_v22, %v1432_v0  ;;  %v1067_v30 = vunpack.c.l.bf16 %v1322_v18  ;;  %v1068_v31 = vunpack.c.h.bf16 %v1322_v18 }
  0x23   : > { %1349 = vst [vmem:[%s1466_s25 + $0x30] sm:$0xff] %v1186_v24   ;;  %v396_v32 = vadd.f32 %v1441_v9, %v325_v25  ;;  %v327_v33 = vmul.f32 %v1063_v26, %v1432_v0  ;;  %v328_v34 = vmul.f32 %v1064_v27, %v1432_v0  ;;  %v1071_v35 = vunpack.c.l.bf16 %v1323_v23 }
  0x24   : > { %1350 = vst [vmem:[%s1466_s25 + $0x38] sm:$0xff] %v1191_v28   ;;  %v397_v36 = vadd.f32 %v1441_v9, %v326_v29  ;;  %v329_v37 = vmul.f32 %v1067_v30, %v1432_v0  ;;  %v330_v38 = vmul.f32 %v1068_v31, %v1432_v0  ;;  %v1072_v39 = vunpack.c.h.bf16 %v1323_v23  ;;  %v1329_v31 = vld [vmem:[%s1427_s18 + $0x88] sm:$0xff]  }
  0x25   : > { %v460_v41 = vmax.f32 %v396_v32, 0.0  ;;  %v398_v42 = vadd.f32 %v1441_v9, %v327_v33  ;;  %v399_v43 = vadd.f32 %v1441_v9, %v328_v34  ;;  %v331_v44 = vmul.f32 %v1071_v35, %v1432_v0 }
  0x26   : > { %v461_v45 = vmax.f32 %v397_v36, 0.0  ;;  %v400_v46 = vadd.f32 %v1441_v9, %v329_v37  ;;  %v401_v47 = vadd.f32 %v1441_v9, %v330_v38  ;;  %v332_v48 = vmul.f32 %v1072_v39, %v1432_v0  ;;  %v1330_v36 = vld [vmem:[%s1427_s18 + $0x90] sm:$0xff]  }
  0x27   : > { %v462_v49 = vmax.f32 %v398_v42, 0.0  ;;  %v463_v50 = vmax.f32 %v399_v43, 0.0  ;;  %v402_v51 = vadd.f32 %v1441_v9, %v331_v44  ;;  %v1075_v52 = vunpack.c.l.bf16 %v1324_v40 }
  0x28   : > { %v1196_v54 = vpack.c.bf16 %v461_v45, %v460_v41  ;;  %v464_v55 = vmax.f32 %v400_v46, 0.0  ;;  %v465_v56 = vmax.f32 %v401_v47, 0.0  ;;  %v403_v57 = vadd.f32 %v1441_v9, %v332_v48  ;;  %v1331_v41 = vld [vmem:[%s1427_s18 + $0x98] sm:$0xff]  }
  0x29   : > { %v1201_v59 = vpack.c.bf16 %v463_v50, %v462_v49  ;;  %v466_v60 = vmax.f32 %v402_v51, 0.0  ;;  %v1076_v61 = vunpack.c.h.bf16 %v1324_v40  ;;  %v333_v62 = vmul.f32 %v1075_v52, %v1432_v0 }
  0x2a   : > { %1351 = vst [vmem:[%s1466_s25 + $0x40] sm:$0xff] %v1196_v54   ;;  %v1206_v1 = vpack.c.bf16 %v465_v56, %v464_v55  ;;  %v467_v2 = vmax.f32 %v403_v57, 0.0  ;;  %v1079_v3 = vunpack.c.l.bf16 %v1325_v53  ;;  %v1080_v4 = vunpack.c.h.bf16 %v1325_v53  ;;  %v1332_v54 = vld [vmem:[%s1427_s18 + $0xa0] sm:$0xff]  }
  0x2b   : > { %1352 = vst [vmem:[%s1466_s25 + $0x48] sm:$0xff] %v1201_v59   ;;  %v334_v5 = vmul.f32 %v1076_v61, %v1432_v0  ;;  %v404_v6 = vadd.f32 %v1441_v9, %v333_v62  ;;  %v1083_v7 = vunpack.c.l.bf16 %v1326_v58  ;;  %v1084_v8 = vunpack.c.h.bf16 %v1326_v58 }
  0x2c   : > { %1353 = vst [vmem:[%s1466_s25 + $0x50] sm:$0xff] %v1206_v1   ;;  %v1211_v10 = vpack.c.bf16 %v467_v2, %v466_v60  ;;  %v335_v11 = vmul.f32 %v1079_v3, %v1432_v0  ;;  %v336_v12 = vmul.f32 %v1080_v4, %v1432_v0  ;;  %v1087_v13 = vunpack.c.l.bf16 %v1327_v63  ;;  %v1333_v4 = vld [vmem:[%s1427_s18 + $0xa8] sm:$0xff]  }
  0x2d   : > { %v405_v15 = vadd.f32 %v1441_v9, %v334_v5  ;;  %v468_v16 = vmax.f32 %v404_v6, 0.0  ;;  %v337_v17 = vmul.f32 %v1083_v7, %v1432_v0  ;;  %v338_v18 = vmul.f32 %v1084_v8, %v1432_v0 }
  0x2e   : > { %1354 = vst [vmem:[%s1466_s25 + $0x58] sm:$0xff] %v1211_v10   ;;  %v406_v19 = vadd.f32 %v1441_v9, %v335_v11  ;;  %v407_v20 = vadd.f32 %v1441_v9, %v336_v12  ;;  %v1088_v21 = vunpack.c.h.bf16 %v1327_v63  ;;  %v339_v22 = vmul.f32 %v1087_v13, %v1432_v0 }
  0x2f   : > { %v469_v23 = vmax.f32 %v405_v15, 0.0  ;;  %v408_v24 = vadd.f32 %v1441_v9, %v337_v17  ;;  %v409_v25 = vadd.f32 %v1441_v9, %v338_v18  ;;  %v1091_v26 = vunpack.c.l.bf16 %v1328_v14 }
  0x30   : > { %v470_v27 = vmax.f32 %v406_v19, 0.0  ;;  %v471_v28 = vmax.f32 %v407_v20, 0.0  ;;  %v340_v29 = vmul.f32 %v1088_v21, %v1432_v0  ;;  %v410_v30 = vadd.f32 %v1441_v9, %v339_v22  ;;  %v1335_v19 = vld [vmem:[%s1427_s18 + $0xb8] sm:$0xff]  }
  0x31   : > { %v1216_v32 = vpack.c.bf16 %v469_v23, %v468_v16  ;;  %v472_v33 = vmax.f32 %v408_v24, 0.0  ;;  %v473_v34 = vmax.f32 %v409_v25, 0.0  ;;  %v1092_v35 = vunpack.c.h.bf16 %v1328_v14  ;;  %v1334_v14 = vld [vmem:[%s1427_s18 + $0xb0] sm:$0xff]  }
  0x32   : > { %v1221_v37 = vpack.c.bf16 %v471_v28, %v470_v27  ;;  %v411_v38 = vadd.f32 %v1441_v9, %v340_v29  ;;  %v474_v39 = vmax.f32 %v410_v30, 0.0  ;;  %v341_v40 = vmul.f32 %v1091_v26, %v1432_v0 }
  0x33   : > { %1355 = vst [vmem:[%s1466_s25 + $0x60] sm:$0xff] %v1216_v32   ;;  %v1226_v42 = vpack.c.bf16 %v473_v34, %v472_v33  ;;  %v342_v43 = vmul.f32 %v1092_v35, %v1432_v0  ;;  %v1095_v44 = vunpack.c.l.bf16 %v1329_v31  ;;  %v1096_v45 = vunpack.c.h.bf16 %v1329_v31  ;;  %v1336_v32 = vld [vmem:[%s1427_s18 + $0xc0] sm:$0xff]  }
  0x34   : > { %1356 = vst [vmem:[%s1466_s25 + $0x68] sm:$0xff] %v1221_v37   ;;  %v475_v46 = vmax.f32 %v411_v38, 0.0  ;;  %v412_v47 = vadd.f32 %v1441_v9, %v341_v40  ;;  %v1099_v48 = vunpack.c.l.bf16 %v1330_v36  ;;  %v1100_v49 = vunpack.c.h.bf16 %v1330_v36 }
  0x35   : > { %1357 = vst [vmem:[%s1466_s25 + $0x70] sm:$0xff] %v1226_v42   ;;  %v413_v50 = vadd.f32 %v1441_v9, %v342_v43  ;;  %v343_v51 = vmul.f32 %v1095_v44, %v1432_v0  ;;  %v344_v52 = vmul.f32 %v1096_v45, %v1432_v0  ;;  %v1103_v53 = vunpack.c.l.bf16 %v1331_v41  ;;  %v1337_v45 = vld [vmem:[%s1427_s18 + $0xc8] sm:$0xff]  }
  0x36   : > { %v1231_v55 = vpack.c.bf16 %v475_v46, %v474_v39  ;;  %v476_v56 = vmax.f32 %v412_v47, 0.0  ;;  %v345_v57 = vmul.f32 %v1099_v48, %v1432_v0  ;;  %v346_v58 = vmul.f32 %v1100_v49, %v1432_v0 }
  0x37   : > { %v477_v59 = vmax.f32 %v413_v50, 0.0  ;;  %v414_v60 = vadd.f32 %v1441_v9, %v343_v51  ;;  %v415_v61 = vadd.f32 %v1441_v9, %v344_v52  ;;  %v1104_v62 = vunpack.c.h.bf16 %v1331_v41 }
  0x38   : > { %1358 = vst [vmem:[%s1466_s25 + $0x78] sm:$0xff] %v1231_v55   ;;  %v416_v63 = vadd.f32 %v1441_v9, %v345_v57  ;;  %v417_v1 = vadd.f32 %v1441_v9, %v346_v58  ;;  %v347_v2 = vmul.f32 %v1103_v53, %v1432_v0  ;;  %v1107_v3 = vunpack.c.l.bf16 %v1332_v54 }
  0x39   : > { %v1236_v5 = vpack.c.bf16 %v477_v59, %v476_v56  ;;  %v478_v6 = vmax.f32 %v414_v60, 0.0  ;;  %v479_v7 = vmax.f32 %v415_v61, 0.0  ;;  %v348_v8 = vmul.f32 %v1104_v62, %v1432_v0 }
  0x3a   : > { %v480_v10 = vmax.f32 %v416_v63, 0.0  ;;  %v481_v11 = vmax.f32 %v417_v1, 0.0  ;;  %v418_v12 = vadd.f32 %v1441_v9, %v347_v2  ;;  %v1108_v13 = vunpack.c.h.bf16 %v1332_v54  ;;  %v1338_v54 = vld [vmem:[%s1427_s18 + $0xd0] sm:$0xff]   ;;  %v1339_v63 = vld [vmem:[%s1427_s18 + $0xd8] sm:$0xff]  }
  0x3b   : > { %1359 = vst [vmem:[%s1466_s25 + $0x80] sm:$0xff] %v1236_v5   ;;  %v1241_v15 = vpack.c.bf16 %v479_v7, %v478_v6  ;;  %v419_v16 = vadd.f32 %v1441_v9, %v348_v8  ;;  %v349_v17 = vmul.f32 %v1107_v3, %v1432_v0  ;;  %v1111_v18 = vunpack.c.l.bf16 %v1333_v4 }
  0x3c   : > { %v1246_v20 = vpack.c.bf16 %v481_v11, %v480_v10  ;;  %v482_v21 = vmax.f32 %v418_v12, 0.0  ;;  %v350_v22 = vmul.f32 %v1108_v13, %v1432_v0  ;;  %v1112_v23 = vunpack.c.h.bf16 %v1333_v4  ;;  %v1340_v10 = vld [vmem:[%s1427_s18 + $0xe0] sm:$0xff]  }
  0x3d   : > { %1360 = vst [vmem:[%s1466_s25 + $0x88] sm:$0xff] %v1241_v15   ;;  %v483_v24 = vmax.f32 %v419_v16, 0.0  ;;  %v420_v25 = vadd.f32 %v1441_v9, %v349_v17  ;;  %v351_v26 = vmul.f32 %v1111_v18, %v1432_v0  ;;  %v1115_v27 = vunpack.c.l.bf16 %v1334_v14 }
  0x3e   : > { %1361 = vst [vmem:[%s1466_s25 + $0x90] sm:$0xff] %v1246_v20   ;;  %v421_v28 = vadd.f32 %v1441_v9, %v350_v22  ;;  %v352_v29 = vmul.f32 %v1112_v23, %v1432_v0  ;;  %v1116_v30 = vunpack.c.h.bf16 %v1334_v14  ;;  %v1119_v31 = vunpack.c.l.bf16 %v1335_v19  ;;  %v1341_v23 = vld [vmem:[%s1427_s18 + $0xe8] sm:$0xff]  }
  0x3f   : > { %v1251_v33 = vpack.c.bf16 %v483_v24, %v482_v21  ;;  %v484_v34 = vmax.f32 %v420_v25, 0.0  ;;  %v422_v35 = vadd.f32 %v1441_v9, %v351_v26  ;;  %v353_v36 = vmul.f32 %v1115_v27, %v1432_v0 }
  0x40   : > { %v485_v37 = vmax.f32 %v421_v28, 0.0  ;;  %v423_v38 = vadd.f32 %v1441_v9, %v352_v29  ;;  %v354_v39 = vmul.f32 %v1116_v30, %v1432_v0  ;;  %v1120_v40 = vunpack.c.h.bf16 %v1335_v19 }
  0x41   : > { %1362 = vst [vmem:[%s1466_s25 + $0x98] sm:$0xff] %v1251_v33   ;;  %v486_v41 = vmax.f32 %v422_v35, 0.0  ;;  %v424_v42 = vadd.f32 %v1441_v9, %v353_v36  ;;  %v355_v43 = vmul.f32 %v1119_v31, %v1432_v0  ;;  %v1123_v44 = vunpack.c.l.bf16 %v1336_v32 }
  0x42   : > { %v1256_v46 = vpack.c.bf16 %v485_v37, %v484_v34  ;;  %v487_v47 = vmax.f32 %v423_v38, 0.0  ;;  %v425_v48 = vadd.f32 %v1441_v9, %v354_v39  ;;  %v356_v49 = vmul.f32 %v1120_v40, %v1432_v0 }
  0x43   : > { %v488_v50 = vmax.f32 %v424_v42, 0.0  ;;  %v426_v51 = vadd.f32 %v1441_v9, %v355_v43  ;;  %v1124_v52 = vunpack.c.h.bf16 %v1336_v32  ;;  %v357_v53 = vmul.f32 %v1123_v44, %v1432_v0  ;;  %v1342_v32 = vld [vmem:[%s1427_s18 + $0xf0] sm:$0xff]  }
  0x44   : > { %1363 = vst [vmem:[%s1466_s25 + $0xa0] sm:$0xff] %v1256_v46   ;;  %v1261_v55 = vpack.c.bf16 %v487_v47, %v486_v41  ;;  %v489_v56 = vmax.f32 %v425_v48, 0.0  ;;  %v427_v57 = vadd.f32 %v1441_v9, %v356_v49  ;;  %v1127_v58 = vunpack.c.l.bf16 %v1337_v45  ;;  %v1343_v41 = vld [vmem:[%s1427_s18 + $0xf8] sm:$0xff]  }
  0x45   : > { %v490_v59 = vmax.f32 %v426_v51, 0.0  ;;  %v358_v60 = vmul.f32 %v1124_v52, %v1432_v0  ;;  %v428_v61 = vadd.f32 %v1441_v9, %v357_v53  ;;  %v1128_v62 = vunpack.c.h.bf16 %v1337_v45 }
  0x46   : > { %1364 = vst [vmem:[%s1466_s25 + $0xa8] sm:$0xff] %v1261_v55   ;;  %v1266_v1 = vpack.c.bf16 %v489_v56, %v488_v50  ;;  %v491_v2 = vmax.f32 %v427_v57, 0.0  ;;  %v359_v3 = vmul.f32 %v1127_v58, %v1432_v0  ;;  %v1131_v4 = vunpack.c.l.bf16 %v1338_v54 }
  0x47   : > { %v429_v5 = vadd.f32 %v1441_v9, %v358_v60  ;;  %v492_v6 = vmax.f32 %v428_v61, 0.0  ;;  %v360_v7 = vmul.f32 %v1128_v62, %v1432_v0  ;;  %v1132_v8 = vunpack.c.h.bf16 %v1338_v54 }
  0x48   : > { %1365 = vst [vmem:[%s1466_s25 + $0xb0] sm:$0xff] %v1266_v1   ;;  %v1271_v11 = vpack.c.bf16 %v491_v2, %v490_v59  ;;  %v430_v12 = vadd.f32 %v1441_v9, %v359_v3  ;;  %v361_v13 = vmul.f32 %v1131_v4, %v1432_v0  ;;  %v1135_v14 = vunpack.c.l.bf16 %v1339_v63 }
  0x49   : > { %v493_v15 = vmax.f32 %v429_v5, 0.0  ;;  %v431_v16 = vadd.f32 %v1441_v9, %v360_v7  ;;  %v362_v17 = vmul.f32 %v1132_v8, %v1432_v0  ;;  %v1136_v18 = vunpack.c.h.bf16 %v1339_v63 }
  0x4a   : > { %1366 = vst [vmem:[%s1466_s25 + $0xb8] sm:$0xff] %v1271_v11   ;;  %v494_v19 = vmax.f32 %v430_v12, 0.0  ;;  %v432_v20 = vadd.f32 %v1441_v9, %v361_v13  ;;  %v363_v21 = vmul.f32 %v1135_v14, %v1432_v0  ;;  %v1139_v22 = vunpack.c.l.bf16 %v1340_v10 }
  0x4b   : > { %v1276_v24 = vpack.c.bf16 %v493_v15, %v492_v6  ;;  %v495_v25 = vmax.f32 %v431_v16, 0.0  ;;  %v433_v26 = vadd.f32 %v1441_v9, %v362_v17  ;;  %v364_v27 = vmul.f32 %v1136_v18, %v1432_v0 }
  0x4c   : > { %v496_v28 = vmax.f32 %v432_v20, 0.0  ;;  %v434_v29 = vadd.f32 %v1441_v9, %v363_v21  ;;  %v1140_v30 = vunpack.c.h.bf16 %v1340_v10  ;;  %v365_v31 = vmul.f32 %v1139_v22, %v1432_v0 }
  0x4d   : > { %1367 = vst [vmem:[%s1466_s25 + $0xc0] sm:$0xff] %v1276_v24   ;;  %v1281_v33 = vpack.c.bf16 %v495_v25, %v494_v19  ;;  %v497_v34 = vmax.f32 %v433_v26, 0.0  ;;  %v435_v35 = vadd.f32 %v1441_v9, %v364_v27  ;;  %v1143_v36 = vunpack.c.l.bf16 %v1341_v23 }
  0x4e   : > { %v498_v37 = vmax.f32 %v434_v29, 0.0  ;;  %v366_v38 = vmul.f32 %v1140_v30, %v1432_v0  ;;  %v436_v39 = vadd.f32 %v1441_v9, %v365_v31  ;;  %v1144_v40 = vunpack.c.h.bf16 %v1341_v23 }
  0x4f   : > { %1368 = vst [vmem:[%s1466_s25 + $0xc8] sm:$0xff] %v1281_v33   ;;  %v1286_v42 = vpack.c.bf16 %v497_v34, %v496_v28  ;;  %v499_v43 = vmax.f32 %v435_v35, 0.0  ;;  %v367_v44 = vmul.f32 %v1143_v36, %v1432_v0  ;;  %v1147_v45 = vunpack.c.l.bf16 %v1342_v32 }
  0x50   : > { %v437_v46 = vadd.f32 %v1441_v9, %v366_v38  ;;  %v500_v47 = vmax.f32 %v436_v39, 0.0  ;;  %v368_v48 = vmul.f32 %v1144_v40, %v1432_v0  ;;  %v1148_v49 = vunpack.c.h.bf16 %v1342_v32 }
  0x51   : > { %1369 = vst [vmem:[%s1466_s25 + $0xd0] sm:$0xff] %v1286_v42   ;;  %v1291_v50 = vpack.c.bf16 %v499_v43, %v498_v37  ;;  %v438_v51 = vadd.f32 %v1441_v9, %v367_v44  ;;  %v369_v52 = vmul.f32 %v1147_v45, %v1432_v0  ;;  %v1151_v53 = vunpack.c.l.bf16 %v1343_v41 }
  0x52   : > { %v501_v54 = vmax.f32 %v437_v46, 0.0  ;;  %v439_v55 = vadd.f32 %v1441_v9, %v368_v48  ;;  %v370_v56 = vmul.f32 %v1148_v49, %v1432_v0  ;;  %v1152_v57 = vunpack.c.h.bf16 %v1343_v41 }
  0x53   : > { %1370 = vst [vmem:[%s1466_s25 + $0xd8] sm:$0xff] %v1291_v50   ;;  %v502_v58 = vmax.f32 %v438_v51, 0.0  ;;  %v440_v59 = vadd.f32 %v1441_v9, %v369_v52  ;;  %v371_v60 = vmul.f32 %v1151_v53, %v1432_v0 }
  0x54   : > { %v1296_v61 = vpack.c.bf16 %v501_v54, %v500_v47  ;;  %v503_v62 = vmax.f32 %v439_v55, 0.0  ;;  %v441_v63 = vadd.f32 %v1441_v9, %v370_v56  ;;  %v372_v1 = vmul.f32 %v1152_v57, %v1432_v0 }
  0x55   : > { %v504_v2 = vmax.f32 %v440_v59, 0.0  ;;  %v442_v3 = vadd.f32 %v1441_v9, %v371_v60 }
  0x56   : > { %1371 = vst [vmem:[%s1466_s25 + $0xe0] sm:$0xff] %v1296_v61   ;;  %v1301_v4 = vpack.c.bf16 %v503_v62, %v502_v58  ;;  %v505_v5 = vmax.f32 %v441_v63, 0.0  ;;  %v443_v6 = vadd.f32 %v1441_v9, %v372_v1 }
  0x57   : > { %v506_v7 = vmax.f32 %v442_v3, 0.0 }
  0x58   : > { %1372 = vst [vmem:[%s1466_s25 + $0xe8] sm:$0xff] %v1301_v4   ;;  %v1306_v8 = vpack.c.bf16 %v505_v5, %v504_v2  ;;  %v507_v10 = vmax.f32 %v443_v6, 0.0 }
  0x5a   : > { %1373 = vst [vmem:[%s1466_s25 + $0xf0] sm:$0xff] %v1306_v8   ;;  %v1311_v11 = vpack.c.bf16 %v507_v10, %v506_v7 }
  0x5c   : > { %1374 = vst [vmem:[%s1466_s25 + $0xf8] sm:$0xff] %v1311_v11  }
  0x5d PF: > { %s13_s12 = sadd.s32 1, %s1389_s12  }
  0x5e   : > { %p10_p4 = scmp.ge.s32.totalorder %s13_s12, 4  }
  0x60   :  { %12 = sbr.rel (!%p10_p4) target bundleno = 1 (0x1), region = 62 }

// kernel: discriminator_forward.11
= control target key start
LH: loop header
LB: loop body
LE: loop exit
PB: predicated region body
PF: predicated region fallthrough
CT: control target
= control target key end

     0   :  { %s851_s12 = smov 0   ;;  %s985_s0 = inlined_call_operand.vmem [shape: bf16[512,128], index: 0, kind: input, shape index: {}]   ;;  %s986_s1 = inlined_call_operand.vmem [shape: f32[1,128], index: 1, kind: input, shape index: {}]   ;;  %s987_s2 = inlined_call_operand.vmem [shape: f32[1,128], index: 2, kind: input, shape index: {}]   ;;  %s988_s3 = inlined_call_operand.vmem [shape: bf16[512,128], index: 3, kind: output, shape index: {}]  }
   0x1 LB: > { %s564_s13 = sadd.s32 4294967295, %s829_s12   ;;  %p568_p0 = scmp.ge.s32.totalorder %s829_s12, 1  ;;  %s829_s12 = sphi %s851_s12, %s13_s12  }
   0x2   : > { %p138_p1 = scmp.lt.s32.totalorder %s829_s12, 3 }
   0x4   : > { %p139_p2 = pnand %p568_p0, %p138_p1 }
   0x5   : > { %s569_s14 = sshll.u32 (!%p139_p2), %s564_s13, 5 }
   0x6   : > { %142 = sbr.rel (%p139_p2) target bundleno = 57 (0x39), region = 32  ;;  %p163_p3 = scmp.lt.s32.totalorder (!%p139_p2), %s569_s14, 63 }
   0xb   : > { %s990_s14 = smov (!%p163_p3, %s569_s14), 63  ;;  %v872_v0 = vld [vmem:[%s986_s1] ss:$0 sm:$0xff] }
   0xc   : > { %s570_s15 = sshll.u32 %s990_s14, 2  ;;  %v881_v9 = vld [vmem:[%s987_s2] ss:$0 sm:$0xff] }
   0xd   : > { %s867_s18 = scalar_lea.vmem %s985_s0, %s570_s15  ;;  %s906_s25 = scalar_lea.vmem %s988_s3, %s570_s15 }
   0xe   : > { %v642_v1 = vld [vmem:[%s867_s18] sm:$0xff]   ;;  %v785_v2 = vld [vmem:[%s867_s18 + $0x8] sm:$0xff]   ;;  %v786_v3 = vld [vmem:[%s867_s18 + $0x10] sm:$0xff]  }
   0xf   : > { %v643_v4 = vunpack.c.l.bf16 %v642_v1  ;;  %v644_v5 = vunpack.c.h.bf16 %v642_v1  ;;  %v647_v6 = vunpack.c.l.bf16 %v785_v2  ;;  %v648_v7 = vunpack.c.h.bf16 %v785_v2  ;;  %v787_v8 = vld [vmem:[%s867_s18 + $0x18] sm:$0xff]   ;;  %v788_v30 = vld [vmem:[%s867_s18 + $0x20] sm:$0xff]   ;;  %v789_v35 = vld [vmem:[%s867_s18 + $0x28] sm:$0xff]  }
  0x10   : > { %v651_v10 = vunpack.c.l.bf16 %v786_v3  ;;  %v652_v11 = vunpack.c.h.bf16 %v786_v3  ;;  %v655_v12 = vunpack.c.l.bf16 %v787_v8  ;;  %v656_v13 = vunpack.c.h.bf16 %v787_v8  ;;  %v790_v40 = vld [vmem:[%s867_s18 + $0x30] sm:$0xff]   ;;  %v791_v45 = vld [vmem:[%s867_s18 + $0x38] sm:$0xff]   ;;  %v792_v3 = vld [vmem:[%s867_s18 + $0x40] sm:$0xff]  }
  0x11   : > { %v245_v14 = vmul.f32 %v643_v4, %v872_v0  ;;  %v246_v15 = vmul.f32 %v644_v5, %v872_v0  ;;  %v247_v16 = vmul.f32 %v647_v6, %v872_v0  ;;  %v248_v17 = vmul.f32 %v648_v7, %v872_v0 }
  0x12   : > { %v249_v18 = vmul.f32 %v651_v10, %v872_v0  ;;  %v250_v19 = vmul.f32 %v652_v11, %v872_v0  ;;  %v251_v20 = vmul.f32 %v655_v12, %v872_v0  ;;  %v252_v21 = vmul.f32 %v656_v13, %v872_v0  ;;  %v793_v13 = vld [vmem:[%s867_s18 + $0x48] sm:$0xff]  }
  0x13   : > { %v284_v22 = vadd.f32 %v881_v9, %v245_v14  ;;  %v285_v23 = vadd.f32 %v881_v9, %v246_v15  ;;  %v286_v24 = vadd.f32 %v881_v9, %v247_v16  ;;  %v287_v25 = vadd.f32 %v881_v9, %v248_v17 }
  0x14   : > { %v288_v26 = vadd.f32 %v881_v9, %v249_v18  ;;  %v289_v27 = vadd.f32 %v881_v9, %v250_v19  ;;  %v290_v28 = vadd.f32 %v881_v9, %v251_v20  ;;  %v291_v29 = vadd.f32 %v881_v9, %v252_v21  ;;  %v794_v18 = vld [vmem:[%s867_s18 + $0x50] sm:$0xff]  }
  0x15   : > { %v316_v31 = vmax.f32 %v284_v22, 0.0  ;;  %v317_v32 = vmax.f32 %v285_v23, 0.0  ;;  %v318_v33 = vmax.f32 %v286_v24, 0.0  ;;  %v319_v34 = vmax.f32 %v287_v25, 0.0  ;;  %v795_v23 = vld [vmem:[%s867_s18 + $0x58] sm:$0xff]  }
  0x16   : > { %v320_v36 = vmax.f32 %v288_v26, 0.0  ;;  %v321_v37 = vmax.f32 %v289_v27, 0.0  ;;  %v322_v38 = vmax.f32 %v290_v28, 0.0  ;;  %v323_v39 = vmax.f32 %v291_v29, 0.0 }
  0x17   : > { %v708_v41 = vpack.c.bf16 %v317_v32, %v316_v31  ;;  %v713_v42 = vpack.c.bf16 %v319_v34, %v318_v33  ;;  %v659_v43 = vunpack.c.l.bf16 %v788_v30  ;;  %v660_v44 = vunpack.c.h.bf16 %v788_v30 }
  0x18   : > { %v718_v46 = vpack.c.bf16 %v321_v37, %v320_v36  ;;  %v723_v47 = vpack.c.bf16 %v323_v39, %v322_v38  ;;  %v663_v48 = vunpack.c.l.bf16 %v789_v35  ;;  %v664_v49 = vunpack.c.h.bf16 %v789_v35 }
  0x19   : > { %709 = vst [vmem:[%s906_s25] sm:$0xff] %v708_v41   ;;  %800 = vst [vmem:[%s906_s25 + $0x8] sm:$0xff] %v713_v42   ;;  %v253_v50 = vmul.f32 %v659_v43, %v872_v0  ;;  %v254_v51 = vmul.f32 %v660_v44, %v872_v0  ;;  %v667_v52 = vunpack.c.l.bf16 %v790_v40  ;;  %v668_v53 = vunpack.c.h.bf16 %v790_v40  ;;  %v796_v40 = vld [vmem:[%s867_s18 + $0x60] sm:$0xff]  }
  0x1a   : > { %801 = vst [vmem:[%s906_s25 + $0x10] sm:$0xff] %v718_v46   ;;  %802 = vst [vmem:[%s906_s25 + $0x18] sm:$0xff] %v723_v47   ;;  %v255_v54 = vmul.f32 %v663_v48, %v872_v0  ;;  %v256_v55 = vmul.f32 %v664_v49, %v872_v0  ;;  %v671_v56 = vunpack.c.l.bf16 %v791_v45  ;;  %v672_v57 = vunpack.c.h.bf16 %v791_v45 }
  0x1b   : > { %v292_v58 = vadd.f32 %v881_v9, %v253_v50  ;;  %v293_v59 = vadd.f32 %v881_v9, %v254_v51  ;;  %v257_v60 = vmul.f32 %v667_v52, %v872_v0  ;;  %v258_v61 = vmul.f32 %v668_v53, %v872_v0  ;;  %v797_v53 = vld [vmem:[%s867_s18 + $0x68] sm:$0xff]  }
  0x1c   : > { %v294_v62 = vadd.f32 %v881_v9, %v255_v54  ;;  %v295_v63 = vadd.f32 %v881_v9, %v256_v55  ;;  %v259_v1 = vmul.f32 %v671_v56, %v872_v0  ;;  %v260_v2 = vmul.f32 %v672_v57, %v872_v0 }
  0x1d   : > { %v324_v4 = vmax.f32 %v292_v58, 0.0  ;;  %v325_v5 = vmax.f32 %v293_v59, 0.0  ;;  %v296_v6 = vadd.f32 %v881_v9, %v257_v60  ;;  %v297_v7 = vadd.f32 %v881_v9, %v258_v61  ;;  %v798_v58 = vld [vmem:[%s867_s18 + $0x70] sm:$0xff]  }
  0x1e   : > { %v326_v8 = vmax.f32 %v294_v62, 0.0  ;;  %v327_v10 = vmax.f32 %v295_v63, 0.0  ;;  %v298_v11 = vadd.f32 %v881_v9, %v259_v1  ;;  %v299_v12 = vadd.f32 %v881_v9, %v260_v2  ;;  %v799_v63 = vld [vmem:[%s867_s18 + $0x78] sm:$0xff]  }
  0x1f   : > { %v728_v14 = vpack.c.bf16 %v325_v5, %v324_v4  ;;  %v328_v15 = vmax.f32 %v296_v6, 0.0  ;;  %v329_v16 = vmax.f32 %v297_v7, 0.0  ;;  %v675_v17 = vunpack.c.l.bf16 %v792_v3 }
  0x20   : > { %v733_v19 = vpack.c.bf16 %v327_v10, %v326_v8  ;;  %v330_v20 = vmax.f32 %v298_v11, 0.0  ;;  %v331_v21 = vmax.f32 %v299_v12, 0.0  ;;  %v676_v22 = vunpack.c.h.bf16 %v792_v3 }
  0x21   : > { %803 = vst [vmem:[%s906_s25 + $0x20] sm:$0xff] %v728_v14   ;;  %v738_v24 = vpack.c.bf16 %v329_v16, %v328_v15  ;;  %v261_v25 = vmul.f32 %v675_v17, %v872_v0  ;;  %v679_v26 = vunpack.c.l.bf16 %v793_v13  ;;  %v680_v27 = vunpack.c.h.bf16 %v793_v13 }
  0x22   : > { %804 = vst [vmem:[%s906_s25 + $0x28] sm:$0xff] %v733_v19   ;;  %v743_v28 = vpack.c.bf16 %v331_v21, %v330_v20  ;;  %v262_v29 = vmul.f32 %v676_v22, %v872_v0  ;;  %v683_v30 = vunpack.c.l.bf16 %v794_v18  ;;  %v684_v31 = vunpack.c.h.bf16 %v794_v18 }
  0x23   : > { %805 = vst [vmem:[%s906_s25 + $0x30] sm:$0xff] %v738_v24   ;;  %v300_v32 = vadd.f32 %v881_v9, %v261_v25  ;;  %v263_v33 = vmul.f32 %v679_v26, %v872_v0  ;;  %v264_v34 = vmul.f32 %v680_v27, %v872_v0  ;;  %v687_v35 = vunpack.c.l.bf16 %v795_v23 }
  0x24   : > { %806 = vst [vmem:[%s906_s25 + $0x38] sm:$0xff] %v743_v28   ;;  %v301_v36 = vadd.f32 %v881_v9, %v262_v29  ;;  %v265_v37 = vmul.f32 %v683_v30, %v872_v0  ;;  %v266_v38 = vmul.f32 %v684_v31, %v872_v0  ;;  %v688_v39 = vunpack.c.h.bf16 %v795_v23 }
  0x25   : > { %v332_v41 = vmax.f32 %v300_v32, 0.0  ;;  %v302_v42 = vadd.f32 %v881_v9, %v263_v33  ;;  %v303_v43 = vadd.f32 %v881_v9, %v264_v34  ;;  %v267_v44 = vmul.f32 %v687_v35, %v872_v0 }
  0x26   : > { %v333_v45 = vmax.f32 %v301_v36, 0.0  ;;  %v304_v46 = vadd.f32 %v881_v9, %v265_v37  ;;  %v305_v47 = vadd.f32 %v881_v9, %v266_v38  ;;  %v268_v48 = vmul.f32 %v688_v39, %v872_v0 }
  0x27   : > { %v334_v49 = vmax.f32 %v302_v42, 0.0  ;;  %v335_v50 = vmax.f32 %v303_v43, 0.0  ;;  %v306_v51 = vadd.f32 %v881_v9, %v267_v44  ;;  %v691_v52 = vunpack.c.l.bf16 %v796_v40 }
  0x28   : > { %v748_v54 = vpack.c.bf16 %v333_v45, %v332_v41  ;;  %v336_v55 = vmax.f32 %v304_v46, 0.0  ;;  %v337_v56 = vmax.f32 %v305_v47, 0.0  ;;  %v307_v57 = vadd.f32 %v881_v9, %v268_v48 }
  0x29   : > { %v753_v59 = vpack.c.bf16 %v335_v50, %v334_v49  ;;  %v338_v60 = vmax.f32 %v306_v51, 0.0  ;;  %v692_v61 = vunpack.c.h.bf16 %v796_v40  ;;  %v269_v62 = vmul.f32 %v691_v52, %v872_v0 }
  0x2a   : > { %807 = vst [vmem:[%s906_s25 + $0x40] sm:$0xff] %v748_v54   ;;  %v758_v1 = vpack.c.bf16 %v337_v56, %v336_v55  ;;  %v339_v2 = vmax.f32 %v307_v57, 0.0  ;;  %v695_v3 = vunpack.c.l.bf16 %v797_v53  ;;  %v696_v4 = vunpack.c.h.bf16 %v797_v53 }
  0x2b   : > { %808 = vst [vmem:[%s906_s25 + $0x48] sm:$0xff] %v753_v59   ;;  %v270_v5 = vmul.f32 %v692_v61, %v872_v0  ;;  %v308_v6 = vadd.f32 %v881_v9, %v269_v62  ;;  %v699_v7 = vunpack.c.l.bf16 %v798_v58  ;;  %v700_v8 = vunpack.c.h.bf16 %v798_v58 }
  0x2c   : > { %809 = vst [vmem:[%s906_s25 + $0x50] sm:$0xff] %v758_v1   ;;  %v763_v10 = vpack.c.bf16 %v339_v2, %v338_v60  ;;  %v271_v11 = vmul.f32 %v695_v3, %v872_v0  ;;  %v272_v12 = vmul.f32 %v696_v4, %v872_v0  ;;  %v703_v13 = vunpack.c.l.bf16 %v799_v63 }
  0x2d   : > { %v309_v14 = vadd.f32 %v881_v9, %v270_v5  ;;  %v340_v15 = vmax.f32 %v308_v6, 0.0  ;;  %v273_v16 = vmul.f32 %v699_v7, %v872_v0  ;;  %v274_v17 = vmul.f32 %v700_v8, %v872_v0 }
  0x2e   : > { %810 = vst [vmem:[%s906_s25 + $0x58] sm:$0xff] %v763_v10   ;;  %v310_v18 = vadd.f32 %v881_v9, %v271_v11  ;;  %v311_v19 = vadd.f32 %v881_v9, %v272_v12  ;;  %v704_v20 = vunpack.c.h.bf16 %v799_v63  ;;  %v275_v21 = vmul.f32 %v703_v13, %v872_v0 }
  0x2f   : > { %v341_v22 = vmax.f32 %v309_v14, 0.0  ;;  %v312_v23 = vadd.f32 %v881_v9, %v273_v16  ;;  %v313_v24 = vadd.f32 %v881_v9, %v274_v17 }
  0x30   : > { %v342_v25 = vmax.f32 %v310_v18, 0.0  ;;  %v343_v26 = vmax.f32 %v311_v19, 0.0  ;;  %v276_v27 = vmul.f32 %v704_v20, %v872_v0  ;;  %v314_v28 = vadd.f32 %v881_v9, %v275_v21 }
  0x31   : > { %v768_v29 = vpack.c.bf16 %v341_v22, %v340_v15  ;;  %v344_v30 = vmax.f32 %v312_v23, 0.0  ;;  %v345_v31 = vmax.f32 %v313_v24, 0.0 }
  0x32   : > { %v773_v32 = vpack.c.bf16 %v343_v26, %v342_v25  ;;  %v315_v33 = vadd.f32 %v881_v9, %v276_v27  ;;  %v346_v34 = vmax.f32 %v314_v28, 0.0 }
  0x33   : > { %811 = vst [vmem:[%s906_s25 + $0x60] sm:$0xff] %v768_v29   ;;  %v778_v35 = vpack.c.bf16 %v345_v31, %v344_v30 }
  0x34   : > { %812 = vst [vmem:[%s906_s25 + $0x68] sm:$0xff] %v773_v32   ;;  %v347_v36 = vmax.f32 %v315_v33, 0.0 }
  0x35   : > { %813 = vst [vmem:[%s906_s25 + $0x70] sm:$0xff] %v778_v35  }
  0x36   : > { %v783_v37 = vpack.c.bf16 %v347_v36, %v346_v34 }
  0x38   : > { %814 = vst [vmem:[%s906_s25 + $0x78] sm:$0xff] %v783_v37  }
  0x39 PF: > { %s13_s12 = sadd.s32 1, %s829_s12  }
  0x3a   : > { %p10_p4 = scmp.ge.s32.totalorder %s13_s12, 4  }
  0x3c   :  { %12 = sbr.rel (!%p10_p4) target bundleno = 1 (0x1), region = 62 }

// kernel: discriminator_forward.10
= control target key start
LH: loop header
LB: loop body
LE: loop exit
PB: predicated region body
PF: predicated region fallthrough
CT: control target
= control target key end

     0   :  { %s3381_s12 = smov 0   ;;  %s3846_s0 = inlined_call_operand.vmem [shape: bf16[512,1024], index: 0, kind: input, shape index: {}]   ;;  %s3847_s1 = inlined_call_operand.vmem [shape: bf16[1024,128], index: 1, kind: input, shape index: {}]   ;;  %s3848_s2 = inlined_call_operand.vmem [shape: bf16[512,128], index: 2, kind: output, shape index: {0}]   ;;  %s3849_s3 = inlined_call_operand.vmem [shape: f32[2,2,128], index: 3, kind: output, shape index: {1}]  }
   0x1 LB: > { %s3387_s13 = sadd.s32 4294967295, %s3359_s12   ;;  %p2472_p0 = scmp.ge.s32.totalorder %s3359_s12, 1  ;;  %s3359_s12 = sphi %s3381_s12, %s14_s12  }
   0x2   : > { %p142_p1 = scmp.lt.s32.totalorder %s3359_s12, 3 }
   0x4   : > { %p143_p2 = pnand %p2472_p0, %p142_p1 }
   0x5   : > { %s2473_s21 = sshll.u32 (!%p143_p2), %s3387_s13, 5  ;;  %p184_p4 = scmp.lt.s32.totalorder (!%p143_p2), %s3387_s13, 1 }
   0x6   : > { %146 = sbr.rel (%p143_p2) target bundleno = 515 (0x203), region = 28  ;;  %p172_p3 = scmp.lt.s32.totalorder (!%p143_p2), %s2473_s21, 63 }
   0xb   : > { %v3289_v0 = vld [vmem:[%s3847_s1 + $0x78] sm:$0xff]   ;;  %v3293_v4 = vld [vmem:[%s3847_s1 + $0x70] sm:$0xff]   ;;  %v3297_v8 = vld [vmem:[%s3847_s1 + $0x68] sm:$0xff]   ;;  %s3851_s21 = smov (!%p172_p3, %s2473_s21), 63  ;;  %s3853_s13 = smov (!%p184_p4, %s3387_s13), 1 }
   0xc   : > { %v3290_v1 = vld [vmem:[%s3847_s1 + $0xf8] sm:$0xff]   ;;  %2833 = vmatprep.subr.bf16.mxu0 %v3289_v0  ;;  %v3294_v5 = vld [vmem:[%s3847_s1 + $0xf0] sm:$0xff]   ;;  %v3298_v9 = vld [vmem:[%s3847_s1 + $0xe8] sm:$0xff]   ;;  %s2705_s19 = sshll.u32 %s3851_s21, 5 }
   0xd   : > { %v3291_v2 = vld [vmem:[%s3847_s1 + $0x38] sm:$0xff]   ;;  %2945 = vmatprep.subr.bf16.mxu1 %v3290_v1  ;;  %v3295_v6 = vld [vmem:[%s3847_s1 + $0x30] sm:$0xff]   ;;  %v3299_v10 = vld [vmem:[%s3847_s1 + $0x28] sm:$0xff]   ;;  %s3488_s29 = scalar_lea.vmem %s3846_s0, %s2705_s19 }
   0xe   : > { %v3292_v3 = vld [vmem:[%s3847_s1 + $0xb8] sm:$0xff]   ;;  %2834 = vmatpush3.bf16.msra.mxu0 %v3291_v2  ;;  %v3296_v7 = vld [vmem:[%s3847_s1 + $0xb0] sm:$0xff]   ;;  %v3300_v11 = vld [vmem:[%s3847_s1 + $0xa8] sm:$0xff]  }
   0xf   : > { %2946 = vmatpush3.bf16.msra.mxu1 %v3292_v3  ;;  %2835 = vmatprep.subr.bf16.mxu0 %v3293_v4  ;;  %v3301_v12 = vld [vmem:[%s3847_s1 + $0x60] sm:$0xff]   ;;  %v3305_v16 = vld [vmem:[%s3847_s1 + $0x58] sm:$0xff]   ;;  %v3309_v20 = vld [vmem:[%s3847_s1 + $0x50] sm:$0xff]  }
  0x10   : > { %2947 = vmatprep.subr.bf16.mxu1 %v3294_v5  ;;  %v3302_v13 = vld [vmem:[%s3847_s1 + $0xe0] sm:$0xff]   ;;  %v3306_v17 = vld [vmem:[%s3847_s1 + $0xd8] sm:$0xff]   ;;  %v3310_v21 = vld [vmem:[%s3847_s1 + $0xd0] sm:$0xff]  }
  0x11   : > { %v3303_v14 = vld [vmem:[%s3847_s1 + $0x20] sm:$0xff]   ;;  %v3307_v18 = vld [vmem:[%s3847_s1 + $0x18] sm:$0xff]   ;;  %v3311_v22 = vld [vmem:[%s3847_s1 + $0x10] sm:$0xff]  }
  0x12   : > { %2836 = vmatpush3.bf16.msra.mxu0 %v3295_v6  ;;  %v3304_v15 = vld [vmem:[%s3847_s1 + $0xa0] sm:$0xff]   ;;  %v3308_v19 = vld [vmem:[%s3847_s1 + $0x98] sm:$0xff]   ;;  %v3312_v23 = vld [vmem:[%s3847_s1 + $0x90] sm:$0xff]  }
  0x13   : > { %2948 = vmatpush3.bf16.msra.mxu1 %v3296_v7  ;;  %2837 = vmatprep.subr.bf16.mxu0 %v3297_v8  ;;  %v3313_v24 = vld [vmem:[%s3847_s1 + $0x48] sm:$0xff]   ;;  %v3317_v28 = vld [vmem:[%s3847_s1 + $0x40] sm:$0xff]   ;;  %v3321_v40 = vld [vmem:[%s3847_s1 + $0x178] sm:$0xff]  }
  0x14   : > { %2949 = vmatprep.subr.bf16.mxu1 %v3298_v9  ;;  %v3314_v25 = vld [vmem:[%s3847_s1 + $0xc8] sm:$0xff]   ;;  %v3318_v29 = vld [vmem:[%s3847_s1 + $0xc0] sm:$0xff]   ;;  %v3322_v41 = vld [vmem:[%s3847_s1 + $0x138] sm:$0xff]  }
  0x15   : > { %v3315_v26 = vld [vmem:[%s3847_s1 + $0x8] sm:$0xff]   ;;  %v3319_v30 = vld [vmem:[%s3847_s1] sm:$0xff]   ;;  %v3323_v42 = vld [vmem:[%s3847_s1 + $0x1f8] sm:$0xff]  }
  0x16   : > { %2838 = vmatpush3.bf16.msra.mxu0 %v3299_v10  ;;  %v3316_v27 = vld [vmem:[%s3847_s1 + $0x88] sm:$0xff]   ;;  %v3320_v31 = vld [vmem:[%s3847_s1 + $0x80] sm:$0xff]   ;;  %v3324_v43 = vld [vmem:[%s3847_s1 + $0x1b8] sm:$0xff]  }
  0x17   : > { %2950 = vmatpush3.bf16.msra.mxu1 %v3300_v11  ;;  %2839 = vmatprep.subr.bf16.mxu0 %v3301_v12  ;;  %v189_v32 = vld [vmem:[%s3488_s29] sm:$0xff]  ;;  %v190_v34 = vld [vmem:[%s3488_s29 + $0x8] sm:$0xff]  ;;  %v3325_v55 = vld [vmem:[%s3847_s1 + $0x170] sm:$0xff]  }
  0x18   : > { %2951 = vmatprep.subr.bf16.mxu1 %v3302_v13  ;;  %v193_v33 = vld [vmem:[%s3488_s29 + $0x20] sm:$0xff]  ;;  %v194_v37 = vld [vmem:[%s3488_s29 + $0x28] sm:$0xff]  ;;  %v3326_v58 = vld [vmem:[%s3847_s1 + $0x130] sm:$0xff]  }
  0x19   : > { %v2479_v35 = vcombine.low %v189_v32, %v193_v33  ;;  %v2480_v36 = vcombine.high %v189_v32, %v193_v33  ;;  %v2481_v38 = vcombine.low %v190_v34, %v194_v37  ;;  %v2482_v39 = vcombine.high %v190_v34, %v194_v37  ;;  %v197_v44 = vld [vmem:[%s3488_s29 + $0x40] sm:$0xff]  ;;  %v198_v47 = vld [vmem:[%s3488_s29 + $0x48] sm:$0xff]  ;;  %v3327_v60 = vld [vmem:[%s3847_s1 + $0x1f0] sm:$0xff]  }
  0x1a   : > { %2840 = vmatpush3.bf16.msra.mxu0 %v3303_v14  ;;  %v201_v45 = vld [vmem:[%s3488_s29 + $0x60] sm:$0xff]  ;;  %v202_v48 = vld [vmem:[%s3488_s29 + $0x68] sm:$0xff]  ;;  %v3328_v61 = vld [vmem:[%s3847_s1 + $0x1b0] sm:$0xff]  }
  0x1b   : > { %2952 = vmatpush3.bf16.msra.mxu1 %v3304_v15  ;;  %2841 = vmatprep.subr.bf16.mxu0 %v3305_v16  ;;  %v2488_v46 = vcombine.high %v197_v44, %v201_v45  ;;  %v205_v49 = vld [vmem:[%s3488_s29 + $0x80] sm:$0xff]  ;;  %v2490_v50 = vcombine.high %v198_v47, %v202_v48  ;;  %v206_v52 = vld [vmem:[%s3488_s29 + $0x88] sm:$0xff]  ;;  %v2487_v54 = vcombine.low %v197_v44, %v201_v45  ;;  %v3341_v34 = vld [vmem:[%s3847_s1 + $0x150] sm:$0xff]  }
  0x1c   : > { %2953 = vmatprep.subr.bf16.mxu1 %v3306_v17  ;;  %1501 = vmatprep.mubr.bf16.mxu0 %v2480_v36  ;;  %v209_v51 = vld [vmem:[%s3488_s29 + $0xa0] sm:$0xff]  ;;  %v210_v53 = vld [vmem:[%s3488_s29 + $0xa8] sm:$0xff]  ;;  %v2489_v56 = vcombine.low %v198_v47, %v202_v48  ;;  %v3342_v36 = vld [vmem:[%s3847_s1 + $0x110] sm:$0xff]  }
  0x1d   : > { %1662 = vmatprep.mubr.bf16.mxu1 %v2482_v39  ;;  %v2496_v57 = vcombine.high %v205_v49, %v209_v51  ;;  %v2498_v59 = vcombine.high %v206_v52, %v210_v53  ;;  %v213_v62 = vld [vmem:[%s3488_s29 + $0xc0] sm:$0xff]  ;;  %v214_v0 = vld [vmem:[%s3488_s29 + $0xc8] sm:$0xff]  ;;  %v2495_v3 = vcombine.low %v205_v49, %v209_v51  ;;  %v2497_v5 = vcombine.low %v206_v52, %v210_v53  ;;  %v3343_v37 = vld [vmem:[%s3847_s1 + $0x1d0] sm:$0xff]  }
  0x1e   : > { %2842 = vmatpush3.bf16.msra.mxu0 %v3307_v18  ;;  %v217_v63 = vld [vmem:[%s3488_s29 + $0xe0] sm:$0xff]  ;;  %v218_v1 = vld [vmem:[%s3488_s29 + $0xe8] sm:$0xff]  ;;  %v3344_v39 = vld [vmem:[%s3847_s1 + $0x190] sm:$0xff]  }
  0x1f   : > { %2954 = vmatpush3.bf16.msra.mxu1 %v3308_v19  ;;  %2843 = vmatprep.subr.bf16.mxu0 %v3309_v20  ;;  %v3329_v2 = vld [vmem:[%s3847_s1 + $0x168] sm:$0xff]   ;;  %v2504_v6 = vcombine.high %v213_v62, %v217_v63  ;;  %v2506_v8 = vcombine.high %v214_v0, %v218_v1  ;;  %v221_v10 = vld [vmem:[%s3488_s29 + $0x100] sm:$0xff]  ;;  %v2503_v16 = vcombine.low %v213_v62, %v217_v63 }
  0x20   : > { %2955 = vmatprep.subr.bf16.mxu1 %v3310_v21  ;;  %v3330_v4 = vld [vmem:[%s3847_s1 + $0x128] sm:$0xff]   ;;  %v225_v11 = vld [vmem:[%s3488_s29 + $0x120] sm:$0xff]  ;;  %v2505_v18 = vcombine.low %v214_v0, %v218_v1 }
  0x21   : > { %v3331_v7 = vld [vmem:[%s3847_s1 + $0x1e8] sm:$0xff]   ;;  %v3333_v14 = vld [vmem:[%s3847_s1 + $0x160] sm:$0xff]   ;;  %v2512_v19 = vcombine.high %v221_v10, %v225_v11 }
  0x22   : > { %2844 = vmatpush3.bf16.msra.mxu0 %v3311_v22  ;;  %v3332_v9 = vld [vmem:[%s3847_s1 + $0x1a8] sm:$0xff]   ;;  %v3334_v15 = vld [vmem:[%s3847_s1 + $0x120] sm:$0xff]  }
  0x23   : > { %2956 = vmatpush3.bf16.msra.mxu1 %v3312_v23  ;;  %2845 = vmatprep.subr.bf16.mxu0 %v3313_v24  ;;  %v222_v12 = vld [vmem:[%s3488_s29 + $0x108] sm:$0xff]  ;;  %v3335_v17 = vld [vmem:[%s3847_s1 + $0x1e0] sm:$0xff]   ;;  %v3337_v24 = vld [vmem:[%s3847_s1 + $0x158] sm:$0xff]  }
  0x24   : > { %2957 = vmatprep.subr.bf16.mxu1 %v3314_v25  ;;  %v226_v13 = vld [vmem:[%s3488_s29 + $0x128] sm:$0xff]  ;;  %v3336_v20 = vld [vmem:[%s3847_s1 + $0x1a0] sm:$0xff]  }
  0x25   : > { %v2514_v21 = vcombine.high %v222_v12, %v226_v13  ;;  %v229_v22 = vld [vmem:[%s3488_s29 + $0x140] sm:$0xff]  ;;  %v230_v25 = vld [vmem:[%s3488_s29 + $0x148] sm:$0xff] }
  0x26   : > { %2846 = vmatpush3.bf16.msra.mxu0 %v3315_v26  ;;  %v233_v23 = vld [vmem:[%s3488_s29 + $0x160] sm:$0xff]  ;;  %v234_v26 = vld [vmem:[%s3488_s29 + $0x168] sm:$0xff] }
  0x27   : > { %2958 = vmatpush3.bf16.msra.mxu1 %v3316_v27  ;;  %2847 = vmatprep.subr.bf16.mxu0 %v3317_v28  ;;  %v3338_v27 = vld [vmem:[%s3847_s1 + $0x118] sm:$0xff]   ;;  %v2520_v32 = vcombine.high %v229_v22, %v233_v23  ;;  %v2522_v33 = vcombine.high %v230_v25, %v234_v26  ;;  %v3346_v47 = vld [vmem:[%s3847_s1 + $0x108] sm:$0xff]   ;;  %v249_v51 = vld [vmem:[%s3488_s29 + $0x1e0] sm:$0xff] }
  0x28   : > { %2959 = vmatprep.subr.bf16.mxu1 %v3318_v29  ;;  %v3339_v28 = vld [vmem:[%s3847_s1 + $0x1d8] sm:$0xff]   ;;  %v3347_v48 = vld [vmem:[%s3847_s1 + $0x1c8] sm:$0xff]   ;;  %v253_v62 = vld [vmem:[%s3488_s29 + $0x200] sm:$0xff] }
  0x29   : > { %v3340_v29 = vld [vmem:[%s3847_s1 + $0x198] sm:$0xff]   ;;  %v3348_v49 = vld [vmem:[%s3847_s1 + $0x188] sm:$0xff]   ;;  %v257_v63 = vld [vmem:[%s3488_s29 + $0x220] sm:$0xff] }
  0x2a   : > { %2848 = vmatpush3.bf16.msra.mxu0 %v3319_v30  ;;  %v2511_v30 = vcombine.low %v221_v10, %v225_v11  ;;  %v246_v52 = vld [vmem:[%s3488_s29 + $0x1c8] sm:$0xff]  ;;  %v2543_v10 = vcombine.low %v253_v62, %v257_v63 }
  0x2b   : > { %2960 = vmatpush3.bf16.msra.mxu1 %v3320_v31  ;;  %3057 = vmatprep.subr.bf16.mxu0 %v3321_v40  ;;  %v2513_v31 = vcombine.low %v222_v12, %v226_v13  ;;  %v238_v40 = vld [vmem:[%s3488_s29 + $0x188] sm:$0xff] }
  0x2c   : > { %3169 = vmatprep.subr.bf16.mxu1 %v3323_v42  ;;  %v2519_v42 = vcombine.low %v229_v22, %v233_v23  ;;  %v250_v53 = vld [vmem:[%s3488_s29 + $0x1e8] sm:$0xff]  ;;  %v277_v22 = vld [vmem:[%s3488_s29 + $0x2c0] sm:$0xff] }
  0x2d   : > { %1502 = vmatmul.mubr.bf16.vlgmr.msra.gmra.mxu0 %v2479_v35  ;;  %v237_v35 = vld [vmem:[%s3488_s29 + $0x180] sm:$0xff]  ;;  %v254_v0 = vld [vmem:[%s3488_s29 + $0x208] sm:$0xff] }
  0x2e   : > { %1663 = vmatmul.mubr.bf16.vlgmr.msra.gmra.mxu1 %v2481_v38  ;;  %3058 = vmatpush3.bf16.msra.mxu0 %v3322_v41  ;;  %v241_v38 = vld [vmem:[%s3488_s29 + $0x1a0] sm:$0xff]  ;;  %v242_v41 = vld [vmem:[%s3488_s29 + $0x1a8] sm:$0xff] }
  0x2f   : > { %3170 = vmatpush3.bf16.msra.mxu1 %v3324_v43  ;;  %1509 = vmatprep.mubr.bf16.mxu0 %v2488_v46  ;;  %v2521_v43 = vcombine.low %v230_v25, %v234_v26  ;;  %v2528_v44 = vcombine.high %v237_v35, %v241_v38  ;;  %v2530_v45 = vcombine.high %v238_v40, %v242_v41  ;;  %v3345_v46 = vld [vmem:[%s3847_s1 + $0x148] sm:$0xff]   ;;  %v281_v23 = vld [vmem:[%s3488_s29 + $0x2e0] sm:$0xff] }
  0x30   : > { %1670 = vmatprep.mubr.bf16.mxu1 %v2490_v50  ;;  %3059 = vmatprep.subr.bf16.mxu0 %v3325_v55  ;;  %v245_v50 = vld [vmem:[%s3488_s29 + $0x1c0] sm:$0xff]  ;;  %v258_v1 = vld [vmem:[%s3488_s29 + $0x228] sm:$0xff] }
  0x31   : > { %3171 = vmatprep.subr.bf16.mxu1 %v3327_v60  ;;  %v3349_v55 = vld [vmem:[%s3847_s1 + $0x140] sm:$0xff]   ;;  %v2545_v11 = vcombine.low %v254_v0, %v258_v1  ;;  %v282_v25 = vld [vmem:[%s3488_s29 + $0x2e8] sm:$0xff] }
  0x32   : > { %3060 = vmatpush3.bf16.msra.mxu0 %v3326_v58  ;;  %v3350_v58 = vld [vmem:[%s3847_s1 + $0x100] sm:$0xff]  }
  0x33   : > { %3172 = vmatpush3.bf16.msra.mxu1 %v3328_v61  ;;  %3061 = vmatprep.subr.bf16.mxu0 %v3329_v2  ;;  %v3351_v60 = vld [vmem:[%s3847_s1 + $0x1c0] sm:$0xff]   ;;  %v2535_v2 = vcombine.low %v245_v50, %v249_v51 }
  0x34   : > { %3173 = vmatprep.subr.bf16.mxu1 %v3331_v7  ;;  %v3352_v61 = vld [vmem:[%s3847_s1 + $0x180] sm:$0xff]  }
  0x35   : > { %1510 = vmatmul.mubr.bf16.gmra.mxu0 %v2487_v54  ;;  %v2527_v54 = vcombine.low %v237_v35, %v241_v38  ;;  %v265_v7 = vld [vmem:[%s3488_s29 + $0x260] sm:$0xff] }
  0x36   : > { %1671 = vmatmul.mubr.bf16.gmra.mxu1 %v2489_v56  ;;  %1517 = vmatprep.mubr.bf16.mxu0 %v2496_v57  ;;  %v2529_v56 = vcombine.low %v238_v40, %v242_v41  ;;  %v2536_v57 = vcombine.high %v245_v50, %v249_v51  ;;  %v293_v38 = vld [vmem:[%s3488_s29 + $0x340] sm:$0xff]  ;;  %v294_v40 = vld [vmem:[%s3488_s29 + $0x348] sm:$0xff] }
  0x37   : > { %1678 = vmatprep.mubr.bf16.mxu1 %v2498_v59  ;;  %3062 = vmatpush3.bf16.msra.mxu0 %v3330_v4  ;;  %v2538_v59 = vcombine.high %v246_v52, %v250_v53  ;;  %v2544_v4 = vcombine.high %v253_v62, %v257_v63  ;;  %v298_v41 = vld [vmem:[%s3488_s29 + $0x368] sm:$0xff]  ;;  %v191_v62 = vld [vmem:[%s3488_s29 + $0x10] sm:$0xff] }
  0x38   : > { %3174 = vmatpush3.bf16.msra.mxu1 %v3332_v9  ;;  %3063 = vmatprep.subr.bf16.mxu0 %v3333_v14  ;;  %v266_v9 = vld [vmem:[%s3488_s29 + $0x268] sm:$0xff]  ;;  %v269_v14 = vld [vmem:[%s3488_s29 + $0x280] sm:$0xff]  ;;  %v2585_v51 = vcombine.low %v294_v40, %v298_v41  ;;  %v195_v63 = vld [vmem:[%s3488_s29 + $0x30] sm:$0xff] }
  0x39   : > { %3175 = vmatprep.subr.bf16.mxu1 %v3335_v17  ;;  %v274_v17 = vld [vmem:[%s3488_s29 + $0x2a8] sm:$0xff] }
  0x3b   : > { %3064 = vmatpush3.bf16.msra.mxu0 %v3334_v15  ;;  %v273_v15 = vld [vmem:[%s3488_s29 + $0x2a0] sm:$0xff] }
  0x3c   : > { %3176 = vmatpush3.bf16.msra.mxu1 %v3336_v20  ;;  %3065 = vmatprep.subr.bf16.mxu0 %v3337_v24  ;;  %v2560_v20 = vcombine.high %v269_v14, %v273_v15  ;;  %v278_v24 = vld [vmem:[%s3488_s29 + $0x2c8] sm:$0xff]  ;;  %v2559_v26 = vcombine.low %v269_v14, %v273_v15  ;;  %v207_v14 = vld [vmem:[%s3488_s29 + $0x90] sm:$0xff] }
  0x3d   : > { %1518 = vmatmul.mubr.bf16.gmra.mxu0 %v2495_v3  ;;  %3177 = vmatprep.subr.bf16.mxu1 %v3339_v28  ;;  %v2537_v3 = vcombine.low %v246_v52, %v250_v53  ;;  %v2568_v28 = vcombine.high %v277_v22, %v281_v23  ;;  %v2569_v35 = vcombine.low %v278_v24, %v282_v25  ;;  %v211_v15 = vld [vmem:[%s3488_s29 + $0xb0] sm:$0xff] }
  0x3e   : > { %1679 = vmatmul.mubr.bf16.gmra.mxu1 %v2497_v5  ;;  %1525 = vmatprep.mubr.bf16.mxu0 %v2504_v6  ;;  %v2546_v5 = vcombine.high %v254_v0, %v258_v1  ;;  %v261_v6 = vld [vmem:[%s3488_s29 + $0x240] sm:$0xff]  ;;  %v192_v0 = vld [vmem:[%s3488_s29 + $0x18] sm:$0xff] }
  0x3f   : > { %1686 = vmatprep.mubr.bf16.mxu1 %v2506_v8  ;;  %3066 = vmatpush3.bf16.msra.mxu0 %v3338_v27  ;;  %v262_v8 = vld [vmem:[%s3488_s29 + $0x248] sm:$0xff]  ;;  %v2552_v12 = vcombine.high %v261_v6, %v265_v7  ;;  %v196_v1 = vld [vmem:[%s3488_s29 + $0x38] sm:$0xff] }
  0x40   : > { %3178 = vmatpush3.bf16.msra.mxu1 %v3340_v29  ;;  %3067 = vmatprep.subr.bf16.mxu0 %v3341_v34  ;;  %v2554_v13 = vcombine.high %v262_v8, %v266_v9  ;;  %v2570_v29 = vcombine.high %v278_v24, %v282_v25  ;;  %v2567_v34 = vcombine.low %v277_v22, %v281_v23  ;;  %v215_v22 = vld [vmem:[%s3488_s29 + $0xd0] sm:$0xff]  ;;  %v216_v24 = vld [vmem:[%s3488_s29 + $0xd8] sm:$0xff] }
  0x41   : > { %3179 = vmatprep.subr.bf16.mxu1 %v3343_v37  ;;  %v219_v23 = vld [vmem:[%s3488_s29 + $0xf0] sm:$0xff]  ;;  %v220_v25 = vld [vmem:[%s3488_s29 + $0xf8] sm:$0xff] }
  0x43   : > { %3068 = vmatpush3.bf16.msra.mxu0 %v3342_v36 }
  0x44   : > { %3180 = vmatpush3.bf16.msra.mxu1 %v3344_v39  ;;  %3069 = vmatprep.subr.bf16.mxu0 %v3345_v46  ;;  %v297_v39 = vld [vmem:[%s3488_s29 + $0x360] sm:$0xff] }
  0x45   : > { %1526 = vmatmul.mubr.bf16.gmra.mxu0 %v2503_v16  ;;  %3181 = vmatprep.subr.bf16.mxu1 %v3347_v48  ;;  %v270_v16 = vld [vmem:[%s3488_s29 + $0x288] sm:$0xff]  ;;  %v301_v46 = vld [vmem:[%s3488_s29 + $0x380] sm:$0xff]  ;;  %v2583_v50 = vcombine.low %v293_v38, %v297_v39 }
  0x46   : > { %1687 = vmatmul.mubr.bf16.gmra.mxu1 %v2505_v18  ;;  %1533 = vmatprep.mubr.bf16.mxu0 %v2512_v19  ;;  %v2551_v18 = vcombine.low %v261_v6, %v265_v7  ;;  %v2553_v19 = vcombine.low %v262_v8, %v266_v9  ;;  %v2561_v27 = vcombine.low %v270_v16, %v274_v17  ;;  %v302_v48 = vld [vmem:[%s3488_s29 + $0x388] sm:$0xff]  ;;  %v199_v6 = vld [vmem:[%s3488_s29 + $0x50] sm:$0xff]  ;;  %v200_v8 = vld [vmem:[%s3488_s29 + $0x58] sm:$0xff] }
  0x47   : > { %1694 = vmatprep.mubr.bf16.mxu1 %v2514_v21  ;;  %3070 = vmatpush3.bf16.msra.mxu0 %v3346_v47  ;;  %v2562_v21 = vcombine.high %v270_v16, %v274_v17  ;;  %v305_v47 = vld [vmem:[%s3488_s29 + $0x3a0] sm:$0xff]  ;;  %v203_v7 = vld [vmem:[%s3488_s29 + $0x70] sm:$0xff]  ;;  %v204_v9 = vld [vmem:[%s3488_s29 + $0x78] sm:$0xff] }
  0x48   : > { %3182 = vmatpush3.bf16.msra.mxu1 %v3348_v49  ;;  %3071 = vmatprep.subr.bf16.mxu0 %v3349_v55  ;;  %v306_v49 = vld [vmem:[%s3488_s29 + $0x3a8] sm:$0xff]  ;;  %v2592_v52 = vcombine.high %v301_v46, %v305_v47  ;;  %v313_v55 = vld [vmem:[%s3488_s29 + $0x3e0] sm:$0xff]  ;;  %v208_v16 = vld [vmem:[%s3488_s29 + $0x98] sm:$0xff] }
  0x49   : > { %3183 = vmatprep.subr.bf16.mxu1 %v3351_v60  ;;  %v2594_v53 = vcombine.high %v302_v48, %v306_v49  ;;  %v212_v17 = vld [vmem:[%s3488_s29 + $0xb8] sm:$0xff] }
  0x4b   : > { %3072 = vmatpush3.bf16.msra.mxu0 %v3350_v58  ;;  %v2591_v58 = vcombine.low %v301_v46, %v305_v47  ;;  %v239_v46 = vld [vmem:[%s3488_s29 + $0x190] sm:$0xff] }
  0x4c   : > { %3184 = vmatpush3.bf16.msra.mxu1 %v3352_v61  ;;  %v243_v47 = vld [vmem:[%s3488_s29 + $0x1b0] sm:$0xff] }
  0x4d   : > { %1534 = vmatmul.mubr.bf16.gmra.mxu0 %v2511_v30  ;;  %v285_v30 = vld [vmem:[%s3488_s29 + $0x300] sm:$0xff] }
  0x4e   : > { %1695 = vmatmul.mubr.bf16.gmra.mxu1 %v2513_v31  ;;  %1541 = vmatprep.mubr.bf16.mxu0 %v2520_v32  ;;  %v289_v31 = vld [vmem:[%s3488_s29 + $0x320] sm:$0xff]  ;;  %v286_v32 = vld [vmem:[%s3488_s29 + $0x308] sm:$0xff] }
  0x4f   : > { %1702 = vmatprep.mubr.bf16.mxu1 %v2522_v33  ;;  %v290_v33 = vld [vmem:[%s3488_s29 + $0x328] sm:$0xff]  ;;  %v2576_v36 = vcombine.high %v285_v30, %v289_v31 }
  0x50   : > { %v2578_v37 = vcombine.high %v286_v32, %v290_v33 }
  0x55   : > { %1542 = vmatmul.mubr.bf16.gmra.mxu0 %v2519_v42  ;;  %v2575_v42 = vcombine.low %v285_v30, %v289_v31  ;;  %v223_v30 = vld [vmem:[%s3488_s29 + $0x110] sm:$0xff] }
  0x56   : > { %1703 = vmatmul.mubr.bf16.gmra.mxu1 %v2521_v43  ;;  %1549 = vmatprep.mubr.bf16.mxu0 %v2528_v44  ;;  %v2577_v43 = vcombine.low %v286_v32, %v290_v33  ;;  %v2584_v44 = vcombine.high %v293_v38, %v297_v39  ;;  %v227_v31 = vld [vmem:[%s3488_s29 + $0x130] sm:$0xff]  ;;  %v224_v32 = vld [vmem:[%s3488_s29 + $0x118] sm:$0xff] }
  0x57   : > { %1710 = vmatprep.mubr.bf16.mxu1 %v2530_v45  ;;  %v2586_v45 = vcombine.high %v294_v40, %v298_v41  ;;  %v228_v33 = vld [vmem:[%s3488_s29 + $0x138] sm:$0xff]  ;;  %v231_v38 = vld [vmem:[%s3488_s29 + $0x150] sm:$0xff] }
  0x58   : > { %v235_v39 = vld [vmem:[%s3488_s29 + $0x170] sm:$0xff]  ;;  %v232_v40 = vld [vmem:[%s3488_s29 + $0x158] sm:$0xff] }
  0x59   : > { %v236_v41 = vld [vmem:[%s3488_s29 + $0x178] sm:$0xff] }
  0x5d   : > { %1550 = vmatmul.mubr.bf16.gmra.mxu0 %v2527_v54  ;;  %v309_v54 = vld [vmem:[%s3488_s29 + $0x3c0] sm:$0xff] }
  0x5e   : > { %1711 = vmatmul.mubr.bf16.gmra.mxu1 %v2529_v56  ;;  %1557 = vmatprep.mubr.bf16.mxu0 %v2536_v57  ;;  %v310_v56 = vld [vmem:[%s3488_s29 + $0x3c8] sm:$0xff]  ;;  %v2600_v60 = vcombine.high %v309_v54, %v313_v55 }
  0x5f   : > { %1718 = vmatprep.mubr.bf16.mxu1 %v2538_v59  ;;  %v314_v57 = vld [vmem:[%s3488_s29 + $0x3e8] sm:$0xff]  ;;  %v2593_v59 = vcombine.low %v302_v48, %v306_v49  ;;  %v240_v48 = vld [vmem:[%s3488_s29 + $0x198] sm:$0xff] }
  0x60   : > { %v2602_v61 = vcombine.high %v310_v56, %v314_v57  ;;  %v244_v49 = vld [vmem:[%s3488_s29 + $0x1b8] sm:$0xff] }
  0x65   : > { %1558 = vmatmul.mubr.bf16.gmra.mxu0 %v2535_v2  ;;  %v2599_v2 = vcombine.low %v309_v54, %v313_v55  ;;  %v247_v54 = vld [vmem:[%s3488_s29 + $0x1d0] sm:$0xff] }
  0x66   : > { %1719 = vmatmul.mubr.bf16.gmra.mxu1 %v2537_v3  ;;  %1565 = vmatprep.mubr.bf16.mxu0 %v2544_v4  ;;  %v2601_v3 = vcombine.low %v310_v56, %v314_v57  ;;  %v2484_v4 = vcombine.high %v191_v62, %v195_v63  ;;  %v251_v55 = vld [vmem:[%s3488_s29 + $0x1f0] sm:$0xff]  ;;  %v248_v56 = vld [vmem:[%s3488_s29 + $0x1d8] sm:$0xff] }
  0x67   : > { %1726 = vmatprep.mubr.bf16.mxu1 %v2546_v5  ;;  %v2486_v5 = vcombine.high %v192_v0, %v196_v1  ;;  %v252_v57 = vld [vmem:[%s3488_s29 + $0x1f8] sm:$0xff] }
  0x6d   : > { %1566 = vmatmul.mubr.bf16.gmra.mxu0 %v2543_v10  ;;  %v2483_v10 = vcombine.low %v191_v62, %v195_v63  ;;  %v255_v62 = vld [vmem:[%s3488_s29 + $0x210] sm:$0xff] }
  0x6e   : > { %1727 = vmatmul.mubr.bf16.gmra.mxu1 %v2545_v11  ;;  %1573 = vmatprep.mubr.bf16.mxu0 %v2552_v12  ;;  %v2485_v11 = vcombine.low %v192_v0, %v196_v1  ;;  %v2492_v12 = vcombine.high %v199_v6, %v203_v7  ;;  %v259_v63 = vld [vmem:[%s3488_s29 + $0x230] sm:$0xff]  ;;  %v256_v0 = vld [vmem:[%s3488_s29 + $0x218] sm:$0xff] }
  0x6f   : > { %1734 = vmatprep.mubr.bf16.mxu1 %v2554_v13  ;;  %v2494_v13 = vcombine.high %v200_v8, %v204_v9  ;;  %v260_v1 = vld [vmem:[%s3488_s29 + $0x238] sm:$0xff] }
  0x75   : > { %1574 = vmatmul.mubr.bf16.gmra.mxu0 %v2551_v18  ;;  %v2491_v18 = vcombine.low %v199_v6, %v203_v7  ;;  %v263_v6 = vld [vmem:[%s3488_s29 + $0x250] sm:$0xff] }
  0x76   : > { %1735 = vmatmul.mubr.bf16.gmra.mxu1 %v2553_v19  ;;  %1581 = vmatprep.mubr.bf16.mxu0 %v2560_v20  ;;  %v2493_v19 = vcombine.low %v200_v8, %v204_v9  ;;  %v2500_v20 = vcombine.high %v207_v14, %v211_v15  ;;  %v267_v7 = vld [vmem:[%s3488_s29 + $0x270] sm:$0xff]  ;;  %v264_v8 = vld [vmem:[%s3488_s29 + $0x258] sm:$0xff] }
  0x77   : > { %1742 = vmatprep.mubr.bf16.mxu1 %v2562_v21  ;;  %v2502_v21 = vcombine.high %v208_v16, %v212_v17  ;;  %v268_v9 = vld [vmem:[%s3488_s29 + $0x278] sm:$0xff] }
  0x7d   : > { %1582 = vmatmul.mubr.bf16.gmra.mxu0 %v2559_v26  ;;  %v2499_v26 = vcombine.low %v207_v14, %v211_v15 }
  0x7e   : > { %1743 = vmatmul.mubr.bf16.gmra.mxu1 %v2561_v27  ;;  %1589 = vmatprep.mubr.bf16.mxu0 %v2568_v28  ;;  %v2501_v27 = vcombine.low %v208_v16, %v212_v17  ;;  %v2508_v28 = vcombine.high %v215_v22, %v219_v23  ;;  %v271_v17 = vld [vmem:[%s3488_s29 + $0x290] sm:$0xff] }
  0x7f   : > { %1750 = vmatprep.mubr.bf16.mxu1 %v2570_v29  ;;  %v2510_v29 = vcombine.high %v216_v24, %v220_v25 }
  0x85   : > { %1590 = vmatmul.mubr.bf16.gmra.mxu0 %v2567_v34  ;;  %v2507_v34 = vcombine.low %v215_v22, %v219_v23  ;;  %v276_v22 = vld [vmem:[%s3488_s29 + $0x2b8] sm:$0xff] }
  0x86   : > { %1751 = vmatmul.mubr.bf16.gmra.mxu1 %v2569_v35  ;;  %1597 = vmatprep.mubr.bf16.mxu0 %v2576_v36  ;;  %v2509_v35 = vcombine.low %v216_v24, %v220_v25  ;;  %v2516_v36 = vcombine.high %v223_v30, %v227_v31  ;;  %v2555_v25 = vcombine.low %v263_v6, %v267_v7 }
  0x87   : > { %1758 = vmatprep.mubr.bf16.mxu1 %v2578_v37  ;;  %v2518_v37 = vcombine.high %v224_v32, %v228_v33 }
  0x8d   : > { %1598 = vmatmul.mubr.bf16.gmra.mxu0 %v2575_v42  ;;  %v2515_v42 = vcombine.low %v223_v30, %v227_v31 }
  0x8e   : > { %1759 = vmatmul.mubr.bf16.gmra.mxu1 %v2577_v43  ;;  %1605 = vmatprep.mubr.bf16.mxu0 %v2584_v44  ;;  %v2517_v43 = vcombine.low %v224_v32, %v228_v33  ;;  %v2524_v44 = vcombine.high %v231_v38, %v235_v39 }
  0x8f   : > { %1766 = vmatprep.mubr.bf16.mxu1 %v2586_v45  ;;  %v2526_v45 = vcombine.high %v232_v40, %v236_v41 }
  0x95   : > { %1606 = vmatmul.mubr.bf16.gmra.mxu0 %v2583_v50  ;;  %v2523_v50 = vcombine.low %v231_v38, %v235_v39  ;;  %v279_v39 = vld [vmem:[%s3488_s29 + $0x2d0] sm:$0xff] }
  0x96   : > { %1767 = vmatmul.mubr.bf16.gmra.mxu1 %v2585_v51  ;;  %1613 = vmatprep.mubr.bf16.mxu0 %v2592_v52  ;;  %v2525_v51 = vcombine.low %v232_v40, %v236_v41  ;;  %v2532_v52 = vcombine.high %v239_v46, %v243_v47  ;;  %v283_v40 = vld [vmem:[%s3488_s29 + $0x2f0] sm:$0xff] }
  0x97   : > { %1774 = vmatprep.mubr.bf16.mxu1 %v2594_v53  ;;  %v2534_v53 = vcombine.high %v240_v48, %v244_v49 }
  0x9d   : > { %1614 = vmatmul.mubr.bf16.gmra.mxu0 %v2591_v58  ;;  %v2531_v58 = vcombine.low %v239_v46, %v243_v47 }
  0x9e   : > { %1775 = vmatmul.mubr.bf16.gmra.mxu1 %v2593_v59  ;;  %1621 = vmatprep.mubr.bf16.mxu0 %v2600_v60  ;;  %v2533_v59 = vcombine.low %v240_v48, %v244_v49  ;;  %v2540_v60 = vcombine.high %v247_v54, %v251_v55 }
  0x9f   : > { %1782 = vmatprep.mubr.bf16.mxu1 %v2602_v61  ;;  %v2542_v61 = vcombine.high %v248_v56, %v252_v57 }
  0xa5   : > { %1622 = vmatmul.mubr.bf16.gmra.mxu0 %v2599_v2  ;;  %v2539_v2 = vcombine.low %v247_v54, %v251_v55 }
  0xa6   : > { %1783 = vmatmul.mubr.bf16.gmra.mxu1 %v2601_v3  ;;  %1823 = vmatprep.mubr.bf16.mxu0 %v2484_v4  ;;  %v2541_v3 = vcombine.low %v248_v56, %v252_v57  ;;  %v2548_v4 = vcombine.high %v255_v62, %v259_v63 }
  0xa7   : > { %1984 = vmatprep.mubr.bf16.mxu1 %v2486_v5  ;;  %v2550_v5 = vcombine.high %v256_v0, %v260_v1 }
  0xad   : > { %1824 = vmatmul.mubr.bf16.vlgmr.msra.gmra.mxu0 %v2483_v10  ;;  %v2547_v10 = vcombine.low %v255_v62, %v259_v63  ;;  %v291_v62 = vld [vmem:[%s3488_s29 + $0x330] sm:$0xff] }
  0xae   : > { %1985 = vmatmul.mubr.bf16.vlgmr.msra.gmra.mxu1 %v2485_v11  ;;  %1831 = vmatprep.mubr.bf16.mxu0 %v2492_v12  ;;  %v2549_v11 = vcombine.low %v256_v0, %v260_v1  ;;  %v2556_v12 = vcombine.high %v263_v6, %v267_v7  ;;  %v288_v1 = vld [vmem:[%s3488_s29 + $0x318] sm:$0xff] }
  0xaf   : > { %1992 = vmatprep.mubr.bf16.mxu1 %v2494_v13  ;;  %v2558_v13 = vcombine.high %v264_v8, %v268_v9 }
  0xb5   : > { %1832 = vmatmul.mubr.bf16.gmra.mxu0 %v2491_v18  ;;  %v275_v18 = vld [vmem:[%s3488_s29 + $0x2b0] sm:$0xff] }
  0xb6   : > { %1993 = vmatmul.mubr.bf16.gmra.mxu1 %v2493_v19  ;;  %1839 = vmatprep.mubr.bf16.mxu0 %v2500_v20  ;;  %v2563_v47 = vcombine.low %v271_v17, %v275_v18 }
  0xb7   : > { %2000 = vmatprep.mubr.bf16.mxu1 %v2502_v21  ;;  %v272_v21 = vld [vmem:[%s3488_s29 + $0x298] sm:$0xff] }
  0xb8   : > { %v2566_v31 = vcombine.high %v272_v21, %v276_v22  ;;  %v2565_v49 = vcombine.low %v272_v21, %v276_v22 }
  0xbd   : > { %1840 = vmatmul.mubr.bf16.gmra.mxu0 %v2499_v26 }
  0xbe   : > { %2001 = vmatmul.mubr.bf16.gmra.mxu1 %v2501_v27  ;;  %1847 = vmatprep.mubr.bf16.mxu0 %v2508_v28  ;;  %v2557_v27 = vcombine.low %v264_v8, %v268_v9  ;;  %v2564_v28 = vcombine.high %v271_v17, %v275_v18 }
  0xbf   : > { %2008 = vmatprep.mubr.bf16.mxu1 %v2510_v29 }
  0xc5   : > { %1848 = vmatmul.mubr.bf16.gmra.mxu0 %v2507_v34 }
  0xc6   : > { %2009 = vmatmul.mubr.bf16.gmra.mxu1 %v2509_v35  ;;  %1855 = vmatprep.mubr.bf16.mxu0 %v2516_v36 }
  0xc7   : > { %2016 = vmatprep.mubr.bf16.mxu1 %v2518_v37 }
  0xcd   : > { %1856 = vmatmul.mubr.bf16.gmra.mxu0 %v2515_v42 }
  0xce   : > { %2017 = vmatmul.mubr.bf16.gmra.mxu1 %v2517_v43  ;;  %1863 = vmatprep.mubr.bf16.mxu0 %v2524_v44  ;;  %v280_v43 = vld [vmem:[%s3488_s29 + $0x2d8] sm:$0xff] }
  0xcf   : > { %2024 = vmatprep.mubr.bf16.mxu1 %v2526_v45  ;;  %v284_v44 = vld [vmem:[%s3488_s29 + $0x2f8] sm:$0xff] }
  0xd0   : > { %v2573_v7 = vcombine.low %v280_v43, %v284_v44 }
  0xd5   : > { %1864 = vmatmul.mubr.bf16.gmra.mxu0 %v2523_v50  ;;  %v2572_v50 = vcombine.high %v279_v39, %v283_v40 }
  0xd6   : > { %2025 = vmatmul.mubr.bf16.gmra.mxu1 %v2525_v51  ;;  %1871 = vmatprep.mubr.bf16.mxu0 %v2532_v52 }
  0xd7   : > { %2032 = vmatprep.mubr.bf16.mxu1 %v2534_v53  ;;  %v2574_v53 = vcombine.high %v280_v43, %v284_v44  ;;  %v303_v43 = vld [vmem:[%s3488_s29 + $0x390] sm:$0xff] }
  0xd8   : > { %v307_v44 = vld [vmem:[%s3488_s29 + $0x3b0] sm:$0xff] }
  0xdd   : > { %1872 = vmatmul.mubr.bf16.gmra.mxu0 %v2531_v58 }
  0xde   : > { %2033 = vmatmul.mubr.bf16.gmra.mxu1 %v2533_v59  ;;  %1879 = vmatprep.mubr.bf16.mxu0 %v2540_v60 }
  0xdf   : > { %2040 = vmatprep.mubr.bf16.mxu1 %v2542_v61  ;;  %v287_v61 = vld [vmem:[%s3488_s29 + $0x310] sm:$0xff] }
  0xe0   : > { %v2580_v8 = vcombine.high %v287_v61, %v291_v62 }
  0xe5   : > { %1880 = vmatmul.mubr.bf16.gmra.mxu0 %v2539_v2  ;;  %v292_v2 = vld [vmem:[%s3488_s29 + $0x338] sm:$0xff] }
  0xe6   : > { %2041 = vmatmul.mubr.bf16.gmra.mxu1 %v2541_v3  ;;  %1887 = vmatprep.mubr.bf16.mxu0 %v2548_v4 }
  0xe7   : > { %2048 = vmatprep.mubr.bf16.mxu1 %v2550_v5  ;;  %v2571_v5 = vcombine.low %v279_v39, %v283_v40 }
  0xed   : > { %v2849_v14 = vpop.f32.mrf.mxu0  ;;  %1888 = vmatmul.mubr.bf16.gmra.mxu0 %v2547_v10 }
  0xee   : > { %v2961_v15 = vpop.f32.mrf.mxu1  ;;  %2049 = vmatmul.mubr.bf16.gmra.mxu1 %v2549_v11  ;;  %1895 = vmatprep.mubr.bf16.mxu0 %v2556_v12  ;;  %v2582_v11 = vcombine.high %v288_v1, %v292_v2 }
  0xef   : > { %v2850_v16 = vpop.f32.mrf.mxu0  ;;  %2056 = vmatprep.mubr.bf16.mxu1 %v2558_v13 }
  0xf0   : > { %v2851_v19 = vadd.f32 %v2850_v16, %v2849_v14  ;;  %v2962_v20 = vpop.f32.mrf.mxu1 }
  0xf1   : > { %v2963_v23 = vadd.f32 %v2962_v20, %v2961_v15  ;;  %v2852_v24 = vpop.f32.mrf.mxu0  ;;  %v299_v20 = vld [vmem:[%s3488_s29 + $0x370] sm:$0xff] }
  0xf2   : > { %v2964_v26 = vpop.f32.mrf.mxu1 }
  0xf3   : > { %v3700_v29 = vadd.f32 %v2963_v23, %v2851_v19  ;;  %v2853_v30 = vpop.f32.mrf.mxu0  ;;  %v295_v19 = vld [vmem:[%s3488_s29 + $0x350] sm:$0xff]  ;;  %v296_v23 = vld [vmem:[%s3488_s29 + $0x358] sm:$0xff] }
  0xf4   : > { %v2854_v32 = vadd.f32 %v2853_v30, %v2852_v24  ;;  %v2965_v33 = vpop.f32.mrf.mxu1  ;;  %v300_v24 = vld [vmem:[%s3488_s29 + $0x378] sm:$0xff]  ;;  %v2581_v30 = vcombine.low %v288_v1, %v292_v2 }
  0xf5   : > { %v2966_v34 = vadd.f32 %v2965_v33, %v2964_v26  ;;  %v2855_v35 = vpop.f32.mrf.mxu0  ;;  %1896 = vmatmul.mubr.bf16.gmra.mxu0 %v2555_v25 }
  0xf6   : > { %v2967_v36 = vpop.f32.mrf.mxu1  ;;  %2057 = vmatmul.mubr.bf16.gmra.mxu1 %v2557_v27  ;;  %1903 = vmatprep.mubr.bf16.mxu0 %v2564_v28  ;;  %v2579_v27 = vcombine.low %v287_v61, %v291_v62 }
  0xf7   : > { %v3702_v37 = vadd.f32 %v2966_v34, %v2854_v32  ;;  %v2856_v38 = vpop.f32.mrf.mxu0  ;;  %2064 = vmatprep.mubr.bf16.mxu1 %v2566_v31  ;;  %v2588_v31 = vcombine.high %v295_v19, %v299_v20  ;;  %v2590_v34 = vcombine.high %v296_v23, %v300_v24 }
  0xf8   : > { %v2857_v41 = vadd.f32 %v2856_v38, %v2855_v35  ;;  %v2968_v42 = vpop.f32.mrf.mxu1 }
  0xf9   : > { %v2969_v45 = vadd.f32 %v2968_v42, %v2967_v36  ;;  %v2858_v46 = vpop.f32.mrf.mxu0 }
  0xfa   : > { %v2970_v48 = vpop.f32.mrf.mxu1 }
  0xfb   : > { %v3708_v51 = vadd.f32 %v2969_v45, %v2857_v41  ;;  %v2859_v52 = vpop.f32.mrf.mxu0 }
  0xfc   : > { %v2860_v54 = vadd.f32 %v2859_v52, %v2858_v46  ;;  %v2971_v55 = vpop.f32.mrf.mxu1  ;;  %v2587_v52 = vcombine.low %v295_v19, %v299_v20 }
  0xfd   : > { %v2972_v56 = vadd.f32 %v2971_v55, %v2970_v48  ;;  %v2861_v57 = vpop.f32.mrf.mxu0  ;;  %1904 = vmatmul.mubr.bf16.gmra.mxu0 %v2563_v47  ;;  %v304_v47 = vld [vmem:[%s3488_s29 + $0x398] sm:$0xff]  ;;  %v2596_v55 = vcombine.high %v303_v43, %v307_v44 }
  0xfe   : > { %v2973_v58 = vpop.f32.mrf.mxu1  ;;  %2065 = vmatmul.mubr.bf16.gmra.mxu1 %v2565_v49  ;;  %1911 = vmatprep.mubr.bf16.mxu0 %v2572_v50  ;;  %v308_v48 = vld [vmem:[%s3488_s29 + $0x3b8] sm:$0xff] }
  0xff   : > { %v3710_v59 = vadd.f32 %v2972_v56, %v2860_v54  ;;  %v2862_v60 = vpop.f32.mrf.mxu0  ;;  %2072 = vmatprep.mubr.bf16.mxu1 %v2574_v53  ;;  %v2589_v54 = vcombine.low %v296_v23, %v300_v24 }
 0x100   : > { %v2863_v63 = vadd.f32 %v2862_v60, %v2861_v57  ;;  %v2974_v0 = vpop.f32.mrf.mxu1 }
 0x101   : > { %v2975_v3 = vadd.f32 %v2974_v0, %v2973_v58  ;;  %v2864_v4 = vpop.f32.mrf.mxu0  ;;  %v2598_v58 = vcombine.high %v304_v47, %v308_v48 }
 0x102   : > { %v2976_v6 = vpop.f32.mrf.mxu1 }
 0x103   : > { %v3716_v9 = vadd.f32 %v2975_v3, %v2863_v63  ;;  %v2865_v10 = vpop.f32.mrf.mxu0  ;;  %v311_v3 = vld [vmem:[%s3488_s29 + $0x3d0] sm:$0xff] }
 0x104   : > { %v2866_v12 = vadd.f32 %v2865_v10, %v2864_v4  ;;  %v2977_v13 = vpop.f32.mrf.mxu1  ;;  %v315_v4 = vld [vmem:[%s3488_s29 + $0x3f0] sm:$0xff] }
 0x105   : > { %v2978_v14 = vadd.f32 %v2977_v13, %v2976_v6  ;;  %v2867_v15 = vpop.f32.mrf.mxu0  ;;  %1912 = vmatmul.mubr.bf16.gmra.mxu0 %v2571_v5 }
 0x106   : > { %v2979_v16 = vpop.f32.mrf.mxu1  ;;  %2073 = vmatmul.mubr.bf16.gmra.mxu1 %v2573_v7  ;;  %1919 = vmatprep.mubr.bf16.mxu0 %v2580_v8  ;;  %v312_v7 = vld [vmem:[%s3488_s29 + $0x3d8] sm:$0xff] }
 0x107   : > { %v3718_v17 = vadd.f32 %v2978_v14, %v2866_v12  ;;  %v2868_v18 = vpop.f32.mrf.mxu0  ;;  %2080 = vmatprep.mubr.bf16.mxu1 %v2582_v11  ;;  %v316_v8 = vld [vmem:[%s3488_s29 + $0x3f8] sm:$0xff]  ;;  %v2595_v12 = vcombine.low %v303_v43, %v307_v44  ;;  %v2597_v14 = vcombine.low %v304_v47, %v308_v48  ;;  %s2477_s29 = sshll.u32 %s3851_s21, 2  ;;  %s2478_s21 = sshll.u32 %s3853_s13, 1 }
 0x108   : > { %v2869_v21 = vadd.f32 %v2868_v18, %v2867_v15  ;;  %v2980_v22 = vpop.f32.mrf.mxu1  ;;  %v2604_v15 = vcombine.high %v311_v3, %v315_v4  ;;  %v2606_v19 = vcombine.high %v312_v7, %v316_v8  ;;  %s3790_s4 = scalar_lea.vmem %s3848_s2, %s2477_s29  ;;  %s187_s7 = scalar_lea.vmem %s3849_s3, %s2478_s21 }
 0x109   : > { %v2981_v25 = vadd.f32 %v2980_v22, %v2979_v16  ;;  %v2870_v26 = vpop.f32.mrf.mxu0 }
 0x10a   : > { %v2982_v28 = vpop.f32.mrf.mxu1 }
 0x10b   : > { %v3724_v32 = vadd.f32 %v2981_v25, %v2869_v21  ;;  %v2871_v33 = vpop.f32.mrf.mxu0 }
 0x10c   : > { %v2872_v35 = vadd.f32 %v2871_v33, %v2870_v26  ;;  %v2983_v36 = vpop.f32.mrf.mxu1  ;;  %v2603_v33 = vcombine.low %v311_v3, %v315_v4 }
 0x10d   : > { %v2984_v38 = vadd.f32 %v2983_v36, %v2982_v28  ;;  %v2873_v39 = vpop.f32.mrf.mxu0  ;;  %1920 = vmatmul.mubr.bf16.gmra.mxu0 %v2579_v27 }
 0x10e   : > { %v2985_v40 = vpop.f32.mrf.mxu1  ;;  %2081 = vmatmul.mubr.bf16.gmra.mxu1 %v2581_v30  ;;  %1927 = vmatprep.mubr.bf16.mxu0 %v2588_v31 }
 0x10f   : > { %v3726_v41 = vadd.f32 %v2984_v38, %v2872_v35  ;;  %v2874_v42 = vpop.f32.mrf.mxu0  ;;  %2088 = vmatprep.mubr.bf16.mxu1 %v2590_v34  ;;  %v2605_v35 = vcombine.low %v312_v7, %v316_v8 }
 0x110   : > { %v2875_v45 = vadd.f32 %v2874_v42, %v2873_v39  ;;  %v2986_v46 = vpop.f32.mrf.mxu1 }
 0x111   : > { %v2987_v49 = vadd.f32 %v2986_v46, %v2985_v40  ;;  %v2876_v50 = vpop.f32.mrf.mxu0 }
 0x112   : > { %v2988_v53 = vpop.f32.mrf.mxu1 }
 0x113   : > { %v3732_v56 = vadd.f32 %v2987_v49, %v2875_v45  ;;  %v2877_v57 = vpop.f32.mrf.mxu0 }
 0x114   : > { %v2878_v60 = vadd.f32 %v2877_v57, %v2876_v50  ;;  %v2989_v61 = vpop.f32.mrf.mxu1 }
 0x115   : > { %v2990_v62 = vadd.f32 %v2989_v61, %v2988_v53  ;;  %v2879_v63 = vpop.f32.mrf.mxu0  ;;  %1928 = vmatmul.mubr.bf16.gmra.mxu0 %v2587_v52 }
 0x116   : > { %v2991_v0 = vpop.f32.mrf.mxu1  ;;  %2089 = vmatmul.mubr.bf16.gmra.mxu1 %v2589_v54  ;;  %1935 = vmatprep.mubr.bf16.mxu0 %v2596_v55 }
 0x117   : > { %v3734_v1 = vadd.f32 %v2990_v62, %v2878_v60  ;;  %v2880_v2 = vpop.f32.mrf.mxu0  ;;  %2096 = vmatprep.mubr.bf16.mxu1 %v2598_v58 }
 0x118   : > { %v2881_v5 = vadd.f32 %v2880_v2, %v2879_v63  ;;  %v2992_v6 = vpop.f32.mrf.mxu1 }
 0x119   : > { %v2993_v10 = vadd.f32 %v2992_v6, %v2991_v0  ;;  %v2882_v11 = vpop.f32.mrf.mxu0 }
 0x11a   : > { %v2994_v13 = vpop.f32.mrf.mxu1 }
 0x11b   : > { %v3740_v16 = vadd.f32 %v2993_v10, %v2881_v5  ;;  %v2883_v18 = vpop.f32.mrf.mxu0 }
 0x11c   : > { %v2884_v20 = vadd.f32 %v2883_v18, %v2882_v11  ;;  %v2995_v21 = vpop.f32.mrf.mxu1 }
 0x11d   : > { %v2996_v22 = vadd.f32 %v2995_v21, %v2994_v13  ;;  %v2885_v23 = vpop.f32.mrf.mxu0  ;;  %1936 = vmatmul.mubr.bf16.gmra.mxu0 %v2595_v12 }
 0x11e   : > { %v2997_v24 = vpop.f32.mrf.mxu1  ;;  %2097 = vmatmul.mubr.bf16.gmra.mxu1 %v2597_v14  ;;  %1943 = vmatprep.mubr.bf16.mxu0 %v2604_v15 }
 0x11f   : > { %v3742_v25 = vadd.f32 %v2996_v22, %v2884_v20  ;;  %v2886_v26 = vpop.f32.mrf.mxu0  ;;  %2104 = vmatprep.mubr.bf16.mxu1 %v2606_v19 }
 0x120   : > { %v2887_v27 = vadd.f32 %v2886_v26, %v2885_v23  ;;  %v2998_v28 = vpop.f32.mrf.mxu1 }
 0x121   : > { %v2999_v30 = vadd.f32 %v2998_v28, %v2997_v24  ;;  %v2888_v31 = vpop.f32.mrf.mxu0 }
 0x122   : > { %v3000_v34 = vpop.f32.mrf.mxu1 }
 0x123   : > { %v3744_v36 = vadd.f32 %v2999_v30, %v2887_v27  ;;  %v2889_v38 = vpop.f32.mrf.mxu0 }
 0x124   : > { %v2890_v39 = vadd.f32 %v2889_v38, %v2888_v31  ;;  %v3001_v40 = vpop.f32.mrf.mxu1 }
 0x125   : > { %v3002_v42 = vadd.f32 %v3001_v40, %v3000_v34  ;;  %v2891_v43 = vpop.f32.mrf.mxu0  ;;  %1944 = vmatmul.mubr.bf16.gmra.mxu0 %v2603_v33 }
 0x126   : > { %v3003_v44 = vpop.f32.mrf.mxu1  ;;  %2105 = vmatmul.mubr.bf16.gmra.mxu1 %v2605_v35 }
 0x127   : > { %v3746_v45 = vadd.f32 %v3002_v42, %v2890_v39  ;;  %v2892_v46 = vpop.f32.mrf.mxu0 }
 0x128   : > { %v2893_v47 = vadd.f32 %v2892_v46, %v2891_v43  ;;  %v3004_v48 = vpop.f32.mrf.mxu1 }
 0x129   : > { %v3005_v49 = vadd.f32 %v3004_v48, %v3003_v44  ;;  %v2894_v50 = vpop.f32.mrf.mxu0 }
 0x12a   : > { %v3006_v52 = vpop.f32.mrf.mxu1 }
 0x12b   : > { %v3748_v53 = vadd.f32 %v3005_v49, %v2893_v47  ;;  %v2895_v54 = vpop.f32.mrf.mxu0 }
 0x12c   : > { %v2896_v55 = vadd.f32 %v2895_v54, %v2894_v50  ;;  %v3007_v57 = vpop.f32.mrf.mxu1 }
 0x12d   : > { %v3008_v58 = vadd.f32 %v3007_v57, %v3006_v52  ;;  %v2897_v60 = vpop.f32.mrf.mxu0 }
 0x12e   : > { %v3009_v61 = vpop.f32.mrf.mxu1 }
 0x12f   : > { %v3750_v62 = vadd.f32 %v3008_v58, %v2896_v55  ;;  %v2898_v63 = vpop.f32.mrf.mxu0 }
 0x130   : > { %v2899_v0 = vadd.f32 %v2898_v63, %v2897_v60  ;;  %v3010_v2 = vpop.f32.mrf.mxu1 }
 0x131   : > { %v3011_v3 = vadd.f32 %v3010_v2, %v3009_v61  ;;  %v2900_v4 = vpop.f32.mrf.mxu0 }
 0x132   : > { %v3012_v5 = vpop.f32.mrf.mxu1 }
 0x133   : > { %v3752_v6 = vadd.f32 %v3011_v3, %v2899_v0  ;;  %v2901_v7 = vpop.f32.mrf.mxu0 }
 0x134   : > { %v2902_v8 = vadd.f32 %v2901_v7, %v2900_v4  ;;  %v3013_v10 = vpop.f32.mrf.mxu1 }
 0x135   : > { %v3014_v11 = vadd.f32 %v3013_v10, %v3012_v5  ;;  %v2903_v12 = vpop.f32.mrf.mxu0 }
 0x136   : > { %v3015_v13 = vpop.f32.mrf.mxu1 }
 0x137   : > { %v3754_v14 = vadd.f32 %v3014_v11, %v2902_v8  ;;  %v2904_v15 = vpop.f32.mrf.mxu0 }
 0x138   : > { %v2905_v18 = vadd.f32 %v2904_v15, %v2903_v12  ;;  %v3016_v19 = vpop.f32.mrf.mxu1 }
 0x139   : > { %v3017_v20 = vadd.f32 %v3016_v19, %v3015_v13  ;;  %v2906_v21 = vpop.f32.mrf.mxu0 }
 0x13a   : > { %v3018_v22 = vpop.f32.mrf.mxu1 }
 0x13b   : > { %v3756_v23 = vadd.f32 %v3017_v20, %v2905_v18  ;;  %v2907_v24 = vpop.f32.mrf.mxu0 }
 0x13c   : > { %v2908_v26 = vadd.f32 %v2907_v24, %v2906_v21  ;;  %v3019_v27 = vpop.f32.mrf.mxu1 }
 0x13d   : > { %v3020_v28 = vadd.f32 %v3019_v27, %v3018_v22  ;;  %v2909_v30 = vpop.f32.mrf.mxu0 }
 0x13e   : > { %v3021_v31 = vpop.f32.mrf.mxu1 }
 0x13f   : > { %v3758_v33 = vadd.f32 %v3020_v28, %v2908_v26  ;;  %v2910_v34 = vpop.f32.mrf.mxu0 }
 0x140   : > { %v2911_v35 = vadd.f32 %v2910_v34, %v2909_v30  ;;  %v3022_v38 = vpop.f32.mrf.mxu1 }
 0x141   : > { %v3023_v39 = vadd.f32 %v3022_v38, %v3021_v31  ;;  %v2912_v40 = vpop.f32.mrf.mxu0 }
 0x142   : > { %v3024_v42 = vpop.f32.mrf.mxu1 }
 0x143   : > { %v3760_v43 = vadd.f32 %v3023_v39, %v2911_v35  ;;  %v2913_v44 = vpop.f32.mrf.mxu0 }
 0x144   : > { %v2914_v46 = vadd.f32 %v2913_v44, %v2912_v40  ;;  %v3025_v47 = vpop.f32.mrf.mxu1 }
 0x145   : > { %v3026_v48 = vadd.f32 %v3025_v47, %v3024_v42  ;;  %v2915_v49 = vpop.f32.mrf.mxu0 }
 0x146   : > { %v3027_v50 = vpop.f32.mrf.mxu1 }
 0x147   : > { %v3762_v52 = vadd.f32 %v3026_v48, %v2914_v46  ;;  %v2916_v54 = vpop.f32.mrf.mxu0 }
 0x148   : > { %v2917_v55 = vadd.f32 %v2916_v54, %v2915_v49  ;;  %v3028_v57 = vpop.f32.mrf.mxu1 }
 0x149   : > { %v3029_v58 = vadd.f32 %v3028_v57, %v3027_v50  ;;  %v2918_v60 = vpop.f32.mrf.mxu0 }
 0x14a   : > { %v3030_v61 = vpop.f32.mrf.mxu1 }
 0x14b   : > { %v3764_v63 = vadd.f32 %v3029_v58, %v2917_v55  ;;  %v2919_v0 = vpop.f32.mrf.mxu0 }
 0x14c   : > { %v2920_v2 = vadd.f32 %v2919_v0, %v2918_v60  ;;  %v3031_v3 = vpop.f32.mrf.mxu1 }
 0x14d   : > { %v3032_v4 = vadd.f32 %v3031_v3, %v3030_v61  ;;  %v2921_v5 = vpop.f32.mrf.mxu0 }
 0x14e   : > { %v3033_v7 = vpop.f32.mrf.mxu1 }
 0x14f   : > { %v3766_v8 = vadd.f32 %v3032_v4, %v2920_v2  ;;  %v2922_v10 = vpop.f32.mrf.mxu0 }
 0x150   : > { %v2923_v11 = vadd.f32 %v2922_v10, %v2921_v5  ;;  %v3034_v12 = vpop.f32.mrf.mxu1 }
 0x151   : > { %v3035_v13 = vadd.f32 %v3034_v12, %v3033_v7  ;;  %v2924_v15 = vpop.f32.mrf.mxu0 }
 0x152   : > { %v3036_v18 = vpop.f32.mrf.mxu1 }
 0x153   : > { %v3768_v19 = vadd.f32 %v3035_v13, %v2923_v11  ;;  %v2925_v20 = vpop.f32.mrf.mxu0 }
 0x154   : > { %v2926_v21 = vadd.f32 %v2925_v20, %v2924_v15  ;;  %v3037_v22 = vpop.f32.mrf.mxu1 }
 0x155   : > { %v3038_v24 = vadd.f32 %v3037_v22, %v3036_v18  ;;  %v2927_v26 = vpop.f32.mrf.mxu0 }
 0x156   : > { %v3039_v27 = vpop.f32.mrf.mxu1 }
 0x157   : > { %v3770_v28 = vadd.f32 %v3038_v24, %v2926_v21  ;;  %v2928_v30 = vpop.f32.mrf.mxu0 }
 0x158   : > { %v2929_v31 = vadd.f32 %v2928_v30, %v2927_v26  ;;  %v3040_v34 = vpop.f32.mrf.mxu1 }
 0x159   : > { %v3041_v35 = vadd.f32 %v3040_v34, %v3039_v27  ;;  %v2930_v38 = vpop.f32.mrf.mxu0 }
 0x15a   : > { %v3042_v39 = vpop.f32.mrf.mxu1 }
 0x15b   : > { %v3772_v40 = vadd.f32 %v3041_v35, %v2929_v31  ;;  %v2931_v42 = vpop.f32.mrf.mxu0 }
 0x15c   : > { %v2932_v44 = vadd.f32 %v2931_v42, %v2930_v38  ;;  %v3043_v46 = vpop.f32.mrf.mxu1 }
 0x15d   : > { %v3044_v47 = vadd.f32 %v3043_v46, %v3042_v39  ;;  %v2933_v48 = vpop.f32.mrf.mxu0 }
 0x15e   : > { %v3045_v49 = vpop.f32.mrf.mxu1 }
 0x15f   : > { %v3774_v50 = vadd.f32 %v3044_v47, %v2932_v44  ;;  %v2934_v54 = vpop.f32.mrf.mxu0 }
 0x160   : > { %v2935_v55 = vadd.f32 %v2934_v54, %v2933_v48  ;;  %v3046_v57 = vpop.f32.mrf.mxu1 }
 0x161   : > { %v3047_v58 = vadd.f32 %v3046_v57, %v3045_v49  ;;  %v2936_v60 = vpop.f32.mrf.mxu0 }
 0x162   : > { %v3048_v61 = vpop.f32.mrf.mxu1 }
 0x163   : > { %v3776_v0 = vadd.f32 %v3047_v58, %v2935_v55  ;;  %v2937_v2 = vpop.f32.mrf.mxu0 }
 0x164   : > { %v2938_v3 = vadd.f32 %v2937_v2, %v2936_v60  ;;  %v3049_v4 = vpop.f32.mrf.mxu1 }
 0x165   : > { %v3050_v5 = vadd.f32 %v3049_v4, %v3048_v61  ;;  %v2939_v7 = vpop.f32.mrf.mxu0 }
 0x166   : > { %v3051_v10 = vpop.f32.mrf.mxu1 }
 0x167   : > { %v3778_v11 = vadd.f32 %v3050_v5, %v2938_v3  ;;  %v2940_v12 = vpop.f32.mrf.mxu0 }
 0x168   : > { %v2941_v13 = vadd.f32 %v2940_v12, %v2939_v7  ;;  %v3052_v15 = vpop.f32.mrf.mxu1 }
 0x169   : > { %v3053_v18 = vadd.f32 %v3052_v15, %v3051_v10  ;;  %v2942_v20 = vpop.f32.mrf.mxu0 }
 0x16a   : > { %v3054_v21 = vpop.f32.mrf.mxu1 }
 0x16b   : > { %v3780_v22 = vadd.f32 %v3053_v18, %v2941_v13  ;;  %v2943_v24 = vpop.f32.mrf.mxu0 }
 0x16c   : > { %v2944_v26 = vadd.f32 %v2943_v24, %v2942_v20  ;;  %v3055_v27 = vpop.f32.mrf.mxu1 }
 0x16d   : > { %v3056_v30 = vadd.f32 %v3055_v27, %v3054_v21  ;;  %v3073_v31 = vpop.f32.mrf.mxu0 }
 0x16e   : > { %v3185_v34 = vpop.f32.mrf.mxu1 }
 0x16f   : > { %v3782_v35 = vadd.f32 %v3056_v30, %v2944_v26  ;;  %v3074_v38 = vpop.f32.mrf.mxu0 }
 0x170   : > { %v3075_v39 = vadd.f32 %v3074_v38, %v3073_v31  ;;  %v3186_v42 = vpop.f32.mrf.mxu1 }
 0x171   : > { %v3076_v44 = vpop.f32.mrf.mxu0  ;;  %v3187_v48 = vadd.f32 %v3186_v42, %v3185_v34 }
 0x172   : > { %v1826_v46 = vadd.f32 %v3075_v39, %v3700_v29  ;;  %v3188_v47 = vpop.f32.mrf.mxu1 }
 0x173   : > { %v3077_v49 = vpop.f32.mrf.mxu0 }
 0x174   : > { %v3078_v54 = vadd.f32 %v3077_v49, %v3076_v44  ;;  %v3189_v55 = vpop.f32.mrf.mxu1  ;;  %v1987_v57 = vadd.f32 %v3187_v48, %v1826_v46 }
 0x175   : > { %v3079_v58 = vpop.f32.mrf.mxu0  ;;  %v3190_v61 = vadd.f32 %v3189_v55, %v3188_v47 }
 0x176   : > { %v1829_v60 = vadd.f32 %v3078_v54, %v3702_v37  ;;  %v3191_v2 = vpop.f32.mrf.mxu1  ;;  %v2311_v10 = vmul.f32 %v1987_v57, %v1987_v57 }
 0x177   : > { %v3080_v3 = vpop.f32.mrf.mxu0 }
 0x178   : > { %v1990_v4 = vadd.f32 %v3190_v61, %v1829_v60  ;;  %v3081_v5 = vadd.f32 %v3080_v3, %v3079_v58  ;;  %v3192_v7 = vpop.f32.mrf.mxu1 }
 0x179   : > { %v3193_v29 = vadd.f32 %v3192_v7, %v3191_v2  ;;  %v3082_v12 = vpop.f32.mrf.mxu0 }
 0x17a   : > { %v2741_v13 = vpack.c.bf16 %v1990_v4, %v1987_v57  ;;  %v2273_v15 = vadd.f32 %v1990_v4, %v1987_v57  ;;  %v2312_v18 = vmul.f32 %v1990_v4, %v1990_v4  ;;  %v1834_v37 = vadd.f32 %v3081_v5, %v3708_v51  ;;  %v3194_v20 = vpop.f32.mrf.mxu1 }
 0x17b   : > { %v3083_v21 = vpop.f32.mrf.mxu0 }
 0x17c   : > { %2742 = vst [vmem:[%s3790_s4] sm:$0xff] %v2741_v13   ;;  %v2343_v24 = vadd.f32 %v2312_v18, %v2311_v10  ;;  %v1995_v26 = vadd.f32 %v3193_v29, %v1834_v37  ;;  %v3084_v27 = vadd.f32 %v3083_v21, %v3082_v12  ;;  %v3195_v30 = vpop.f32.mrf.mxu1 }
 0x17d   : > { %v3085_v31 = vpop.f32.mrf.mxu0  ;;  %v3196_v42 = vadd.f32 %v3195_v30, %v3194_v20 }
 0x17e   : > { %v2274_v34 = vadd.f32 %v2273_v15, %v1995_v26  ;;  %v2313_v38 = vmul.f32 %v1995_v26, %v1995_v26  ;;  %v1837_v39 = vadd.f32 %v3084_v27, %v3710_v59  ;;  %v3197_v44 = vpop.f32.mrf.mxu1 }
 0x17f   : > { %v3086_v46 = vpop.f32.mrf.mxu0 }
 0x180   : > { %v2344_v47 = vadd.f32 %v2343_v24, %v2313_v38  ;;  %v1998_v48 = vadd.f32 %v3196_v42, %v1837_v39  ;;  %v3087_v49 = vadd.f32 %v3086_v46, %v3085_v31  ;;  %v3198_v51 = vpop.f32.mrf.mxu1 }
 0x181   : > { %v3199_v54 = vadd.f32 %v3198_v51, %v3197_v44  ;;  %v3088_v55 = vpop.f32.mrf.mxu0 }
 0x182   : > { %v2746_v57 = vpack.c.bf16 %v1998_v48, %v1995_v26  ;;  %v2275_v58 = vadd.f32 %v2274_v34, %v1998_v48  ;;  %v2314_v60 = vmul.f32 %v1998_v48, %v1998_v48  ;;  %v1842_v61 = vadd.f32 %v3087_v49, %v3716_v9  ;;  %v3200_v2 = vpop.f32.mrf.mxu1 }
 0x183   : > { %v3089_v3 = vpop.f32.mrf.mxu0 }
 0x184   : > { %2818 = vst [vmem:[%s3790_s4 + $0x8] sm:$0xff] %v2746_v57   ;;  %v2345_v4 = vadd.f32 %v2344_v47, %v2314_v60  ;;  %v2003_v59 = vadd.f32 %v3199_v54, %v1842_v61  ;;  %v3090_v5 = vadd.f32 %v3089_v3, %v3088_v55  ;;  %v3201_v7 = vpop.f32.mrf.mxu1 }
 0x185   : > { %v3091_v10 = vpop.f32.mrf.mxu0  ;;  %v3202_v15 = vadd.f32 %v3201_v7, %v3200_v2 }
 0x186   : > { %v2276_v29 = vadd.f32 %v2275_v58, %v2003_v59  ;;  %v2315_v12 = vmul.f32 %v2003_v59, %v2003_v59  ;;  %v1845_v13 = vadd.f32 %v3090_v5, %v3718_v17  ;;  %v3203_v18 = vpop.f32.mrf.mxu1 }
 0x187   : > { %v3092_v37 = vpop.f32.mrf.mxu0 }
 0x188   : > { %v2346_v20 = vadd.f32 %v2345_v4, %v2315_v12  ;;  %v2006_v21 = vadd.f32 %v3202_v15, %v1845_v13  ;;  %v3093_v24 = vadd.f32 %v3092_v37, %v3091_v10  ;;  %v3204_v9 = vpop.f32.mrf.mxu1 }
 0x189   : > { %v3205_v26 = vadd.f32 %v3204_v9, %v3203_v18  ;;  %v3094_v27 = vpop.f32.mrf.mxu0 }
 0x18a   : > { %v2751_v30 = vpack.c.bf16 %v2006_v21, %v2003_v59  ;;  %v2277_v31 = vadd.f32 %v2276_v29, %v2006_v21  ;;  %v2316_v34 = vmul.f32 %v2006_v21, %v2006_v21  ;;  %v1850_v38 = vadd.f32 %v3093_v24, %v3724_v32  ;;  %v3206_v39 = vpop.f32.mrf.mxu1 }
 0x18b   : > { %v3095_v42 = vpop.f32.mrf.mxu0 }
 0x18c   : > { %2819 = vst [vmem:[%s3790_s4 + $0x10] sm:$0xff] %v2751_v30   ;;  %v2347_v44 = vadd.f32 %v2346_v20, %v2316_v34  ;;  %v2011_v17 = vadd.f32 %v3205_v26, %v1850_v38  ;;  %v3096_v46 = vadd.f32 %v3095_v42, %v3094_v27  ;;  %v3207_v47 = vpop.f32.mrf.mxu1 }
 0x18d   : > { %v3097_v48 = vpop.f32.mrf.mxu0  ;;  %v3208_v55 = vadd.f32 %v3207_v47, %v3206_v39 }
 0x18e   : > { %v2278_v49 = vadd.f32 %v2277_v31, %v2011_v17  ;;  %v2317_v51 = vmul.f32 %v2011_v17, %v2011_v17  ;;  %v1853_v54 = vadd.f32 %v3096_v46, %v3726_v41  ;;  %v3209_v57 = vpop.f32.mrf.mxu1 }
 0x18f   : > { %v3098_v58 = vpop.f32.mrf.mxu0 }
 0x190   : > { %v2348_v60 = vadd.f32 %v2347_v44, %v2317_v51  ;;  %v2014_v61 = vadd.f32 %v3208_v55, %v1853_v54  ;;  %v3099_v2 = vadd.f32 %v3098_v58, %v3097_v48  ;;  %v3210_v32 = vpop.f32.mrf.mxu1 }
 0x191   : > { %v3211_v3 = vadd.f32 %v3210_v32, %v3209_v57  ;;  %v3100_v4 = vpop.f32.mrf.mxu0 }
 0x192   : > { %v2756_v59 = vpack.c.bf16 %v2014_v61, %v2011_v17  ;;  %v2279_v5 = vadd.f32 %v2278_v49, %v2014_v61  ;;  %v2318_v7 = vmul.f32 %v2014_v61, %v2014_v61  ;;  %v1858_v10 = vadd.f32 %v3099_v2, %v3732_v56  ;;  %v3212_v29 = vpop.f32.mrf.mxu1 }
 0x193   : > { %v3101_v12 = vpop.f32.mrf.mxu0 }
 0x194   : > { %2820 = vst [vmem:[%s3790_s4 + $0x18] sm:$0xff] %v2756_v59   ;;  %v2349_v13 = vadd.f32 %v2348_v60, %v2318_v7  ;;  %v2019_v41 = vadd.f32 %v3211_v3, %v1858_v10  ;;  %v3102_v15 = vadd.f32 %v3101_v12, %v3100_v4  ;;  %v3213_v18 = vpop.f32.mrf.mxu1 }
 0x195   : > { %v3103_v37 = vpop.f32.mrf.mxu0  ;;  %v3214_v9 = vadd.f32 %v3213_v18, %v3212_v29 }
 0x196   : > { %v2280_v20 = vadd.f32 %v2279_v5, %v2019_v41  ;;  %v2319_v21 = vmul.f32 %v2019_v41, %v2019_v41  ;;  %v1861_v24 = vadd.f32 %v3102_v15, %v3734_v1  ;;  %v3215_v26 = vpop.f32.mrf.mxu1 }
 0x197   : > { %v3104_v27 = vpop.f32.mrf.mxu0 }
 0x198   : > { %v2350_v30 = vadd.f32 %v2349_v13, %v2319_v21  ;;  %v2022_v31 = vadd.f32 %v3214_v9, %v1861_v24  ;;  %v3105_v34 = vadd.f32 %v3104_v27, %v3103_v37  ;;  %v3216_v56 = vpop.f32.mrf.mxu1 }
 0x199   : > { %v3217_v38 = vadd.f32 %v3216_v56, %v3215_v26  ;;  %v3106_v39 = vpop.f32.mrf.mxu0 }
 0x19a   : > { %v2761_v42 = vpack.c.bf16 %v2022_v31, %v2019_v41  ;;  %v2281_v44 = vadd.f32 %v2280_v20, %v2022_v31  ;;  %v2320_v17 = vmul.f32 %v2022_v31, %v2022_v31  ;;  %v1866_v46 = vadd.f32 %v3105_v34, %v3740_v16  ;;  %v3218_v47 = vpop.f32.mrf.mxu1 }
 0x19b   : > { %v3107_v48 = vpop.f32.mrf.mxu0 }
 0x19c   : > { %2821 = vst [vmem:[%s3790_s4 + $0x20] sm:$0xff] %v2761_v42   ;;  %v2351_v49 = vadd.f32 %v2350_v30, %v2320_v17  ;;  %v2027_v1 = vadd.f32 %v3217_v38, %v1866_v46  ;;  %v3108_v51 = vadd.f32 %v3107_v48, %v3106_v39  ;;  %v3219_v54 = vpop.f32.mrf.mxu1 }
 0x19d   : > { %v3109_v55 = vpop.f32.mrf.mxu0  ;;  %v3220_v61 = vadd.f32 %v3219_v54, %v3218_v47 }
 0x19e   : > { %v2282_v57 = vadd.f32 %v2281_v44, %v2027_v1  ;;  %v2321_v58 = vmul.f32 %v2027_v1, %v2027_v1  ;;  %v1869_v60 = vadd.f32 %v3108_v51, %v3742_v25  ;;  %v3221_v2 = vpop.f32.mrf.mxu1 }
 0x19f   : > { %v3110_v32 = vpop.f32.mrf.mxu0 }
 0x1a0   : > { %v2352_v3 = vadd.f32 %v2351_v49, %v2321_v58  ;;  %v2030_v4 = vadd.f32 %v3220_v61, %v1869_v60  ;;  %v3111_v59 = vadd.f32 %v3110_v32, %v3109_v55  ;;  %v3222_v16 = vpop.f32.mrf.mxu1 }
 0x1a1   : > { %v3223_v5 = vadd.f32 %v3222_v16, %v3221_v2  ;;  %v3112_v7 = vpop.f32.mrf.mxu0 }
 0x1a2   : > { %v2766_v10 = vpack.c.bf16 %v2030_v4, %v2027_v1  ;;  %v2283_v29 = vadd.f32 %v2282_v57, %v2030_v4  ;;  %v2322_v12 = vmul.f32 %v2030_v4, %v2030_v4  ;;  %v1874_v13 = vadd.f32 %v3111_v59, %v3744_v36  ;;  %v3224_v41 = vpop.f32.mrf.mxu1 }
 0x1a3   : > { %v3113_v15 = vpop.f32.mrf.mxu0 }
 0x1a4   : > { %2822 = vst [vmem:[%s3790_s4 + $0x28] sm:$0xff] %v2766_v10   ;;  %v2353_v18 = vadd.f32 %v2352_v3, %v2322_v12  ;;  %v2035_v25 = vadd.f32 %v3223_v5, %v1874_v13  ;;  %v3114_v37 = vadd.f32 %v3113_v15, %v3112_v7  ;;  %v3225_v20 = vpop.f32.mrf.mxu1 }
 0x1a5   : > { %v3115_v21 = vpop.f32.mrf.mxu0  ;;  %v3226_v27 = vadd.f32 %v3225_v20, %v3224_v41 }
 0x1a6   : > { %v2284_v24 = vadd.f32 %v2283_v29, %v2035_v25  ;;  %v2323_v9 = vmul.f32 %v2035_v25, %v2035_v25  ;;  %v1877_v26 = vadd.f32 %v3114_v37, %v3746_v45  ;;  %v3227_v30 = vpop.f32.mrf.mxu1 }
 0x1a7   : > { %v3116_v31 = vpop.f32.mrf.mxu0 }
 0x1a8   : > { %v2354_v34 = vadd.f32 %v2353_v18, %v2323_v9  ;;  %v2038_v56 = vadd.f32 %v3226_v27, %v1877_v26  ;;  %v3117_v38 = vadd.f32 %v3116_v31, %v3115_v21  ;;  %v3228_v36 = vpop.f32.mrf.mxu1 }
 0x1a9   : > { %v3229_v39 = vadd.f32 %v3228_v36, %v3227_v30  ;;  %v3118_v42 = vpop.f32.mrf.mxu0 }
 0x1aa   : > { %v2771_v44 = vpack.c.bf16 %v2038_v56, %v2035_v25  ;;  %v2285_v17 = vadd.f32 %v2284_v24, %v2038_v56  ;;  %v2324_v46 = vmul.f32 %v2038_v56, %v2038_v56  ;;  %v1882_v47 = vadd.f32 %v3117_v38, %v3748_v53  ;;  %v3230_v48 = vpop.f32.mrf.mxu1 }
 0x1ab   : > { %v3119_v49 = vpop.f32.mrf.mxu0 }
 0x1ac   : > { %2823 = vst [vmem:[%s3790_s4 + $0x30] sm:$0xff] %v2771_v44   ;;  %v2355_v1 = vadd.f32 %v2354_v34, %v2324_v46  ;;  %v2043_v45 = vadd.f32 %v3229_v39, %v1882_v47  ;;  %v3120_v51 = vadd.f32 %v3119_v49, %v3118_v42  ;;  %v3231_v54 = vpop.f32.mrf.mxu1 }
 0x1ad   : > { %v3121_v55 = vpop.f32.mrf.mxu0  ;;  %v3232_v61 = vadd.f32 %v3231_v54, %v3230_v48 }
 0x1ae   : > { %v2286_v57 = vadd.f32 %v2285_v17, %v2043_v45  ;;  %v2325_v58 = vmul.f32 %v2043_v45, %v2043_v45  ;;  %v1885_v60 = vadd.f32 %v3120_v51, %v3750_v62  ;;  %v3233_v2 = vpop.f32.mrf.mxu1 }
 0x1af   : > { %v3122_v32 = vpop.f32.mrf.mxu0 }
 0x1b0   : > { %v2356_v3 = vadd.f32 %v2355_v1, %v2325_v58  ;;  %v2046_v4 = vadd.f32 %v3232_v61, %v1885_v60  ;;  %v3123_v59 = vadd.f32 %v3122_v32, %v3121_v55  ;;  %v3234_v53 = vpop.f32.mrf.mxu1 }
 0x1b1   : > { %v3235_v16 = vadd.f32 %v3234_v53, %v3233_v2  ;;  %v3124_v5 = vpop.f32.mrf.mxu0 }
 0x1b2   : > { %v2776_v7 = vpack.c.bf16 %v2046_v4, %v2043_v45  ;;  %v2287_v10 = vadd.f32 %v2286_v57, %v2046_v4  ;;  %v2326_v29 = vmul.f32 %v2046_v4, %v2046_v4  ;;  %v1890_v12 = vadd.f32 %v3123_v59, %v3752_v6  ;;  %v3236_v13 = vpop.f32.mrf.mxu1 }
 0x1b3   : > { %v3125_v41 = vpop.f32.mrf.mxu0 }
 0x1b4   : > { %2824 = vst [vmem:[%s3790_s4 + $0x38] sm:$0xff] %v2776_v7   ;;  %v2357_v15 = vadd.f32 %v2356_v3, %v2326_v29  ;;  %v2051_v62 = vadd.f32 %v3235_v16, %v1890_v12  ;;  %v3126_v18 = vadd.f32 %v3125_v41, %v3124_v5  ;;  %v3237_v25 = vpop.f32.mrf.mxu1 }
 0x1b5   : > { %v3127_v37 = vpop.f32.mrf.mxu0  ;;  %v3238_v9 = vadd.f32 %v3237_v25, %v3236_v13 }
 0x1b6   : > { %v2288_v20 = vadd.f32 %v2287_v10, %v2051_v62  ;;  %v2327_v21 = vmul.f32 %v2051_v62, %v2051_v62  ;;  %v1893_v24 = vadd.f32 %v3126_v18, %v3754_v14  ;;  %v3239_v26 = vpop.f32.mrf.mxu1 }
 0x1b7   : > { %v3128_v27 = vpop.f32.mrf.mxu0 }
 0x1b8   : > { %v2358_v30 = vadd.f32 %v2357_v15, %v2327_v21  ;;  %v2054_v31 = vadd.f32 %v3238_v9, %v1893_v24  ;;  %v3129_v34 = vadd.f32 %v3128_v27, %v3127_v37  ;;  %v3240_v6 = vpop.f32.mrf.mxu1 }
 0x1b9   : > { %v3241_v56 = vadd.f32 %v3240_v6, %v3239_v26  ;;  %v3130_v38 = vpop.f32.mrf.mxu0 }
 0x1ba   : > { %v2781_v36 = vpack.c.bf16 %v2054_v31, %v2051_v62  ;;  %v2289_v39 = vadd.f32 %v2288_v20, %v2054_v31  ;;  %v2328_v42 = vmul.f32 %v2054_v31, %v2054_v31  ;;  %v1898_v44 = vadd.f32 %v3129_v34, %v3756_v23  ;;  %v3242_v17 = vpop.f32.mrf.mxu1 }
 0x1bb   : > { %v3131_v46 = vpop.f32.mrf.mxu0 }
 0x1bc   : > { %2825 = vst [vmem:[%s3790_s4 + $0x40] sm:$0xff] %v2781_v36   ;;  %v2359_v47 = vadd.f32 %v2358_v30, %v2328_v42  ;;  %v2059_v14 = vadd.f32 %v3241_v56, %v1898_v44  ;;  %v3132_v48 = vadd.f32 %v3131_v46, %v3130_v38  ;;  %v3243_v49 = vpop.f32.mrf.mxu1 }
 0x1bd   : > { %v3133_v1 = vpop.f32.mrf.mxu0  ;;  %v3244_v55 = vadd.f32 %v3243_v49, %v3242_v17 }
 0x1be   : > { %v2290_v45 = vadd.f32 %v2289_v39, %v2059_v14  ;;  %v2329_v51 = vmul.f32 %v2059_v14, %v2059_v14  ;;  %v1901_v54 = vadd.f32 %v3132_v48, %v3758_v33  ;;  %v3245_v57 = vpop.f32.mrf.mxu1 }
 0x1bf   : > { %v3134_v58 = vpop.f32.mrf.mxu0 }
 0x1c0   : > { %v2360_v60 = vadd.f32 %v2359_v47, %v2329_v51  ;;  %v2062_v61 = vadd.f32 %v3244_v55, %v1901_v54  ;;  %v3135_v2 = vadd.f32 %v3134_v58, %v3133_v1  ;;  %v3246_v23 = vpop.f32.mrf.mxu1 }
 0x1c1   : > { %v3247_v32 = vadd.f32 %v3246_v23, %v3245_v57  ;;  %v3136_v3 = vpop.f32.mrf.mxu0 }
 0x1c2   : > { %v2786_v4 = vpack.c.bf16 %v2062_v61, %v2059_v14  ;;  %v2291_v59 = vadd.f32 %v2290_v45, %v2062_v61  ;;  %v2330_v53 = vmul.f32 %v2062_v61, %v2062_v61  ;;  %v1906_v16 = vadd.f32 %v3135_v2, %v3760_v43  ;;  %v3248_v5 = vpop.f32.mrf.mxu1 }
 0x1c3   : > { %v3137_v7 = vpop.f32.mrf.mxu0 }
 0x1c4   : > { %2826 = vst [vmem:[%s3790_s4 + $0x48] sm:$0xff] %v2786_v4   ;;  %v2361_v10 = vadd.f32 %v2360_v60, %v2330_v53  ;;  %v2067_v33 = vadd.f32 %v3247_v32, %v1906_v16  ;;  %v3138_v29 = vadd.f32 %v3137_v7, %v3136_v3  ;;  %v3249_v12 = vpop.f32.mrf.mxu1 }
 0x1c5   : > { %v3139_v13 = vpop.f32.mrf.mxu0  ;;  %v3250_v18 = vadd.f32 %v3249_v12, %v3248_v5 }
 0x1c6   : > { %v2292_v41 = vadd.f32 %v2291_v59, %v2067_v33  ;;  %v2331_v15 = vmul.f32 %v2067_v33, %v2067_v33  ;;  %v1909_v62 = vadd.f32 %v3138_v29, %v3762_v52  ;;  %v3251_v25 = vpop.f32.mrf.mxu1 }
 0x1c7   : > { %v3140_v37 = vpop.f32.mrf.mxu0 }
 0x1c8   : > { %v2362_v20 = vadd.f32 %v2361_v10, %v2331_v15  ;;  %v2070_v21 = vadd.f32 %v3250_v18, %v1909_v62  ;;  %v3141_v24 = vadd.f32 %v3140_v37, %v3139_v13  ;;  %v3252_v43 = vpop.f32.mrf.mxu1 }
 0x1c9   : > { %v3253_v9 = vadd.f32 %v3252_v43, %v3251_v25  ;;  %v3142_v26 = vpop.f32.mrf.mxu0 }
 0x1ca   : > { %v2791_v27 = vpack.c.bf16 %v2070_v21, %v2067_v33  ;;  %v2293_v30 = vadd.f32 %v2292_v41, %v2070_v21  ;;  %v2332_v31 = vmul.f32 %v2070_v21, %v2070_v21  ;;  %v1914_v34 = vadd.f32 %v3141_v24, %v3764_v63  ;;  %v3254_v6 = vpop.f32.mrf.mxu1 }
 0x1cb   : > { %v3143_v56 = vpop.f32.mrf.mxu0 }
 0x1cc   : > { %2827 = vst [vmem:[%s3790_s4 + $0x50] sm:$0xff] %v2791_v27   ;;  %v2363_v38 = vadd.f32 %v2362_v20, %v2332_v31  ;;  %v2075_v52 = vadd.f32 %v3253_v9, %v1914_v34  ;;  %v3144_v36 = vadd.f32 %v3143_v56, %v3142_v26  ;;  %v3255_v39 = vpop.f32.mrf.mxu1 }
 0x1cd   : > { %v3145_v42 = vpop.f32.mrf.mxu0  ;;  %v3256_v47 = vadd.f32 %v3255_v39, %v3254_v6 }
 0x1ce   : > { %v2294_v44 = vadd.f32 %v2293_v30, %v2075_v52  ;;  %v2333_v17 = vmul.f32 %v2075_v52, %v2075_v52  ;;  %v1917_v46 = vadd.f32 %v3144_v36, %v3766_v8  ;;  %v3257_v14 = vpop.f32.mrf.mxu1 }
 0x1cf   : > { %v3146_v48 = vpop.f32.mrf.mxu0 }
 0x1d0   : > { %v2364_v49 = vadd.f32 %v2363_v38, %v2333_v17  ;;  %v2078_v1 = vadd.f32 %v3256_v47, %v1917_v46  ;;  %v3147_v45 = vadd.f32 %v3146_v48, %v3145_v42  ;;  %v3258_v63 = vpop.f32.mrf.mxu1 }
 0x1d1   : > { %v3259_v51 = vadd.f32 %v3258_v63, %v3257_v14  ;;  %v3148_v54 = vpop.f32.mrf.mxu0 }
 0x1d2   : > { %v2796_v55 = vpack.c.bf16 %v2078_v1, %v2075_v52  ;;  %v2295_v57 = vadd.f32 %v2294_v44, %v2078_v1  ;;  %v2334_v58 = vmul.f32 %v2078_v1, %v2078_v1  ;;  %v1922_v60 = vadd.f32 %v3147_v45, %v3768_v19  ;;  %v3260_v61 = vpop.f32.mrf.mxu1 }
 0x1d3   : > { %v3149_v2 = vpop.f32.mrf.mxu0 }
 0x1d4   : > { %2828 = vst [vmem:[%s3790_s4 + $0x58] sm:$0xff] %v2796_v55   ;;  %v2365_v23 = vadd.f32 %v2364_v49, %v2334_v58  ;;  %v2083_v8 = vadd.f32 %v3259_v51, %v1922_v60  ;;  %v3150_v32 = vadd.f32 %v3149_v2, %v3148_v54  ;;  %v3261_v3 = vpop.f32.mrf.mxu1 }
 0x1d5   : > { %v3151_v4 = vpop.f32.mrf.mxu0  ;;  %v3262_v5 = vadd.f32 %v3261_v3, %v3260_v61 }
 0x1d6   : > { %v2296_v59 = vadd.f32 %v2295_v57, %v2083_v8  ;;  %v2335_v53 = vmul.f32 %v2083_v8, %v2083_v8  ;;  %v1925_v16 = vadd.f32 %v3150_v32, %v3770_v28  ;;  %v3263_v7 = vpop.f32.mrf.mxu1 }
 0x1d7   : > { %v3152_v10 = vpop.f32.mrf.mxu0 }
 0x1d8   : > { %v2366_v33 = vadd.f32 %v2365_v23, %v2335_v53  ;;  %v2086_v29 = vadd.f32 %v3262_v5, %v1925_v16  ;;  %v3153_v12 = vadd.f32 %v3152_v10, %v3151_v4  ;;  %v3264_v19 = vpop.f32.mrf.mxu1 }
 0x1d9   : > { %v3265_v13 = vadd.f32 %v3264_v19, %v3263_v7  ;;  %v3154_v41 = vpop.f32.mrf.mxu0 }
 0x1da   : > { %v2801_v15 = vpack.c.bf16 %v2086_v29, %v2083_v8  ;;  %v2297_v62 = vadd.f32 %v2296_v59, %v2086_v29  ;;  %v2336_v18 = vmul.f32 %v2086_v29, %v2086_v29  ;;  %v1930_v25 = vadd.f32 %v3153_v12, %v3772_v40  ;;  %v3266_v37 = vpop.f32.mrf.mxu1 }
 0x1db   : > { %v3155_v20 = vpop.f32.mrf.mxu0 }
 0x1dc   : > { %2829 = vst [vmem:[%s3790_s4 + $0x60] sm:$0xff] %v2801_v15   ;;  %v2367_v21 = vadd.f32 %v2366_v33, %v2336_v18  ;;  %v2091_v28 = vadd.f32 %v3265_v13, %v1930_v25  ;;  %v3156_v24 = vadd.f32 %v3155_v20, %v3154_v41  ;;  %v3267_v43 = vpop.f32.mrf.mxu1 }
 0x1dd   : > { %v3157_v9 = vpop.f32.mrf.mxu0  ;;  %v3268_v31 = vadd.f32 %v3267_v43, %v3266_v37 }
 0x1de   : > { %v2298_v26 = vadd.f32 %v2297_v62, %v2091_v28  ;;  %v2337_v27 = vmul.f32 %v2091_v28, %v2091_v28  ;;  %v1933_v30 = vadd.f32 %v3156_v24, %v3774_v50  ;;  %v3269_v34 = vpop.f32.mrf.mxu1 }
 0x1df   : > { %v3158_v6 = vpop.f32.mrf.mxu0 }
 0x1e0   : > { %v2368_v56 = vadd.f32 %v2367_v21, %v2337_v27  ;;  %v2094_v38 = vadd.f32 %v3268_v31, %v1933_v30  ;;  %v3159_v52 = vadd.f32 %v3158_v6, %v3157_v9  ;;  %v3270_v40 = vpop.f32.mrf.mxu1 }
 0x1e1   : > { %v3271_v36 = vadd.f32 %v3270_v40, %v3269_v34  ;;  %v3160_v39 = vpop.f32.mrf.mxu0 }
 0x1e2   : > { %v2806_v42 = vpack.c.bf16 %v2094_v38, %v2091_v28  ;;  %v2299_v44 = vadd.f32 %v2298_v26, %v2094_v38  ;;  %v2338_v17 = vmul.f32 %v2094_v38, %v2094_v38  ;;  %v1938_v46 = vadd.f32 %v3159_v52, %v3776_v0  ;;  %v3272_v47 = vpop.f32.mrf.mxu1 }
 0x1e3   : > { %v3161_v14 = vpop.f32.mrf.mxu0 }
 0x1e4   : > { %2830 = vst [vmem:[%s3790_s4 + $0x68] sm:$0xff] %v2806_v42   ;;  %v2369_v48 = vadd.f32 %v2368_v56, %v2338_v17  ;;  %v2099_v50 = vadd.f32 %v3271_v36, %v1938_v46  ;;  %v3162_v49 = vadd.f32 %v3161_v14, %v3160_v39  ;;  %v3273_v1 = vpop.f32.mrf.mxu1 }
 0x1e5   : > { %v3163_v45 = vpop.f32.mrf.mxu0  ;;  %v3274_v55 = vadd.f32 %v3273_v1, %v3272_v47 }
 0x1e6   : > { %v2300_v63 = vadd.f32 %v2299_v44, %v2099_v50  ;;  %v2339_v51 = vmul.f32 %v2099_v50, %v2099_v50  ;;  %v1941_v54 = vadd.f32 %v3162_v49, %v3778_v11  ;;  %v3275_v57 = vpop.f32.mrf.mxu1 }
 0x1e7   : > { %v3164_v58 = vpop.f32.mrf.mxu0 }
 0x1e8   : > { %v2370_v60 = vadd.f32 %v2369_v48, %v2339_v51  ;;  %v2102_v61 = vadd.f32 %v3274_v55, %v1941_v54  ;;  %v3165_v2 = vadd.f32 %v3164_v58, %v3163_v45  ;;  %v3276_v0 = vpop.f32.mrf.mxu1 }
 0x1e9   : > { %v3277_v23 = vadd.f32 %v3276_v0, %v3275_v57  ;;  %v3166_v8 = vpop.f32.mrf.mxu0 }
 0x1ea   : > { %v2811_v32 = vpack.c.bf16 %v2102_v61, %v2099_v50  ;;  %v2301_v3 = vadd.f32 %v2300_v63, %v2102_v61  ;;  %v2340_v4 = vmul.f32 %v2102_v61, %v2102_v61  ;;  %v1946_v59 = vadd.f32 %v3165_v2, %v3780_v22  ;;  %v3278_v53 = vpop.f32.mrf.mxu1 }
 0x1eb   : > { %v3167_v16 = vpop.f32.mrf.mxu0 }
 0x1ec   : > { %2831 = vst [vmem:[%s3790_s4 + $0x70] sm:$0xff] %v2811_v32   ;;  %v2371_v11 = vadd.f32 %v2370_v60, %v2340_v4  ;;  %v2107_v5 = vadd.f32 %v3277_v23, %v1946_v59  ;;  %v3168_v7 = vadd.f32 %v3167_v16, %v3166_v8  ;;  %v3279_v10 = vpop.f32.mrf.mxu1 }
 0x1ed   : > { %v3280_v19 = vadd.f32 %v3279_v10, %v3278_v53 }
 0x1ee   : > { %v2302_v33 = vadd.f32 %v2301_v3, %v2107_v5  ;;  %v2341_v29 = vmul.f32 %v2107_v5, %v2107_v5  ;;  %v1949_v12 = vadd.f32 %v3168_v7, %v3782_v35 }
 0x1f0   : > { %v2372_v13 = vadd.f32 %v2371_v11, %v2341_v29  ;;  %v2110_v41 = vadd.f32 %v3280_v19, %v1949_v12 }
 0x1f2   : > { %v2816_v15 = vpack.c.bf16 %v2110_v41, %v2107_v5  ;;  %v2303_v62 = vadd.f32 %v2302_v33, %v2110_v41  ;;  %v2342_v22 = vmul.f32 %v2110_v41, %v2110_v41 }
 0x1f4   : > { %2832 = vst [vmem:[%s3790_s4 + $0x78] sm:$0xff] %v2816_v15   ;;  %v2304_v18 = vrot.slane %v2303_v62, 4  ;;  %v2373_v25 = vadd.f32 %v2372_v13, %v2342_v22 }
 0x1f6   : > { %v2305_v37 = vadd.f32 %v2304_v18, %v2303_v62  ;;  %v2374_v20 = vrot.slane %v2373_v25, 4 }
 0x1f8   : > { %v2306_v21 = vrot.slane %v2305_v37, 2  ;;  %v2375_v28 = vadd.f32 %v2374_v20, %v2373_v25 }
 0x1fa   : > { %v2307_v24 = vadd.f32 %v2306_v21, %v2305_v37  ;;  %v2376_v43 = vrot.slane %v2375_v28, 2 }
 0x1fc   : > { %v2308_v9 = vrot.slane %v2307_v24, 1  ;;  %v2377_v35 = vadd.f32 %v2376_v43, %v2375_v28 }
 0x1fe   : > { %v2309_v26 = vadd.f32 %v2308_v9, %v2307_v24  ;;  %v2378_v27 = vrot.slane %v2377_v35, 1 }
 0x200   : > { %2310 = vst [vmem:[%s187_s7] sm:$0x1] %v2309_v26  ;;  %v2379_v30 = vadd.f32 %v2378_v27, %v2377_v35 }
 0x202   : > { %2380 = vst [vmem:[%s187_s7 + $0x1] sm:$0x1] %v2379_v30 }
 0x203 PF: > { %s14_s12 = sadd.s32 1, %s3359_s12  }
 0x204   : > { %p11_p5 = scmp.ge.s32.totalorder %s14_s12, 4  }
 0x206   :  { %13 = sbr.rel (!%p11_p5) target bundleno = 1 (0x1), region = 70 }

// kernel: discriminator_forward.13
= control target key start
LH: loop header
LB: loop body
LE: loop exit
PB: predicated region body
PF: predicated region fallthrough
CT: control target
= control target key end

     0   :  { %s456_s12 = smov 0   ;;  %s546_s0 = inlined_call_operand.vmem [shape: bf16[128,256], index: 0, kind: input, shape index: {}]   ;;  %s547_s1 = inlined_call_operand.vmem [shape: f32[1,256], index: 1, kind: input, shape index: {}]   ;;  %s548_s2 = inlined_call_operand.vmem [shape: f32[1,256], index: 2, kind: input, shape index: {}]   ;;  %s549_s3 = inlined_call_operand.vmem [shape: bf16[128,256], index: 3, kind: output, shape index: {}]  }
   0x1 LB: > { %s389_s13 = sadd.s32 4294967295, %s434_s12   ;;  %p393_p0 = scmp.ge.s32.totalorder %s434_s12, 1  ;;  %s434_s12 = sphi %s456_s12, %s13_s12  }
   0x2   : > { %p139_p1 = scmp.lt.s32.totalorder %s434_s12, 3 }
   0x4   : > { %p140_p2 = pnand %p393_p0, %p139_p1 }
   0x5   : > { %s394_s14 = sshll.u32 (!%p140_p2), %s389_s13, 3 }
   0x6   : > { %143 = sbr.rel (%p140_p2) target bundleno = 39 (0x27), region = 32  ;;  %p166_p3 = scmp.lt.s32.totalorder (!%p140_p2), %s394_s14, 15 }
   0xb   : > { %v205_v0 = vlaneseq  ;;  %s551_s14 = smov (!%p166_p3, %s394_s14), 15  ;;  %v203_v2 = vld [vmem:[%s547_s1] sm:$0x3] }
   0xc   : > { %v231_v5 = vld [vmem:[%s548_s2] sm:$0x3]  ;;  %s410_s19 = sshll.u32 %s551_s14, 3 }
   0xd   : > { %v206_v1 = vshrl.u32 %v205_v0, 7  ;;  %s478_s22 = scalar_lea.vmem %s546_s0, %s410_s19  ;;  %s515_s25 = scalar_lea.vmem %s549_s3, %s410_s19 }
   0xe   : > { %v179_v8 = vld [vmem:[%s478_s22] sm:$0xff]  ;;  %v180_v11 = vld [vmem:[%s478_s22 + $0x8] sm:$0xff]  ;;  %v181_v12 = vld [vmem:[%s478_s22 + $0x10] sm:$0xff] }
   0xf   : > { %v207_v3 = vsub.s32 0, %v206_v1  ;;  %v211_v4 = vsub.s32 1, %v206_v1  ;;  %v187_v13 = vunpack.c.l.bf16 %v179_v8  ;;  %v188_v14 = vunpack.c.h.bf16 %v179_v8  ;;  %v182_v17 = vld [vmem:[%s478_s22 + $0x18] sm:$0xff]  ;;  %v183_v38 = vld [vmem:[%s478_s22 + $0x20] sm:$0xff]  ;;  %v184_v43 = vld [vmem:[%s478_s22 + $0x28] sm:$0xff] }
  0x10   : > { %v189_v15 = vunpack.c.l.bf16 %v180_v11  ;;  %v190_v16 = vunpack.c.h.bf16 %v180_v11  ;;  %v191_v18 = vunpack.c.l.bf16 %v181_v12  ;;  %v192_v19 = vunpack.c.h.bf16 %v181_v12  ;;  %v185_v48 = vld [vmem:[%s478_s22 + $0x30] sm:$0xff]  ;;  %v186_v53 = vld [vmem:[%s478_s22 + $0x38] sm:$0xff] }
  0x11   : > { %v480_v6 = vrot.slane %v203_v2, %v207_v3  ;;  %v482_v7 = vrot.slane %v203_v2, %v211_v4  ;;  %v485_v9 = vrot.slane %v231_v5, %v207_v3  ;;  %v487_v10 = vrot.slane %v231_v5, %v211_v4 }
  0x12   : > { %v193_v20 = vunpack.c.l.bf16 %v182_v17  ;;  %v194_v21 = vunpack.c.h.bf16 %v182_v17  ;;  %v195_v51 = vunpack.c.l.bf16 %v183_v38  ;;  %v196_v52 = vunpack.c.h.bf16 %v183_v38 }
  0x13   : > { %v215_v22 = vmul.f32 %v480_v6, %v187_v13  ;;  %v216_v23 = vmul.f32 %v482_v7, %v188_v14  ;;  %v217_v24 = vmul.f32 %v480_v6, %v189_v15  ;;  %v218_v25 = vmul.f32 %v482_v7, %v190_v16 }
  0x14   : > { %v219_v26 = vmul.f32 %v480_v6, %v191_v18  ;;  %v220_v27 = vmul.f32 %v482_v7, %v192_v19  ;;  %v221_v28 = vmul.f32 %v480_v6, %v193_v20  ;;  %v222_v29 = vmul.f32 %v482_v7, %v194_v21 }
  0x15   : > { %v243_v30 = vadd.f32 %v485_v9, %v215_v22  ;;  %v244_v31 = vadd.f32 %v487_v10, %v216_v23  ;;  %v245_v32 = vadd.f32 %v485_v9, %v217_v24  ;;  %v246_v33 = vadd.f32 %v487_v10, %v218_v25 }
  0x16   : > { %v247_v34 = vadd.f32 %v485_v9, %v219_v26  ;;  %v248_v35 = vadd.f32 %v487_v10, %v220_v27  ;;  %v249_v36 = vadd.f32 %v485_v9, %v221_v28  ;;  %v250_v37 = vadd.f32 %v487_v10, %v222_v29 }
  0x17   : > { %v259_v39 = vmax.f32 %v243_v30, 0.0  ;;  %v260_v40 = vmax.f32 %v244_v31, 0.0  ;;  %v261_v41 = vmax.f32 %v245_v32, 0.0  ;;  %v262_v42 = vmax.f32 %v246_v33, 0.0 }
  0x18   : > { %v263_v44 = vmax.f32 %v247_v34, 0.0  ;;  %v264_v45 = vmax.f32 %v248_v35, 0.0  ;;  %v265_v46 = vmax.f32 %v249_v36, 0.0  ;;  %v266_v47 = vmax.f32 %v250_v37, 0.0 }
  0x19   : > { %v412_v49 = vpack.c.bf16 %v260_v40, %v259_v39  ;;  %v413_v50 = vpack.c.bf16 %v262_v42, %v261_v41  ;;  %v197_v56 = vunpack.c.l.bf16 %v184_v43  ;;  %v198_v57 = vunpack.c.h.bf16 %v184_v43 }
  0x1a   : > { %v414_v54 = vpack.c.bf16 %v264_v45, %v263_v44  ;;  %v415_v55 = vpack.c.bf16 %v266_v47, %v265_v46  ;;  %v223_v58 = vmul.f32 %v480_v6, %v195_v51  ;;  %v224_v59 = vmul.f32 %v482_v7, %v196_v52 }
  0x1b   : > { %323 = vst [vmem:[%s515_s25] sm:$0xff] %v412_v49  ;;  %324 = vst [vmem:[%s515_s25 + $0x8] sm:$0xff] %v413_v50  ;;  %v199_v60 = vunpack.c.l.bf16 %v185_v48  ;;  %v200_v61 = vunpack.c.h.bf16 %v185_v48  ;;  %v225_v62 = vmul.f32 %v480_v6, %v197_v56  ;;  %v226_v63 = vmul.f32 %v482_v7, %v198_v57 }
  0x1c   : > { %325 = vst [vmem:[%s515_s25 + $0x10] sm:$0xff] %v414_v54  ;;  %326 = vst [vmem:[%s515_s25 + $0x18] sm:$0xff] %v415_v55  ;;  %v201_v0 = vunpack.c.l.bf16 %v186_v53  ;;  %v202_v1 = vunpack.c.h.bf16 %v186_v53  ;;  %v251_v2 = vadd.f32 %v485_v9, %v223_v58  ;;  %v252_v3 = vadd.f32 %v487_v10, %v224_v59 }
  0x1d   : > { %v227_v4 = vmul.f32 %v480_v6, %v199_v60  ;;  %v228_v5 = vmul.f32 %v482_v7, %v200_v61  ;;  %v253_v8 = vadd.f32 %v485_v9, %v225_v62  ;;  %v254_v11 = vadd.f32 %v487_v10, %v226_v63 }
  0x1e   : > { %v229_v12 = vmul.f32 %v480_v6, %v201_v0  ;;  %v230_v13 = vmul.f32 %v482_v7, %v202_v1  ;;  %v267_v14 = vmax.f32 %v251_v2, 0.0  ;;  %v268_v15 = vmax.f32 %v252_v3, 0.0 }
  0x1f   : > { %v255_v16 = vadd.f32 %v485_v9, %v227_v4  ;;  %v256_v17 = vadd.f32 %v487_v10, %v228_v5  ;;  %v269_v18 = vmax.f32 %v253_v8, 0.0  ;;  %v270_v19 = vmax.f32 %v254_v11, 0.0 }
  0x20   : > { %v257_v20 = vadd.f32 %v485_v9, %v229_v12  ;;  %v258_v21 = vadd.f32 %v487_v10, %v230_v13  ;;  %v416_v22 = vpack.c.bf16 %v268_v15, %v267_v14 }
  0x21   : > { %v271_v6 = vmax.f32 %v255_v16, 0.0  ;;  %v272_v23 = vmax.f32 %v256_v17, 0.0  ;;  %v417_v24 = vpack.c.bf16 %v270_v19, %v269_v18 }
  0x22   : > { %v273_v7 = vmax.f32 %v257_v20, 0.0  ;;  %v274_v25 = vmax.f32 %v258_v21, 0.0  ;;  %327 = vst [vmem:[%s515_s25 + $0x20] sm:$0xff] %v416_v22 }
  0x23   : > { %v418_v26 = vpack.c.bf16 %v272_v23, %v271_v6  ;;  %328 = vst [vmem:[%s515_s25 + $0x28] sm:$0xff] %v417_v24 }
  0x24   : > { %v419_v27 = vpack.c.bf16 %v274_v25, %v273_v7 }
  0x25   : > { %329 = vst [vmem:[%s515_s25 + $0x30] sm:$0xff] %v418_v26 }
  0x26   : > { %330 = vst [vmem:[%s515_s25 + $0x38] sm:$0xff] %v419_v27 }
  0x27 PF: > { %s13_s12 = sadd.s32 1, %s434_s12  }
  0x28   : > { %p10_p4 = scmp.ge.s32.totalorder %s13_s12, 4  }
  0x2a   :  { %12 = sbr.rel (!%p10_p4) target bundleno = 1 (0x1), region = 62 }

// kernel: discriminator_forward.12
= control target key start
LH: loop header
LB: loop body
LE: loop exit
PB: predicated region body
PF: predicated region fallthrough
CT: control target
= control target key end

     0   :  { %s3731_s12 = smov 0   ;;  %s4844_s0 = inlined_call_operand.vmem [shape: bf16[128,2048], index: 0, kind: input, shape index: {}]   ;;  %s4845_s1 = inlined_call_operand.vmem [shape: bf16[2048,256], index: 1, kind: input, shape index: {}]   ;;  %s4846_s2 = inlined_call_operand.vmem [shape: bf16[128,256], index: 2, kind: output, shape index: {0}]   ;;  %s4847_s3 = inlined_call_operand.vmem [shape: f32[2,2,256], index: 3, kind: output, shape index: {1}]  }
   0x1 LB: > { %s3737_s13 = sadd.s32 4294967295, %s3708_s12   ;;  %p2958_p0 = scmp.ge.s32.totalorder %s3708_s12, 1  ;;  %s3708_s12 = sphi %s3731_s12, %s14_s12  }
   0x2   : > { %p142_p1 = scmp.lt.s32.totalorder %s3708_s12, 3 }
   0x4   : > { %p143_p2 = pnand %p2958_p0, %p142_p1 }
   0x6   : > { %146 = sbr.rel (%p143_p2) target bundleno = 519 (0x207), region = 28 }
   0xb   : > { %v3318_v0 = vld [vmem:[%s4845_s1 + $0x74] ss:$8 sps:$4 sm:$0xff]   ;;  %v3322_v2 = vld [vmem:[%s4845_s1 + $0x70] ss:$8 sps:$4 sm:$0xff]   ;;  %v3324_v4 = vld [vmem:[%s4845_s1 + $0x64] ss:$8 sps:$4 sm:$0xff]  }
   0xc   : > { %v3320_v1 = vld [vmem:[%s4845_s1 + $0x174] ss:$8 sps:$4 sm:$0xff]   ;;  %2112 = vmatprep.subr.bf16.mxu0 %v3318_v0  ;;  %v3323_v3 = vld [vmem:[%s4845_s1 + $0x170] ss:$8 sps:$4 sm:$0xff]   ;;  %v3326_v5 = vld [vmem:[%s4845_s1 + $0x164] ss:$8 sps:$4 sm:$0xff]  }
   0xd   : > { %2185 = vmatprep.subr.bf16.mxu1 %v3320_v1  ;;  %2113 = vmatpush1.bf16.msra.mxu0 %v3322_v2  ;;  %v3328_v6 = vld [vmem:[%s4845_s1 + $0x60] ss:$8 sps:$4 sm:$0xff]   ;;  %v3330_v8 = vld [vmem:[%s4845_s1 + $0x54] ss:$8 sps:$4 sm:$0xff]   ;;  %v3334_v10 = vld [vmem:[%s4845_s1 + $0x50] ss:$8 sps:$4 sm:$0xff]  }
   0xe   : > { %2186 = vmatpush1.bf16.msra.mxu1 %v3323_v3  ;;  %2114 = vmatprep.subr.bf16.mxu0 %v3324_v4  ;;  %v3329_v7 = vld [vmem:[%s4845_s1 + $0x160] ss:$8 sps:$4 sm:$0xff]   ;;  %v3332_v9 = vld [vmem:[%s4845_s1 + $0x154] ss:$8 sps:$4 sm:$0xff]   ;;  %v3335_v11 = vld [vmem:[%s4845_s1 + $0x150] ss:$8 sps:$4 sm:$0xff]  }
   0xf   : > { %2187 = vmatprep.subr.bf16.mxu1 %v3326_v5  ;;  %v3336_v12 = vld [vmem:[%s4845_s1 + $0x44] ss:$8 sps:$4 sm:$0xff]   ;;  %v3340_v14 = vld [vmem:[%s4845_s1 + $0x40] ss:$8 sps:$4 sm:$0xff]   ;;  %v3342_v16 = vld [vmem:[%s4845_s1 + $0x34] ss:$8 sps:$4 sm:$0xff]  }
  0x10   : > { %v3338_v13 = vld [vmem:[%s4845_s1 + $0x144] ss:$8 sps:$4 sm:$0xff]   ;;  %v3341_v15 = vld [vmem:[%s4845_s1 + $0x140] ss:$8 sps:$4 sm:$0xff]   ;;  %v3344_v17 = vld [vmem:[%s4845_s1 + $0x134] ss:$8 sps:$4 sm:$0xff]  }
  0x11   : > { %2115 = vmatpush1.bf16.msra.mxu0 %v3328_v6  ;;  %v3346_v18 = vld [vmem:[%s4845_s1 + $0x30] ss:$8 sps:$4 sm:$0xff]   ;;  %v3348_v20 = vld [vmem:[%s4845_s1 + $0x24] ss:$8 sps:$4 sm:$0xff]   ;;  %v3352_v22 = vld [vmem:[%s4845_s1 + $0x20] ss:$8 sps:$4 sm:$0xff]  }
  0x12   : > { %2188 = vmatpush1.bf16.msra.mxu1 %v3329_v7  ;;  %2116 = vmatprep.subr.bf16.mxu0 %v3330_v8  ;;  %v3347_v19 = vld [vmem:[%s4845_s1 + $0x130] ss:$8 sps:$4 sm:$0xff]   ;;  %v3350_v21 = vld [vmem:[%s4845_s1 + $0x124] ss:$8 sps:$4 sm:$0xff]   ;;  %v3353_v23 = vld [vmem:[%s4845_s1 + $0x120] ss:$8 sps:$4 sm:$0xff]  }
  0x13   : > { %2189 = vmatprep.subr.bf16.mxu1 %v3332_v9  ;;  %v3354_v24 = vld [vmem:[%s4845_s1 + $0x14] ss:$8 sps:$4 sm:$0xff]   ;;  %v3358_v26 = vld [vmem:[%s4845_s1 + $0x10] ss:$8 sps:$4 sm:$0xff]   ;;  %v3360_v28 = vld [vmem:[%s4845_s1 + $0x4] ss:$8 sps:$4 sm:$0xff]  }
  0x14   : > { %v3356_v25 = vld [vmem:[%s4845_s1 + $0x114] ss:$8 sps:$4 sm:$0xff]   ;;  %v3359_v27 = vld [vmem:[%s4845_s1 + $0x110] ss:$8 sps:$4 sm:$0xff]   ;;  %v3362_v29 = vld [vmem:[%s4845_s1 + $0x104] ss:$8 sps:$4 sm:$0xff]  }
  0x15   : > { %2117 = vmatpush1.bf16.msra.mxu0 %v3334_v10  ;;  %s2959_s24 = sshll.u32 %s3737_s13, 3  ;;  %v3364_v30 = vld [vmem:[%s4845_s1] ss:$8 sps:$4 sm:$0xff]   ;;  %v3366_v32 = vld [vmem:[%s4845_s1 + $0xf4] ss:$8 sps:$4 sm:$0xff]   ;;  %p187_p4 = scmp.lt.s32.totalorder %s3737_s13, 1 }
  0x16   : > { %2190 = vmatpush1.bf16.msra.mxu1 %v3335_v11  ;;  %2118 = vmatprep.subr.bf16.mxu0 %v3336_v12  ;;  %v3365_v31 = vld [vmem:[%s4845_s1 + $0x100] ss:$8 sps:$4 sm:$0xff]   ;;  %p174_p3 = scmp.lt.s32.totalorder %s2959_s24, 15  ;;  %v3368_v33 = vld [vmem:[%s4845_s1 + $0x1f4] ss:$8 sps:$4 sm:$0xff]  }
  0x17   : > { %2191 = vmatprep.subr.bf16.mxu1 %v3338_v13  ;;  %v3370_v34 = vld [vmem:[%s4845_s1 + $0xf0] ss:$8 sps:$4 sm:$0xff]   ;;  %v3372_v36 = vld [vmem:[%s4845_s1 + $0xe4] ss:$8 sps:$4 sm:$0xff]   ;;  %v3376_v38 = vld [vmem:[%s4845_s1 + $0xe0] ss:$8 sps:$4 sm:$0xff]  }
  0x18   : > { %v3371_v35 = vld [vmem:[%s4845_s1 + $0x1f0] ss:$8 sps:$4 sm:$0xff]   ;;  %s4895_s24 = smov (!%p174_p3, %s2959_s24), 15  ;;  %v3374_v37 = vld [vmem:[%s4845_s1 + $0x1e4] ss:$8 sps:$4 sm:$0xff]   ;;  %s4897_s13 = smov (!%p187_p4, %s3737_s13), 1 }
  0x19   : > { %2119 = vmatpush1.bf16.msra.mxu0 %v3340_v14  ;;  %v3377_v39 = vld [vmem:[%s4845_s1 + $0x1e0] ss:$8 sps:$4 sm:$0xff]   ;;  %v3378_v40 = vld [vmem:[%s4845_s1 + $0xd4] ss:$8 sps:$4 sm:$0xff]   ;;  %s3298_s22 = sshll.u32 %s4895_s24, 6  ;;  %s3300_s20 = sshll.u32 %s4897_s13, 2 }
  0x1a   : > { %2192 = vmatpush1.bf16.msra.mxu1 %v3341_v15  ;;  %2120 = vmatprep.subr.bf16.mxu0 %v3342_v16  ;;  %v3380_v41 = vld [vmem:[%s4845_s1 + $0x1d4] ss:$8 sps:$4 sm:$0xff]   ;;  %v3382_v42 = vld [vmem:[%s4845_s1 + $0xd0] ss:$8 sps:$4 sm:$0xff]   ;;  %s3880_s5 = scalar_lea.vmem %s4844_s0, %s3298_s22  ;;  %v3384_v44 = vld [vmem:[%s4845_s1 + $0xc4] ss:$8 sps:$4 sm:$0xff]   ;;  %s191_s23 = scalar_lea.vmem %s4847_s3, %s3300_s20 }
  0x1b   : > { %2193 = vmatprep.subr.bf16.mxu1 %v3344_v17  ;;  %v3383_v43 = vld [vmem:[%s4845_s1 + $0x1d0] ss:$8 sps:$4 sm:$0xff]   ;;  %v3386_v45 = vld [vmem:[%s4845_s1 + $0x1c4] ss:$8 sps:$4 sm:$0xff]   ;;  %v3388_v46 = vld [vmem:[%s4845_s1 + $0xc0] ss:$8 sps:$4 sm:$0xff]  }
  0x1c   : > { %v3389_v47 = vld [vmem:[%s4845_s1 + $0x1c0] ss:$8 sps:$4 sm:$0xff]   ;;  %v3390_v52 = vld [vmem:[%s4845_s1 + $0xb4] ss:$8 sps:$4 sm:$0xff]   ;;  %v3394_v56 = vld [vmem:[%s4845_s1 + $0xb0] ss:$8 sps:$4 sm:$0xff]  }
  0x1d   : > { %2121 = vmatpush1.bf16.msra.mxu0 %v3346_v18  ;;  %v192_v48 = vld [vmem:[%s3880_s5] sm:$0xff]  ;;  %v193_v50 = vld [vmem:[%s3880_s5 + $0x8] sm:$0xff]  ;;  %v3392_v54 = vld [vmem:[%s4845_s1 + $0x1b4] ss:$8 sps:$4 sm:$0xff]  }
  0x1e   : > { %2194 = vmatpush1.bf16.msra.mxu1 %v3347_v19  ;;  %2122 = vmatprep.subr.bf16.mxu0 %v3348_v20  ;;  %v200_v49 = vld [vmem:[%s3880_s5 + $0x40] sm:$0xff]  ;;  %v201_v51 = vld [vmem:[%s3880_s5 + $0x48] sm:$0xff]  ;;  %v3395_v57 = vld [vmem:[%s4845_s1 + $0x1b0] ss:$8 sps:$4 sm:$0xff]  }
  0x1f   : > { %2195 = vmatprep.subr.bf16.mxu1 %v3350_v21  ;;  %v2968_v53 = vcombine.high %v192_v48, %v200_v49  ;;  %v2970_v55 = vcombine.high %v193_v50, %v201_v51  ;;  %v3396_v58 = vld [vmem:[%s4845_s1 + $0xa4] ss:$8 sps:$4 sm:$0xff]   ;;  %v3400_v60 = vld [vmem:[%s4845_s1 + $0xa0] ss:$8 sps:$4 sm:$0xff]   ;;  %v3402_v62 = vld [vmem:[%s4845_s1 + $0x94] ss:$8 sps:$4 sm:$0xff]   ;;  %v2967_v8 = vcombine.low %v192_v48, %v200_v49  ;;  %v2969_v9 = vcombine.low %v193_v50, %v201_v51 }
  0x20   : > { %v3398_v59 = vld [vmem:[%s4845_s1 + $0x1a4] ss:$8 sps:$4 sm:$0xff]   ;;  %v3401_v61 = vld [vmem:[%s4845_s1 + $0x1a0] ss:$8 sps:$4 sm:$0xff]   ;;  %v3404_v63 = vld [vmem:[%s4845_s1 + $0x194] ss:$8 sps:$4 sm:$0xff]  }
  0x21   : > { %2123 = vmatpush1.bf16.msra.mxu0 %v3352_v22  ;;  %2144 = vmatprep.mubr.bf16.mxu0 %v2968_v53  ;;  %v3406_v0 = vld [vmem:[%s4845_s1 + $0x90] ss:$8 sps:$4 sm:$0xff]   ;;  %v3408_v2 = vld [vmem:[%s4845_s1 + $0x84] ss:$8 sps:$4 sm:$0xff]   ;;  %v3412_v4 = vld [vmem:[%s4845_s1 + $0x80] ss:$8 sps:$4 sm:$0xff]  }
  0x22   : > { %2196 = vmatpush1.bf16.msra.mxu1 %v3353_v23  ;;  %2124 = vmatprep.subr.bf16.mxu0 %v3354_v24  ;;  %v3407_v1 = vld [vmem:[%s4845_s1 + $0x190] ss:$8 sps:$4 sm:$0xff]   ;;  %v3410_v3 = vld [vmem:[%s4845_s1 + $0x184] ss:$8 sps:$4 sm:$0xff]   ;;  %v3413_v5 = vld [vmem:[%s4845_s1 + $0x180] ss:$8 sps:$4 sm:$0xff]  }
  0x23   : > { %2197 = vmatprep.subr.bf16.mxu1 %v3356_v25  ;;  %2217 = vmatprep.mubr.bf16.mxu1 %v2970_v55  ;;  %v3416_v6 = vld [vmem:[%s4845_s1 + $0x274] ss:$8 sps:$4 sm:$0xff]   ;;  %v3414_v10 = vld [vmem:[%s4845_s1 + $0x270] ss:$8 sps:$4 sm:$0xff]   ;;  %v3422_v12 = vld [vmem:[%s4845_s1 + $0x264] ss:$8 sps:$4 sm:$0xff]  }
  0x24   : > { %v3419_v7 = vld [vmem:[%s4845_s1 + $0x374] ss:$8 sps:$4 sm:$0xff]   ;;  %v3417_v11 = vld [vmem:[%s4845_s1 + $0x370] ss:$8 sps:$4 sm:$0xff]   ;;  %v3425_v13 = vld [vmem:[%s4845_s1 + $0x364] ss:$8 sps:$4 sm:$0xff]  }
  0x25   : > { %2125 = vmatpush1.bf16.msra.mxu0 %v3358_v26  ;;  %v3420_v14 = vld [vmem:[%s4845_s1 + $0x260] ss:$8 sps:$4 sm:$0xff]   ;;  %v3428_v16 = vld [vmem:[%s4845_s1 + $0x254] ss:$8 sps:$4 sm:$0xff]   ;;  %v3426_v24 = vld [vmem:[%s4845_s1 + $0x250] ss:$8 sps:$4 sm:$0xff]  }
  0x26   : > { %2198 = vmatpush1.bf16.msra.mxu1 %v3359_v27  ;;  %2126 = vmatprep.subr.bf16.mxu0 %v3360_v28  ;;  %v3423_v15 = vld [vmem:[%s4845_s1 + $0x360] ss:$8 sps:$4 sm:$0xff]   ;;  %v3431_v17 = vld [vmem:[%s4845_s1 + $0x354] ss:$8 sps:$4 sm:$0xff]   ;;  %v3429_v25 = vld [vmem:[%s4845_s1 + $0x350] ss:$8 sps:$4 sm:$0xff]  }
  0x27   : > { %2199 = vmatprep.subr.bf16.mxu1 %v3362_v29  ;;  %v208_v18 = vld [vmem:[%s3880_s5 + $0x80] sm:$0xff]  ;;  %v209_v20 = vld [vmem:[%s3880_s5 + $0x88] sm:$0xff]  ;;  %v3455_v55 = vld [vmem:[%s4845_s1 + $0x314] ss:$8 sps:$4 sm:$0xff]  }
  0x28   : > { %v216_v19 = vld [vmem:[%s3880_s5 + $0xc0] sm:$0xff]  ;;  %v217_v22 = vld [vmem:[%s3880_s5 + $0xc8] sm:$0xff] }
  0x29   : > { %2127 = vmatpush1.bf16.msra.mxu0 %v3364_v30  ;;  %v2984_v21 = vcombine.high %v208_v18, %v216_v19  ;;  %v2986_v23 = vcombine.high %v209_v20, %v217_v22  ;;  %v2983_v26 = vcombine.low %v208_v18, %v216_v19  ;;  %v2985_v27 = vcombine.low %v209_v20, %v217_v22  ;;  %v3434_v28 = vld [vmem:[%s4845_s1 + $0x244] ss:$8 sps:$4 sm:$0xff]   ;;  %v3432_v30 = vld [vmem:[%s4845_s1 + $0x240] ss:$8 sps:$4 sm:$0xff]   ;;  %v3488_v22 = vld [vmem:[%s4845_s1 + $0x2b4] ss:$8 sps:$4 sm:$0xff]  }
  0x2a   : > { %2200 = vmatpush1.bf16.msra.mxu1 %v3365_v31  ;;  %2128 = vmatprep.subr.bf16.mxu0 %v3366_v32  ;;  %v3437_v29 = vld [vmem:[%s4845_s1 + $0x344] ss:$8 sps:$4 sm:$0xff]   ;;  %v3435_v31 = vld [vmem:[%s4845_s1 + $0x340] ss:$8 sps:$4 sm:$0xff]  }
  0x2b   : > { %2201 = vmatprep.subr.bf16.mxu1 %v3368_v33  ;;  %v224_v32 = vld [vmem:[%s3880_s5 + $0x100] sm:$0xff]  ;;  %v241_v49 = vld [vmem:[%s3880_s5 + $0x188] sm:$0xff] }
  0x2c   : > { %v232_v33 = vld [vmem:[%s3880_s5 + $0x140] sm:$0xff]  ;;  %v249_v50 = vld [vmem:[%s3880_s5 + $0x1c8] sm:$0xff] }
  0x2d   : > { %2129 = vmatpush2.bf16.msra.mxu0 %v3370_v34  ;;  %v225_v34 = vld [vmem:[%s3880_s5 + $0x108] sm:$0xff]  ;;  %v3018_v53 = vcombine.high %v241_v49, %v249_v50 }
  0x2e   : > { %2202 = vmatpush2.bf16.msra.mxu1 %v3371_v35  ;;  %2130 = vmatprep.subr.bf16.mxu0 %v3372_v36  ;;  %v233_v35 = vld [vmem:[%s3880_s5 + $0x148] sm:$0xff]  ;;  %v3440_v36 = vld [vmem:[%s4845_s1 + $0x234] ss:$8 sps:$4 sm:$0xff]  }
  0x2f   : > { %2203 = vmatprep.subr.bf16.mxu1 %v3374_v37  ;;  %v3000_v37 = vcombine.high %v224_v32, %v232_v33  ;;  %v3444_v51 = vld [vmem:[%s4845_s1 + $0x220] ss:$8 sps:$4 sm:$0xff]   ;;  %v3482_v18 = vld [vmem:[%s4845_s1 + $0x2c4] ss:$8 sps:$4 sm:$0xff]  }
  0x30   : > { %v3485_v19 = vld [vmem:[%s4845_s1 + $0x3c4] ss:$8 sps:$4 sm:$0xff]   ;;  %v3480_v20 = vld [vmem:[%s4845_s1 + $0x2c0] ss:$8 sps:$4 sm:$0xff]  }
  0x31   : > { %2131 = vmatpush2.bf16.msra.mxu0 %v3376_v38  ;;  %v3002_v38 = vcombine.high %v225_v34, %v233_v35 }
  0x32   : > { %2204 = vmatpush2.bf16.msra.mxu1 %v3377_v39  ;;  %2132 = vmatprep.subr.bf16.mxu0 %v3378_v40  ;;  %v3443_v39 = vld [vmem:[%s4845_s1 + $0x334] ss:$8 sps:$4 sm:$0xff]   ;;  %v3438_v40 = vld [vmem:[%s4845_s1 + $0x230] ss:$8 sps:$4 sm:$0xff]  }
  0x33   : > { %2205 = vmatprep.subr.bf16.mxu1 %v3380_v41  ;;  %v3441_v41 = vld [vmem:[%s4845_s1 + $0x330] ss:$8 sps:$4 sm:$0xff]  }
  0x35   : > { %2133 = vmatpush2.bf16.msra.mxu0 %v3382_v42  ;;  %v2999_v42 = vcombine.low %v224_v32, %v232_v33  ;;  %v3498_v32 = vld [vmem:[%s4845_s1 + $0x290] ss:$8 sps:$4 sm:$0xff]  }
  0x36   : > { %2206 = vmatpush2.bf16.msra.mxu1 %v3383_v43  ;;  %2134 = vmatprep.subr.bf16.mxu0 %v3384_v44  ;;  %v3001_v43 = vcombine.low %v225_v34, %v233_v35  ;;  %v3446_v44 = vld [vmem:[%s4845_s1 + $0x224] ss:$8 sps:$4 sm:$0xff]   ;;  %v3501_v33 = vld [vmem:[%s4845_s1 + $0x390] ss:$8 sps:$4 sm:$0xff]  }
  0x37   : > { %2207 = vmatprep.subr.bf16.mxu1 %v3386_v45  ;;  %v3449_v45 = vld [vmem:[%s4845_s1 + $0x324] ss:$8 sps:$4 sm:$0xff]  }
  0x38   : > { %v3506_v34 = vld [vmem:[%s4845_s1 + $0x284] ss:$8 sps:$4 sm:$0xff]  }
  0x39   : > { %2135 = vmatpush2.bf16.msra.mxu0 %v3388_v46  ;;  %v240_v46 = vld [vmem:[%s3880_s5 + $0x180] sm:$0xff] }
  0x3a   : > { %2208 = vmatpush2.bf16.msra.mxu1 %v3389_v47  ;;  %2136 = vmatprep.subr.bf16.mxu0 %v3390_v52  ;;  %v248_v47 = vld [vmem:[%s3880_s5 + $0x1c0] sm:$0xff] }
  0x3b   : > { %2209 = vmatprep.subr.bf16.mxu1 %v3392_v54  ;;  %v3016_v48 = vcombine.high %v240_v46, %v248_v47  ;;  %v3447_v52 = vld [vmem:[%s4845_s1 + $0x320] ss:$8 sps:$4 sm:$0xff]   ;;  %v3452_v54 = vld [vmem:[%s4845_s1 + $0x214] ss:$8 sps:$4 sm:$0xff]   ;;  %v3509_v35 = vld [vmem:[%s4845_s1 + $0x384] ss:$8 sps:$4 sm:$0xff]  }
  0x3d   : > { %2137 = vmatpush2.bf16.msra.mxu0 %v3394_v56  ;;  %v3450_v56 = vld [vmem:[%s4845_s1 + $0x210] ss:$8 sps:$4 sm:$0xff]  }
  0x3e   : > { %2210 = vmatpush2.bf16.msra.mxu1 %v3395_v57  ;;  %2138 = vmatprep.subr.bf16.mxu0 %v3396_v58  ;;  %v3453_v57 = vld [vmem:[%s4845_s1 + $0x310] ss:$8 sps:$4 sm:$0xff]   ;;  %v3015_v58 = vcombine.low %v240_v46, %v248_v47 }
  0x3f   : > { %2211 = vmatprep.subr.bf16.mxu1 %v3398_v59  ;;  %v3017_v59 = vcombine.low %v241_v49, %v249_v50  ;;  %v211_v46 = vld [vmem:[%s3880_s5 + $0x98] sm:$0xff]  ;;  %v3521_v49 = vld [vmem:[%s4845_s1 + $0x564] ss:$8 sps:$4 sm:$0xff]  }
  0x40   : > { %v219_v47 = vld [vmem:[%s3880_s5 + $0xd8] sm:$0xff] }
  0x41   : > { %2139 = vmatpush2.bf16.msra.mxu0 %v3400_v60  ;;  %v3458_v60 = vld [vmem:[%s4845_s1 + $0x204] ss:$8 sps:$4 sm:$0xff]  }
  0x42   : > { %2212 = vmatpush2.bf16.msra.mxu1 %v3401_v61  ;;  %2140 = vmatprep.subr.bf16.mxu0 %v3402_v62  ;;  %v3461_v61 = vld [vmem:[%s4845_s1 + $0x304] ss:$8 sps:$4 sm:$0xff]   ;;  %v3456_v62 = vld [vmem:[%s4845_s1 + $0x200] ss:$8 sps:$4 sm:$0xff]  }
  0x43   : > { %2213 = vmatprep.subr.bf16.mxu1 %v3404_v63  ;;  %v3459_v63 = vld [vmem:[%s4845_s1 + $0x300] ss:$8 sps:$4 sm:$0xff]  }
  0x45   : > { %2141 = vmatpush2.bf16.msra.mxu0 %v3406_v0  ;;  %v4055_v0 = vld [vmem:[%s3880_s5 + $0x10] sm:$0xff] }
  0x46   : > { %2214 = vmatpush2.bf16.msra.mxu1 %v3407_v1  ;;  %2142 = vmatprep.subr.bf16.mxu0 %v3408_v2  ;;  %v4058_v1 = vld [vmem:[%s3880_s5 + $0x50] sm:$0xff]  ;;  %v4061_v2 = vld [vmem:[%s3880_s5 + $0x18] sm:$0xff] }
  0x47   : > { %2215 = vmatprep.subr.bf16.mxu1 %v3410_v3  ;;  %v4064_v3 = vld [vmem:[%s3880_s5 + $0x58] sm:$0xff] }
  0x49   : > { %2143 = vmatpush2.bf16.msra.mxu0 %v3412_v4  ;;  %v3464_v4 = vld [vmem:[%s4845_s1 + $0x2f4] ss:$8 sps:$4 sm:$0xff]  }
  0x4a   : > { %2216 = vmatpush2.bf16.msra.mxu1 %v3413_v5  ;;  %2258 = vmatprep.subr.bf16.mxu0 %v3416_v6  ;;  %v2972_v5 = vcombine.high %v4055_v0, %v4058_v1  ;;  %v3467_v6 = vld [vmem:[%s4845_s1 + $0x3f4] ss:$8 sps:$4 sm:$0xff]  }
  0x4b   : > { %2331 = vmatprep.subr.bf16.mxu1 %v3419_v7  ;;  %v2974_v7 = vcombine.high %v4061_v2, %v4064_v3 }
  0x4c   : > { %2145 = vmatmul.mubr.bf16.vlgmr.msra.gmra.mxu0 %v2967_v8  ;;  %v3462_v8 = vld [vmem:[%s4845_s1 + $0x2f0] ss:$8 sps:$4 sm:$0xff]  }
  0x4d   : > { %2218 = vmatmul.mubr.bf16.vlgmr.msra.gmra.mxu1 %v2969_v9  ;;  %2259 = vmatpush1.bf16.msra.mxu0 %v3414_v10  ;;  %v3465_v9 = vld [vmem:[%s4845_s1 + $0x3f0] ss:$8 sps:$4 sm:$0xff]   ;;  %v3470_v10 = vld [vmem:[%s4845_s1 + $0x2e4] ss:$8 sps:$4 sm:$0xff]  }
  0x4e   : > { %2332 = vmatpush1.bf16.msra.mxu1 %v3417_v11  ;;  %2260 = vmatprep.subr.bf16.mxu0 %v3422_v12  ;;  %v3473_v11 = vld [vmem:[%s4845_s1 + $0x3e4] ss:$8 sps:$4 sm:$0xff]   ;;  %v3468_v12 = vld [vmem:[%s4845_s1 + $0x2e0] ss:$8 sps:$4 sm:$0xff]  }
  0x4f   : > { %2333 = vmatprep.subr.bf16.mxu1 %v3425_v13  ;;  %2154 = vmatprep.mubr.bf16.mxu0 %v2984_v21  ;;  %v3471_v13 = vld [vmem:[%s4845_s1 + $0x3e0] ss:$8 sps:$4 sm:$0xff]  }
  0x50   : > { %2227 = vmatprep.mubr.bf16.mxu1 %v2986_v23  ;;  %v3483_v21 = vld [vmem:[%s4845_s1 + $0x3c0] ss:$8 sps:$4 sm:$0xff]   ;;  %v3491_v23 = vld [vmem:[%s4845_s1 + $0x3b4] ss:$8 sps:$4 sm:$0xff]  }
  0x51   : > { %2261 = vmatpush1.bf16.msra.mxu0 %v3420_v14  ;;  %v3476_v14 = vld [vmem:[%s4845_s1 + $0x2d4] ss:$8 sps:$4 sm:$0xff]  }
  0x52   : > { %2334 = vmatpush1.bf16.msra.mxu1 %v3423_v15  ;;  %2262 = vmatprep.subr.bf16.mxu0 %v3428_v16  ;;  %v3479_v15 = vld [vmem:[%s4845_s1 + $0x3d4] ss:$8 sps:$4 sm:$0xff]   ;;  %v3474_v16 = vld [vmem:[%s4845_s1 + $0x2d0] ss:$8 sps:$4 sm:$0xff]  }
  0x53   : > { %2335 = vmatprep.subr.bf16.mxu1 %v3431_v17  ;;  %v3477_v17 = vld [vmem:[%s4845_s1 + $0x3d0] ss:$8 sps:$4 sm:$0xff]  }
  0x54   : > { %2155 = vmatmul.mubr.bf16.gmra.mxu0 %v2983_v26  ;;  %v3494_v26 = vld [vmem:[%s4845_s1 + $0x2a4] ss:$8 sps:$4 sm:$0xff]  }
  0x55   : > { %2228 = vmatmul.mubr.bf16.gmra.mxu1 %v2985_v27  ;;  %2263 = vmatpush1.bf16.msra.mxu0 %v3426_v24  ;;  %v3486_v24 = vld [vmem:[%s4845_s1 + $0x2b0] ss:$8 sps:$4 sm:$0xff]   ;;  %v3497_v27 = vld [vmem:[%s4845_s1 + $0x3a4] ss:$8 sps:$4 sm:$0xff]  }
  0x56   : > { %2336 = vmatpush1.bf16.msra.mxu1 %v3429_v25  ;;  %2264 = vmatprep.subr.bf16.mxu0 %v3434_v28  ;;  %v3489_v25 = vld [vmem:[%s4845_s1 + $0x3b0] ss:$8 sps:$4 sm:$0xff]   ;;  %v3492_v28 = vld [vmem:[%s4845_s1 + $0x2a0] ss:$8 sps:$4 sm:$0xff]  }
  0x57   : > { %2337 = vmatprep.subr.bf16.mxu1 %v3437_v29  ;;  %2164 = vmatprep.mubr.bf16.mxu0 %v3000_v37  ;;  %v3495_v29 = vld [vmem:[%s4845_s1 + $0x3a0] ss:$8 sps:$4 sm:$0xff]  }
  0x58   : > { %2237 = vmatprep.mubr.bf16.mxu1 %v3002_v38  ;;  %v3507_v37 = vld [vmem:[%s4845_s1 + $0x380] ss:$8 sps:$4 sm:$0xff]   ;;  %v3512_v38 = vld [vmem:[%s4845_s1 + $0x474] ss:$8 sps:$4 sm:$0xff]  }
  0x59   : > { %2265 = vmatpush1.bf16.msra.mxu0 %v3432_v30  ;;  %v3500_v30 = vld [vmem:[%s4845_s1 + $0x294] ss:$8 sps:$4 sm:$0xff]  }
  0x5a   : > { %2338 = vmatpush1.bf16.msra.mxu1 %v3435_v31  ;;  %2266 = vmatprep.subr.bf16.mxu0 %v3440_v36  ;;  %v3503_v31 = vld [vmem:[%s4845_s1 + $0x394] ss:$8 sps:$4 sm:$0xff]   ;;  %v3504_v36 = vld [vmem:[%s4845_s1 + $0x280] ss:$8 sps:$4 sm:$0xff]  }
  0x5b   : > { %2339 = vmatprep.subr.bf16.mxu1 %v3443_v39  ;;  %v3515_v39 = vld [vmem:[%s4845_s1 + $0x574] ss:$8 sps:$4 sm:$0xff]  }
  0x5c   : > { %2165 = vmatmul.mubr.bf16.gmra.mxu0 %v2999_v42  ;;  %v210_v42 = vld [vmem:[%s3880_s5 + $0x90] sm:$0xff] }
  0x5d   : > { %2238 = vmatmul.mubr.bf16.gmra.mxu1 %v3001_v43  ;;  %2267 = vmatpush1.bf16.msra.mxu0 %v3438_v40  ;;  %v3510_v40 = vld [vmem:[%s4845_s1 + $0x470] ss:$8 sps:$4 sm:$0xff]  }
  0x5e   : > { %2340 = vmatpush1.bf16.msra.mxu1 %v3441_v41  ;;  %2268 = vmatprep.subr.bf16.mxu0 %v3446_v44  ;;  %v3513_v41 = vld [vmem:[%s4845_s1 + $0x570] ss:$8 sps:$4 sm:$0xff]   ;;  %v2971_v44 = vcombine.low %v4055_v0, %v4058_v1  ;;  %v3530_v0 = vld [vmem:[%s4845_s1 + $0x444] ss:$8 sps:$4 sm:$0xff]  }
  0x5f   : > { %2341 = vmatprep.subr.bf16.mxu1 %v3449_v45  ;;  %2174 = vmatprep.mubr.bf16.mxu0 %v3016_v48  ;;  %v218_v43 = vld [vmem:[%s3880_s5 + $0xd0] sm:$0xff]  ;;  %v2973_v45 = vcombine.low %v4061_v2, %v4064_v3  ;;  %v3518_v48 = vld [vmem:[%s4845_s1 + $0x464] ss:$8 sps:$4 sm:$0xff]  }
  0x60   : > { %2247 = vmatprep.mubr.bf16.mxu1 %v3018_v53  ;;  %v2988_v50 = vcombine.high %v210_v42, %v218_v43  ;;  %v3519_v53 = vld [vmem:[%s4845_s1 + $0x560] ss:$8 sps:$4 sm:$0xff]   ;;  %v3533_v1 = vld [vmem:[%s4845_s1 + $0x544] ss:$8 sps:$4 sm:$0xff]  }
  0x61   : > { %2269 = vmatpush1.bf16.msra.mxu0 %v3444_v51  ;;  %v2990_v51 = vcombine.high %v211_v46, %v219_v47 }
  0x62   : > { %2342 = vmatpush1.bf16.msra.mxu1 %v3447_v52  ;;  %2270 = vmatprep.subr.bf16.mxu0 %v3452_v54  ;;  %v3516_v52 = vld [vmem:[%s4845_s1 + $0x460] ss:$8 sps:$4 sm:$0xff]   ;;  %v3524_v54 = vld [vmem:[%s4845_s1 + $0x454] ss:$8 sps:$4 sm:$0xff]  }
  0x63   : > { %2343 = vmatprep.subr.bf16.mxu1 %v3455_v55  ;;  %v3527_v55 = vld [vmem:[%s4845_s1 + $0x554] ss:$8 sps:$4 sm:$0xff]  }
  0x64   : > { %2175 = vmatmul.mubr.bf16.gmra.mxu0 %v3015_v58  ;;  %v226_v58 = vld [vmem:[%s3880_s5 + $0x110] sm:$0xff] }
  0x65   : > { %2248 = vmatmul.mubr.bf16.gmra.mxu1 %v3017_v59  ;;  %2271 = vmatpush1.bf16.msra.mxu0 %v3450_v56  ;;  %v3522_v56 = vld [vmem:[%s4845_s1 + $0x450] ss:$8 sps:$4 sm:$0xff]  }
  0x66   : > { %2344 = vmatpush1.bf16.msra.mxu1 %v3453_v57  ;;  %2272 = vmatprep.subr.bf16.mxu0 %v3458_v60  ;;  %v3525_v57 = vld [vmem:[%s4845_s1 + $0x550] ss:$8 sps:$4 sm:$0xff]   ;;  %v2987_v60 = vcombine.low %v210_v42, %v218_v43  ;;  %v3566_v42 = vld [vmem:[%s4845_s1 + $0x4e4] ss:$8 sps:$4 sm:$0xff]  }
  0x67   : > { %2345 = vmatprep.subr.bf16.mxu1 %v3461_v61  ;;  %2290 = vmatprep.mubr.bf16.mxu0 %v2972_v5  ;;  %v234_v59 = vld [vmem:[%s3880_s5 + $0x150] sm:$0xff]  ;;  %v2989_v61 = vcombine.low %v211_v46, %v219_v47  ;;  %v3531_v5 = vld [vmem:[%s4845_s1 + $0x540] ss:$8 sps:$4 sm:$0xff]   ;;  %v3569_v43 = vld [vmem:[%s4845_s1 + $0x5e4] ss:$8 sps:$4 sm:$0xff]  }
  0x68   : > { %2363 = vmatprep.mubr.bf16.mxu1 %v2974_v7  ;;  %v3004_v2 = vcombine.high %v226_v58, %v234_v59  ;;  %v3539_v7 = vld [vmem:[%s4845_s1 + $0x534] ss:$8 sps:$4 sm:$0xff]  }
  0x69   : > { %2273 = vmatpush1.bf16.msra.mxu0 %v3456_v62  ;;  %v227_v62 = vld [vmem:[%s3880_s5 + $0x118] sm:$0xff] }
  0x6a   : > { %2346 = vmatpush1.bf16.msra.mxu1 %v3459_v63  ;;  %2274 = vmatprep.subr.bf16.mxu0 %v3464_v4  ;;  %v235_v63 = vld [vmem:[%s3880_s5 + $0x158] sm:$0xff]  ;;  %v3528_v4 = vld [vmem:[%s4845_s1 + $0x440] ss:$8 sps:$4 sm:$0xff]  }
  0x6b   : > { %2347 = vmatprep.subr.bf16.mxu1 %v3467_v6  ;;  %v3006_v3 = vcombine.high %v227_v62, %v235_v63  ;;  %v3536_v6 = vld [vmem:[%s4845_s1 + $0x434] ss:$8 sps:$4 sm:$0xff]  }
  0x6c   : > { %v3572_v46 = vld [vmem:[%s4845_s1 + $0x4d4] ss:$8 sps:$4 sm:$0xff]  }
  0x6d   : > { %2275 = vmatpush2.bf16.msra.mxu0 %v3462_v8  ;;  %v3534_v8 = vld [vmem:[%s4845_s1 + $0x430] ss:$8 sps:$4 sm:$0xff]   ;;  %v3575_v47 = vld [vmem:[%s4845_s1 + $0x5d4] ss:$8 sps:$4 sm:$0xff]  }
  0x6e   : > { %2348 = vmatpush2.bf16.msra.mxu1 %v3465_v9  ;;  %2276 = vmatprep.subr.bf16.mxu0 %v3470_v10  ;;  %v242_v9 = vld [vmem:[%s3880_s5 + $0x190] sm:$0xff] }
  0x6f   : > { %2349 = vmatprep.subr.bf16.mxu1 %v3473_v11  ;;  %v250_v10 = vld [vmem:[%s3880_s5 + $0x1d0] sm:$0xff]  ;;  %v3003_v11 = vcombine.low %v226_v58, %v234_v59  ;;  %v3590_v58 = vld [vmem:[%s4845_s1 + $0x4a4] ss:$8 sps:$4 sm:$0xff]  }
  0x70   : > { %v3593_v59 = vld [vmem:[%s4845_s1 + $0x5a4] ss:$8 sps:$4 sm:$0xff]  }
  0x71   : > { %2277 = vmatpush2.bf16.msra.mxu0 %v3468_v12  ;;  %v3005_v12 = vcombine.low %v227_v62, %v235_v63  ;;  %v3596_v62 = vld [vmem:[%s4845_s1 + $0x494] ss:$8 sps:$4 sm:$0xff]  }
  0x72   : > { %2350 = vmatpush2.bf16.msra.mxu1 %v3471_v13  ;;  %2278 = vmatprep.subr.bf16.mxu0 %v3476_v14  ;;  %v243_v13 = vld [vmem:[%s3880_s5 + $0x198] sm:$0xff] }
  0x73   : > { %2351 = vmatprep.subr.bf16.mxu1 %v3479_v15  ;;  %v251_v14 = vld [vmem:[%s3880_s5 + $0x1d8] sm:$0xff] }
  0x74   : > { %v3537_v15 = vld [vmem:[%s4845_s1 + $0x530] ss:$8 sps:$4 sm:$0xff]   ;;  %v3599_v63 = vld [vmem:[%s4845_s1 + $0x594] ss:$8 sps:$4 sm:$0xff]  }
  0x75   : > { %2279 = vmatpush2.bf16.msra.mxu0 %v3474_v16  ;;  %v3542_v16 = vld [vmem:[%s4845_s1 + $0x424] ss:$8 sps:$4 sm:$0xff]  }
  0x76   : > { %2352 = vmatpush2.bf16.msra.mxu1 %v3477_v17  ;;  %2280 = vmatprep.subr.bf16.mxu0 %v3482_v18  ;;  %v3545_v17 = vld [vmem:[%s4845_s1 + $0x524] ss:$8 sps:$4 sm:$0xff]   ;;  %v3020_v18 = vcombine.high %v242_v9, %v250_v10 }
  0x77   : > { %2353 = vmatprep.subr.bf16.mxu1 %v3485_v19  ;;  %v3022_v19 = vcombine.high %v243_v13, %v251_v14 }
  0x79   : > { %2281 = vmatpush2.bf16.msra.mxu0 %v3480_v20  ;;  %v3540_v20 = vld [vmem:[%s4845_s1 + $0x420] ss:$8 sps:$4 sm:$0xff]  }
  0x7a   : > { %2354 = vmatpush2.bf16.msra.mxu1 %v3483_v21  ;;  %2282 = vmatprep.subr.bf16.mxu0 %v3488_v22  ;;  %v3543_v21 = vld [vmem:[%s4845_s1 + $0x520] ss:$8 sps:$4 sm:$0xff]   ;;  %v3548_v22 = vld [vmem:[%s4845_s1 + $0x414] ss:$8 sps:$4 sm:$0xff]  }
  0x7b   : > { %2355 = vmatprep.subr.bf16.mxu1 %v3491_v23  ;;  %v3551_v23 = vld [vmem:[%s4845_s1 + $0x514] ss:$8 sps:$4 sm:$0xff]  }
  0x7d   : > { %2283 = vmatpush2.bf16.msra.mxu0 %v3486_v24  ;;  %v4261_v24 = vld [vmem:[%s3880_s5 + $0x20] sm:$0xff] }
  0x7e   : > { %2356 = vmatpush2.bf16.msra.mxu1 %v3489_v25  ;;  %2284 = vmatprep.subr.bf16.mxu0 %v3494_v26  ;;  %v4264_v25 = vld [vmem:[%s3880_s5 + $0x60] sm:$0xff]  ;;  %v3019_v26 = vcombine.low %v242_v9, %v250_v10 }
  0x7f   : > { %2357 = vmatprep.subr.bf16.mxu1 %v3497_v27  ;;  %v3021_v27 = vcombine.low %v243_v13, %v251_v14  ;;  %v2975_v9 = vcombine.low %v4261_v24, %v4264_v25  ;;  %v221_v13 = vld [vmem:[%s3880_s5 + $0xe8] sm:$0xff]  ;;  %v3606_v14 = vld [vmem:[%s4845_s1 + $0x670] ss:$8 sps:$4 sm:$0xff]  }
  0x81   : > { %2285 = vmatpush2.bf16.msra.mxu0 %v3492_v28  ;;  %v4267_v28 = vld [vmem:[%s3880_s5 + $0x28] sm:$0xff] }
  0x82   : > { %2358 = vmatpush2.bf16.msra.mxu1 %v3495_v29  ;;  %2286 = vmatprep.subr.bf16.mxu0 %v3500_v30  ;;  %v4270_v29 = vld [vmem:[%s3880_s5 + $0x68] sm:$0xff]  ;;  %v3546_v30 = vld [vmem:[%s4845_s1 + $0x410] ss:$8 sps:$4 sm:$0xff]  }
  0x83   : > { %2359 = vmatprep.subr.bf16.mxu1 %v3503_v31  ;;  %v3549_v31 = vld [vmem:[%s4845_s1 + $0x510] ss:$8 sps:$4 sm:$0xff]   ;;  %v2977_v10 = vcombine.low %v4267_v28, %v4270_v29 }
  0x85   : > { %2287 = vmatpush2.bf16.msra.mxu0 %v3498_v32  ;;  %v3554_v32 = vld [vmem:[%s4845_s1 + $0x404] ss:$8 sps:$4 sm:$0xff]  }
  0x86   : > { %2360 = vmatpush2.bf16.msra.mxu1 %v3501_v33  ;;  %2288 = vmatprep.subr.bf16.mxu0 %v3506_v34  ;;  %v3557_v33 = vld [vmem:[%s4845_s1 + $0x504] ss:$8 sps:$4 sm:$0xff]   ;;  %v2976_v34 = vcombine.high %v4261_v24, %v4264_v25 }
  0x87   : > { %2361 = vmatprep.subr.bf16.mxu1 %v3509_v35  ;;  %v2978_v35 = vcombine.high %v4267_v28, %v4270_v29  ;;  %v228_v24 = vld [vmem:[%s3880_s5 + $0x120] sm:$0xff]  ;;  %v229_v28 = vld [vmem:[%s3880_s5 + $0x128] sm:$0xff] }
  0x88   : > { %v237_v29 = vld [vmem:[%s3880_s5 + $0x168] sm:$0xff] }
  0x89   : > { %2289 = vmatpush2.bf16.msra.mxu0 %v3504_v36  ;;  %v3552_v36 = vld [vmem:[%s4845_s1 + $0x400] ss:$8 sps:$4 sm:$0xff]  }
  0x8a   : > { %2362 = vmatpush2.bf16.msra.mxu1 %v3507_v37  ;;  %2404 = vmatprep.subr.bf16.mxu0 %v3512_v38  ;;  %v3555_v37 = vld [vmem:[%s4845_s1 + $0x500] ss:$8 sps:$4 sm:$0xff]   ;;  %v3560_v38 = vld [vmem:[%s4845_s1 + $0x4f4] ss:$8 sps:$4 sm:$0xff]  }
  0x8b   : > { %2477 = vmatprep.subr.bf16.mxu1 %v3515_v39  ;;  %v3563_v39 = vld [vmem:[%s4845_s1 + $0x5f4] ss:$8 sps:$4 sm:$0xff]  }
  0x8c   : > { %2291 = vmatmul.mubr.bf16.vlgmr.msra.gmra.mxu0 %v2971_v44  ;;  %v3564_v44 = vld [vmem:[%s4845_s1 + $0x4e0] ss:$8 sps:$4 sm:$0xff]  }
  0x8d   : > { %2364 = vmatmul.mubr.bf16.vlgmr.msra.gmra.mxu1 %v2973_v45  ;;  %2405 = vmatpush1.bf16.msra.mxu0 %v3510_v40  ;;  %v3558_v40 = vld [vmem:[%s4845_s1 + $0x4f0] ss:$8 sps:$4 sm:$0xff]   ;;  %v3567_v45 = vld [vmem:[%s4845_s1 + $0x5e0] ss:$8 sps:$4 sm:$0xff]  }
  0x8e   : > { %2478 = vmatpush1.bf16.msra.mxu1 %v3513_v41  ;;  %2406 = vmatprep.subr.bf16.mxu0 %v3518_v48  ;;  %v3561_v41 = vld [vmem:[%s4845_s1 + $0x5f0] ss:$8 sps:$4 sm:$0xff]  }
  0x8f   : > { %2479 = vmatprep.subr.bf16.mxu1 %v3521_v49  ;;  %2300 = vmatprep.mubr.bf16.mxu0 %v2988_v50  ;;  %v3570_v48 = vld [vmem:[%s4845_s1 + $0x4d0] ss:$8 sps:$4 sm:$0xff]   ;;  %v3578_v50 = vld [vmem:[%s4845_s1 + $0x4c4] ss:$8 sps:$4 sm:$0xff]  }
  0x90   : > { %2373 = vmatprep.mubr.bf16.mxu1 %v2990_v51  ;;  %v3573_v49 = vld [vmem:[%s4845_s1 + $0x5d0] ss:$8 sps:$4 sm:$0xff]   ;;  %v3581_v51 = vld [vmem:[%s4845_s1 + $0x5c4] ss:$8 sps:$4 sm:$0xff]  }
  0x91   : > { %2407 = vmatpush1.bf16.msra.mxu0 %v3516_v52  ;;  %v3576_v52 = vld [vmem:[%s4845_s1 + $0x4c0] ss:$8 sps:$4 sm:$0xff]  }
  0x92   : > { %2480 = vmatpush1.bf16.msra.mxu1 %v3519_v53  ;;  %2408 = vmatprep.subr.bf16.mxu0 %v3524_v54  ;;  %v3579_v53 = vld [vmem:[%s4845_s1 + $0x5c0] ss:$8 sps:$4 sm:$0xff]   ;;  %v3584_v54 = vld [vmem:[%s4845_s1 + $0x4b4] ss:$8 sps:$4 sm:$0xff]  }
  0x93   : > { %2481 = vmatprep.subr.bf16.mxu1 %v3527_v55  ;;  %v3587_v55 = vld [vmem:[%s4845_s1 + $0x5b4] ss:$8 sps:$4 sm:$0xff]  }
  0x94   : > { %2301 = vmatmul.mubr.bf16.gmra.mxu0 %v2987_v60  ;;  %v3588_v60 = vld [vmem:[%s4845_s1 + $0x4a0] ss:$8 sps:$4 sm:$0xff]  }
  0x95   : > { %2374 = vmatmul.mubr.bf16.gmra.mxu1 %v2989_v61  ;;  %2409 = vmatpush1.bf16.msra.mxu0 %v3522_v56  ;;  %v3582_v56 = vld [vmem:[%s4845_s1 + $0x4b0] ss:$8 sps:$4 sm:$0xff]   ;;  %v3591_v61 = vld [vmem:[%s4845_s1 + $0x5a0] ss:$8 sps:$4 sm:$0xff]  }
  0x96   : > { %2482 = vmatpush1.bf16.msra.mxu1 %v3525_v57  ;;  %2410 = vmatprep.subr.bf16.mxu0 %v3530_v0  ;;  %v3585_v57 = vld [vmem:[%s4845_s1 + $0x5b0] ss:$8 sps:$4 sm:$0xff]  }
  0x97   : > { %2483 = vmatprep.subr.bf16.mxu1 %v3533_v1  ;;  %2310 = vmatprep.mubr.bf16.mxu0 %v3004_v2  ;;  %v3594_v0 = vld [vmem:[%s4845_s1 + $0x490] ss:$8 sps:$4 sm:$0xff]   ;;  %v3602_v2 = vld [vmem:[%s4845_s1 + $0x484] ss:$8 sps:$4 sm:$0xff]  }
  0x98   : > { %2383 = vmatprep.mubr.bf16.mxu1 %v3006_v3  ;;  %v3597_v1 = vld [vmem:[%s4845_s1 + $0x590] ss:$8 sps:$4 sm:$0xff]   ;;  %v3605_v3 = vld [vmem:[%s4845_s1 + $0x584] ss:$8 sps:$4 sm:$0xff]  }
  0x99   : > { %2411 = vmatpush1.bf16.msra.mxu0 %v3528_v4  ;;  %v3600_v4 = vld [vmem:[%s4845_s1 + $0x480] ss:$8 sps:$4 sm:$0xff]  }
  0x9a   : > { %2484 = vmatpush1.bf16.msra.mxu1 %v3531_v5  ;;  %2412 = vmatprep.subr.bf16.mxu0 %v3536_v6  ;;  %v3603_v5 = vld [vmem:[%s4845_s1 + $0x580] ss:$8 sps:$4 sm:$0xff]   ;;  %v3608_v6 = vld [vmem:[%s4845_s1 + $0x674] ss:$8 sps:$4 sm:$0xff]  }
  0x9b   : > { %2485 = vmatprep.subr.bf16.mxu1 %v3539_v7  ;;  %v3611_v7 = vld [vmem:[%s4845_s1 + $0x774] ss:$8 sps:$4 sm:$0xff]  }
  0x9c   : > { %2311 = vmatmul.mubr.bf16.gmra.mxu0 %v3003_v11  ;;  %v220_v11 = vld [vmem:[%s3880_s5 + $0xe0] sm:$0xff] }
  0x9d   : > { %2384 = vmatmul.mubr.bf16.gmra.mxu1 %v3005_v12  ;;  %2413 = vmatpush1.bf16.msra.mxu0 %v3534_v8  ;;  %v212_v8 = vld [vmem:[%s3880_s5 + $0xa0] sm:$0xff]  ;;  %v213_v12 = vld [vmem:[%s3880_s5 + $0xa8] sm:$0xff] }
  0x9e   : > { %2486 = vmatpush1.bf16.msra.mxu1 %v3537_v15  ;;  %2414 = vmatprep.subr.bf16.mxu0 %v3542_v16  ;;  %v3609_v15 = vld [vmem:[%s4845_s1 + $0x770] ss:$8 sps:$4 sm:$0xff]   ;;  %v3614_v16 = vld [vmem:[%s4845_s1 + $0x664] ss:$8 sps:$4 sm:$0xff]   ;;  %v2991_v25 = vcombine.low %v212_v8, %v220_v11 }
  0x9f   : > { %2487 = vmatprep.subr.bf16.mxu1 %v3545_v17  ;;  %2320 = vmatprep.mubr.bf16.mxu0 %v3020_v18  ;;  %v3617_v17 = vld [vmem:[%s4845_s1 + $0x764] ss:$8 sps:$4 sm:$0xff]   ;;  %v2992_v18 = vcombine.high %v212_v8, %v220_v11  ;;  %v3654_v8 = vld [vmem:[%s4845_s1 + $0x6f0] ss:$8 sps:$4 sm:$0xff]  }
  0xa0   : > { %2393 = vmatprep.mubr.bf16.mxu1 %v3022_v19  ;;  %v2994_v19 = vcombine.high %v213_v12, %v221_v13  ;;  %v3665_v11 = vld [vmem:[%s4845_s1 + $0x7e4] ss:$8 sps:$4 sm:$0xff]  }
  0xa1   : > { %2415 = vmatpush1.bf16.msra.mxu0 %v3540_v20  ;;  %v3612_v20 = vld [vmem:[%s4845_s1 + $0x660] ss:$8 sps:$4 sm:$0xff]  }
  0xa2   : > { %2488 = vmatpush1.bf16.msra.mxu1 %v3543_v21  ;;  %2416 = vmatprep.subr.bf16.mxu0 %v3548_v22  ;;  %v3615_v21 = vld [vmem:[%s4845_s1 + $0x760] ss:$8 sps:$4 sm:$0xff]   ;;  %v3620_v22 = vld [vmem:[%s4845_s1 + $0x654] ss:$8 sps:$4 sm:$0xff]  }
  0xa3   : > { %2489 = vmatprep.subr.bf16.mxu1 %v3551_v23  ;;  %v3623_v23 = vld [vmem:[%s4845_s1 + $0x754] ss:$8 sps:$4 sm:$0xff]  }
  0xa4   : > { %2321 = vmatmul.mubr.bf16.gmra.mxu0 %v3019_v26  ;;  %v2993_v26 = vcombine.low %v213_v12, %v221_v13  ;;  %v3660_v12 = vld [vmem:[%s4845_s1 + $0x6e0] ss:$8 sps:$4 sm:$0xff]  }
  0xa5   : > { %2394 = vmatmul.mubr.bf16.gmra.mxu1 %v3021_v27  ;;  %2417 = vmatpush1.bf16.msra.mxu0 %v3546_v30  ;;  %v236_v27 = vld [vmem:[%s3880_s5 + $0x160] sm:$0xff]  ;;  %v3618_v30 = vld [vmem:[%s4845_s1 + $0x650] ss:$8 sps:$4 sm:$0xff]  }
  0xa6   : > { %2490 = vmatpush1.bf16.msra.mxu1 %v3549_v31  ;;  %2418 = vmatprep.subr.bf16.mxu0 %v3554_v32  ;;  %v3621_v31 = vld [vmem:[%s4845_s1 + $0x750] ss:$8 sps:$4 sm:$0xff]   ;;  %v3626_v32 = vld [vmem:[%s4845_s1 + $0x644] ss:$8 sps:$4 sm:$0xff]   ;;  %v3663_v13 = vld [vmem:[%s4845_s1 + $0x7e0] ss:$8 sps:$4 sm:$0xff]  }
  0xa7   : > { %2491 = vmatprep.subr.bf16.mxu1 %v3557_v33  ;;  %2436 = vmatprep.mubr.bf16.mxu0 %v2976_v34  ;;  %v3629_v33 = vld [vmem:[%s4845_s1 + $0x744] ss:$8 sps:$4 sm:$0xff]   ;;  %v3008_v34 = vcombine.high %v228_v24, %v236_v27 }
  0xa8   : > { %2509 = vmatprep.mubr.bf16.mxu1 %v2978_v35  ;;  %v3010_v35 = vcombine.high %v229_v28, %v237_v29 }
  0xa9   : > { %2419 = vmatpush1.bf16.msra.mxu0 %v3552_v36  ;;  %v3624_v36 = vld [vmem:[%s4845_s1 + $0x640] ss:$8 sps:$4 sm:$0xff]  }
  0xaa   : > { %2492 = vmatpush1.bf16.msra.mxu1 %v3555_v37  ;;  %2420 = vmatprep.subr.bf16.mxu0 %v3560_v38  ;;  %v3627_v37 = vld [vmem:[%s4845_s1 + $0x740] ss:$8 sps:$4 sm:$0xff]   ;;  %v3632_v38 = vld [vmem:[%s4845_s1 + $0x634] ss:$8 sps:$4 sm:$0xff]  }
  0xab   : > { %2493 = vmatprep.subr.bf16.mxu1 %v3563_v39  ;;  %v3635_v39 = vld [vmem:[%s4845_s1 + $0x734] ss:$8 sps:$4 sm:$0xff]  }
  0xad   : > { %2421 = vmatpush2.bf16.msra.mxu0 %v3558_v40  ;;  %v244_v40 = vld [vmem:[%s3880_s5 + $0x1a0] sm:$0xff] }
  0xae   : > { %2494 = vmatpush2.bf16.msra.mxu1 %v3561_v41  ;;  %2422 = vmatprep.subr.bf16.mxu0 %v3566_v42  ;;  %v3007_v41 = vcombine.low %v228_v24, %v236_v27  ;;  %v3009_v42 = vcombine.low %v229_v28, %v237_v29  ;;  %v3678_v24 = vld [vmem:[%s4845_s1 + $0x6b0] ss:$8 sps:$4 sm:$0xff]   ;;  %v3689_v27 = vld [vmem:[%s4845_s1 + $0x7a4] ss:$8 sps:$4 sm:$0xff]   ;;  %v3684_v28 = vld [vmem:[%s4845_s1 + $0x6a0] ss:$8 sps:$4 sm:$0xff]  }
  0xaf   : > { %2495 = vmatprep.subr.bf16.mxu1 %v3569_v43  ;;  %v252_v43 = vld [vmem:[%s3880_s5 + $0x1e0] sm:$0xff] }
  0xb0   : > { %v3687_v29 = vld [vmem:[%s4845_s1 + $0x7a0] ss:$8 sps:$4 sm:$0xff]  }
  0xb1   : > { %2423 = vmatpush2.bf16.msra.mxu0 %v3564_v44  ;;  %v245_v44 = vld [vmem:[%s3880_s5 + $0x1a8] sm:$0xff] }
  0xb2   : > { %2496 = vmatpush2.bf16.msra.mxu1 %v3567_v45  ;;  %2424 = vmatprep.subr.bf16.mxu0 %v3572_v46  ;;  %v253_v45 = vld [vmem:[%s3880_s5 + $0x1e8] sm:$0xff]  ;;  %v3630_v46 = vld [vmem:[%s4845_s1 + $0x630] ss:$8 sps:$4 sm:$0xff]  }
  0xb3   : > { %2497 = vmatprep.subr.bf16.mxu1 %v3575_v47  ;;  %v3633_v47 = vld [vmem:[%s4845_s1 + $0x730] ss:$8 sps:$4 sm:$0xff]  }
  0xb5   : > { %2425 = vmatpush2.bf16.msra.mxu0 %v3570_v48  ;;  %v3638_v48 = vld [vmem:[%s4845_s1 + $0x624] ss:$8 sps:$4 sm:$0xff]  }
  0xb6   : > { %2498 = vmatpush2.bf16.msra.mxu1 %v3573_v49  ;;  %2426 = vmatprep.subr.bf16.mxu0 %v3578_v50  ;;  %v3641_v49 = vld [vmem:[%s4845_s1 + $0x724] ss:$8 sps:$4 sm:$0xff]   ;;  %v3024_v50 = vcombine.high %v244_v40, %v252_v43 }
  0xb7   : > { %2499 = vmatprep.subr.bf16.mxu1 %v3581_v51  ;;  %v3026_v51 = vcombine.high %v245_v44, %v253_v45 }
  0xb9   : > { %2427 = vmatpush2.bf16.msra.mxu0 %v3576_v52  ;;  %v3636_v52 = vld [vmem:[%s4845_s1 + $0x620] ss:$8 sps:$4 sm:$0xff]  }
  0xba   : > { %2500 = vmatpush2.bf16.msra.mxu1 %v3579_v53  ;;  %2428 = vmatprep.subr.bf16.mxu0 %v3584_v54  ;;  %v3639_v53 = vld [vmem:[%s4845_s1 + $0x720] ss:$8 sps:$4 sm:$0xff]   ;;  %v3644_v54 = vld [vmem:[%s4845_s1 + $0x614] ss:$8 sps:$4 sm:$0xff]  }
  0xbb   : > { %2501 = vmatprep.subr.bf16.mxu1 %v3587_v55  ;;  %v3647_v55 = vld [vmem:[%s4845_s1 + $0x714] ss:$8 sps:$4 sm:$0xff]  }
  0xbd   : > { %2429 = vmatpush2.bf16.msra.mxu0 %v3582_v56  ;;  %v4485_v56 = vld [vmem:[%s3880_s5 + $0x30] sm:$0xff] }
  0xbe   : > { %2502 = vmatpush2.bf16.msra.mxu1 %v3585_v57  ;;  %2430 = vmatprep.subr.bf16.mxu0 %v3590_v58  ;;  %v3023_v57 = vcombine.low %v244_v40, %v252_v43  ;;  %v3025_v58 = vcombine.low %v245_v44, %v253_v45  ;;  %v215_v40 = vld [vmem:[%s3880_s5 + $0xb8] sm:$0xff] }
  0xbf   : > { %2503 = vmatprep.subr.bf16.mxu1 %v3593_v59  ;;  %v4488_v59 = vld [vmem:[%s3880_s5 + $0x70] sm:$0xff] }
  0xc1   : > { %2431 = vmatpush2.bf16.msra.mxu0 %v3588_v60  ;;  %v4491_v60 = vld [vmem:[%s3880_s5 + $0x38] sm:$0xff] }
  0xc2   : > { %2504 = vmatpush2.bf16.msra.mxu1 %v3591_v61  ;;  %2432 = vmatprep.subr.bf16.mxu0 %v3596_v62  ;;  %v4494_v61 = vld [vmem:[%s3880_s5 + $0x78] sm:$0xff] }
  0xc3   : > { %2505 = vmatprep.subr.bf16.mxu1 %v3599_v63  ;;  %v3642_v62 = vld [vmem:[%s4845_s1 + $0x610] ss:$8 sps:$4 sm:$0xff]   ;;  %v2981_v43 = vcombine.low %v4491_v60, %v4494_v61 }
  0xc4   : > { %v3645_v63 = vld [vmem:[%s4845_s1 + $0x710] ss:$8 sps:$4 sm:$0xff]  }
  0xc5   : > { %2433 = vmatpush2.bf16.msra.mxu0 %v3594_v0  ;;  %v3650_v0 = vld [vmem:[%s4845_s1 + $0x604] ss:$8 sps:$4 sm:$0xff]  }
  0xc6   : > { %2506 = vmatpush2.bf16.msra.mxu1 %v3597_v1  ;;  %2434 = vmatprep.subr.bf16.mxu0 %v3602_v2  ;;  %v3653_v1 = vld [vmem:[%s4845_s1 + $0x704] ss:$8 sps:$4 sm:$0xff]   ;;  %v2980_v2 = vcombine.high %v4485_v56, %v4488_v59 }
  0xc7   : > { %2507 = vmatprep.subr.bf16.mxu1 %v3605_v3  ;;  %v2982_v3 = vcombine.high %v4491_v60, %v4494_v61 }
  0xc9   : > { %2435 = vmatpush2.bf16.msra.mxu0 %v3600_v4  ;;  %v3648_v4 = vld [vmem:[%s4845_s1 + $0x600] ss:$8 sps:$4 sm:$0xff]  }
  0xca   : > { %2508 = vmatpush2.bf16.msra.mxu1 %v3603_v5  ;;  %2550 = vmatprep.subr.bf16.mxu0 %v3608_v6  ;;  %v3651_v5 = vld [vmem:[%s4845_s1 + $0x700] ss:$8 sps:$4 sm:$0xff]   ;;  %v3656_v6 = vld [vmem:[%s4845_s1 + $0x6f4] ss:$8 sps:$4 sm:$0xff]  }
  0xcb   : > { %2623 = vmatprep.subr.bf16.mxu1 %v3611_v7  ;;  %v3659_v7 = vld [vmem:[%s4845_s1 + $0x7f4] ss:$8 sps:$4 sm:$0xff]  }
  0xcc   : > { %2437 = vmatmul.mubr.bf16.vlgmr.msra.gmra.mxu0 %v2975_v9  ;;  %v3657_v9 = vld [vmem:[%s4845_s1 + $0x7f0] ss:$8 sps:$4 sm:$0xff]  }
  0xcd   : > { %2510 = vmatmul.mubr.bf16.vlgmr.msra.gmra.mxu1 %v2977_v10  ;;  %2551 = vmatpush1.bf16.msra.mxu0 %v3606_v14  ;;  %v3662_v10 = vld [vmem:[%s4845_s1 + $0x6e4] ss:$8 sps:$4 sm:$0xff]   ;;  %v3668_v14 = vld [vmem:[%s4845_s1 + $0x6d4] ss:$8 sps:$4 sm:$0xff]  }
  0xce   : > { %2624 = vmatpush1.bf16.msra.mxu1 %v3609_v15  ;;  %2552 = vmatprep.subr.bf16.mxu0 %v3614_v16  ;;  %v3671_v15 = vld [vmem:[%s4845_s1 + $0x7d4] ss:$8 sps:$4 sm:$0xff]   ;;  %v3666_v16 = vld [vmem:[%s4845_s1 + $0x6d0] ss:$8 sps:$4 sm:$0xff]  }
  0xcf   : > { %2625 = vmatprep.subr.bf16.mxu1 %v3617_v17  ;;  %2446 = vmatprep.mubr.bf16.mxu0 %v2992_v18  ;;  %v3669_v17 = vld [vmem:[%s4845_s1 + $0x7d0] ss:$8 sps:$4 sm:$0xff]   ;;  %v3674_v18 = vld [vmem:[%s4845_s1 + $0x6c4] ss:$8 sps:$4 sm:$0xff]  }
  0xd0   : > { %2519 = vmatprep.mubr.bf16.mxu1 %v2994_v19  ;;  %v3677_v19 = vld [vmem:[%s4845_s1 + $0x7c4] ss:$8 sps:$4 sm:$0xff]  }
  0xd1   : > { %2553 = vmatpush1.bf16.msra.mxu0 %v3612_v20  ;;  %v3672_v20 = vld [vmem:[%s4845_s1 + $0x6c0] ss:$8 sps:$4 sm:$0xff]  }
  0xd2   : > { %2626 = vmatpush1.bf16.msra.mxu1 %v3615_v21  ;;  %2554 = vmatprep.subr.bf16.mxu0 %v3620_v22  ;;  %v3675_v21 = vld [vmem:[%s4845_s1 + $0x7c0] ss:$8 sps:$4 sm:$0xff]   ;;  %v3680_v22 = vld [vmem:[%s4845_s1 + $0x6b4] ss:$8 sps:$4 sm:$0xff]  }
  0xd3   : > { %2627 = vmatprep.subr.bf16.mxu1 %v3623_v23  ;;  %v3683_v23 = vld [vmem:[%s4845_s1 + $0x7b4] ss:$8 sps:$4 sm:$0xff]  }
  0xd4   : > { %2447 = vmatmul.mubr.bf16.gmra.mxu0 %v2991_v25  ;;  %v3681_v25 = vld [vmem:[%s4845_s1 + $0x7b0] ss:$8 sps:$4 sm:$0xff]  }
  0xd5   : > { %2520 = vmatmul.mubr.bf16.gmra.mxu1 %v2993_v26  ;;  %2555 = vmatpush1.bf16.msra.mxu0 %v3618_v30  ;;  %v3686_v26 = vld [vmem:[%s4845_s1 + $0x6a4] ss:$8 sps:$4 sm:$0xff]   ;;  %v3692_v30 = vld [vmem:[%s4845_s1 + $0x694] ss:$8 sps:$4 sm:$0xff]  }
  0xd6   : > { %2628 = vmatpush1.bf16.msra.mxu1 %v3621_v31  ;;  %2556 = vmatprep.subr.bf16.mxu0 %v3626_v32  ;;  %v3695_v31 = vld [vmem:[%s4845_s1 + $0x794] ss:$8 sps:$4 sm:$0xff]   ;;  %v3690_v32 = vld [vmem:[%s4845_s1 + $0x690] ss:$8 sps:$4 sm:$0xff]  }
  0xd7   : > { %2629 = vmatprep.subr.bf16.mxu1 %v3629_v33  ;;  %2456 = vmatprep.mubr.bf16.mxu0 %v3008_v34  ;;  %v3693_v33 = vld [vmem:[%s4845_s1 + $0x790] ss:$8 sps:$4 sm:$0xff]   ;;  %v3698_v34 = vld [vmem:[%s4845_s1 + $0x684] ss:$8 sps:$4 sm:$0xff]  }
  0xd8   : > { %2529 = vmatprep.mubr.bf16.mxu1 %v3010_v35  ;;  %v3701_v35 = vld [vmem:[%s4845_s1 + $0x784] ss:$8 sps:$4 sm:$0xff]  }
  0xd9   : > { %2557 = vmatpush1.bf16.msra.mxu0 %v3624_v36  ;;  %v3696_v36 = vld [vmem:[%s4845_s1 + $0x680] ss:$8 sps:$4 sm:$0xff]  }
  0xda   : > { %2630 = vmatpush1.bf16.msra.mxu1 %v3627_v37  ;;  %2558 = vmatprep.subr.bf16.mxu0 %v3632_v38  ;;  %v3699_v37 = vld [vmem:[%s4845_s1 + $0x780] ss:$8 sps:$4 sm:$0xff]   ;;  %v214_v38 = vld [vmem:[%s3880_s5 + $0xb0] sm:$0xff] }
  0xdb   : > { %2631 = vmatprep.subr.bf16.mxu1 %v3635_v39  ;;  %v222_v39 = vld [vmem:[%s3880_s5 + $0xf0] sm:$0xff] }
  0xdc   : > { %2457 = vmatmul.mubr.bf16.gmra.mxu0 %v3007_v41  ;;  %v223_v41 = vld [vmem:[%s3880_s5 + $0xf8] sm:$0xff]  ;;  %v2996_v44 = vcombine.high %v214_v38, %v222_v39 }
  0xdd   : > { %2530 = vmatmul.mubr.bf16.gmra.mxu1 %v3009_v42  ;;  %2559 = vmatpush1.bf16.msra.mxu0 %v3630_v46  ;;  %v2979_v42 = vcombine.low %v4485_v56, %v4488_v59  ;;  %v2998_v45 = vcombine.high %v215_v40, %v223_v41  ;;  %v2997_v59 = vcombine.low %v215_v40, %v223_v41 }
  0xde   : > { %2632 = vmatpush1.bf16.msra.mxu1 %v3633_v47  ;;  %2560 = vmatprep.subr.bf16.mxu0 %v3638_v48 }
  0xdf   : > { %2633 = vmatprep.subr.bf16.mxu1 %v3641_v49  ;;  %2466 = vmatprep.mubr.bf16.mxu0 %v3024_v50  ;;  %v230_v49 = vld [vmem:[%s3880_s5 + $0x130] sm:$0xff] }
  0xe0   : > { %2539 = vmatprep.mubr.bf16.mxu1 %v3026_v51 }
  0xe1   : > { %2561 = vmatpush1.bf16.msra.mxu0 %v3636_v52  ;;  %v238_v52 = vld [vmem:[%s3880_s5 + $0x170] sm:$0xff] }
  0xe2   : > { %2634 = vmatpush1.bf16.msra.mxu1 %v3639_v53  ;;  %2562 = vmatprep.subr.bf16.mxu0 %v3644_v54  ;;  %v231_v53 = vld [vmem:[%s3880_s5 + $0x138] sm:$0xff]  ;;  %v3012_v61 = vcombine.high %v230_v49, %v238_v52 }
  0xe3   : > { %2635 = vmatprep.subr.bf16.mxu1 %v3647_v55  ;;  %v239_v54 = vld [vmem:[%s3880_s5 + $0x178] sm:$0xff] }
  0xe4   : > { %2467 = vmatmul.mubr.bf16.gmra.mxu0 %v3023_v57 }
  0xe5   : > { %2540 = vmatmul.mubr.bf16.gmra.mxu1 %v3025_v58  ;;  %2563 = vmatpush1.bf16.msra.mxu0 %v3642_v62  ;;  %v2995_v58 = vcombine.low %v214_v38, %v222_v39  ;;  %v3014_v62 = vcombine.high %v231_v53, %v239_v54 }
  0xe6   : > { %2636 = vmatpush1.bf16.msra.mxu1 %v3645_v63  ;;  %2564 = vmatprep.subr.bf16.mxu0 %v3650_v0 }
  0xe7   : > { %2637 = vmatprep.subr.bf16.mxu1 %v3653_v1  ;;  %2582 = vmatprep.mubr.bf16.mxu0 %v2980_v2 }
  0xe8   : > { %2655 = vmatprep.mubr.bf16.mxu1 %v2982_v3 }
  0xe9   : > { %2565 = vmatpush1.bf16.msra.mxu0 %v3648_v4  ;;  %v246_v4 = vld [vmem:[%s3880_s5 + $0x1b0] sm:$0xff] }
  0xea   : > { %2638 = vmatpush1.bf16.msra.mxu1 %v3651_v5  ;;  %2566 = vmatprep.subr.bf16.mxu0 %v3656_v6  ;;  %v254_v6 = vld [vmem:[%s3880_s5 + $0x1f0] sm:$0xff] }
  0xeb   : > { %2639 = vmatprep.subr.bf16.mxu1 %v3659_v7  ;;  %v247_v7 = vld [vmem:[%s3880_s5 + $0x1b8] sm:$0xff] }
  0xed   : > { %2567 = vmatpush2.bf16.msra.mxu0 %v3654_v8  ;;  %v255_v8 = vld [vmem:[%s3880_s5 + $0x1f8] sm:$0xff]  ;;  %s3299_s5 = sshll.u32 %s4895_s24, 3 }
  0xee   : > { %2640 = vmatpush2.bf16.msra.mxu1 %v3657_v9  ;;  %2568 = vmatprep.subr.bf16.mxu0 %v3662_v10  ;;  %s4797_s19 = scalar_lea.vmem %s4846_s2, %s3299_s5 }
  0xef   : > { %2641 = vmatprep.subr.bf16.mxu1 %v3665_v11 }
  0xf1   : > { %2569 = vmatpush2.bf16.msra.mxu0 %v3660_v12  ;;  %v3011_v12 = vcombine.low %v230_v49, %v238_v52 }
  0xf2   : > { %2642 = vmatpush2.bf16.msra.mxu1 %v3663_v13  ;;  %2570 = vmatprep.subr.bf16.mxu0 %v3668_v14  ;;  %v3013_v13 = vcombine.low %v231_v53, %v239_v54 }
  0xf3   : > { %2643 = vmatprep.subr.bf16.mxu1 %v3671_v15 }
  0xf5   : > { %2571 = vmatpush2.bf16.msra.mxu0 %v3666_v16  ;;  %v3028_v16 = vcombine.high %v246_v4, %v254_v6 }
  0xf6   : > { %2644 = vmatpush2.bf16.msra.mxu1 %v3669_v17  ;;  %2572 = vmatprep.subr.bf16.mxu0 %v3674_v18  ;;  %v3030_v17 = vcombine.high %v247_v7, %v255_v8 }
  0xf7   : > { %2645 = vmatprep.subr.bf16.mxu1 %v3677_v19 }
  0xf9   : > { %2573 = vmatpush2.bf16.msra.mxu0 %v3672_v20 }
  0xfa   : > { %2646 = vmatpush2.bf16.msra.mxu1 %v3675_v21  ;;  %2574 = vmatprep.subr.bf16.mxu0 %v3680_v22 }
  0xfb   : > { %2647 = vmatprep.subr.bf16.mxu1 %v3683_v23 }
  0xfd   : > { %2575 = vmatpush2.bf16.msra.mxu0 %v3678_v24 }
  0xfe   : > { %2648 = vmatpush2.bf16.msra.mxu1 %v3681_v25  ;;  %2576 = vmatprep.subr.bf16.mxu0 %v3686_v26 }
  0xff   : > { %2649 = vmatprep.subr.bf16.mxu1 %v3689_v27 }
 0x101   : > { %2577 = vmatpush2.bf16.msra.mxu0 %v3684_v28  ;;  %v3027_v28 = vcombine.low %v246_v4, %v254_v6 }
 0x102   : > { %2650 = vmatpush2.bf16.msra.mxu1 %v3687_v29  ;;  %2578 = vmatprep.subr.bf16.mxu0 %v3692_v30  ;;  %v3029_v29 = vcombine.low %v247_v7, %v255_v8 }
 0x103   : > { %2651 = vmatprep.subr.bf16.mxu1 %v3695_v31 }
 0x105   : > { %2579 = vmatpush2.bf16.msra.mxu0 %v3690_v32 }
 0x106   : > { %2652 = vmatpush2.bf16.msra.mxu1 %v3693_v33  ;;  %2580 = vmatprep.subr.bf16.mxu0 %v3698_v34 }
 0x107   : > { %2653 = vmatprep.subr.bf16.mxu1 %v3701_v35 }
 0x109   : > { %2581 = vmatpush2.bf16.msra.mxu0 %v3696_v36 }
 0x10a   : > { %2654 = vmatpush2.bf16.msra.mxu1 %v3699_v37 }
 0x10c   : > { %v2146_v46 = vpop.f32.mrf.mxu0  ;;  %2583 = vmatmul.mubr.bf16.vlgmr.msra.gmra.mxu0 %v2979_v42 }
 0x10d   : > { %v2219_v47 = vpop.f32.mrf.mxu1  ;;  %2656 = vmatmul.mubr.bf16.vlgmr.msra.gmra.mxu1 %v2981_v43  ;;  %2592 = vmatprep.mubr.bf16.mxu0 %v2996_v44 }
 0x10e   : > { %v4622_v48 = vadd.f32 %v2219_v47, %v2146_v46  ;;  %2665 = vmatprep.mubr.bf16.mxu1 %v2998_v45  ;;  %v2148_v50 = vpop.f32.mrf.mxu0 }
 0x10f   : > { %v2221_v51 = vpop.f32.mrf.mxu1 }
 0x110   : > { %v4628_v55 = vadd.f32 %v2221_v51, %v2148_v50  ;;  %v2150_v56 = vpop.f32.mrf.mxu0 }
 0x111   : > { %v2223_v57 = vpop.f32.mrf.mxu1 }
 0x112   : > { %v4630_v60 = vadd.f32 %v2223_v57, %v2150_v56  ;;  %v2152_v63 = vpop.f32.mrf.mxu0 }
 0x113   : > { %v2225_v0 = vpop.f32.mrf.mxu1 }
 0x114   : > { %v4632_v1 = vadd.f32 %v2225_v0, %v2152_v63  ;;  %2593 = vmatmul.mubr.bf16.gmra.mxu0 %v2995_v58  ;;  %v2156_v2 = vpop.f32.mrf.mxu0 }
 0x115   : > { %2666 = vmatmul.mubr.bf16.gmra.mxu1 %v2997_v59  ;;  %v2229_v3 = vpop.f32.mrf.mxu1  ;;  %2602 = vmatprep.mubr.bf16.mxu0 %v3012_v61 }
 0x116   : > { %2675 = vmatprep.mubr.bf16.mxu1 %v3014_v62  ;;  %v4635_v5 = vadd.f32 %v2229_v3, %v2156_v2  ;;  %v2158_v9 = vpop.f32.mrf.mxu0 }
 0x117   : > { %v2231_v10 = vpop.f32.mrf.mxu1 }
 0x118   : > { %v4640_v11 = vadd.f32 %v2231_v10, %v2158_v9  ;;  %v2160_v14 = vpop.f32.mrf.mxu0 }
 0x119   : > { %v2233_v15 = vpop.f32.mrf.mxu1 }
 0x11a   : > { %v4642_v18 = vadd.f32 %v2233_v15, %v2160_v14  ;;  %v2162_v19 = vpop.f32.mrf.mxu0 }
 0x11b   : > { %v2235_v20 = vpop.f32.mrf.mxu1 }
 0x11c   : > { %v4644_v21 = vadd.f32 %v2235_v20, %v2162_v19  ;;  %2603 = vmatmul.mubr.bf16.gmra.mxu0 %v3011_v12  ;;  %v2166_v22 = vpop.f32.mrf.mxu0 }
 0x11d   : > { %2676 = vmatmul.mubr.bf16.gmra.mxu1 %v3013_v13  ;;  %v2239_v23 = vpop.f32.mrf.mxu1  ;;  %2612 = vmatprep.mubr.bf16.mxu0 %v3028_v16 }
 0x11e   : > { %2685 = vmatprep.mubr.bf16.mxu1 %v3030_v17  ;;  %v4646_v24 = vadd.f32 %v2239_v23, %v2166_v22  ;;  %v2168_v25 = vpop.f32.mrf.mxu0 }
 0x11f   : > { %v2241_v26 = vpop.f32.mrf.mxu1 }
 0x120   : > { %v4648_v27 = vadd.f32 %v2241_v26, %v2168_v25  ;;  %v2170_v30 = vpop.f32.mrf.mxu0 }
 0x121   : > { %v2243_v31 = vpop.f32.mrf.mxu1 }
 0x122   : > { %v4650_v32 = vadd.f32 %v2243_v31, %v2170_v30  ;;  %v2172_v33 = vpop.f32.mrf.mxu0 }
 0x123   : > { %v2245_v34 = vpop.f32.mrf.mxu1 }
 0x124   : > { %v4652_v35 = vadd.f32 %v2245_v34, %v2172_v33  ;;  %2613 = vmatmul.mubr.bf16.gmra.mxu0 %v3027_v28  ;;  %v2176_v36 = vpop.f32.mrf.mxu0 }
 0x125   : > { %2686 = vmatmul.mubr.bf16.gmra.mxu1 %v3029_v29  ;;  %v2249_v37 = vpop.f32.mrf.mxu1 }
 0x126   : > { %v4654_v38 = vadd.f32 %v2249_v37, %v2176_v36  ;;  %v2178_v39 = vpop.f32.mrf.mxu0 }
 0x127   : > { %v2251_v40 = vpop.f32.mrf.mxu1 }
 0x128   : > { %v4656_v41 = vadd.f32 %v2251_v40, %v2178_v39  ;;  %v2180_v42 = vpop.f32.mrf.mxu0 }
 0x129   : > { %v2253_v43 = vpop.f32.mrf.mxu1 }
 0x12a   : > { %v4658_v44 = vadd.f32 %v2253_v43, %v2180_v42  ;;  %v2182_v45 = vpop.f32.mrf.mxu0 }
 0x12b   : > { %v2255_v46 = vpop.f32.mrf.mxu1 }
 0x12c   : > { %4848 = vst [vmem:[#allocation2_spill] sm:$0xff] %v4658_v44  ;;  %v4660_v47 = vadd.f32 %v2255_v46, %v2182_v45 }
 0x12e   : > { %4849 = vst [vmem:[#allocation3_spill] sm:$0xff] %v4660_v47 }
 0x14c   : > { %v2292_v49 = vpop.f32.mrf.mxu0 }
 0x14d   : > { %v2365_v50 = vpop.f32.mrf.mxu1 }
 0x14e   : > { %v2294_v51 = vpop.f32.mrf.mxu0 }
 0x14f   : > { %v4662_v52 = vpop.f32.mrf.mxu1 }
 0x150   : > { %v2296_v53 = vpop.f32.mrf.mxu0 }
 0x151   : > { %v4664_v54 = vpop.f32.mrf.mxu1 }
 0x152   : > { %v2298_v56 = vpop.f32.mrf.mxu0 }
 0x153   : > { %v4666_v57 = vpop.f32.mrf.mxu1 }
 0x154   : > { %v2302_v58 = vpop.f32.mrf.mxu0 }
 0x155   : > { %v4668_v59 = vpop.f32.mrf.mxu1 }
 0x156   : > { %v2304_v61 = vpop.f32.mrf.mxu0 }
 0x157   : > { %v4670_v62 = vpop.f32.mrf.mxu1 }
 0x158   : > { %v2306_v63 = vpop.f32.mrf.mxu0 }
 0x159   : > { %v4672_v0 = vpop.f32.mrf.mxu1 }
 0x15a   : > { %v4674_v2 = vpop.f32.mrf.mxu0 }
 0x15b   : > { %v4676_v3 = vpop.f32.mrf.mxu1 }
 0x15c   : > { %v4678_v4 = vpop.f32.mrf.mxu0 }
 0x15d   : > { %v4680_v6 = vpop.f32.mrf.mxu1 }
 0x15e   : > { %v4682_v7 = vpop.f32.mrf.mxu0 }
 0x15f   : > { %v4684_v8 = vpop.f32.mrf.mxu1 }
 0x160   : > { %v4686_v9 = vpop.f32.mrf.mxu0 }
 0x161   : > { %v4688_v10 = vpop.f32.mrf.mxu1 }
 0x162   : > { %v4690_v12 = vpop.f32.mrf.mxu0 }
 0x163   : > { %v4692_v13 = vpop.f32.mrf.mxu1 }
 0x164   : > { %v4694_v14 = vpop.f32.mrf.mxu0 }
 0x165   : > { %v4696_v15 = vpop.f32.mrf.mxu1 }
 0x166   : > { %v4698_v16 = vpop.f32.mrf.mxu0 }
 0x167   : > { %v4700_v17 = vpop.f32.mrf.mxu1 }
 0x168   : > { %4850 = vst [vmem:[#allocation4_spill] sm:$0xff] %v4700_v17  ;;  %v4702_v19 = vpop.f32.mrf.mxu0 }
 0x169   : > { %4851 = vst [vmem:[#allocation5_spill] sm:$0xff] %v4702_v19  ;;  %v4704_v20 = vpop.f32.mrf.mxu1 }
 0x16a   : > { %4852 = vst [vmem:[#allocation6_spill] sm:$0xff] %v4704_v20  ;;  %v4706_v22 = vpop.f32.mrf.mxu0 }
 0x16b   : > { %4853 = vst [vmem:[#allocation7_spill] sm:$0xff] %v4706_v22  ;;  %v4708_v23 = vpop.f32.mrf.mxu1 }
 0x16c   : > { %4854 = vst [vmem:[#allocation8_spill] sm:$0xff] %v4708_v23 }
 0x18c   : > { %v2438_v25 = vpop.f32.mrf.mxu0 }
 0x18d   : > { %v2511_v26 = vpop.f32.mrf.mxu1 }
 0x18e   : > { %v2440_v28 = vpop.f32.mrf.mxu0 }
 0x18f   : > { %v2513_v29 = vpop.f32.mrf.mxu1 }
 0x190   : > { %v2442_v30 = vpop.f32.mrf.mxu0 }
 0x191   : > { %v2515_v31 = vpop.f32.mrf.mxu1 }
 0x192   : > { %v2444_v33 = vpop.f32.mrf.mxu0 }
 0x193   : > { %v4710_v34 = vpop.f32.mrf.mxu1 }
 0x194   : > { %v2448_v36 = vpop.f32.mrf.mxu0 }
 0x195   : > { %v4712_v37 = vpop.f32.mrf.mxu1 }
 0x196   : > { %v4714_v39 = vpop.f32.mrf.mxu0 }
 0x197   : > { %v4716_v40 = vpop.f32.mrf.mxu1 }
 0x198   : > { %4855 = vst [vmem:[#allocation9_spill] sm:$0xff] %v4716_v40  ;;  %v4718_v42 = vpop.f32.mrf.mxu0 }
 0x199   : > { %v4720_v43 = vpop.f32.mrf.mxu1 }
 0x19a   : > { %4856 = vst [vmem:[#allocation10_spill] sm:$0xff] %v4720_v43  ;;  %v4722_v45 = vpop.f32.mrf.mxu0 }
 0x19b   : > { %4857 = vst [vmem:[#allocation11_spill] sm:$0xff] %v4722_v45  ;;  %v4724_v46 = vpop.f32.mrf.mxu1 }
 0x19c   : > { %4858 = vst [vmem:[#allocation12_spill] sm:$0xff] %v4724_v46  ;;  %v4726_v23 = vpop.f32.mrf.mxu0  ;;  %v2293_v46 = vadd.f32 %v2292_v49, %v4622_v48  ;;  %v2303_v48 = vadd.f32 %v2302_v58, %v4635_v5 }
 0x19d   : > { %4859 = vst [vmem:[#allocation13_spill] sm:$0xff] %v4726_v23  ;;  %v4728_v20 = vpop.f32.mrf.mxu1 }
 0x19e   : > { %4860 = vst [vmem:[#allocation14_spill] sm:$0xff] %v4728_v20  ;;  %v4730_v22 = vpop.f32.mrf.mxu0  ;;  %v2376_v5 = vadd.f32 %v4668_v59, %v2303_v48  ;;  %v2319_v59 = vadd.f32 %v4690_v12, %v4652_v35 }
 0x19f   : > { %4861 = vst [vmem:[#allocation15_spill] sm:$0xff] %v4730_v22  ;;  %v4732_v47 = vpop.f32.mrf.mxu1  ;;  %v2366_v22 = vadd.f32 %v2365_v50, %v2293_v46  ;;  %v4874_v48 = vld [vmem:[#allocation9_spill] sm:$0xff] }
 0x1a0   : > { %4862 = vst [vmem:[#allocation16_spill] sm:$0xff] %v4732_v47  ;;  %v4734_v17 = vpop.f32.mrf.mxu0  ;;  %v2295_v47 = vadd.f32 %v2294_v51, %v4628_v55  ;;  %v2307_v55 = vadd.f32 %v2306_v63, %v4642_v18 }
 0x1a1   : > { %4863 = vst [vmem:[#allocation17_spill] sm:$0xff] %v4734_v17  ;;  %v4736_v19 = vpop.f32.mrf.mxu1  ;;  %v2297_v17 = vadd.f32 %v2296_v53, %v4630_v60 }
 0x1a2   : > { %4864 = vst [vmem:[#allocation18_spill] sm:$0xff] %v4736_v19  ;;  %v4738_v40 = vpop.f32.mrf.mxu0 }
 0x1a3   : > { %4865 = vst [vmem:[#allocation19_spill] sm:$0xff] %v4738_v40  ;;  %v4740_v44 = vpop.f32.mrf.mxu1  ;;  %v2370_v49 = vadd.f32 %v4664_v54, %v2297_v17  ;;  %v2317_v54 = vadd.f32 %v4686_v9, %v4650_v32 }
 0x1a4   : > { %4866 = vst [vmem:[#allocation20_spill] sm:$0xff] %v4740_v44  ;;  %v4742_v43 = vpop.f32.mrf.mxu0  ;;  %v2368_v44 = vadd.f32 %v4662_v52, %v2295_v47  ;;  %v2309_v47 = vadd.f32 %v4674_v2, %v4644_v21 }
 0x1a5   : > { %4867 = vst [vmem:[#allocation21_spill] sm:$0xff] %v4742_v43  ;;  %v4744_v45 = vpop.f32.mrf.mxu1  ;;  %v2299_v43 = vadd.f32 %v2298_v56, %v4632_v1  ;;  %v2443_v52 = vadd.f32 %v2442_v30, %v2370_v49  ;;  %v2390_v35 = vadd.f32 %v4688_v10, %v2317_v54  ;;  %v4875_v49 = vld [vmem:[#allocation10_spill] sm:$0xff] }
 0x1a6   : > { %4868 = vst [vmem:[#allocation22_spill] sm:$0xff] %v4744_v45  ;;  %v4747_v23 = vpop.f32.mrf.mxu0  ;;  %v2439_v45 = vadd.f32 %v2438_v25, %v2366_v22  ;;  %v2325_v25 = vadd.f32 %v4698_v16, %v4656_v41  ;;  %v4871_v41 = vld [vmem:[#allocation2_spill] sm:$0xff]  ;;  %v4872_v16 = vld [vmem:[#allocation5_spill] sm:$0xff] }
 0x1a7   : > { %4869 = vst [vmem:[#allocation23_spill] sm:$0xff] %v4747_v23  ;;  %v4749_v20 = vpop.f32.mrf.mxu1  ;;  %v2441_v23 = vadd.f32 %v2440_v28, %v2368_v44  ;;  %v2372_v51 = vadd.f32 %v4666_v57, %v2299_v43  ;;  %v2313_v44 = vadd.f32 %v4678_v4, %v4646_v24  ;;  %v2516_v2 = vadd.f32 %v2515_v31, %v2443_v52  ;;  %v4873_v31 = vld [vmem:[#allocation11_spill] sm:$0xff] }
 0x1a8   : > { %4870 = vst [vmem:[#allocation24_spill] sm:$0xff] %v4749_v20  ;;  %v4753_v19 = vpop.f32.mrf.mxu0  ;;  %v2305_v20 = vadd.f32 %v2304_v61, %v4640_v11  ;;  %v2512_v1 = vadd.f32 %v2511_v26, %v2439_v45  ;;  %v2315_v11 = vadd.f32 %v4682_v7, %v4648_v27  ;;  %v2380_v61 = vadd.f32 %v4672_v0, %v2307_v55 }
 0x1a9   : > { %v4755_v40 = vpop.f32.mrf.mxu1  ;;  %v2514_v56 = vadd.f32 %v2513_v29, %v2441_v23  ;;  %v2445_v57 = vadd.f32 %v2444_v33, %v2372_v51  ;;  %v2382_v27 = vadd.f32 %v4676_v3, %v2309_v47  ;;  %v2449_v4 = vadd.f32 %v2448_v36, %v2376_v5  ;;  %v4876_v51 = vld [vmem:[#allocation13_spill] sm:$0xff] }
 0x1aa   : > { %v4763_v50 = vpop.f32.mrf.mxu0  ;;  %v2378_v21 = vadd.f32 %v4670_v62, %v2305_v20  ;;  %v2386_v32 = vadd.f32 %v4680_v6, %v2313_v44  ;;  %v2388_v9 = vadd.f32 %v4684_v8, %v2315_v11  ;;  %v2323_v62 = vadd.f32 %v4694_v14, %v4654_v38 }
 0x1ab   : > { %v4765_v60 = vpop.f32.mrf.mxu1  ;;  %v2518_v12 = vadd.f32 %v4710_v34, %v2445_v57  ;;  %v2392_v23 = vadd.f32 %v4692_v13, %v2319_v59  ;;  %v2453_v8 = vadd.f32 %v4718_v42, %v2380_v61  ;;  %v2522_v14 = vadd.f32 %v4712_v37, %v2449_v4  ;;  %v4879_v57 = vld [vmem:[#allocation7_spill] sm:$0xff] }
 0x1ac   : > { %v2451_v6 = vadd.f32 %v4714_v39, %v2378_v21  ;;  %v2396_v29 = vadd.f32 %v4696_v15, %v2323_v62  ;;  %v2327_v30 = vadd.f32 %v4872_v16, %v4871_v41  ;;  %v2455_v33 = vadd.f32 %v4873_v31, %v2382_v27  ;;  %v4882_v62 = vld [vmem:[#allocation17_spill] sm:$0xff] }
 0x1ad   : > { %v2526_v55 = vadd.f32 %v4875_v49, %v2453_v8  ;;  %v2459_v47 = vadd.f32 %v4876_v51, %v2386_v32  ;;  %v4884_v8 = vld [vmem:[#allocation19_spill] sm:$0xff] }
 0x1ae   : > { %v2524_v37 = vadd.f32 %v4874_v48, %v2451_v6 }
 0x1cc   : > { %v2584_v18 = vpop.f32.mrf.mxu0 }
 0x1cd   : > { %v2657_v53 = vpop.f32.mrf.mxu1  ;;  %v2585_v58 = vadd.f32 %v2584_v18, %v2512_v1 }
 0x1ce   : > { %v2586_v24 = vpop.f32.mrf.mxu0 }
 0x1cf   : > { %v2659_v63 = vpop.f32.mrf.mxu1  ;;  %v2587_v7 = vadd.f32 %v2586_v24, %v2514_v56  ;;  %v2658_v17 = vadd.f32 %v2657_v53, %v2585_v58  ;;  %v4877_v53 = vld [vmem:[#allocation4_spill] sm:$0xff]  ;;  %v4878_v56 = vld [vmem:[#allocation3_spill] sm:$0xff] }
 0x1d0   : > { %v2588_v0 = vpop.f32.mrf.mxu0  ;;  %v2398_v54 = vadd.f32 %v4877_v53, %v2325_v25  ;;  %v2329_v58 = vadd.f32 %v4879_v57, %v4878_v56  ;;  %v4883_v25 = vld [vmem:[#allocation14_spill] sm:$0xff]  ;;  %v4890_v56 = vld [vmem:[#allocation20_spill] sm:$0xff] }
 0x1d1   : > { %v2661_v20 = vpop.f32.mrf.mxu1  ;;  %v2660_v22 = vadd.f32 %v2659_v63, %v2587_v7  ;;  %v2589_v3 = vadd.f32 %v2588_v0, %v2516_v2  ;;  %v2801_v34 = vmul.f32 %v2658_v17, %v2658_v17  ;;  %v4880_v63 = vld [vmem:[#allocation12_spill] sm:$0xff]  ;;  %v4881_v2 = vld [vmem:[#allocation15_spill] sm:$0xff]  ;;  %v2532_v6 = vadd.f32 %v4883_v25, %v2459_v47 }
 0x1d2   : > { %v2590_v38 = vpop.f32.mrf.mxu0  ;;  %v2528_v27 = vadd.f32 %v4880_v63, %v2455_v33  ;;  %v2461_v4 = vadd.f32 %v4881_v2, %v2388_v9 }
 0x1d3   : > { %v2663_v10 = vpop.f32.mrf.mxu1  ;;  %v3301_v26 = vpack.c.bf16 %v2660_v22, %v2658_v17  ;;  %v2662_v28 = vadd.f32 %v2661_v20, %v2589_v3  ;;  %v2591_v13 = vadd.f32 %v2590_v38, %v2518_v12  ;;  %v2802_v15 = vmul.f32 %v2660_v22, %v2660_v22 }
 0x1d4   : > { %v2594_v36 = vpop.f32.mrf.mxu0  ;;  %v2465_v38 = vadd.f32 %v4884_v8, %v2392_v23 }
 0x1d5   : > { %v2667_v39 = vpop.f32.mrf.mxu1  ;;  %2744 = vst [vmem:[%s4797_s19] sm:$0xff] %v3301_v26  ;;  %v2752_v42 = vadd.f32 %v2662_v28, %v2658_v17  ;;  %v2803_v43 = vmul.f32 %v2662_v28, %v2662_v28  ;;  %v2664_v45 = vadd.f32 %v2663_v10, %v2591_v13  ;;  %v2595_v46 = vadd.f32 %v2594_v36, %v2522_v14  ;;  %v4885_v36 = vld [vmem:[#allocation16_spill] sm:$0xff] }
 0x1d6   : > { %v2596_v1 = vpop.f32.mrf.mxu0  ;;  %v2463_v17 = vadd.f32 %v4882_v62, %v2390_v35  ;;  %v2538_v57 = vadd.f32 %v4890_v56, %v2465_v38  ;;  %v4893_v38 = vld [vmem:[#allocation24_spill] sm:$0xff] }
 0x1d7   : > { %v2669_v52 = vpop.f32.mrf.mxu1  ;;  %v2817_v5 = vadd.f32 %v2803_v43, %v2801_v34  ;;  %v3302_v44 = vpack.c.bf16 %v2664_v45, %v2662_v28  ;;  %v2765_v11 = vadd.f32 %v2664_v45, %v2660_v22  ;;  %v2804_v18 = vmul.f32 %v2664_v45, %v2664_v45  ;;  %v4887_v45 = vld [vmem:[#allocation21_spill] sm:$0xff] }
 0x1d8   : > { %v2668_v21 = vadd.f32 %v2667_v39, %v2595_v46  ;;  %v2597_v61 = vadd.f32 %v2596_v1, %v2524_v37  ;;  %v2598_v59 = vpop.f32.mrf.mxu0  ;;  %v2534_v39 = vadd.f32 %v4885_v36, %v2461_v4  ;;  %v2469_v46 = vadd.f32 %v4887_v45, %v2396_v29  ;;  %v4891_v29 = vld [vmem:[#allocation23_spill] sm:$0xff] }
 0x1d9   : > { %v2671_v24 = vpop.f32.mrf.mxu1  ;;  %2745 = vst [vmem:[%s4797_s19 + $0x8] sm:$0xff] %v3302_v44  ;;  %v2830_v7 = vadd.f32 %v2804_v18, %v2802_v15  ;;  %v2599_v32 = vadd.f32 %v2598_v59, %v2526_v55  ;;  %v4888_v15 = vld [vmem:[#allocation6_spill] sm:$0xff] }
 0x1da   : > { %v2753_v0 = vadd.f32 %v2752_v42, %v2668_v21  ;;  %v2805_v20 = vmul.f32 %v2668_v21, %v2668_v21  ;;  %v2670_v12 = vadd.f32 %v2669_v52, %v2597_v61  ;;  %v2600_v22 = vpop.f32.mrf.mxu0  ;;  %v4886_v42 = vld [vmem:[#allocation18_spill] sm:$0xff]  ;;  %v2400_v1 = vadd.f32 %v4888_v15, %v2327_v30  ;;  %v4889_v52 = vld [vmem:[#allocation8_spill] sm:$0xff] }
 0x1db   : > { %v2673_v3 = vpop.f32.mrf.mxu1  ;;  %v2672_v10 = vadd.f32 %v2671_v24, %v2599_v32  ;;  %v2601_v14 = vadd.f32 %v2600_v22, %v2528_v27  ;;  %v2536_v43 = vadd.f32 %v4886_v42, %v2463_v17 }
 0x1dc   : > { %v2818_v26 = vadd.f32 %v2817_v5, %v2805_v20  ;;  %v3303_v28 = vpack.c.bf16 %v2670_v12, %v2668_v21  ;;  %v2766_v9 = vadd.f32 %v2765_v11, %v2670_v12  ;;  %v2806_v13 = vmul.f32 %v2670_v12, %v2670_v12  ;;  %v2604_v41 = vpop.f32.mrf.mxu0 }
 0x1dd   : > { %v2677_v16 = vpop.f32.mrf.mxu1  ;;  %v2754_v31 = vadd.f32 %v2753_v0, %v2672_v10  ;;  %v2807_v35 = vmul.f32 %v2672_v10, %v2672_v10  ;;  %v2674_v33 = vadd.f32 %v2673_v3, %v2601_v14  ;;  %v2605_v34 = vadd.f32 %v2604_v41, %v2532_v6 }
 0x1de   : > { %2746 = vst [vmem:[%s4797_s19 + $0x10] sm:$0xff] %v3303_v28  ;;  %v2831_v23 = vadd.f32 %v2830_v7, %v2806_v13  ;;  %v2606_v48 = vpop.f32.mrf.mxu0  ;;  %v2402_v5 = vadd.f32 %v4889_v52, %v2329_v58  ;;  %v2471_v21 = vadd.f32 %v4891_v29, %v2398_v54  ;;  %v2473_v24 = vadd.f32 %v4753_v19, %v2400_v1  ;;  %v4892_v7 = vld [vmem:[#allocation22_spill] sm:$0xff] }
 0x1df   : > { %v2679_v37 = vpop.f32.mrf.mxu1  ;;  %v2819_v49 = vadd.f32 %v2818_v26, %v2807_v35  ;;  %v3304_v55 = vpack.c.bf16 %v2674_v33, %v2672_v10  ;;  %v2767_v51 = vadd.f32 %v2766_v9, %v2674_v33  ;;  %v2808_v47 = vmul.f32 %v2674_v33, %v2674_v33 }
 0x1e0   : > { %v2678_v44 = vadd.f32 %v2677_v16, %v2605_v34  ;;  %v2607_v11 = vadd.f32 %v2606_v48, %v2534_v39  ;;  %v2608_v18 = vpop.f32.mrf.mxu0  ;;  %v2542_v58 = vadd.f32 %v4892_v7, %v2469_v46  ;;  %v2475_v32 = vadd.f32 %v4763_v50, %v2402_v5 }
 0x1e1   : > { %v2681_v53 = vpop.f32.mrf.mxu1  ;;  %2747 = vst [vmem:[%s4797_s19 + $0x18] sm:$0xff] %v3304_v55  ;;  %v2832_v61 = vadd.f32 %v2831_v23, %v2808_v47  ;;  %v2609_v59 = vadd.f32 %v2608_v18, %v2536_v43  ;;  %v2544_v10 = vadd.f32 %v4893_v38, %v2471_v21  ;;  %v2546_v14 = vadd.f32 %v4755_v40, %v2473_v24 }
 0x1e2   : > { %v2755_v63 = vadd.f32 %v2754_v31, %v2678_v44  ;;  %v2809_v27 = vmul.f32 %v2678_v44, %v2678_v44  ;;  %v2680_v2 = vadd.f32 %v2679_v37, %v2607_v11  ;;  %v2610_v4 = vpop.f32.mrf.mxu0  ;;  %v2548_v36 = vadd.f32 %v4765_v60, %v2475_v32 }
 0x1e3   : > { %v2683_v30 = vpop.f32.mrf.mxu1  ;;  %v2682_v62 = vadd.f32 %v2681_v53, %v2609_v59  ;;  %v2611_v17 = vadd.f32 %v2610_v4, %v2538_v57  ;;  %v3710_v21 = vmov 1966171168  }
 0x1e4   : > { %v2820_v0 = vadd.f32 %v2819_v49, %v2809_v27  ;;  %v3305_v20 = vpack.c.bf16 %v2680_v2, %v2678_v44  ;;  %v2768_v54 = vadd.f32 %v2767_v51, %v2680_v2  ;;  %v2810_v12 = vmul.f32 %v2680_v2, %v2680_v2  ;;  %v2614_v22 = vpop.f32.mrf.mxu0 }
 0x1e5   : > { %v2687_v3 = vpop.f32.mrf.mxu1  ;;  %v2756_v25 = vadd.f32 %v2755_v63, %v2682_v62  ;;  %v2811_v19 = vmul.f32 %v2682_v62, %v2682_v62  ;;  %v2684_v6 = vadd.f32 %v2683_v30, %v2611_v17  ;;  %v2615_v8 = vadd.f32 %v2614_v22, %v2542_v58 }
 0x1e6   : > { %2748 = vst [vmem:[%s4797_s19 + $0x20] sm:$0xff] %v3305_v20  ;;  %v2833_v26 = vadd.f32 %v2832_v61, %v2810_v12  ;;  %v2616_v50 = vpop.f32.mrf.mxu0  ;;  %v2782_v61 = vunpack.c.l.s4 %v3710_v21  ;;  %v2784_v2 = vlaneseq }
 0x1e7   : > { %v2689_v28 = vpop.f32.mrf.mxu1  ;;  %v2821_v9 = vadd.f32 %v2820_v0, %v2811_v19  ;;  %v3306_v13 = vpack.c.bf16 %v2684_v6, %v2682_v62  ;;  %v2769_v41 = vadd.f32 %v2768_v54, %v2684_v6  ;;  %v2812_v16 = vmul.f32 %v2684_v6, %v2684_v6 }
 0x1e8   : > { %v2688_v31 = vadd.f32 %v2687_v3, %v2615_v8  ;;  %v2617_v35 = vadd.f32 %v2616_v50, %v2544_v10  ;;  %v2618_v33 = vpop.f32.mrf.mxu0  ;;  %v2783_v32 = vunpack.c.0.s8 %v2782_v61  ;;  %v2785_v54 = vshrl.u32 %v2784_v2, 7 }
 0x1e9   : > { %v2691_v34 = vpop.f32.mrf.mxu1  ;;  %2749 = vst [vmem:[%s4797_s19 + $0x28] sm:$0xff] %v3306_v13  ;;  %v2834_v39 = vadd.f32 %v2833_v26, %v2812_v16  ;;  %v2619_v42 = vadd.f32 %v2618_v33, %v2546_v14  ;;  %vm2798_vm0 = vcmp.lt.s32.totalorder %v2784_v2, 256 }
 0x1ea   : > { %v2757_v43 = vadd.f32 %v2756_v25, %v2688_v31  ;;  %v2813_v40 = vmul.f32 %v2688_v31, %v2688_v31  ;;  %v2690_v45 = vadd.f32 %v2689_v28, %v2617_v35  ;;  %v2620_v46 = vpop.f32.mrf.mxu0  ;;  %v2786_v8 = vsub.s32 %v2783_v32, %v2785_v54 }
 0x1eb   : > { %v2692_v23 = vadd.f32 %v2691_v34, %v2619_v42  ;;  %v2621_v48 = vadd.f32 %v2620_v46, %v2548_v36  ;;  %v2693_v47 = vpop.f32.mrf.mxu1 }
 0x1ec   : > { %v2822_v37 = vadd.f32 %v2821_v9, %v2813_v40  ;;  %v3307_v49 = vpack.c.bf16 %v2690_v45, %v2688_v31  ;;  %v2770_v55 = vadd.f32 %v2769_v41, %v2690_v45  ;;  %v2814_v51 = vmul.f32 %v2690_v45, %v2690_v45 }
 0x1ed   : > { %v2758_v15 = vadd.f32 %v2757_v43, %v2692_v23  ;;  %v2815_v1 = vmul.f32 %v2692_v23, %v2692_v23  ;;  %v2694_v52 = vadd.f32 %v2693_v47, %v2621_v48 }
 0x1ee   : > { %2750 = vst [vmem:[%s4797_s19 + $0x30] sm:$0xff] %v3307_v49  ;;  %v2835_v60 = vadd.f32 %v2834_v39, %v2814_v51 }
 0x1ef   : > { %v2759_v5 = vrot.slane %v2758_v15, 4  ;;  %v2823_v44 = vadd.f32 %v2822_v37, %v2815_v1  ;;  %v3308_v11 = vpack.c.bf16 %v2694_v52, %v2692_v23  ;;  %v2771_v18 = vadd.f32 %v2770_v55, %v2694_v52 }
 0x1f0   : > { %v2816_v53 = vmul.f32 %v2694_v52, %v2694_v52 }
 0x1f1   : > { %v2760_v56 = vadd.f32 %v2759_v5, %v2758_v15  ;;  %v2824_v57 = vrot.slane %v2823_v44, 4  ;;  %2751 = vst [vmem:[%s4797_s19 + $0x38] sm:$0xff] %v3308_v11  ;;  %v2772_v29 = vrot.slane %v2771_v18, 4 }
 0x1f2   : > { %v2836_v59 = vadd.f32 %v2835_v60, %v2816_v53 }
 0x1f3   : > { %v2761_v24 = vrot.slane %v2760_v56, 2  ;;  %v2825_v63 = vadd.f32 %v2824_v57, %v2823_v44  ;;  %v2773_v27 = vadd.f32 %v2772_v29, %v2771_v18 }
 0x1f4   : > { %v2837_v4 = vrot.slane %v2836_v59, 4 }
 0x1f5   : > { %v2762_v30 = vadd.f32 %v2761_v24, %v2760_v56  ;;  %v2826_v7 = vrot.slane %v2825_v63, 2  ;;  %v2774_v58 = vrot.slane %v2773_v27, 2 }
 0x1f6   : > { %v2838_v62 = vadd.f32 %v2837_v4, %v2836_v59 }
 0x1f7   : > { %v2763_v17 = vrot.slane %v2762_v30, 1  ;;  %v2827_v0 = vadd.f32 %v2826_v7, %v2825_v63  ;;  %v2775_v20 = vadd.f32 %v2774_v58, %v2773_v27 }
 0x1f8   : > { %v2839_v12 = vrot.slane %v2838_v62, 2 }
 0x1f9   : > { %v2776_v22 = vrot.slane %v2775_v20, 1  ;;  %v2828_v3 = vrot.slane %v2827_v0, 1  ;;  %v2764_v19 = vadd.f32 %v2763_v17, %v2762_v30 }
 0x1fa   : > { %v2840_v25 = vadd.f32 %v2839_v12, %v2838_v62 }
 0x1fb   : > { %v2777_v6 = vadd.f32 %v2776_v22, %v2775_v20  ;;  %v2829_v14 = vadd.f32 %v2828_v3, %v2827_v0 }
 0x1fc   : > { %v2841_v38 = vrot.slane %v2840_v25, 1 }
 0x1fd   : > { %v2780_v10 = vcombine.low %v2764_v19, %v2777_v6 }
 0x1fe   : > { %v2842_v26 = vadd.f32 %v2841_v38, %v2840_v25 }
 0x1ff   : > { %v2787_v50 = vrot.slane %v2780_v10, %v2786_v8 }
 0x200   : > { %v2845_v28 = vcombine.low %v2829_v14, %v2842_v26 }
 0x201   : > { %v2794_v9 = vrot.slane %v2787_v50, %v2786_v8 }
 0x202   : > { %v2852_v13 = vrot.slane %v2845_v28, %v2786_v8 }
 0x203   : > { %2800 = vst.msk [vmem:[%s191_s23] ss:$2 sm:$0x3] %vm2798_vm0, %v2794_v9 }
 0x204   : > { %v2859_v41 = vrot.slane %v2852_v13, %v2786_v8 }
 0x206   : > { %3295 = vst.msk [vmem:[%s191_s23 + $0x1] ss:$2 sm:$0x3] %vm2798_vm0, %v2859_v41 }
 0x207 PF: > { %s14_s12 = sadd.s32 1, %s3708_s12  }
 0x208   : > { %p11_p5 = scmp.ge.s32.totalorder %s14_s12, 4  }
 0x20a   :  { %13 = sbr.rel (!%p11_p5) target bundleno = 1 (0x1), region = 71 }

// kernel: discriminator_forward.15
= control target key start
LH: loop header
LB: loop body
LE: loop exit
PB: predicated region body
PF: predicated region fallthrough
CT: control target
= control target key end

     0   :  { %s418_s15 = smov 0   ;;  %s469_s0 = inlined_call_operand.vmem [shape: bf16[2,16,512], index: 0, kind: input, shape index: {}]   ;;  %s470_s1 = inlined_call_operand.vmem [shape: f32[1,512], index: 1, kind: input, shape index: {}]   ;;  %s471_s2 = inlined_call_operand.vmem [shape: f32[1,512], index: 2, kind: input, shape index: {}]   ;;  %s472_s3 = inlined_call_operand.vmem [shape: f32[16,512], index: 3, kind: input, shape index: {}]   ;;  %s473_s4 = inlined_call_operand.vmem [shape: f32[2,1,1], index: 4, kind: output, shape index: {}]  }
   0x1 LB: > { %s362_s16 = sadd.s32 4294967295, %s391_s15   ;;  %p366_p0 = scmp.ge.s32.totalorder %s391_s15, 1  ;;  %s391_s15 = sphi %s418_s15, %s14_s15  }
   0x2   : > { %p162_p1 = scmp.lt.s32.totalorder %s391_s15, 3 }
   0x4   : > { %p163_p2 = pnand %p366_p0, %p162_p1 }
   0x5   : > { %p186_p3 = scmp.lt.s32.totalorder (!%p163_p2), %s362_s16, 1 }
   0x6   : > { %166 = sbr.rel (%p163_p2) target bundleno = 222 (0xde), region = 36 }
   0xb   : > { %v208_v0 = vlaneseq  ;;  %s475_s16 = smov (!%p186_p3, %s362_s16), 1  ;;  %v206_v2 = vld [vmem:[%s470_s1] sm:$0xf]  ;;  %v275_v37 = vld [vmem:[%s472_s3 + $0x8] sm:$0xff]  ;;  %v276_v38 = vld [vmem:[%s472_s3 + $0x10] sm:$0xff]  ;;  %vm313_vm0 = vcmask 0  }
   0xc   : > { %s372_s19 = sshll.u32 %s475_s16, 5  ;;  %v236_v7 = vld [vmem:[%s471_s2] sm:$0xf]  ;;  %v277_v47 = vld [vmem:[%s472_s3 + $0x18] sm:$0xff]  ;;  %v279_v56 = vld [vmem:[%s472_s3 + $0x28] sm:$0xff] }
   0xd   : > { %v209_v1 = vshrl.u32 %v208_v0, 7  ;;  %s190_s22 = scalar_lea.vmem %s469_s0, %s372_s19  ;;  %v274_v36 = vld [vmem:[%s472_s3] sm:$0xff]  ;;  %v280_v57 = vld [vmem:[%s472_s3 + $0x30] sm:$0xff]  ;;  %v281_v0 = vld [vmem:[%s472_s3 + $0x38] sm:$0xff]  ;;  %s193_s19 = scalar_lea.vmem %s473_s4, %s475_s16 }
   0xe   : > { %v194_v8 = vld [vmem:[%s190_s22] sm:$0xff]  ;;  %v195_v9 = vld [vmem:[%s190_s22 + $0x8] sm:$0xff]  ;;  %v196_v18 = vld [vmem:[%s190_s22 + $0x10] sm:$0xff] }
   0xf   : > { %v210_v3 = vsub.s32 0, %v209_v1  ;;  %v214_v4 = vsub.s32 1, %v209_v1  ;;  %v218_v5 = vsub.s32 2, %v209_v1  ;;  %v222_v6 = vsub.s32 3, %v209_v1  ;;  %v197_v19 = vld [vmem:[%s190_s22 + $0x18] sm:$0xff]  ;;  %v278_v55 = vld [vmem:[%s472_s3 + $0x20] sm:$0xff] }
  0x10   : > { %v198_v14 = vunpack.c.l.bf16 %v194_v8  ;;  %v199_v15 = vunpack.c.h.bf16 %v194_v8  ;;  %v200_v16 = vunpack.c.l.bf16 %v195_v9  ;;  %v201_v17 = vunpack.c.h.bf16 %v195_v9 }
  0x11   : > { %v211_v10 = vrot.slane %v206_v2, %v210_v3  ;;  %v215_v11 = vrot.slane %v206_v2, %v214_v4  ;;  %v219_v12 = vrot.slane %v206_v2, %v218_v5  ;;  %v223_v13 = vrot.slane %v206_v2, %v222_v6 }
  0x12   : > { %v241_v20 = vrot.slane %v236_v7, %v210_v3  ;;  %v245_v21 = vrot.slane %v236_v7, %v214_v4  ;;  %v249_v22 = vrot.slane %v236_v7, %v218_v5  ;;  %v253_v23 = vrot.slane %v236_v7, %v222_v6 }
  0x13   : > { %v228_v24 = vmul.f32 %v211_v10, %v198_v14  ;;  %v229_v25 = vmul.f32 %v215_v11, %v199_v15  ;;  %v230_v26 = vmul.f32 %v219_v12, %v200_v16  ;;  %v231_v27 = vmul.f32 %v223_v13, %v201_v17 }
  0x14   : > { %v202_v28 = vunpack.c.l.bf16 %v196_v18  ;;  %v203_v29 = vunpack.c.h.bf16 %v196_v18  ;;  %v204_v30 = vunpack.c.l.bf16 %v197_v19  ;;  %v205_v31 = vunpack.c.h.bf16 %v197_v19 }
  0x15   : > { %v258_v32 = vadd.f32 %v241_v20, %v228_v24  ;;  %v259_v33 = vadd.f32 %v245_v21, %v229_v25  ;;  %v260_v34 = vadd.f32 %v249_v22, %v230_v26  ;;  %v261_v35 = vadd.f32 %v253_v23, %v231_v27 }
  0x16   : > { %v232_v39 = vmul.f32 %v211_v10, %v202_v28  ;;  %v233_v40 = vmul.f32 %v215_v11, %v203_v29  ;;  %v234_v41 = vmul.f32 %v219_v12, %v204_v30  ;;  %v235_v42 = vmul.f32 %v223_v13, %v205_v31 }
  0x17   : > { %v266_v43 = vmax.f32 %v258_v32, 0.0  ;;  %v267_v44 = vmax.f32 %v259_v33, 0.0  ;;  %v268_v45 = vmax.f32 %v260_v34, 0.0  ;;  %v269_v46 = vmax.f32 %v261_v35, 0.0 }
  0x18   : > { %v262_v48 = vadd.f32 %v241_v20, %v232_v39  ;;  %v263_v49 = vadd.f32 %v245_v21, %v233_v40  ;;  %v264_v50 = vadd.f32 %v249_v22, %v234_v41  ;;  %v265_v51 = vadd.f32 %v253_v23, %v235_v42 }
  0x19   : > { %v282_v52 = vmul.f32 %v274_v36, %v266_v43  ;;  %v283_v53 = vmul.f32 %v275_v37, %v267_v44  ;;  %v284_v54 = vmul.f32 %v276_v38, %v268_v45  ;;  %v285_v62 = vmul.f32 %v277_v47, %v269_v46 }
  0x1a   : > { %v270_v58 = vmax.f32 %v262_v48, 0.0  ;;  %v271_v59 = vmax.f32 %v263_v49, 0.0  ;;  %v272_v60 = vmax.f32 %v264_v50, 0.0  ;;  %v273_v61 = vmax.f32 %v265_v51, 0.0 }
  0x1b   : > { %v290_v63 = vadd.f32 %v283_v53, %v282_v52 }
  0x1c   : > { %v286_v1 = vmul.f32 %v278_v55, %v270_v58  ;;  %v287_v2 = vmul.f32 %v279_v56, %v271_v59  ;;  %v288_v3 = vmul.f32 %v280_v57, %v272_v60  ;;  %v289_v5 = vmul.f32 %v281_v0, %v273_v61 }
  0x1d   : > { %v291_v4 = vadd.f32 %v290_v63, %v284_v54 }
  0x1e   : > { %v295_v6 = vadd.f32 %v287_v2, %v286_v1 }
  0x1f   : > { %v292_v7 = vadd.f32 %v291_v4, %v285_v62 }
  0x20   : > { %v296_v8 = vadd.f32 %v295_v6, %v288_v3 }
  0x21   : > { %293 = vadd.xlane.f32.xlu0 %v292_v7 }
  0x22   : > { %v297_v9 = vadd.f32 %v296_v8, %v289_v5 }
  0x25   : > { %298 = vadd.xlane.f32.xlu0 %v297_v9 }
  0xaa   : > { %v294_v10 = vpop.xlane.xlu0 %293 }
  0xae   : > { %v299_v11 = vpop.xlane.xlu0 %298 }
  0xaf   : > { %v300_v12 = vadd.f32 %v299_v11, %v294_v10 }
  0xb1   : > { %v301_v13 = vrot.slane %v300_v12, 4 }
  0xb3   : > { %v302_v14 = vadd.f32 %v301_v13, %v300_v12 }
  0xb5   : > { %v303_v15 = vrot.slane %v302_v14, 2 }
  0xb7   : > { %v304_v16 = vadd.f32 %v303_v15, %v302_v14 }
  0xb9   : > { %v305_v17 = vrot.slane %v304_v16, 1 }
  0xbb   : > { %v306_v18 = vadd.f32 %v305_v17, %v304_v16 }
  0xbd   : > { %v369_v19 = vmul.f32 -1.442695, %v306_v18 }
  0xbf   : > { %381 = vpow2.f32 %v369_v19 }
  0xcc   : > { %v382_v20 = vpop.eup %381 }
  0xcd   : > { %v310_v21 = vadd.f32 1.0, %v382_v20 }
  0xcf   : > { %383 = vrcp.f32 %v310_v21 }
  0xdc   : > { %v384_v22 = vpop.eup %383 }
  0xdd   : > { %314 = vst.msk [vmem:[%s193_s19] sm:$0x1] %vm313_vm0, %v384_v22 }
  0xde PF: > { %s14_s15 = sadd.s32 1, %s391_s15  }
  0xdf   : > { %p11_p4 = scmp.ge.s32.totalorder %s14_s15, 4  }
  0xe1   :  { %13 = sbr.rel (!%p11_p4) target bundleno = 1 (0x1), region = 66 }

// kernel: discriminator_forward.14
= control target key start
LH: loop header
LB: loop body
LE: loop exit
PB: predicated region body
PF: predicated region fallthrough
CT: control target
= control target key end

     0   :  { %s10809_s12 = smov 0   ;;  %s14340_s0 = inlined_call_operand.vmem [shape: bf16[32,4096], index: 0, kind: input, shape index: {}]   ;;  %s14341_s1 = inlined_call_operand.vmem [shape: bf16[4096,512], index: 1, kind: input, shape index: {}]   ;;  %s14342_s2 = inlined_call_operand.vmem [shape: bf16[32,512], index: 2, kind: output, shape index: {0}]   ;;  %s14343_s3 = inlined_call_operand.vmem [shape: f32[2,2,512], index: 3, kind: output, shape index: {1}]  }
   0x1 LB: > { %s10815_s13 = sadd.s32 4294967295, %s10786_s12   ;;  %p8156_p0 = scmp.ge.s32.totalorder %s10786_s12, 1  ;;  %s10786_s12 = sphi %s10809_s12, %s14_s12  }
   0x2   : > { %p142_p1 = scmp.lt.s32.totalorder %s10786_s12, 3 }
   0x4   : > { %p143_p2 = pnand %p8156_p0, %p142_p1 }
   0x6   : > { %146 = sbr.rel (%p143_p2) target bundleno = 1265 (0x4f1), region = 28 }
   0xb   : > { %v9244_v0 = vld [vmem:[%s14341_s1 + $0xe4] ss:$16 sps:$4 sm:$0xff]   ;;  %v9248_v2 = vld [vmem:[%s14341_s1 + $0xe0] ss:$16 sps:$4 sm:$0xff]   ;;  %s8157_s24 = sshll.u32 %s10815_s13, 1  ;;  %p187_p4 = scmp.lt.s32.totalorder %s10815_s13, 1 }
   0xc   : > { %v9246_v1 = vld [vmem:[%s14341_s1 + $0x2e4] ss:$16 sps:$4 sm:$0xff]   ;;  %6528 = vmatprep.subr.bf16.mxu0 %v9244_v0  ;;  %v9249_v3 = vld [vmem:[%s14341_s1 + $0x2e0] ss:$16 sps:$4 sm:$0xff]   ;;  %p174_p3 = scmp.lt.s32.totalorder %s8157_s24, 3 }
   0xd   : > { %6571 = vmatprep.subr.bf16.mxu1 %v9246_v1  ;;  %v9250_v4 = vld [vmem:[%s14341_s1 + $0xc4] ss:$16 sps:$4 sm:$0xff]   ;;  %6529 = vmatpush1.bf16.msra.mxu0 %v9248_v2  ;;  %v9254_v6 = vld [vmem:[%s14341_s1 + $0xc0] ss:$16 sps:$4 sm:$0xff]   ;;  %s14362_s13 = smov (!%p187_p4, %s10815_s13), 1 }
   0xe   : > { %6572 = vmatpush1.bf16.msra.mxu1 %v9249_v3  ;;  %v9252_v5 = vld [vmem:[%s14341_s1 + $0x2c4] ss:$16 sps:$4 sm:$0xff]   ;;  %6530 = vmatprep.subr.bf16.mxu0 %v9250_v4  ;;  %v9255_v7 = vld [vmem:[%s14341_s1 + $0x2c0] ss:$16 sps:$4 sm:$0xff]   ;;  %s14360_s24 = smov (!%p174_p3, %s8157_s24), 3 }
   0xf   : > { %6573 = vmatprep.subr.bf16.mxu1 %v9252_v5  ;;  %v9256_v8 = vld [vmem:[%s14341_s1 + $0xa4] ss:$16 sps:$4 sm:$0xff]   ;;  %v9260_v10 = vld [vmem:[%s14341_s1 + $0xa0] ss:$16 sps:$4 sm:$0xff]   ;;  %s9228_s22 = sshll.u32 %s14360_s24, 7  ;;  %s9229_s15 = sshll.u32 %s14360_s24, 4 }
  0x10   : > { %v9258_v9 = vld [vmem:[%s14341_s1 + $0x2a4] ss:$16 sps:$4 sm:$0xff]   ;;  %v9261_v11 = vld [vmem:[%s14341_s1 + $0x2a0] ss:$16 sps:$4 sm:$0xff]   ;;  %s10958_s5 = scalar_lea.vmem %s14340_s0, %s9228_s22  ;;  %s13366_s20 = scalar_lea.vmem %s14342_s2, %s9229_s15 }
  0x11   : > { %6531 = vmatpush1.bf16.msra.mxu0 %v9254_v6  ;;  %v9262_v12 = vld [vmem:[%s14341_s1 + $0x84] ss:$16 sps:$4 sm:$0xff]   ;;  %v9266_v14 = vld [vmem:[%s14341_s1 + $0x80] ss:$16 sps:$4 sm:$0xff]   ;;  %v193_v50 = vld [vmem:[%s10958_s5 + $0x8] sm:$0xff] }
  0x12   : > { %6574 = vmatpush1.bf16.msra.mxu1 %v9255_v7  ;;  %6532 = vmatprep.subr.bf16.mxu0 %v9256_v8  ;;  %v9264_v13 = vld [vmem:[%s14341_s1 + $0x284] ss:$16 sps:$4 sm:$0xff]   ;;  %v9267_v15 = vld [vmem:[%s14341_s1 + $0x280] ss:$16 sps:$4 sm:$0xff]   ;;  %v209_v51 = vld [vmem:[%s10958_s5 + $0x88] sm:$0xff] }
  0x13   : > { %6575 = vmatprep.subr.bf16.mxu1 %v9258_v9  ;;  %v9268_v16 = vld [vmem:[%s14341_s1 + $0x64] ss:$16 sps:$4 sm:$0xff]   ;;  %v9272_v18 = vld [vmem:[%s14341_s1 + $0x60] ss:$16 sps:$4 sm:$0xff]   ;;  %v10984_v55 = vcombine.high %v193_v50, %v209_v51  ;;  %v11038_v9 = vcombine.low %v193_v50, %v209_v51 }
  0x14   : > { %v9270_v17 = vld [vmem:[%s14341_s1 + $0x264] ss:$16 sps:$4 sm:$0xff]   ;;  %v9273_v19 = vld [vmem:[%s14341_s1 + $0x260] ss:$16 sps:$4 sm:$0xff]  }
  0x15   : > { %6533 = vmatpush1.bf16.msra.mxu0 %v9260_v10  ;;  %v9274_v20 = vld [vmem:[%s14341_s1 + $0x44] ss:$16 sps:$4 sm:$0xff]   ;;  %v9278_v22 = vld [vmem:[%s14341_s1 + $0x40] ss:$16 sps:$4 sm:$0xff]   ;;  %6603 = vmatprep.mubr.bf16.mxu1 %v10984_v55 }
  0x16   : > { %6576 = vmatpush1.bf16.msra.mxu1 %v9261_v11  ;;  %6534 = vmatprep.subr.bf16.mxu0 %v9262_v12  ;;  %v9276_v21 = vld [vmem:[%s14341_s1 + $0x244] ss:$16 sps:$4 sm:$0xff]   ;;  %v9279_v23 = vld [vmem:[%s14341_s1 + $0x240] ss:$16 sps:$4 sm:$0xff]  }
  0x17   : > { %6577 = vmatprep.subr.bf16.mxu1 %v9264_v13  ;;  %v9280_v24 = vld [vmem:[%s14341_s1 + $0x24] ss:$16 sps:$4 sm:$0xff]   ;;  %v9284_v26 = vld [vmem:[%s14341_s1 + $0x20] ss:$16 sps:$4 sm:$0xff]  }
  0x18   : > { %v9282_v25 = vld [vmem:[%s14341_s1 + $0x224] ss:$16 sps:$4 sm:$0xff]   ;;  %v9285_v27 = vld [vmem:[%s14341_s1 + $0x220] ss:$16 sps:$4 sm:$0xff]  }
  0x19   : > { %6535 = vmatpush1.bf16.msra.mxu0 %v9266_v14  ;;  %v9286_v28 = vld [vmem:[%s14341_s1 + $0x4] ss:$16 sps:$4 sm:$0xff]   ;;  %v9290_v30 = vld [vmem:[%s14341_s1] ss:$16 sps:$4 sm:$0xff]  }
  0x1a   : > { %6578 = vmatpush1.bf16.msra.mxu1 %v9267_v15  ;;  %6536 = vmatprep.subr.bf16.mxu0 %v9268_v16  ;;  %v9288_v29 = vld [vmem:[%s14341_s1 + $0x204] ss:$16 sps:$4 sm:$0xff]   ;;  %v9291_v31 = vld [vmem:[%s14341_s1 + $0x200] ss:$16 sps:$4 sm:$0xff]  }
  0x1b   : > { %6579 = vmatprep.subr.bf16.mxu1 %v9270_v17  ;;  %v9292_v32 = vld [vmem:[%s14341_s1 + $0x1e4] ss:$16 sps:$4 sm:$0xff]   ;;  %v9296_v34 = vld [vmem:[%s14341_s1 + $0x1e0] ss:$16 sps:$4 sm:$0xff]  }
  0x1c   : > { %v9294_v33 = vld [vmem:[%s14341_s1 + $0x3e4] ss:$16 sps:$4 sm:$0xff]   ;;  %v9297_v35 = vld [vmem:[%s14341_s1 + $0x3e0] ss:$16 sps:$4 sm:$0xff]  }
  0x1d   : > { %6537 = vmatpush1.bf16.msra.mxu0 %v9272_v18  ;;  %v9298_v36 = vld [vmem:[%s14341_s1 + $0x1c4] ss:$16 sps:$4 sm:$0xff]   ;;  %v9302_v38 = vld [vmem:[%s14341_s1 + $0x1c0] ss:$16 sps:$4 sm:$0xff]  }
  0x1e   : > { %6580 = vmatpush1.bf16.msra.mxu1 %v9273_v19  ;;  %6538 = vmatprep.subr.bf16.mxu0 %v9274_v20  ;;  %v9300_v37 = vld [vmem:[%s14341_s1 + $0x3c4] ss:$16 sps:$4 sm:$0xff]   ;;  %v9303_v39 = vld [vmem:[%s14341_s1 + $0x3c0] ss:$16 sps:$4 sm:$0xff]  }
  0x1f   : > { %6581 = vmatprep.subr.bf16.mxu1 %v9276_v21  ;;  %v9304_v40 = vld [vmem:[%s14341_s1 + $0x1a4] ss:$16 sps:$4 sm:$0xff]   ;;  %v9308_v42 = vld [vmem:[%s14341_s1 + $0x1a0] ss:$16 sps:$4 sm:$0xff]  }
  0x20   : > { %v9306_v41 = vld [vmem:[%s14341_s1 + $0x3a4] ss:$16 sps:$4 sm:$0xff]   ;;  %v9309_v43 = vld [vmem:[%s14341_s1 + $0x3a0] ss:$16 sps:$4 sm:$0xff]  }
  0x21   : > { %6539 = vmatpush1.bf16.msra.mxu0 %v9278_v22  ;;  %v9310_v44 = vld [vmem:[%s14341_s1 + $0x184] ss:$16 sps:$4 sm:$0xff]   ;;  %v9314_v46 = vld [vmem:[%s14341_s1 + $0x180] ss:$16 sps:$4 sm:$0xff]  }
  0x22   : > { %6582 = vmatpush1.bf16.msra.mxu1 %v9279_v23  ;;  %6540 = vmatprep.subr.bf16.mxu0 %v9280_v24  ;;  %v9312_v45 = vld [vmem:[%s14341_s1 + $0x384] ss:$16 sps:$4 sm:$0xff]   ;;  %v9315_v47 = vld [vmem:[%s14341_s1 + $0x380] ss:$16 sps:$4 sm:$0xff]  }
  0x23   : > { %6583 = vmatprep.subr.bf16.mxu1 %v9282_v25  ;;  %v192_v48 = vld [vmem:[%s10958_s5] sm:$0xff] }
  0x24   : > { %v208_v49 = vld [vmem:[%s10958_s5 + $0x80] sm:$0xff] }
  0x25   : > { %6541 = vmatpush1.bf16.msra.mxu0 %v9284_v26  ;;  %v9316_v52 = vld [vmem:[%s14341_s1 + $0x164] ss:$16 sps:$4 sm:$0xff]   ;;  %v10979_v53 = vcombine.high %v192_v48, %v208_v49  ;;  %v9320_v56 = vld [vmem:[%s14341_s1 + $0x160] ss:$16 sps:$4 sm:$0xff]   ;;  %v11036_v8 = vcombine.low %v192_v48, %v208_v49 }
  0x26   : > { %6584 = vmatpush1.bf16.msra.mxu1 %v9285_v27  ;;  %6542 = vmatprep.subr.bf16.mxu0 %v9286_v28  ;;  %v9318_v54 = vld [vmem:[%s14341_s1 + $0x364] ss:$16 sps:$4 sm:$0xff]   ;;  %v9321_v57 = vld [vmem:[%s14341_s1 + $0x360] ss:$16 sps:$4 sm:$0xff]  }
  0x27   : > { %6585 = vmatprep.subr.bf16.mxu1 %v9288_v29  ;;  %6560 = vmatprep.mubr.bf16.mxu0 %v10979_v53  ;;  %v9322_v58 = vld [vmem:[%s14341_s1 + $0x144] ss:$16 sps:$4 sm:$0xff]   ;;  %v9326_v60 = vld [vmem:[%s14341_s1 + $0x140] ss:$16 sps:$4 sm:$0xff]  }
  0x28   : > { %v9324_v59 = vld [vmem:[%s14341_s1 + $0x344] ss:$16 sps:$4 sm:$0xff]   ;;  %v9327_v61 = vld [vmem:[%s14341_s1 + $0x340] ss:$16 sps:$4 sm:$0xff]  }
  0x29   : > { %6543 = vmatpush1.bf16.msra.mxu0 %v9290_v30  ;;  %v9328_v62 = vld [vmem:[%s14341_s1 + $0x124] ss:$16 sps:$4 sm:$0xff]   ;;  %v9332_v0 = vld [vmem:[%s14341_s1 + $0x120] ss:$16 sps:$4 sm:$0xff]  }
  0x2a   : > { %6586 = vmatpush1.bf16.msra.mxu1 %v9291_v31  ;;  %6544 = vmatprep.subr.bf16.mxu0 %v9292_v32  ;;  %v9330_v63 = vld [vmem:[%s14341_s1 + $0x324] ss:$16 sps:$4 sm:$0xff]   ;;  %v9333_v1 = vld [vmem:[%s14341_s1 + $0x320] ss:$16 sps:$4 sm:$0xff]  }
  0x2b   : > { %6587 = vmatprep.subr.bf16.mxu1 %v9294_v33  ;;  %v9334_v2 = vld [vmem:[%s14341_s1 + $0x104] ss:$16 sps:$4 sm:$0xff]   ;;  %v9338_v4 = vld [vmem:[%s14341_s1 + $0x100] ss:$16 sps:$4 sm:$0xff]  }
  0x2c   : > { %v9336_v3 = vld [vmem:[%s14341_s1 + $0x304] ss:$16 sps:$4 sm:$0xff]   ;;  %v9339_v5 = vld [vmem:[%s14341_s1 + $0x300] ss:$16 sps:$4 sm:$0xff]  }
  0x2d   : > { %6545 = vmatpush2.bf16.msra.mxu0 %v9296_v34  ;;  %v9342_v6 = vld [vmem:[%s14341_s1 + $0x4e4] ss:$16 sps:$4 sm:$0xff]   ;;  %v9340_v10 = vld [vmem:[%s14341_s1 + $0x4e0] ss:$16 sps:$4 sm:$0xff]  }
  0x2e   : > { %6588 = vmatpush2.bf16.msra.mxu1 %v9297_v35  ;;  %6546 = vmatprep.subr.bf16.mxu0 %v9298_v36  ;;  %v9345_v7 = vld [vmem:[%s14341_s1 + $0x6e4] ss:$16 sps:$4 sm:$0xff]   ;;  %v9343_v11 = vld [vmem:[%s14341_s1 + $0x6e0] ss:$16 sps:$4 sm:$0xff]  }
  0x2f   : > { %6589 = vmatprep.subr.bf16.mxu1 %v9300_v37  ;;  %v9348_v12 = vld [vmem:[%s14341_s1 + $0x4c4] ss:$16 sps:$4 sm:$0xff]   ;;  %v9346_v14 = vld [vmem:[%s14341_s1 + $0x4c0] ss:$16 sps:$4 sm:$0xff]  }
  0x30   : > { %v9351_v13 = vld [vmem:[%s14341_s1 + $0x6c4] ss:$16 sps:$4 sm:$0xff]   ;;  %v9349_v15 = vld [vmem:[%s14341_s1 + $0x6c0] ss:$16 sps:$4 sm:$0xff]  }
  0x31   : > { %6547 = vmatpush2.bf16.msra.mxu0 %v9302_v38  ;;  %v9354_v16 = vld [vmem:[%s14341_s1 + $0x4a4] ss:$16 sps:$4 sm:$0xff]   ;;  %v9352_v18 = vld [vmem:[%s14341_s1 + $0x4a0] ss:$16 sps:$4 sm:$0xff]   ;;  %v11127_v38 = vld [vmem:[%s10958_s5 + $0x18] sm:$0xff] }
  0x32   : > { %6590 = vmatpush2.bf16.msra.mxu1 %v9303_v39  ;;  %6548 = vmatprep.subr.bf16.mxu0 %v9304_v40  ;;  %v9357_v17 = vld [vmem:[%s14341_s1 + $0x6a4] ss:$16 sps:$4 sm:$0xff]   ;;  %v9355_v19 = vld [vmem:[%s14341_s1 + $0x6a0] ss:$16 sps:$4 sm:$0xff]   ;;  %v11130_v39 = vld [vmem:[%s10958_s5 + $0x98] sm:$0xff] }
  0x33   : > { %6591 = vmatprep.subr.bf16.mxu1 %v9306_v41  ;;  %v9360_v20 = vld [vmem:[%s14341_s1 + $0x484] ss:$16 sps:$4 sm:$0xff]   ;;  %v9358_v22 = vld [vmem:[%s14341_s1 + $0x480] ss:$16 sps:$4 sm:$0xff]  }
  0x34   : > { %v9363_v21 = vld [vmem:[%s14341_s1 + $0x684] ss:$16 sps:$4 sm:$0xff]   ;;  %v9361_v23 = vld [vmem:[%s14341_s1 + $0x680] ss:$16 sps:$4 sm:$0xff]  }
  0x35   : > { %6549 = vmatpush2.bf16.msra.mxu0 %v9308_v42  ;;  %v9366_v24 = vld [vmem:[%s14341_s1 + $0x464] ss:$16 sps:$4 sm:$0xff]   ;;  %v9364_v26 = vld [vmem:[%s14341_s1 + $0x460] ss:$16 sps:$4 sm:$0xff]  }
  0x36   : > { %6592 = vmatpush2.bf16.msra.mxu1 %v9309_v43  ;;  %6550 = vmatprep.subr.bf16.mxu0 %v9310_v44  ;;  %v9369_v25 = vld [vmem:[%s14341_s1 + $0x664] ss:$16 sps:$4 sm:$0xff]   ;;  %v9367_v27 = vld [vmem:[%s14341_s1 + $0x660] ss:$16 sps:$4 sm:$0xff]   ;;  %v11144_v43 = vcombine.high %v11127_v38, %v11130_v39 }
  0x37   : > { %6593 = vmatprep.subr.bf16.mxu1 %v9312_v45  ;;  %v9372_v28 = vld [vmem:[%s14341_s1 + $0x444] ss:$16 sps:$4 sm:$0xff]   ;;  %v9370_v30 = vld [vmem:[%s14341_s1 + $0x440] ss:$16 sps:$4 sm:$0xff]  }
  0x38   : > { %v9375_v29 = vld [vmem:[%s14341_s1 + $0x644] ss:$16 sps:$4 sm:$0xff]   ;;  %v9373_v31 = vld [vmem:[%s14341_s1 + $0x640] ss:$16 sps:$4 sm:$0xff]  }
  0x39   : > { %6551 = vmatpush2.bf16.msra.mxu0 %v9314_v46  ;;  %v9378_v32 = vld [vmem:[%s14341_s1 + $0x424] ss:$16 sps:$4 sm:$0xff]   ;;  %v9376_v34 = vld [vmem:[%s14341_s1 + $0x420] ss:$16 sps:$4 sm:$0xff]  }
  0x3a   : > { %6594 = vmatpush2.bf16.msra.mxu1 %v9315_v47  ;;  %6552 = vmatprep.subr.bf16.mxu0 %v9316_v52  ;;  %v9381_v33 = vld [vmem:[%s14341_s1 + $0x624] ss:$16 sps:$4 sm:$0xff]   ;;  %v9379_v35 = vld [vmem:[%s14341_s1 + $0x620] ss:$16 sps:$4 sm:$0xff]  }
  0x3b   : > { %6595 = vmatprep.subr.bf16.mxu1 %v9318_v54  ;;  %v11121_v36 = vld [vmem:[%s10958_s5 + $0x10] sm:$0xff] }
  0x3c   : > { %v11124_v37 = vld [vmem:[%s10958_s5 + $0x90] sm:$0xff] }
  0x3d   : > { %6553 = vmatpush2.bf16.msra.mxu0 %v9320_v56  ;;  %v9384_v40 = vld [vmem:[%s14341_s1 + $0x404] ss:$16 sps:$4 sm:$0xff]   ;;  %v11137_v41 = vcombine.high %v11121_v36, %v11124_v37  ;;  %v9382_v44 = vld [vmem:[%s14341_s1 + $0x400] ss:$16 sps:$4 sm:$0xff]  }
  0x3e   : > { %6596 = vmatpush2.bf16.msra.mxu1 %v9321_v57  ;;  %6554 = vmatprep.subr.bf16.mxu0 %v9322_v58  ;;  %v9387_v42 = vld [vmem:[%s14341_s1 + $0x604] ss:$16 sps:$4 sm:$0xff]   ;;  %v9385_v45 = vld [vmem:[%s14341_s1 + $0x600] ss:$16 sps:$4 sm:$0xff]  }
  0x3f   : > { %6597 = vmatprep.subr.bf16.mxu1 %v9324_v59  ;;  %v9390_v46 = vld [vmem:[%s14341_s1 + $0x5e4] ss:$16 sps:$4 sm:$0xff]   ;;  %v9388_v48 = vld [vmem:[%s14341_s1 + $0x5e0] ss:$16 sps:$4 sm:$0xff]  }
  0x40   : > { %v9393_v47 = vld [vmem:[%s14341_s1 + $0x7e4] ss:$16 sps:$4 sm:$0xff]   ;;  %v9391_v49 = vld [vmem:[%s14341_s1 + $0x7e0] ss:$16 sps:$4 sm:$0xff]  }
  0x41   : > { %6555 = vmatpush2.bf16.msra.mxu0 %v9326_v60  ;;  %v9396_v50 = vld [vmem:[%s14341_s1 + $0x5c4] ss:$16 sps:$4 sm:$0xff]   ;;  %v9394_v52 = vld [vmem:[%s14341_s1 + $0x5c0] ss:$16 sps:$4 sm:$0xff]  }
  0x42   : > { %6598 = vmatpush2.bf16.msra.mxu1 %v9327_v61  ;;  %6556 = vmatprep.subr.bf16.mxu0 %v9328_v62  ;;  %v9399_v51 = vld [vmem:[%s14341_s1 + $0x7c4] ss:$16 sps:$4 sm:$0xff]   ;;  %v9397_v54 = vld [vmem:[%s14341_s1 + $0x7c0] ss:$16 sps:$4 sm:$0xff]  }
  0x43   : > { %6599 = vmatprep.subr.bf16.mxu1 %v9330_v63  ;;  %v9402_v56 = vld [vmem:[%s14341_s1 + $0x5a4] ss:$16 sps:$4 sm:$0xff]   ;;  %v9400_v58 = vld [vmem:[%s14341_s1 + $0x5a0] ss:$16 sps:$4 sm:$0xff]  }
  0x44   : > { %v9405_v57 = vld [vmem:[%s14341_s1 + $0x7a4] ss:$16 sps:$4 sm:$0xff]   ;;  %v9403_v59 = vld [vmem:[%s14341_s1 + $0x7a0] ss:$16 sps:$4 sm:$0xff]  }
  0x45   : > { %6557 = vmatpush2.bf16.msra.mxu0 %v9332_v0  ;;  %v9408_v60 = vld [vmem:[%s14341_s1 + $0x584] ss:$16 sps:$4 sm:$0xff]   ;;  %v9406_v62 = vld [vmem:[%s14341_s1 + $0x580] ss:$16 sps:$4 sm:$0xff]  }
  0x46   : > { %6600 = vmatpush2.bf16.msra.mxu1 %v9333_v1  ;;  %6558 = vmatprep.subr.bf16.mxu0 %v9334_v2  ;;  %v9411_v61 = vld [vmem:[%s14341_s1 + $0x784] ss:$16 sps:$4 sm:$0xff]   ;;  %v9409_v63 = vld [vmem:[%s14341_s1 + $0x780] ss:$16 sps:$4 sm:$0xff]  }
  0x47   : > { %6601 = vmatprep.subr.bf16.mxu1 %v9336_v3  ;;  %v9414_v0 = vld [vmem:[%s14341_s1 + $0x564] ss:$16 sps:$4 sm:$0xff]   ;;  %v9412_v2 = vld [vmem:[%s14341_s1 + $0x560] ss:$16 sps:$4 sm:$0xff]  }
  0x48   : > { %v9417_v1 = vld [vmem:[%s14341_s1 + $0x764] ss:$16 sps:$4 sm:$0xff]   ;;  %v9415_v3 = vld [vmem:[%s14341_s1 + $0x760] ss:$16 sps:$4 sm:$0xff]  }
  0x49   : > { %6559 = vmatpush2.bf16.msra.mxu0 %v9338_v4  ;;  %v9420_v4 = vld [vmem:[%s14341_s1 + $0x544] ss:$16 sps:$4 sm:$0xff]  }
  0x4a   : > { %6602 = vmatpush2.bf16.msra.mxu1 %v9339_v5  ;;  %6614 = vmatprep.subr.bf16.mxu0 %v9342_v6  ;;  %v9423_v5 = vld [vmem:[%s14341_s1 + $0x744] ss:$16 sps:$4 sm:$0xff]   ;;  %v9418_v6 = vld [vmem:[%s14341_s1 + $0x540] ss:$16 sps:$4 sm:$0xff]  }
  0x4b   : > { %6657 = vmatprep.subr.bf16.mxu1 %v9345_v7  ;;  %v9421_v7 = vld [vmem:[%s14341_s1 + $0x740] ss:$16 sps:$4 sm:$0xff]  }
  0x4c   : > { %6561 = vmatmul.mubr.bf16.vlgmr.msra.gmra.mxu0 %v11036_v8 }
  0x4d   : > { %6604 = vmatmul.mubr.bf16.vlgmr.msra.gmra.mxu1 %v11038_v9  ;;  %6615 = vmatpush1.bf16.msra.mxu0 %v9340_v10  ;;  %v9426_v10 = vld [vmem:[%s14341_s1 + $0x524] ss:$16 sps:$4 sm:$0xff]  }
  0x4e   : > { %6658 = vmatpush1.bf16.msra.mxu1 %v9343_v11  ;;  %6616 = vmatprep.subr.bf16.mxu0 %v9348_v12  ;;  %v9429_v11 = vld [vmem:[%s14341_s1 + $0x724] ss:$16 sps:$4 sm:$0xff]   ;;  %v9424_v12 = vld [vmem:[%s14341_s1 + $0x520] ss:$16 sps:$4 sm:$0xff]  }
  0x4f   : > { %6659 = vmatprep.subr.bf16.mxu1 %v9351_v13  ;;  %6646 = vmatprep.mubr.bf16.mxu0 %v11137_v41  ;;  %v9427_v13 = vld [vmem:[%s14341_s1 + $0x720] ss:$16 sps:$4 sm:$0xff]  }
  0x50   : > { %6689 = vmatprep.mubr.bf16.mxu1 %v11144_v43 }
  0x51   : > { %6617 = vmatpush1.bf16.msra.mxu0 %v9346_v14  ;;  %v9432_v14 = vld [vmem:[%s14341_s1 + $0x504] ss:$16 sps:$4 sm:$0xff]  }
  0x52   : > { %6660 = vmatpush1.bf16.msra.mxu1 %v9349_v15  ;;  %6618 = vmatprep.subr.bf16.mxu0 %v9354_v16  ;;  %v9435_v15 = vld [vmem:[%s14341_s1 + $0x704] ss:$16 sps:$4 sm:$0xff]   ;;  %v9430_v16 = vld [vmem:[%s14341_s1 + $0x500] ss:$16 sps:$4 sm:$0xff]  }
  0x53   : > { %6661 = vmatprep.subr.bf16.mxu1 %v9357_v17  ;;  %v9433_v17 = vld [vmem:[%s14341_s1 + $0x700] ss:$16 sps:$4 sm:$0xff]  }
  0x55   : > { %6619 = vmatpush1.bf16.msra.mxu0 %v9352_v18  ;;  %v9438_v18 = vld [vmem:[%s14341_s1 + $0x8e4] ss:$16 sps:$4 sm:$0xff]  }
  0x56   : > { %6662 = vmatpush1.bf16.msra.mxu1 %v9355_v19  ;;  %6620 = vmatprep.subr.bf16.mxu0 %v9360_v20  ;;  %v9441_v19 = vld [vmem:[%s14341_s1 + $0xae4] ss:$16 sps:$4 sm:$0xff]   ;;  %v11258_v20 = vcombine.low %v11121_v36, %v11124_v37  ;;  %v9448_v36 = vld [vmem:[%s14341_s1 + $0x8a0] ss:$16 sps:$4 sm:$0xff]  }
  0x57   : > { %6663 = vmatprep.subr.bf16.mxu1 %v9363_v21  ;;  %v11262_v21 = vcombine.low %v11127_v38, %v11130_v39  ;;  %v9451_v37 = vld [vmem:[%s14341_s1 + $0xaa0] ss:$16 sps:$4 sm:$0xff]   ;;  %v9456_v38 = vld [vmem:[%s14341_s1 + $0x884] ss:$16 sps:$4 sm:$0xff]  }
  0x58   : > { %v9459_v39 = vld [vmem:[%s14341_s1 + $0xa84] ss:$16 sps:$4 sm:$0xff]  }
  0x59   : > { %6621 = vmatpush1.bf16.msra.mxu0 %v9358_v22  ;;  %v9436_v22 = vld [vmem:[%s14341_s1 + $0x8e0] ss:$16 sps:$4 sm:$0xff]  }
  0x5a   : > { %6664 = vmatpush1.bf16.msra.mxu1 %v9361_v23  ;;  %6622 = vmatprep.subr.bf16.mxu0 %v9366_v24  ;;  %v9439_v23 = vld [vmem:[%s14341_s1 + $0xae0] ss:$16 sps:$4 sm:$0xff]   ;;  %v9444_v24 = vld [vmem:[%s14341_s1 + $0x8c4] ss:$16 sps:$4 sm:$0xff]  }
  0x5b   : > { %6665 = vmatprep.subr.bf16.mxu1 %v9369_v25  ;;  %v9447_v25 = vld [vmem:[%s14341_s1 + $0xac4] ss:$16 sps:$4 sm:$0xff]  }
  0x5d   : > { %6623 = vmatpush1.bf16.msra.mxu0 %v9364_v26  ;;  %v9442_v26 = vld [vmem:[%s14341_s1 + $0x8c0] ss:$16 sps:$4 sm:$0xff]  }
  0x5e   : > { %6666 = vmatpush1.bf16.msra.mxu1 %v9367_v27  ;;  %6624 = vmatprep.subr.bf16.mxu0 %v9372_v28  ;;  %v9445_v27 = vld [vmem:[%s14341_s1 + $0xac0] ss:$16 sps:$4 sm:$0xff]  }
  0x5f   : > { %6667 = vmatprep.subr.bf16.mxu1 %v9375_v29  ;;  %v11283_v28 = vld [vmem:[%s10958_s5 + $0x20] sm:$0xff] }
  0x60   : > { %v11288_v29 = vld [vmem:[%s10958_s5 + $0xa0] sm:$0xff] }
  0x61   : > { %6625 = vmatpush1.bf16.msra.mxu0 %v9370_v30  ;;  %v11291_v30 = vld [vmem:[%s10958_s5 + $0x28] sm:$0xff] }
  0x62   : > { %6668 = vmatpush1.bf16.msra.mxu1 %v9373_v31  ;;  %6626 = vmatprep.subr.bf16.mxu0 %v9378_v32  ;;  %v11294_v31 = vld [vmem:[%s10958_s5 + $0xa8] sm:$0xff]  ;;  %v9450_v32 = vld [vmem:[%s14341_s1 + $0x8a4] ss:$16 sps:$4 sm:$0xff]  }
  0x63   : > { %6669 = vmatprep.subr.bf16.mxu1 %v9381_v33  ;;  %v11301_v33 = vcombine.high %v11283_v28, %v11288_v29 }
  0x65   : > { %6627 = vmatpush1.bf16.msra.mxu0 %v9376_v34  ;;  %v9453_v34 = vld [vmem:[%s14341_s1 + $0xaa4] ss:$16 sps:$4 sm:$0xff]  }
  0x66   : > { %6670 = vmatpush1.bf16.msra.mxu1 %v9379_v35  ;;  %6628 = vmatprep.subr.bf16.mxu0 %v9384_v40  ;;  %v11308_v35 = vcombine.high %v11291_v30, %v11294_v31  ;;  %v9454_v40 = vld [vmem:[%s14341_s1 + $0x880] ss:$16 sps:$4 sm:$0xff]  }
  0x67   : > { %6671 = vmatprep.subr.bf16.mxu1 %v9387_v42  ;;  %v9457_v42 = vld [vmem:[%s14341_s1 + $0xa80] ss:$16 sps:$4 sm:$0xff]  }
  0x69   : > { %6629 = vmatpush1.bf16.msra.mxu0 %v9382_v44  ;;  %v9462_v44 = vld [vmem:[%s14341_s1 + $0x864] ss:$16 sps:$4 sm:$0xff]  }
  0x6a   : > { %6672 = vmatpush1.bf16.msra.mxu1 %v9385_v45  ;;  %6630 = vmatprep.subr.bf16.mxu0 %v9390_v46  ;;  %v9465_v45 = vld [vmem:[%s14341_s1 + $0xa64] ss:$16 sps:$4 sm:$0xff]   ;;  %v9460_v46 = vld [vmem:[%s14341_s1 + $0x860] ss:$16 sps:$4 sm:$0xff]  }
  0x6b   : > { %6673 = vmatprep.subr.bf16.mxu1 %v9393_v47  ;;  %v9463_v47 = vld [vmem:[%s14341_s1 + $0xa60] ss:$16 sps:$4 sm:$0xff]  }
  0x6d   : > { %6631 = vmatpush2.bf16.msra.mxu0 %v9388_v48  ;;  %v9468_v48 = vld [vmem:[%s14341_s1 + $0x844] ss:$16 sps:$4 sm:$0xff]  }
  0x6e   : > { %6674 = vmatpush2.bf16.msra.mxu1 %v9391_v49  ;;  %6632 = vmatprep.subr.bf16.mxu0 %v9396_v50  ;;  %v9471_v49 = vld [vmem:[%s14341_s1 + $0xa44] ss:$16 sps:$4 sm:$0xff]   ;;  %v9466_v50 = vld [vmem:[%s14341_s1 + $0x840] ss:$16 sps:$4 sm:$0xff]  }
  0x6f   : > { %6675 = vmatprep.subr.bf16.mxu1 %v9399_v51  ;;  %v9469_v51 = vld [vmem:[%s14341_s1 + $0xa40] ss:$16 sps:$4 sm:$0xff]  }
  0x71   : > { %6633 = vmatpush2.bf16.msra.mxu0 %v9394_v52  ;;  %v9474_v52 = vld [vmem:[%s14341_s1 + $0x824] ss:$16 sps:$4 sm:$0xff]  }
  0x72   : > { %6676 = vmatpush2.bf16.msra.mxu1 %v9397_v54  ;;  %6634 = vmatprep.subr.bf16.mxu0 %v9402_v56  ;;  %v9477_v54 = vld [vmem:[%s14341_s1 + $0xa24] ss:$16 sps:$4 sm:$0xff]   ;;  %v9472_v56 = vld [vmem:[%s14341_s1 + $0x820] ss:$16 sps:$4 sm:$0xff]  }
  0x73   : > { %6677 = vmatprep.subr.bf16.mxu1 %v9405_v57  ;;  %v9475_v57 = vld [vmem:[%s14341_s1 + $0xa20] ss:$16 sps:$4 sm:$0xff]  }
  0x75   : > { %6635 = vmatpush2.bf16.msra.mxu0 %v9400_v58  ;;  %v9480_v58 = vld [vmem:[%s14341_s1 + $0x804] ss:$16 sps:$4 sm:$0xff]  }
  0x76   : > { %6678 = vmatpush2.bf16.msra.mxu1 %v9403_v59  ;;  %6636 = vmatprep.subr.bf16.mxu0 %v9408_v60  ;;  %v9483_v59 = vld [vmem:[%s14341_s1 + $0xa04] ss:$16 sps:$4 sm:$0xff]   ;;  %v9478_v60 = vld [vmem:[%s14341_s1 + $0x800] ss:$16 sps:$4 sm:$0xff]  }
  0x77   : > { %6679 = vmatprep.subr.bf16.mxu1 %v9411_v61  ;;  %v9481_v61 = vld [vmem:[%s14341_s1 + $0xa00] ss:$16 sps:$4 sm:$0xff]  }
  0x79   : > { %6637 = vmatpush2.bf16.msra.mxu0 %v9406_v62  ;;  %v9486_v62 = vld [vmem:[%s14341_s1 + $0x9e4] ss:$16 sps:$4 sm:$0xff]  }
  0x7a   : > { %6680 = vmatpush2.bf16.msra.mxu1 %v9409_v63  ;;  %6638 = vmatprep.subr.bf16.mxu0 %v9414_v0  ;;  %v9489_v63 = vld [vmem:[%s14341_s1 + $0xbe4] ss:$16 sps:$4 sm:$0xff]   ;;  %v9484_v0 = vld [vmem:[%s14341_s1 + $0x9e0] ss:$16 sps:$4 sm:$0xff]  }
  0x7b   : > { %6681 = vmatprep.subr.bf16.mxu1 %v9417_v1  ;;  %v9487_v1 = vld [vmem:[%s14341_s1 + $0xbe0] ss:$16 sps:$4 sm:$0xff]  }
  0x7d   : > { %6639 = vmatpush2.bf16.msra.mxu0 %v9412_v2  ;;  %v9492_v2 = vld [vmem:[%s14341_s1 + $0x9c4] ss:$16 sps:$4 sm:$0xff]  }
  0x7e   : > { %6682 = vmatpush2.bf16.msra.mxu1 %v9415_v3  ;;  %6640 = vmatprep.subr.bf16.mxu0 %v9420_v4  ;;  %v9495_v3 = vld [vmem:[%s14341_s1 + $0xbc4] ss:$16 sps:$4 sm:$0xff]   ;;  %v9490_v4 = vld [vmem:[%s14341_s1 + $0x9c0] ss:$16 sps:$4 sm:$0xff]  }
  0x7f   : > { %6683 = vmatprep.subr.bf16.mxu1 %v9423_v5  ;;  %v9493_v5 = vld [vmem:[%s14341_s1 + $0xbc0] ss:$16 sps:$4 sm:$0xff]  }
  0x81   : > { %6641 = vmatpush2.bf16.msra.mxu0 %v9418_v6  ;;  %v9498_v6 = vld [vmem:[%s14341_s1 + $0x9a4] ss:$16 sps:$4 sm:$0xff]  }
  0x82   : > { %6684 = vmatpush2.bf16.msra.mxu1 %v9421_v7  ;;  %6642 = vmatprep.subr.bf16.mxu0 %v9426_v10  ;;  %v9501_v7 = vld [vmem:[%s14341_s1 + $0xba4] ss:$16 sps:$4 sm:$0xff]   ;;  %v9496_v10 = vld [vmem:[%s14341_s1 + $0x9a0] ss:$16 sps:$4 sm:$0xff]  }
  0x83   : > { %6685 = vmatprep.subr.bf16.mxu1 %v9429_v11  ;;  %v9499_v11 = vld [vmem:[%s14341_s1 + $0xba0] ss:$16 sps:$4 sm:$0xff]  }
  0x85   : > { %6643 = vmatpush2.bf16.msra.mxu0 %v9424_v12  ;;  %v9504_v12 = vld [vmem:[%s14341_s1 + $0x984] ss:$16 sps:$4 sm:$0xff]  }
  0x86   : > { %6686 = vmatpush2.bf16.msra.mxu1 %v9427_v13  ;;  %6644 = vmatprep.subr.bf16.mxu0 %v9432_v14  ;;  %v9507_v13 = vld [vmem:[%s14341_s1 + $0xb84] ss:$16 sps:$4 sm:$0xff]   ;;  %v9502_v14 = vld [vmem:[%s14341_s1 + $0x980] ss:$16 sps:$4 sm:$0xff]  }
  0x87   : > { %6687 = vmatprep.subr.bf16.mxu1 %v9435_v15  ;;  %v9505_v15 = vld [vmem:[%s14341_s1 + $0xb80] ss:$16 sps:$4 sm:$0xff]  }
  0x89   : > { %6645 = vmatpush2.bf16.msra.mxu0 %v9430_v16  ;;  %v9510_v16 = vld [vmem:[%s14341_s1 + $0x964] ss:$16 sps:$4 sm:$0xff]  }
  0x8a   : > { %6688 = vmatpush2.bf16.msra.mxu1 %v9433_v17  ;;  %6700 = vmatprep.subr.bf16.mxu0 %v9438_v18  ;;  %v9513_v17 = vld [vmem:[%s14341_s1 + $0xb64] ss:$16 sps:$4 sm:$0xff]   ;;  %v9508_v18 = vld [vmem:[%s14341_s1 + $0x960] ss:$16 sps:$4 sm:$0xff]  }
  0x8b   : > { %6743 = vmatprep.subr.bf16.mxu1 %v9441_v19  ;;  %v9511_v19 = vld [vmem:[%s14341_s1 + $0xb60] ss:$16 sps:$4 sm:$0xff]  }
  0x8c   : > { %6647 = vmatmul.mubr.bf16.vlgmr.msra.gmra.mxu0 %v11258_v20 }
  0x8d   : > { %6690 = vmatmul.mubr.bf16.vlgmr.msra.gmra.mxu1 %v11262_v21  ;;  %6701 = vmatpush1.bf16.msra.mxu0 %v9436_v22  ;;  %v9516_v22 = vld [vmem:[%s14341_s1 + $0x944] ss:$16 sps:$4 sm:$0xff]  }
  0x8e   : > { %6744 = vmatpush1.bf16.msra.mxu1 %v9439_v23  ;;  %6702 = vmatprep.subr.bf16.mxu0 %v9444_v24  ;;  %v9519_v23 = vld [vmem:[%s14341_s1 + $0xb44] ss:$16 sps:$4 sm:$0xff]   ;;  %v9514_v24 = vld [vmem:[%s14341_s1 + $0x940] ss:$16 sps:$4 sm:$0xff]  }
  0x8f   : > { %6745 = vmatprep.subr.bf16.mxu1 %v9447_v25  ;;  %6732 = vmatprep.mubr.bf16.mxu0 %v11301_v33  ;;  %v9517_v25 = vld [vmem:[%s14341_s1 + $0xb40] ss:$16 sps:$4 sm:$0xff]  }
  0x90   : > { %6775 = vmatprep.mubr.bf16.mxu1 %v11308_v35 }
  0x91   : > { %6703 = vmatpush1.bf16.msra.mxu0 %v9442_v26  ;;  %v9522_v26 = vld [vmem:[%s14341_s1 + $0x924] ss:$16 sps:$4 sm:$0xff]  }
  0x92   : > { %6746 = vmatpush1.bf16.msra.mxu1 %v9445_v27  ;;  %6704 = vmatprep.subr.bf16.mxu0 %v9450_v32  ;;  %v9525_v27 = vld [vmem:[%s14341_s1 + $0xb24] ss:$16 sps:$4 sm:$0xff]   ;;  %v9520_v32 = vld [vmem:[%s14341_s1 + $0x920] ss:$16 sps:$4 sm:$0xff]  }
  0x93   : > { %6747 = vmatprep.subr.bf16.mxu1 %v9453_v34  ;;  %v9523_v34 = vld [vmem:[%s14341_s1 + $0xb20] ss:$16 sps:$4 sm:$0xff]  }
  0x95   : > { %6705 = vmatpush1.bf16.msra.mxu0 %v9448_v36  ;;  %v9528_v36 = vld [vmem:[%s14341_s1 + $0x904] ss:$16 sps:$4 sm:$0xff]  }
  0x96   : > { %6748 = vmatpush1.bf16.msra.mxu1 %v9451_v37  ;;  %6706 = vmatprep.subr.bf16.mxu0 %v9456_v38  ;;  %v9531_v37 = vld [vmem:[%s14341_s1 + $0xb04] ss:$16 sps:$4 sm:$0xff]   ;;  %v9526_v38 = vld [vmem:[%s14341_s1 + $0x900] ss:$16 sps:$4 sm:$0xff]  }
  0x97   : > { %6749 = vmatprep.subr.bf16.mxu1 %v9459_v39  ;;  %v9529_v39 = vld [vmem:[%s14341_s1 + $0xb00] ss:$16 sps:$4 sm:$0xff]  }
  0x99   : > { %6707 = vmatpush1.bf16.msra.mxu0 %v9454_v40  ;;  %v9534_v40 = vld [vmem:[%s14341_s1 + $0xce4] ss:$16 sps:$4 sm:$0xff]  }
  0x9a   : > { %6750 = vmatpush1.bf16.msra.mxu1 %v9457_v42  ;;  %6708 = vmatprep.subr.bf16.mxu0 %v9462_v44  ;;  %v9537_v42 = vld [vmem:[%s14341_s1 + $0xee4] ss:$16 sps:$4 sm:$0xff]   ;;  %v9532_v44 = vld [vmem:[%s14341_s1 + $0xce0] ss:$16 sps:$4 sm:$0xff]  }
  0x9b   : > { %6751 = vmatprep.subr.bf16.mxu1 %v9465_v45  ;;  %v9535_v45 = vld [vmem:[%s14341_s1 + $0xee0] ss:$16 sps:$4 sm:$0xff]  }
  0x9d   : > { %6709 = vmatpush1.bf16.msra.mxu0 %v9460_v46  ;;  %v11487_v46 = vld [vmem:[%s10958_s5 + $0x30] sm:$0xff] }
  0x9e   : > { %6752 = vmatpush1.bf16.msra.mxu1 %v9463_v47  ;;  %6710 = vmatprep.subr.bf16.mxu0 %v9468_v48  ;;  %v11490_v47 = vld [vmem:[%s10958_s5 + $0xb0] sm:$0xff]  ;;  %v11494_v48 = vcombine.low %v11283_v28, %v11288_v29 }
  0x9f   : > { %6753 = vmatprep.subr.bf16.mxu1 %v9471_v49  ;;  %v11498_v49 = vcombine.low %v11291_v30, %v11294_v31  ;;  %v9543_v28 = vld [vmem:[%s14341_s1 + $0xec4] ss:$16 sps:$4 sm:$0xff]   ;;  %v11514_v29 = vcombine.high %v11487_v46, %v11490_v47  ;;  %v9538_v31 = vld [vmem:[%s14341_s1 + $0xcc0] ss:$16 sps:$4 sm:$0xff]  }
  0xa1   : > { %6711 = vmatpush1.bf16.msra.mxu0 %v9466_v50  ;;  %v11501_v50 = vld [vmem:[%s10958_s5 + $0x38] sm:$0xff] }
  0xa2   : > { %6754 = vmatpush1.bf16.msra.mxu1 %v9469_v51  ;;  %6712 = vmatprep.subr.bf16.mxu0 %v9474_v52  ;;  %v11504_v51 = vld [vmem:[%s10958_s5 + $0xb8] sm:$0xff]  ;;  %v9540_v52 = vld [vmem:[%s14341_s1 + $0xcc4] ss:$16 sps:$4 sm:$0xff]  }
  0xa3   : > { %6755 = vmatprep.subr.bf16.mxu1 %v9477_v54  ;;  %v11518_v30 = vcombine.high %v11501_v50, %v11504_v51  ;;  %v9541_v54 = vld [vmem:[%s14341_s1 + $0xec0] ss:$16 sps:$4 sm:$0xff]  }
  0xa5   : > { %6713 = vmatpush1.bf16.msra.mxu0 %v9472_v56  ;;  %v9546_v56 = vld [vmem:[%s14341_s1 + $0xca4] ss:$16 sps:$4 sm:$0xff]  }
  0xa6   : > { %6756 = vmatpush1.bf16.msra.mxu1 %v9475_v57  ;;  %6714 = vmatprep.subr.bf16.mxu0 %v9480_v58  ;;  %v9549_v57 = vld [vmem:[%s14341_s1 + $0xea4] ss:$16 sps:$4 sm:$0xff]   ;;  %v9544_v58 = vld [vmem:[%s14341_s1 + $0xca0] ss:$16 sps:$4 sm:$0xff]  }
  0xa7   : > { %6757 = vmatprep.subr.bf16.mxu1 %v9483_v59  ;;  %v9547_v59 = vld [vmem:[%s14341_s1 + $0xea0] ss:$16 sps:$4 sm:$0xff]  }
  0xa9   : > { %6715 = vmatpush1.bf16.msra.mxu0 %v9478_v60  ;;  %v9552_v60 = vld [vmem:[%s14341_s1 + $0xc84] ss:$16 sps:$4 sm:$0xff]  }
  0xaa   : > { %6758 = vmatpush1.bf16.msra.mxu1 %v9481_v61  ;;  %6716 = vmatprep.subr.bf16.mxu0 %v9486_v62  ;;  %v9555_v61 = vld [vmem:[%s14341_s1 + $0xe84] ss:$16 sps:$4 sm:$0xff]   ;;  %v9550_v62 = vld [vmem:[%s14341_s1 + $0xc80] ss:$16 sps:$4 sm:$0xff]  }
  0xab   : > { %6759 = vmatprep.subr.bf16.mxu1 %v9489_v63  ;;  %v9553_v63 = vld [vmem:[%s14341_s1 + $0xe80] ss:$16 sps:$4 sm:$0xff]  }
  0xad   : > { %6717 = vmatpush2.bf16.msra.mxu0 %v9484_v0  ;;  %v9558_v0 = vld [vmem:[%s14341_s1 + $0xc64] ss:$16 sps:$4 sm:$0xff]  }
  0xae   : > { %6760 = vmatpush2.bf16.msra.mxu1 %v9487_v1  ;;  %6718 = vmatprep.subr.bf16.mxu0 %v9492_v2  ;;  %v9561_v1 = vld [vmem:[%s14341_s1 + $0xe64] ss:$16 sps:$4 sm:$0xff]   ;;  %v9556_v2 = vld [vmem:[%s14341_s1 + $0xc60] ss:$16 sps:$4 sm:$0xff]  }
  0xaf   : > { %6761 = vmatprep.subr.bf16.mxu1 %v9495_v3  ;;  %v9559_v3 = vld [vmem:[%s14341_s1 + $0xe60] ss:$16 sps:$4 sm:$0xff]  }
  0xb1   : > { %6719 = vmatpush2.bf16.msra.mxu0 %v9490_v4  ;;  %v9564_v4 = vld [vmem:[%s14341_s1 + $0xc44] ss:$16 sps:$4 sm:$0xff]  }
  0xb2   : > { %6762 = vmatpush2.bf16.msra.mxu1 %v9493_v5  ;;  %6720 = vmatprep.subr.bf16.mxu0 %v9498_v6  ;;  %v9567_v5 = vld [vmem:[%s14341_s1 + $0xe44] ss:$16 sps:$4 sm:$0xff]   ;;  %v9562_v6 = vld [vmem:[%s14341_s1 + $0xc40] ss:$16 sps:$4 sm:$0xff]  }
  0xb3   : > { %6763 = vmatprep.subr.bf16.mxu1 %v9501_v7  ;;  %v9565_v7 = vld [vmem:[%s14341_s1 + $0xe40] ss:$16 sps:$4 sm:$0xff]  }
  0xb5   : > { %6721 = vmatpush2.bf16.msra.mxu0 %v9496_v10  ;;  %v9570_v10 = vld [vmem:[%s14341_s1 + $0xc24] ss:$16 sps:$4 sm:$0xff]  }
  0xb6   : > { %6764 = vmatpush2.bf16.msra.mxu1 %v9499_v11  ;;  %6722 = vmatprep.subr.bf16.mxu0 %v9504_v12  ;;  %v9573_v11 = vld [vmem:[%s14341_s1 + $0xe24] ss:$16 sps:$4 sm:$0xff]   ;;  %v9568_v12 = vld [vmem:[%s14341_s1 + $0xc20] ss:$16 sps:$4 sm:$0xff]  }
  0xb7   : > { %6765 = vmatprep.subr.bf16.mxu1 %v9507_v13  ;;  %v9571_v13 = vld [vmem:[%s14341_s1 + $0xe20] ss:$16 sps:$4 sm:$0xff]  }
  0xb9   : > { %6723 = vmatpush2.bf16.msra.mxu0 %v9502_v14  ;;  %v9576_v14 = vld [vmem:[%s14341_s1 + $0xc04] ss:$16 sps:$4 sm:$0xff]  }
  0xba   : > { %6766 = vmatpush2.bf16.msra.mxu1 %v9505_v15  ;;  %6724 = vmatprep.subr.bf16.mxu0 %v9510_v16  ;;  %v9579_v15 = vld [vmem:[%s14341_s1 + $0xe04] ss:$16 sps:$4 sm:$0xff]   ;;  %v9574_v16 = vld [vmem:[%s14341_s1 + $0xc00] ss:$16 sps:$4 sm:$0xff]  }
  0xbb   : > { %6767 = vmatprep.subr.bf16.mxu1 %v9513_v17  ;;  %v9577_v17 = vld [vmem:[%s14341_s1 + $0xe00] ss:$16 sps:$4 sm:$0xff]  }
  0xbd   : > { %6725 = vmatpush2.bf16.msra.mxu0 %v9508_v18  ;;  %v9582_v18 = vld [vmem:[%s14341_s1 + $0xde4] ss:$16 sps:$4 sm:$0xff]  }
  0xbe   : > { %6768 = vmatpush2.bf16.msra.mxu1 %v9511_v19  ;;  %6726 = vmatprep.subr.bf16.mxu0 %v9516_v22  ;;  %v9585_v19 = vld [vmem:[%s14341_s1 + $0xfe4] ss:$16 sps:$4 sm:$0xff]   ;;  %v9580_v22 = vld [vmem:[%s14341_s1 + $0xde0] ss:$16 sps:$4 sm:$0xff]  }
  0xbf   : > { %6769 = vmatprep.subr.bf16.mxu1 %v9519_v23  ;;  %v9583_v23 = vld [vmem:[%s14341_s1 + $0xfe0] ss:$16 sps:$4 sm:$0xff]  }
  0xc1   : > { %6727 = vmatpush2.bf16.msra.mxu0 %v9514_v24  ;;  %v9588_v24 = vld [vmem:[%s14341_s1 + $0xdc4] ss:$16 sps:$4 sm:$0xff]  }
  0xc2   : > { %6770 = vmatpush2.bf16.msra.mxu1 %v9517_v25  ;;  %6728 = vmatprep.subr.bf16.mxu0 %v9522_v26  ;;  %v9591_v25 = vld [vmem:[%s14341_s1 + $0xfc4] ss:$16 sps:$4 sm:$0xff]   ;;  %v9586_v26 = vld [vmem:[%s14341_s1 + $0xdc0] ss:$16 sps:$4 sm:$0xff]  }
  0xc3   : > { %6771 = vmatprep.subr.bf16.mxu1 %v9525_v27  ;;  %v9589_v27 = vld [vmem:[%s14341_s1 + $0xfc0] ss:$16 sps:$4 sm:$0xff]  }
  0xc5   : > { %6729 = vmatpush2.bf16.msra.mxu0 %v9520_v32  ;;  %v9594_v32 = vld [vmem:[%s14341_s1 + $0xda4] ss:$16 sps:$4 sm:$0xff]  }
  0xc6   : > { %6772 = vmatpush2.bf16.msra.mxu1 %v9523_v34  ;;  %6730 = vmatprep.subr.bf16.mxu0 %v9528_v36  ;;  %v9597_v34 = vld [vmem:[%s14341_s1 + $0xfa4] ss:$16 sps:$4 sm:$0xff]   ;;  %v9592_v36 = vld [vmem:[%s14341_s1 + $0xda0] ss:$16 sps:$4 sm:$0xff]  }
  0xc7   : > { %6773 = vmatprep.subr.bf16.mxu1 %v9531_v37  ;;  %v9595_v37 = vld [vmem:[%s14341_s1 + $0xfa0] ss:$16 sps:$4 sm:$0xff]  }
  0xc9   : > { %6731 = vmatpush2.bf16.msra.mxu0 %v9526_v38  ;;  %v9600_v38 = vld [vmem:[%s14341_s1 + $0xd84] ss:$16 sps:$4 sm:$0xff]  }
  0xca   : > { %6774 = vmatpush2.bf16.msra.mxu1 %v9529_v39  ;;  %6786 = vmatprep.subr.bf16.mxu0 %v9534_v40  ;;  %v9603_v39 = vld [vmem:[%s14341_s1 + $0xf84] ss:$16 sps:$4 sm:$0xff]   ;;  %v9598_v40 = vld [vmem:[%s14341_s1 + $0xd80] ss:$16 sps:$4 sm:$0xff]  }
  0xcb   : > { %6829 = vmatprep.subr.bf16.mxu1 %v9537_v42  ;;  %v9601_v42 = vld [vmem:[%s14341_s1 + $0xf80] ss:$16 sps:$4 sm:$0xff]  }
  0xcc   : > { %6733 = vmatmul.mubr.bf16.vlgmr.msra.gmra.mxu0 %v11494_v48 }
  0xcd   : > { %6776 = vmatmul.mubr.bf16.vlgmr.msra.gmra.mxu1 %v11498_v49  ;;  %6787 = vmatpush1.bf16.msra.mxu0 %v9532_v44  ;;  %v9606_v44 = vld [vmem:[%s14341_s1 + $0xd64] ss:$16 sps:$4 sm:$0xff]  }
  0xce   : > { %6830 = vmatpush1.bf16.msra.mxu1 %v9535_v45  ;;  %6788 = vmatprep.subr.bf16.mxu0 %v9540_v52  ;;  %v9609_v45 = vld [vmem:[%s14341_s1 + $0xf64] ss:$16 sps:$4 sm:$0xff]   ;;  %v9604_v52 = vld [vmem:[%s14341_s1 + $0xd60] ss:$16 sps:$4 sm:$0xff]  }
  0xcf   : > { %6831 = vmatprep.subr.bf16.mxu1 %v9543_v28  ;;  %6818 = vmatprep.mubr.bf16.mxu0 %v11514_v29  ;;  %v9607_v28 = vld [vmem:[%s14341_s1 + $0xf60] ss:$16 sps:$4 sm:$0xff]  }
  0xd0   : > { %6861 = vmatprep.mubr.bf16.mxu1 %v11518_v30 }
  0xd1   : > { %6789 = vmatpush1.bf16.msra.mxu0 %v9538_v31  ;;  %v9612_v31 = vld [vmem:[%s14341_s1 + $0xd44] ss:$16 sps:$4 sm:$0xff]  }
  0xd2   : > { %6832 = vmatpush1.bf16.msra.mxu1 %v9541_v54  ;;  %6790 = vmatprep.subr.bf16.mxu0 %v9546_v56  ;;  %v9615_v54 = vld [vmem:[%s14341_s1 + $0xf44] ss:$16 sps:$4 sm:$0xff]   ;;  %v9610_v56 = vld [vmem:[%s14341_s1 + $0xd40] ss:$16 sps:$4 sm:$0xff]  }
  0xd3   : > { %6833 = vmatprep.subr.bf16.mxu1 %v9549_v57  ;;  %v9613_v57 = vld [vmem:[%s14341_s1 + $0xf40] ss:$16 sps:$4 sm:$0xff]  }
  0xd5   : > { %6791 = vmatpush1.bf16.msra.mxu0 %v9544_v58  ;;  %v9618_v58 = vld [vmem:[%s14341_s1 + $0xd24] ss:$16 sps:$4 sm:$0xff]  }
  0xd6   : > { %6834 = vmatpush1.bf16.msra.mxu1 %v9547_v59  ;;  %6792 = vmatprep.subr.bf16.mxu0 %v9552_v60  ;;  %v9621_v59 = vld [vmem:[%s14341_s1 + $0xf24] ss:$16 sps:$4 sm:$0xff]   ;;  %v9616_v60 = vld [vmem:[%s14341_s1 + $0xd20] ss:$16 sps:$4 sm:$0xff]  }
  0xd7   : > { %6835 = vmatprep.subr.bf16.mxu1 %v9555_v61  ;;  %v9619_v61 = vld [vmem:[%s14341_s1 + $0xf20] ss:$16 sps:$4 sm:$0xff]  }
  0xd9   : > { %6793 = vmatpush1.bf16.msra.mxu0 %v9550_v62  ;;  %v9624_v62 = vld [vmem:[%s14341_s1 + $0xd04] ss:$16 sps:$4 sm:$0xff]  }
  0xda   : > { %6836 = vmatpush1.bf16.msra.mxu1 %v9553_v63  ;;  %6794 = vmatprep.subr.bf16.mxu0 %v9558_v0  ;;  %v9627_v63 = vld [vmem:[%s14341_s1 + $0xf04] ss:$16 sps:$4 sm:$0xff]   ;;  %v9622_v0 = vld [vmem:[%s14341_s1 + $0xd00] ss:$16 sps:$4 sm:$0xff]  }
  0xdb   : > { %6837 = vmatprep.subr.bf16.mxu1 %v9561_v1  ;;  %v9625_v1 = vld [vmem:[%s14341_s1 + $0xf00] ss:$16 sps:$4 sm:$0xff]  }
  0xdd   : > { %6795 = vmatpush1.bf16.msra.mxu0 %v9556_v2  ;;  %v9630_v2 = vld [vmem:[%s14341_s1 + $0x10e4] ss:$16 sps:$4 sm:$0xff]  }
  0xde   : > { %6838 = vmatpush1.bf16.msra.mxu1 %v9559_v3  ;;  %6796 = vmatprep.subr.bf16.mxu0 %v9564_v4  ;;  %v9633_v3 = vld [vmem:[%s14341_s1 + $0x12e4] ss:$16 sps:$4 sm:$0xff]   ;;  %v9628_v4 = vld [vmem:[%s14341_s1 + $0x10e0] ss:$16 sps:$4 sm:$0xff]  }
  0xdf   : > { %6839 = vmatprep.subr.bf16.mxu1 %v9567_v5  ;;  %v9631_v5 = vld [vmem:[%s14341_s1 + $0x12e0] ss:$16 sps:$4 sm:$0xff]  }
  0xe1   : > { %6797 = vmatpush1.bf16.msra.mxu0 %v9562_v6  ;;  %v11711_v6 = vld [vmem:[%s10958_s5 + $0x40] sm:$0xff] }
  0xe2   : > { %6840 = vmatpush1.bf16.msra.mxu1 %v9565_v7  ;;  %6798 = vmatprep.subr.bf16.mxu0 %v9570_v10  ;;  %v11714_v7 = vld [vmem:[%s10958_s5 + $0xc0] sm:$0xff]  ;;  %v11718_v10 = vcombine.low %v11487_v46, %v11490_v47 }
  0xe3   : > { %6841 = vmatprep.subr.bf16.mxu1 %v9573_v11  ;;  %v11722_v11 = vcombine.low %v11501_v50, %v11504_v51  ;;  %v9639_v46 = vld [vmem:[%s14341_s1 + $0x12c4] ss:$16 sps:$4 sm:$0xff]   ;;  %v11738_v47 = vcombine.high %v11711_v6, %v11714_v7  ;;  %v9634_v51 = vld [vmem:[%s14341_s1 + $0x10c0] ss:$16 sps:$4 sm:$0xff]  }
  0xe5   : > { %6799 = vmatpush1.bf16.msra.mxu0 %v9568_v12  ;;  %v11725_v12 = vld [vmem:[%s10958_s5 + $0x48] sm:$0xff] }
  0xe6   : > { %6842 = vmatpush1.bf16.msra.mxu1 %v9571_v13  ;;  %6800 = vmatprep.subr.bf16.mxu0 %v9576_v14  ;;  %v11728_v13 = vld [vmem:[%s10958_s5 + $0xc8] sm:$0xff]  ;;  %v9636_v14 = vld [vmem:[%s14341_s1 + $0x10c4] ss:$16 sps:$4 sm:$0xff]  }
  0xe7   : > { %6843 = vmatprep.subr.bf16.mxu1 %v9579_v15  ;;  %v11742_v50 = vcombine.high %v11725_v12, %v11728_v13  ;;  %v9637_v15 = vld [vmem:[%s14341_s1 + $0x12c0] ss:$16 sps:$4 sm:$0xff]  }
  0xe9   : > { %6801 = vmatpush1.bf16.msra.mxu0 %v9574_v16  ;;  %v9642_v16 = vld [vmem:[%s14341_s1 + $0x10a4] ss:$16 sps:$4 sm:$0xff]  }
  0xea   : > { %6844 = vmatpush1.bf16.msra.mxu1 %v9577_v17  ;;  %6802 = vmatprep.subr.bf16.mxu0 %v9582_v18  ;;  %v9645_v17 = vld [vmem:[%s14341_s1 + $0x12a4] ss:$16 sps:$4 sm:$0xff]   ;;  %v9640_v18 = vld [vmem:[%s14341_s1 + $0x10a0] ss:$16 sps:$4 sm:$0xff]  }
  0xeb   : > { %6845 = vmatprep.subr.bf16.mxu1 %v9585_v19  ;;  %v9643_v19 = vld [vmem:[%s14341_s1 + $0x12a0] ss:$16 sps:$4 sm:$0xff]  }
  0xed   : > { %6803 = vmatpush2.bf16.msra.mxu0 %v9580_v22  ;;  %v9648_v22 = vld [vmem:[%s14341_s1 + $0x1084] ss:$16 sps:$4 sm:$0xff]  }
  0xee   : > { %6846 = vmatpush2.bf16.msra.mxu1 %v9583_v23  ;;  %6804 = vmatprep.subr.bf16.mxu0 %v9588_v24  ;;  %v9651_v23 = vld [vmem:[%s14341_s1 + $0x1284] ss:$16 sps:$4 sm:$0xff]   ;;  %v9646_v24 = vld [vmem:[%s14341_s1 + $0x1080] ss:$16 sps:$4 sm:$0xff]  }
  0xef   : > { %6847 = vmatprep.subr.bf16.mxu1 %v9591_v25  ;;  %v9649_v25 = vld [vmem:[%s14341_s1 + $0x1280] ss:$16 sps:$4 sm:$0xff]  }
  0xf1   : > { %6805 = vmatpush2.bf16.msra.mxu0 %v9586_v26  ;;  %v9654_v26 = vld [vmem:[%s14341_s1 + $0x1064] ss:$16 sps:$4 sm:$0xff]  }
  0xf2   : > { %6848 = vmatpush2.bf16.msra.mxu1 %v9589_v27  ;;  %6806 = vmatprep.subr.bf16.mxu0 %v9594_v32  ;;  %v9657_v27 = vld [vmem:[%s14341_s1 + $0x1264] ss:$16 sps:$4 sm:$0xff]   ;;  %v9652_v32 = vld [vmem:[%s14341_s1 + $0x1060] ss:$16 sps:$4 sm:$0xff]  }
  0xf3   : > { %6849 = vmatprep.subr.bf16.mxu1 %v9597_v34  ;;  %v9655_v34 = vld [vmem:[%s14341_s1 + $0x1260] ss:$16 sps:$4 sm:$0xff]  }
  0xf5   : > { %6807 = vmatpush2.bf16.msra.mxu0 %v9592_v36  ;;  %v9660_v36 = vld [vmem:[%s14341_s1 + $0x1044] ss:$16 sps:$4 sm:$0xff]  }
  0xf6   : > { %6850 = vmatpush2.bf16.msra.mxu1 %v9595_v37  ;;  %6808 = vmatprep.subr.bf16.mxu0 %v9600_v38  ;;  %v9663_v37 = vld [vmem:[%s14341_s1 + $0x1244] ss:$16 sps:$4 sm:$0xff]   ;;  %v9658_v38 = vld [vmem:[%s14341_s1 + $0x1040] ss:$16 sps:$4 sm:$0xff]  }
  0xf7   : > { %6851 = vmatprep.subr.bf16.mxu1 %v9603_v39  ;;  %v9661_v39 = vld [vmem:[%s14341_s1 + $0x1240] ss:$16 sps:$4 sm:$0xff]  }
  0xf9   : > { %6809 = vmatpush2.bf16.msra.mxu0 %v9598_v40  ;;  %v9666_v40 = vld [vmem:[%s14341_s1 + $0x1024] ss:$16 sps:$4 sm:$0xff]  }
  0xfa   : > { %6852 = vmatpush2.bf16.msra.mxu1 %v9601_v42  ;;  %6810 = vmatprep.subr.bf16.mxu0 %v9606_v44  ;;  %v9669_v42 = vld [vmem:[%s14341_s1 + $0x1224] ss:$16 sps:$4 sm:$0xff]   ;;  %v9664_v44 = vld [vmem:[%s14341_s1 + $0x1020] ss:$16 sps:$4 sm:$0xff]  }
  0xfb   : > { %6853 = vmatprep.subr.bf16.mxu1 %v9609_v45  ;;  %v9667_v45 = vld [vmem:[%s14341_s1 + $0x1220] ss:$16 sps:$4 sm:$0xff]  }
  0xfd   : > { %6811 = vmatpush2.bf16.msra.mxu0 %v9604_v52  ;;  %v9672_v52 = vld [vmem:[%s14341_s1 + $0x1004] ss:$16 sps:$4 sm:$0xff]  }
  0xfe   : > { %6854 = vmatpush2.bf16.msra.mxu1 %v9607_v28  ;;  %6812 = vmatprep.subr.bf16.mxu0 %v9612_v31  ;;  %v9675_v28 = vld [vmem:[%s14341_s1 + $0x1204] ss:$16 sps:$4 sm:$0xff]   ;;  %v9670_v31 = vld [vmem:[%s14341_s1 + $0x1000] ss:$16 sps:$4 sm:$0xff]  }
  0xff   : > { %6855 = vmatprep.subr.bf16.mxu1 %v9615_v54  ;;  %v9673_v54 = vld [vmem:[%s14341_s1 + $0x1200] ss:$16 sps:$4 sm:$0xff]  }
 0x101   : > { %6813 = vmatpush2.bf16.msra.mxu0 %v9610_v56  ;;  %v9678_v56 = vld [vmem:[%s14341_s1 + $0x11e4] ss:$16 sps:$4 sm:$0xff]  }
 0x102   : > { %6856 = vmatpush2.bf16.msra.mxu1 %v9613_v57  ;;  %6814 = vmatprep.subr.bf16.mxu0 %v9618_v58  ;;  %v9681_v57 = vld [vmem:[%s14341_s1 + $0x13e4] ss:$16 sps:$4 sm:$0xff]   ;;  %v9676_v58 = vld [vmem:[%s14341_s1 + $0x11e0] ss:$16 sps:$4 sm:$0xff]  }
 0x103   : > { %6857 = vmatprep.subr.bf16.mxu1 %v9621_v59  ;;  %v9679_v59 = vld [vmem:[%s14341_s1 + $0x13e0] ss:$16 sps:$4 sm:$0xff]  }
 0x105   : > { %6815 = vmatpush2.bf16.msra.mxu0 %v9616_v60  ;;  %v9684_v60 = vld [vmem:[%s14341_s1 + $0x11c4] ss:$16 sps:$4 sm:$0xff]  }
 0x106   : > { %6858 = vmatpush2.bf16.msra.mxu1 %v9619_v61  ;;  %6816 = vmatprep.subr.bf16.mxu0 %v9624_v62  ;;  %v9687_v61 = vld [vmem:[%s14341_s1 + $0x13c4] ss:$16 sps:$4 sm:$0xff]   ;;  %v9682_v62 = vld [vmem:[%s14341_s1 + $0x11c0] ss:$16 sps:$4 sm:$0xff]  }
 0x107   : > { %6859 = vmatprep.subr.bf16.mxu1 %v9627_v63  ;;  %v9685_v63 = vld [vmem:[%s14341_s1 + $0x13c0] ss:$16 sps:$4 sm:$0xff]  }
 0x109   : > { %6817 = vmatpush2.bf16.msra.mxu0 %v9622_v0  ;;  %v9690_v0 = vld [vmem:[%s14341_s1 + $0x11a4] ss:$16 sps:$4 sm:$0xff]  }
 0x10a   : > { %6860 = vmatpush2.bf16.msra.mxu1 %v9625_v1  ;;  %6872 = vmatprep.subr.bf16.mxu0 %v9630_v2  ;;  %v9693_v1 = vld [vmem:[%s14341_s1 + $0x13a4] ss:$16 sps:$4 sm:$0xff]   ;;  %v9688_v2 = vld [vmem:[%s14341_s1 + $0x11a0] ss:$16 sps:$4 sm:$0xff]  }
 0x10b   : > { %6915 = vmatprep.subr.bf16.mxu1 %v9633_v3  ;;  %v9691_v3 = vld [vmem:[%s14341_s1 + $0x13a0] ss:$16 sps:$4 sm:$0xff]  }
 0x10c   : > { %6819 = vmatmul.mubr.bf16.vlgmr.msra.gmra.mxu0 %v11718_v10 }
 0x10d   : > { %6862 = vmatmul.mubr.bf16.vlgmr.msra.gmra.mxu1 %v11722_v11  ;;  %6873 = vmatpush1.bf16.msra.mxu0 %v9628_v4  ;;  %v9696_v4 = vld [vmem:[%s14341_s1 + $0x1184] ss:$16 sps:$4 sm:$0xff]  }
 0x10e   : > { %6916 = vmatpush1.bf16.msra.mxu1 %v9631_v5  ;;  %6874 = vmatprep.subr.bf16.mxu0 %v9636_v14  ;;  %v9699_v5 = vld [vmem:[%s14341_s1 + $0x1384] ss:$16 sps:$4 sm:$0xff]   ;;  %v9694_v14 = vld [vmem:[%s14341_s1 + $0x1180] ss:$16 sps:$4 sm:$0xff]  }
 0x10f   : > { %6917 = vmatprep.subr.bf16.mxu1 %v9639_v46  ;;  %6904 = vmatprep.mubr.bf16.mxu0 %v11738_v47  ;;  %v9697_v46 = vld [vmem:[%s14341_s1 + $0x1380] ss:$16 sps:$4 sm:$0xff]  }
 0x110   : > { %6947 = vmatprep.mubr.bf16.mxu1 %v11742_v50 }
 0x111   : > { %6875 = vmatpush1.bf16.msra.mxu0 %v9634_v51  ;;  %v9702_v51 = vld [vmem:[%s14341_s1 + $0x1164] ss:$16 sps:$4 sm:$0xff]  }
 0x112   : > { %6918 = vmatpush1.bf16.msra.mxu1 %v9637_v15  ;;  %6876 = vmatprep.subr.bf16.mxu0 %v9642_v16  ;;  %v9705_v15 = vld [vmem:[%s14341_s1 + $0x1364] ss:$16 sps:$4 sm:$0xff]   ;;  %v9700_v16 = vld [vmem:[%s14341_s1 + $0x1160] ss:$16 sps:$4 sm:$0xff]  }
 0x113   : > { %6919 = vmatprep.subr.bf16.mxu1 %v9645_v17  ;;  %v9703_v17 = vld [vmem:[%s14341_s1 + $0x1360] ss:$16 sps:$4 sm:$0xff]  }
 0x115   : > { %6877 = vmatpush1.bf16.msra.mxu0 %v9640_v18  ;;  %v9708_v18 = vld [vmem:[%s14341_s1 + $0x1144] ss:$16 sps:$4 sm:$0xff]  }
 0x116   : > { %6920 = vmatpush1.bf16.msra.mxu1 %v9643_v19  ;;  %6878 = vmatprep.subr.bf16.mxu0 %v9648_v22  ;;  %v9711_v19 = vld [vmem:[%s14341_s1 + $0x1344] ss:$16 sps:$4 sm:$0xff]   ;;  %v9706_v22 = vld [vmem:[%s14341_s1 + $0x1140] ss:$16 sps:$4 sm:$0xff]  }
 0x117   : > { %6921 = vmatprep.subr.bf16.mxu1 %v9651_v23  ;;  %v9709_v23 = vld [vmem:[%s14341_s1 + $0x1340] ss:$16 sps:$4 sm:$0xff]  }
 0x119   : > { %6879 = vmatpush1.bf16.msra.mxu0 %v9646_v24  ;;  %v9714_v24 = vld [vmem:[%s14341_s1 + $0x1124] ss:$16 sps:$4 sm:$0xff]  }
 0x11a   : > { %6922 = vmatpush1.bf16.msra.mxu1 %v9649_v25  ;;  %6880 = vmatprep.subr.bf16.mxu0 %v9654_v26  ;;  %v9717_v25 = vld [vmem:[%s14341_s1 + $0x1324] ss:$16 sps:$4 sm:$0xff]   ;;  %v9712_v26 = vld [vmem:[%s14341_s1 + $0x1120] ss:$16 sps:$4 sm:$0xff]  }
 0x11b   : > { %6923 = vmatprep.subr.bf16.mxu1 %v9657_v27  ;;  %v9715_v27 = vld [vmem:[%s14341_s1 + $0x1320] ss:$16 sps:$4 sm:$0xff]  }
 0x11d   : > { %6881 = vmatpush1.bf16.msra.mxu0 %v9652_v32  ;;  %v9720_v32 = vld [vmem:[%s14341_s1 + $0x1104] ss:$16 sps:$4 sm:$0xff]  }
 0x11e   : > { %6924 = vmatpush1.bf16.msra.mxu1 %v9655_v34  ;;  %6882 = vmatprep.subr.bf16.mxu0 %v9660_v36  ;;  %v9723_v34 = vld [vmem:[%s14341_s1 + $0x1304] ss:$16 sps:$4 sm:$0xff]   ;;  %v9718_v36 = vld [vmem:[%s14341_s1 + $0x1100] ss:$16 sps:$4 sm:$0xff]  }
 0x11f   : > { %6925 = vmatprep.subr.bf16.mxu1 %v9663_v37  ;;  %v9721_v37 = vld [vmem:[%s14341_s1 + $0x1300] ss:$16 sps:$4 sm:$0xff]  }
 0x121   : > { %6883 = vmatpush1.bf16.msra.mxu0 %v9658_v38  ;;  %v9726_v38 = vld [vmem:[%s14341_s1 + $0x14e4] ss:$16 sps:$4 sm:$0xff]  }
 0x122   : > { %6926 = vmatpush1.bf16.msra.mxu1 %v9661_v39  ;;  %6884 = vmatprep.subr.bf16.mxu0 %v9666_v40  ;;  %v9729_v39 = vld [vmem:[%s14341_s1 + $0x16e4] ss:$16 sps:$4 sm:$0xff]  }
 0x123   : > { %6927 = vmatprep.subr.bf16.mxu1 %v9669_v42  ;;  %v11929_v40 = vld [vmem:[%s10958_s5 + $0x50] sm:$0xff] }
 0x124   : > { %v9724_v42 = vld [vmem:[%s14341_s1 + $0x14e0] ss:$16 sps:$4 sm:$0xff]  }
 0x125   : > { %6885 = vmatpush1.bf16.msra.mxu0 %v9664_v44  ;;  %v11936_v44 = vcombine.low %v11711_v6, %v11714_v7  ;;  %v9732_v6 = vld [vmem:[%s14341_s1 + $0x14c4] ss:$16 sps:$4 sm:$0xff]  }
 0x126   : > { %6928 = vmatpush1.bf16.msra.mxu1 %v9667_v45  ;;  %6886 = vmatprep.subr.bf16.mxu0 %v9672_v52  ;;  %v11940_v45 = vcombine.low %v11725_v12, %v11728_v13  ;;  %v11943_v52 = vld [vmem:[%s10958_s5 + $0xd0] sm:$0xff] }
 0x127   : > { %6929 = vmatprep.subr.bf16.mxu1 %v9675_v28  ;;  %v11946_v28 = vld [vmem:[%s10958_s5 + $0x58] sm:$0xff]  ;;  %v9735_v7 = vld [vmem:[%s14341_s1 + $0x16c4] ss:$16 sps:$4 sm:$0xff]   ;;  %v9730_v12 = vld [vmem:[%s14341_s1 + $0x14c0] ss:$16 sps:$4 sm:$0xff]  }
 0x128   : > { %v9733_v13 = vld [vmem:[%s14341_s1 + $0x16c0] ss:$16 sps:$4 sm:$0xff]  }
 0x129   : > { %6887 = vmatpush1.bf16.msra.mxu0 %v9670_v31  ;;  %v11949_v31 = vld [vmem:[%s10958_s5 + $0xd8] sm:$0xff] }
 0x12a   : > { %6930 = vmatpush1.bf16.msra.mxu1 %v9673_v54  ;;  %6888 = vmatprep.subr.bf16.mxu0 %v9678_v56  ;;  %v9727_v54 = vld [vmem:[%s14341_s1 + $0x16e0] ss:$16 sps:$4 sm:$0xff]   ;;  %v11968_v56 = vcombine.high %v11929_v40, %v11943_v52 }
 0x12b   : > { %6931 = vmatprep.subr.bf16.mxu1 %v9681_v57  ;;  %v11972_v57 = vcombine.high %v11946_v28, %v11949_v31 }
 0x12d   : > { %6889 = vmatpush2.bf16.msra.mxu0 %v9676_v58  ;;  %v9738_v58 = vld [vmem:[%s14341_s1 + $0x14a4] ss:$16 sps:$4 sm:$0xff]  }
 0x12e   : > { %6932 = vmatpush2.bf16.msra.mxu1 %v9679_v59  ;;  %6890 = vmatprep.subr.bf16.mxu0 %v9684_v60  ;;  %v9741_v59 = vld [vmem:[%s14341_s1 + $0x16a4] ss:$16 sps:$4 sm:$0xff]   ;;  %v9736_v60 = vld [vmem:[%s14341_s1 + $0x14a0] ss:$16 sps:$4 sm:$0xff]  }
 0x12f   : > { %6933 = vmatprep.subr.bf16.mxu1 %v9687_v61  ;;  %v9739_v61 = vld [vmem:[%s14341_s1 + $0x16a0] ss:$16 sps:$4 sm:$0xff]  }
 0x131   : > { %6891 = vmatpush2.bf16.msra.mxu0 %v9682_v62  ;;  %v9744_v62 = vld [vmem:[%s14341_s1 + $0x1484] ss:$16 sps:$4 sm:$0xff]  }
 0x132   : > { %6934 = vmatpush2.bf16.msra.mxu1 %v9685_v63  ;;  %6892 = vmatprep.subr.bf16.mxu0 %v9690_v0  ;;  %v9747_v63 = vld [vmem:[%s14341_s1 + $0x1684] ss:$16 sps:$4 sm:$0xff]   ;;  %v9742_v0 = vld [vmem:[%s14341_s1 + $0x1480] ss:$16 sps:$4 sm:$0xff]  }
 0x133   : > { %6935 = vmatprep.subr.bf16.mxu1 %v9693_v1  ;;  %v9745_v1 = vld [vmem:[%s14341_s1 + $0x1680] ss:$16 sps:$4 sm:$0xff]  }
 0x135   : > { %6893 = vmatpush2.bf16.msra.mxu0 %v9688_v2  ;;  %v9750_v2 = vld [vmem:[%s14341_s1 + $0x1464] ss:$16 sps:$4 sm:$0xff]  }
 0x136   : > { %6936 = vmatpush2.bf16.msra.mxu1 %v9691_v3  ;;  %6894 = vmatprep.subr.bf16.mxu0 %v9696_v4  ;;  %v9753_v3 = vld [vmem:[%s14341_s1 + $0x1664] ss:$16 sps:$4 sm:$0xff]   ;;  %v9748_v4 = vld [vmem:[%s14341_s1 + $0x1460] ss:$16 sps:$4 sm:$0xff]  }
 0x137   : > { %6937 = vmatprep.subr.bf16.mxu1 %v9699_v5  ;;  %v9751_v5 = vld [vmem:[%s14341_s1 + $0x1660] ss:$16 sps:$4 sm:$0xff]  }
 0x139   : > { %6895 = vmatpush2.bf16.msra.mxu0 %v9694_v14  ;;  %v9756_v14 = vld [vmem:[%s14341_s1 + $0x1444] ss:$16 sps:$4 sm:$0xff]  }
 0x13a   : > { %6938 = vmatpush2.bf16.msra.mxu1 %v9697_v46  ;;  %6896 = vmatprep.subr.bf16.mxu0 %v9702_v51  ;;  %v9759_v46 = vld [vmem:[%s14341_s1 + $0x1644] ss:$16 sps:$4 sm:$0xff]   ;;  %v9754_v51 = vld [vmem:[%s14341_s1 + $0x1440] ss:$16 sps:$4 sm:$0xff]  }
 0x13b   : > { %6939 = vmatprep.subr.bf16.mxu1 %v9705_v15  ;;  %v9757_v15 = vld [vmem:[%s14341_s1 + $0x1640] ss:$16 sps:$4 sm:$0xff]  }
 0x13d   : > { %6897 = vmatpush2.bf16.msra.mxu0 %v9700_v16  ;;  %v9762_v16 = vld [vmem:[%s14341_s1 + $0x1424] ss:$16 sps:$4 sm:$0xff]  }
 0x13e   : > { %6940 = vmatpush2.bf16.msra.mxu1 %v9703_v17  ;;  %6898 = vmatprep.subr.bf16.mxu0 %v9708_v18  ;;  %v9765_v17 = vld [vmem:[%s14341_s1 + $0x1624] ss:$16 sps:$4 sm:$0xff]   ;;  %v9760_v18 = vld [vmem:[%s14341_s1 + $0x1420] ss:$16 sps:$4 sm:$0xff]  }
 0x13f   : > { %6941 = vmatprep.subr.bf16.mxu1 %v9711_v19  ;;  %v9763_v19 = vld [vmem:[%s14341_s1 + $0x1620] ss:$16 sps:$4 sm:$0xff]  }
 0x141   : > { %6899 = vmatpush2.bf16.msra.mxu0 %v9706_v22  ;;  %v9768_v22 = vld [vmem:[%s14341_s1 + $0x1404] ss:$16 sps:$4 sm:$0xff]  }
 0x142   : > { %6942 = vmatpush2.bf16.msra.mxu1 %v9709_v23  ;;  %6900 = vmatprep.subr.bf16.mxu0 %v9714_v24  ;;  %v9771_v23 = vld [vmem:[%s14341_s1 + $0x1604] ss:$16 sps:$4 sm:$0xff]   ;;  %v9766_v24 = vld [vmem:[%s14341_s1 + $0x1400] ss:$16 sps:$4 sm:$0xff]  }
 0x143   : > { %6943 = vmatprep.subr.bf16.mxu1 %v9717_v25  ;;  %v9769_v25 = vld [vmem:[%s14341_s1 + $0x1600] ss:$16 sps:$4 sm:$0xff]  }
 0x145   : > { %6901 = vmatpush2.bf16.msra.mxu0 %v9712_v26  ;;  %v9774_v26 = vld [vmem:[%s14341_s1 + $0x15e4] ss:$16 sps:$4 sm:$0xff]  }
 0x146   : > { %6944 = vmatpush2.bf16.msra.mxu1 %v9715_v27  ;;  %6902 = vmatprep.subr.bf16.mxu0 %v9720_v32  ;;  %v9777_v27 = vld [vmem:[%s14341_s1 + $0x17e4] ss:$16 sps:$4 sm:$0xff]   ;;  %v9772_v32 = vld [vmem:[%s14341_s1 + $0x15e0] ss:$16 sps:$4 sm:$0xff]  }
 0x147   : > { %6945 = vmatprep.subr.bf16.mxu1 %v9723_v34  ;;  %v9775_v34 = vld [vmem:[%s14341_s1 + $0x17e0] ss:$16 sps:$4 sm:$0xff]  }
 0x149   : > { %6903 = vmatpush2.bf16.msra.mxu0 %v9718_v36  ;;  %v9780_v36 = vld [vmem:[%s14341_s1 + $0x15c4] ss:$16 sps:$4 sm:$0xff]  }
 0x14a   : > { %6946 = vmatpush2.bf16.msra.mxu1 %v9721_v37  ;;  %6958 = vmatprep.subr.bf16.mxu0 %v9726_v38  ;;  %v9783_v37 = vld [vmem:[%s14341_s1 + $0x17c4] ss:$16 sps:$4 sm:$0xff]   ;;  %v9778_v38 = vld [vmem:[%s14341_s1 + $0x15c0] ss:$16 sps:$4 sm:$0xff]  }
 0x14b   : > { %7001 = vmatprep.subr.bf16.mxu1 %v9729_v39  ;;  %v9781_v39 = vld [vmem:[%s14341_s1 + $0x17c0] ss:$16 sps:$4 sm:$0xff]  }
 0x14c   : > { %6905 = vmatmul.mubr.bf16.vlgmr.msra.gmra.mxu0 %v11936_v44 }
 0x14d   : > { %6948 = vmatmul.mubr.bf16.vlgmr.msra.gmra.mxu1 %v11940_v45  ;;  %6959 = vmatpush1.bf16.msra.mxu0 %v9724_v42  ;;  %v9786_v42 = vld [vmem:[%s14341_s1 + $0x15a4] ss:$16 sps:$4 sm:$0xff]  }
 0x14e   : > { %7002 = vmatpush1.bf16.msra.mxu1 %v9727_v54  ;;  %6960 = vmatprep.subr.bf16.mxu0 %v9732_v6  ;;  %v9789_v54 = vld [vmem:[%s14341_s1 + $0x17a4] ss:$16 sps:$4 sm:$0xff]   ;;  %v9784_v6 = vld [vmem:[%s14341_s1 + $0x15a0] ss:$16 sps:$4 sm:$0xff]  }
 0x14f   : > { %7003 = vmatprep.subr.bf16.mxu1 %v9735_v7  ;;  %6990 = vmatprep.mubr.bf16.mxu0 %v11968_v56  ;;  %v9787_v7 = vld [vmem:[%s14341_s1 + $0x17a0] ss:$16 sps:$4 sm:$0xff]  }
 0x150   : > { %7033 = vmatprep.mubr.bf16.mxu1 %v11972_v57 }
 0x151   : > { %6961 = vmatpush1.bf16.msra.mxu0 %v9730_v12  ;;  %v9792_v12 = vld [vmem:[%s14341_s1 + $0x1584] ss:$16 sps:$4 sm:$0xff]  }
 0x152   : > { %7004 = vmatpush1.bf16.msra.mxu1 %v9733_v13  ;;  %6962 = vmatprep.subr.bf16.mxu0 %v9738_v58  ;;  %v9795_v13 = vld [vmem:[%s14341_s1 + $0x1784] ss:$16 sps:$4 sm:$0xff]   ;;  %v9790_v58 = vld [vmem:[%s14341_s1 + $0x1580] ss:$16 sps:$4 sm:$0xff]  }
 0x153   : > { %7005 = vmatprep.subr.bf16.mxu1 %v9741_v59  ;;  %v9793_v59 = vld [vmem:[%s14341_s1 + $0x1780] ss:$16 sps:$4 sm:$0xff]  }
 0x155   : > { %6963 = vmatpush1.bf16.msra.mxu0 %v9736_v60  ;;  %v9798_v60 = vld [vmem:[%s14341_s1 + $0x1564] ss:$16 sps:$4 sm:$0xff]  }
 0x156   : > { %7006 = vmatpush1.bf16.msra.mxu1 %v9739_v61  ;;  %6964 = vmatprep.subr.bf16.mxu0 %v9744_v62  ;;  %v9801_v61 = vld [vmem:[%s14341_s1 + $0x1764] ss:$16 sps:$4 sm:$0xff]   ;;  %v9796_v62 = vld [vmem:[%s14341_s1 + $0x1560] ss:$16 sps:$4 sm:$0xff]  }
 0x157   : > { %7007 = vmatprep.subr.bf16.mxu1 %v9747_v63  ;;  %v9799_v63 = vld [vmem:[%s14341_s1 + $0x1760] ss:$16 sps:$4 sm:$0xff]  }
 0x159   : > { %6965 = vmatpush1.bf16.msra.mxu0 %v9742_v0  ;;  %v9804_v0 = vld [vmem:[%s14341_s1 + $0x1544] ss:$16 sps:$4 sm:$0xff]  }
 0x15a   : > { %7008 = vmatpush1.bf16.msra.mxu1 %v9745_v1  ;;  %6966 = vmatprep.subr.bf16.mxu0 %v9750_v2  ;;  %v9807_v1 = vld [vmem:[%s14341_s1 + $0x1744] ss:$16 sps:$4 sm:$0xff]   ;;  %v9802_v2 = vld [vmem:[%s14341_s1 + $0x1540] ss:$16 sps:$4 sm:$0xff]  }
 0x15b   : > { %7009 = vmatprep.subr.bf16.mxu1 %v9753_v3  ;;  %v9805_v3 = vld [vmem:[%s14341_s1 + $0x1740] ss:$16 sps:$4 sm:$0xff]  }
 0x15d   : > { %6967 = vmatpush1.bf16.msra.mxu0 %v9748_v4  ;;  %v9810_v4 = vld [vmem:[%s14341_s1 + $0x1524] ss:$16 sps:$4 sm:$0xff]  }
 0x15e   : > { %7010 = vmatpush1.bf16.msra.mxu1 %v9751_v5  ;;  %6968 = vmatprep.subr.bf16.mxu0 %v9756_v14  ;;  %v9813_v5 = vld [vmem:[%s14341_s1 + $0x1724] ss:$16 sps:$4 sm:$0xff]   ;;  %v9808_v14 = vld [vmem:[%s14341_s1 + $0x1520] ss:$16 sps:$4 sm:$0xff]  }
 0x15f   : > { %7011 = vmatprep.subr.bf16.mxu1 %v9759_v46  ;;  %v9811_v46 = vld [vmem:[%s14341_s1 + $0x1720] ss:$16 sps:$4 sm:$0xff]  }
 0x161   : > { %6969 = vmatpush1.bf16.msra.mxu0 %v9754_v51  ;;  %v9816_v51 = vld [vmem:[%s14341_s1 + $0x1504] ss:$16 sps:$4 sm:$0xff]  }
 0x162   : > { %7012 = vmatpush1.bf16.msra.mxu1 %v9757_v15  ;;  %6970 = vmatprep.subr.bf16.mxu0 %v9762_v16  ;;  %v9819_v15 = vld [vmem:[%s14341_s1 + $0x1704] ss:$16 sps:$4 sm:$0xff]   ;;  %v9814_v16 = vld [vmem:[%s14341_s1 + $0x1500] ss:$16 sps:$4 sm:$0xff]  }
 0x163   : > { %7013 = vmatprep.subr.bf16.mxu1 %v9765_v17  ;;  %v9817_v17 = vld [vmem:[%s14341_s1 + $0x1700] ss:$16 sps:$4 sm:$0xff]  }
 0x165   : > { %6971 = vmatpush1.bf16.msra.mxu0 %v9760_v18  ;;  %v9822_v18 = vld [vmem:[%s14341_s1 + $0x18e4] ss:$16 sps:$4 sm:$0xff]  }
 0x166   : > { %7014 = vmatpush1.bf16.msra.mxu1 %v9763_v19  ;;  %6972 = vmatprep.subr.bf16.mxu0 %v9768_v22  ;;  %v9825_v19 = vld [vmem:[%s14341_s1 + $0x1ae4] ss:$16 sps:$4 sm:$0xff]  }
 0x167   : > { %7015 = vmatprep.subr.bf16.mxu1 %v9771_v23  ;;  %v12153_v22 = vld [vmem:[%s10958_s5 + $0x60] sm:$0xff] }
 0x168   : > { %v9820_v23 = vld [vmem:[%s14341_s1 + $0x18e0] ss:$16 sps:$4 sm:$0xff]  }
 0x169   : > { %6973 = vmatpush1.bf16.msra.mxu0 %v9766_v24  ;;  %v12160_v24 = vcombine.low %v11929_v40, %v11943_v52  ;;  %v9828_v40 = vld [vmem:[%s14341_s1 + $0x18c4] ss:$16 sps:$4 sm:$0xff]  }
 0x16a   : > { %7016 = vmatpush1.bf16.msra.mxu1 %v9769_v25  ;;  %6974 = vmatprep.subr.bf16.mxu0 %v9774_v26  ;;  %v12164_v25 = vcombine.low %v11946_v28, %v11949_v31  ;;  %v12167_v26 = vld [vmem:[%s10958_s5 + $0xe0] sm:$0xff] }
 0x16b   : > { %7017 = vmatprep.subr.bf16.mxu1 %v9777_v27  ;;  %v12170_v27 = vld [vmem:[%s10958_s5 + $0x68] sm:$0xff]  ;;  %v9831_v52 = vld [vmem:[%s14341_s1 + $0x1ac4] ss:$16 sps:$4 sm:$0xff]   ;;  %v9826_v28 = vld [vmem:[%s14341_s1 + $0x18c0] ss:$16 sps:$4 sm:$0xff]  }
 0x16c   : > { %v9829_v31 = vld [vmem:[%s14341_s1 + $0x1ac0] ss:$16 sps:$4 sm:$0xff]  }
 0x16d   : > { %6975 = vmatpush2.bf16.msra.mxu0 %v9772_v32  ;;  %v12173_v32 = vld [vmem:[%s10958_s5 + $0xe8] sm:$0xff] }
 0x16e   : > { %7018 = vmatpush2.bf16.msra.mxu1 %v9775_v34  ;;  %6976 = vmatprep.subr.bf16.mxu0 %v9780_v36  ;;  %v9823_v34 = vld [vmem:[%s14341_s1 + $0x1ae0] ss:$16 sps:$4 sm:$0xff]   ;;  %v12192_v36 = vcombine.high %v12153_v22, %v12167_v26 }
 0x16f   : > { %7019 = vmatprep.subr.bf16.mxu1 %v9783_v37  ;;  %v12196_v37 = vcombine.high %v12170_v27, %v12173_v32 }
 0x171   : > { %6977 = vmatpush2.bf16.msra.mxu0 %v9778_v38  ;;  %v9834_v38 = vld [vmem:[%s14341_s1 + $0x18a4] ss:$16 sps:$4 sm:$0xff]  }
 0x172   : > { %7020 = vmatpush2.bf16.msra.mxu1 %v9781_v39  ;;  %6978 = vmatprep.subr.bf16.mxu0 %v9786_v42  ;;  %v9837_v39 = vld [vmem:[%s14341_s1 + $0x1aa4] ss:$16 sps:$4 sm:$0xff]   ;;  %v9832_v42 = vld [vmem:[%s14341_s1 + $0x18a0] ss:$16 sps:$4 sm:$0xff]  }
 0x173   : > { %7021 = vmatprep.subr.bf16.mxu1 %v9789_v54  ;;  %v9835_v54 = vld [vmem:[%s14341_s1 + $0x1aa0] ss:$16 sps:$4 sm:$0xff]  }
 0x175   : > { %6979 = vmatpush2.bf16.msra.mxu0 %v9784_v6  ;;  %v9840_v6 = vld [vmem:[%s14341_s1 + $0x1884] ss:$16 sps:$4 sm:$0xff]  }
 0x176   : > { %7022 = vmatpush2.bf16.msra.mxu1 %v9787_v7  ;;  %6980 = vmatprep.subr.bf16.mxu0 %v9792_v12  ;;  %v9843_v7 = vld [vmem:[%s14341_s1 + $0x1a84] ss:$16 sps:$4 sm:$0xff]   ;;  %v9838_v12 = vld [vmem:[%s14341_s1 + $0x1880] ss:$16 sps:$4 sm:$0xff]  }
 0x177   : > { %7023 = vmatprep.subr.bf16.mxu1 %v9795_v13  ;;  %v9841_v13 = vld [vmem:[%s14341_s1 + $0x1a80] ss:$16 sps:$4 sm:$0xff]  }
 0x179   : > { %6981 = vmatpush2.bf16.msra.mxu0 %v9790_v58  ;;  %v9846_v58 = vld [vmem:[%s14341_s1 + $0x1864] ss:$16 sps:$4 sm:$0xff]  }
 0x17a   : > { %7024 = vmatpush2.bf16.msra.mxu1 %v9793_v59  ;;  %6982 = vmatprep.subr.bf16.mxu0 %v9798_v60  ;;  %v9849_v59 = vld [vmem:[%s14341_s1 + $0x1a64] ss:$16 sps:$4 sm:$0xff]   ;;  %v9844_v60 = vld [vmem:[%s14341_s1 + $0x1860] ss:$16 sps:$4 sm:$0xff]  }
 0x17b   : > { %7025 = vmatprep.subr.bf16.mxu1 %v9801_v61  ;;  %v9847_v61 = vld [vmem:[%s14341_s1 + $0x1a60] ss:$16 sps:$4 sm:$0xff]  }
 0x17d   : > { %6983 = vmatpush2.bf16.msra.mxu0 %v9796_v62  ;;  %v9852_v62 = vld [vmem:[%s14341_s1 + $0x1844] ss:$16 sps:$4 sm:$0xff]  }
 0x17e   : > { %7026 = vmatpush2.bf16.msra.mxu1 %v9799_v63  ;;  %6984 = vmatprep.subr.bf16.mxu0 %v9804_v0  ;;  %v9855_v63 = vld [vmem:[%s14341_s1 + $0x1a44] ss:$16 sps:$4 sm:$0xff]   ;;  %v9850_v0 = vld [vmem:[%s14341_s1 + $0x1840] ss:$16 sps:$4 sm:$0xff]  }
 0x17f   : > { %7027 = vmatprep.subr.bf16.mxu1 %v9807_v1  ;;  %v9853_v1 = vld [vmem:[%s14341_s1 + $0x1a40] ss:$16 sps:$4 sm:$0xff]  }
 0x181   : > { %6985 = vmatpush2.bf16.msra.mxu0 %v9802_v2  ;;  %v9858_v2 = vld [vmem:[%s14341_s1 + $0x1824] ss:$16 sps:$4 sm:$0xff]  }
 0x182   : > { %7028 = vmatpush2.bf16.msra.mxu1 %v9805_v3  ;;  %6986 = vmatprep.subr.bf16.mxu0 %v9810_v4  ;;  %v9861_v3 = vld [vmem:[%s14341_s1 + $0x1a24] ss:$16 sps:$4 sm:$0xff]   ;;  %v9856_v4 = vld [vmem:[%s14341_s1 + $0x1820] ss:$16 sps:$4 sm:$0xff]  }
 0x183   : > { %7029 = vmatprep.subr.bf16.mxu1 %v9813_v5  ;;  %v9859_v5 = vld [vmem:[%s14341_s1 + $0x1a20] ss:$16 sps:$4 sm:$0xff]  }
 0x185   : > { %6987 = vmatpush2.bf16.msra.mxu0 %v9808_v14  ;;  %v9864_v14 = vld [vmem:[%s14341_s1 + $0x1804] ss:$16 sps:$4 sm:$0xff]  }
 0x186   : > { %7030 = vmatpush2.bf16.msra.mxu1 %v9811_v46  ;;  %6988 = vmatprep.subr.bf16.mxu0 %v9816_v51  ;;  %v9867_v46 = vld [vmem:[%s14341_s1 + $0x1a04] ss:$16 sps:$4 sm:$0xff]   ;;  %v9862_v51 = vld [vmem:[%s14341_s1 + $0x1800] ss:$16 sps:$4 sm:$0xff]  }
 0x187   : > { %7031 = vmatprep.subr.bf16.mxu1 %v9819_v15  ;;  %v9865_v15 = vld [vmem:[%s14341_s1 + $0x1a00] ss:$16 sps:$4 sm:$0xff]  }
 0x189   : > { %6989 = vmatpush2.bf16.msra.mxu0 %v9814_v16  ;;  %v9870_v16 = vld [vmem:[%s14341_s1 + $0x19e4] ss:$16 sps:$4 sm:$0xff]  }
 0x18a   : > { %7032 = vmatpush2.bf16.msra.mxu1 %v9817_v17  ;;  %7044 = vmatprep.subr.bf16.mxu0 %v9822_v18  ;;  %v9873_v17 = vld [vmem:[%s14341_s1 + $0x1be4] ss:$16 sps:$4 sm:$0xff]   ;;  %v9868_v18 = vld [vmem:[%s14341_s1 + $0x19e0] ss:$16 sps:$4 sm:$0xff]  }
 0x18b   : > { %7087 = vmatprep.subr.bf16.mxu1 %v9825_v19  ;;  %v9871_v19 = vld [vmem:[%s14341_s1 + $0x1be0] ss:$16 sps:$4 sm:$0xff]  }
 0x18c   : > { %6991 = vmatmul.mubr.bf16.vlgmr.msra.gmra.mxu0 %v12160_v24 }
 0x18d   : > { %7034 = vmatmul.mubr.bf16.vlgmr.msra.gmra.mxu1 %v12164_v25  ;;  %7045 = vmatpush1.bf16.msra.mxu0 %v9820_v23  ;;  %v9876_v23 = vld [vmem:[%s14341_s1 + $0x19c4] ss:$16 sps:$4 sm:$0xff]  }
 0x18e   : > { %7088 = vmatpush1.bf16.msra.mxu1 %v9823_v34  ;;  %7046 = vmatprep.subr.bf16.mxu0 %v9828_v40  ;;  %v9879_v34 = vld [vmem:[%s14341_s1 + $0x1bc4] ss:$16 sps:$4 sm:$0xff]   ;;  %v9874_v40 = vld [vmem:[%s14341_s1 + $0x19c0] ss:$16 sps:$4 sm:$0xff]  }
 0x18f   : > { %7089 = vmatprep.subr.bf16.mxu1 %v9831_v52  ;;  %7076 = vmatprep.mubr.bf16.mxu0 %v12192_v36  ;;  %v9877_v52 = vld [vmem:[%s14341_s1 + $0x1bc0] ss:$16 sps:$4 sm:$0xff]  }
 0x190   : > { %7119 = vmatprep.mubr.bf16.mxu1 %v12196_v37 }
 0x191   : > { %7047 = vmatpush1.bf16.msra.mxu0 %v9826_v28  ;;  %v9882_v28 = vld [vmem:[%s14341_s1 + $0x19a4] ss:$16 sps:$4 sm:$0xff]  }
 0x192   : > { %7090 = vmatpush1.bf16.msra.mxu1 %v9829_v31  ;;  %7048 = vmatprep.subr.bf16.mxu0 %v9834_v38  ;;  %v9885_v31 = vld [vmem:[%s14341_s1 + $0x1ba4] ss:$16 sps:$4 sm:$0xff]   ;;  %v9880_v38 = vld [vmem:[%s14341_s1 + $0x19a0] ss:$16 sps:$4 sm:$0xff]  }
 0x193   : > { %7091 = vmatprep.subr.bf16.mxu1 %v9837_v39  ;;  %v9883_v39 = vld [vmem:[%s14341_s1 + $0x1ba0] ss:$16 sps:$4 sm:$0xff]  }
 0x195   : > { %7049 = vmatpush1.bf16.msra.mxu0 %v9832_v42  ;;  %v9888_v42 = vld [vmem:[%s14341_s1 + $0x1984] ss:$16 sps:$4 sm:$0xff]  }
 0x196   : > { %7092 = vmatpush1.bf16.msra.mxu1 %v9835_v54  ;;  %7050 = vmatprep.subr.bf16.mxu0 %v9840_v6  ;;  %v9891_v54 = vld [vmem:[%s14341_s1 + $0x1b84] ss:$16 sps:$4 sm:$0xff]   ;;  %v9886_v6 = vld [vmem:[%s14341_s1 + $0x1980] ss:$16 sps:$4 sm:$0xff]  }
 0x197   : > { %7093 = vmatprep.subr.bf16.mxu1 %v9843_v7  ;;  %v9889_v7 = vld [vmem:[%s14341_s1 + $0x1b80] ss:$16 sps:$4 sm:$0xff]  }
 0x199   : > { %7051 = vmatpush1.bf16.msra.mxu0 %v9838_v12  ;;  %v9894_v12 = vld [vmem:[%s14341_s1 + $0x1964] ss:$16 sps:$4 sm:$0xff]  }
 0x19a   : > { %7094 = vmatpush1.bf16.msra.mxu1 %v9841_v13  ;;  %7052 = vmatprep.subr.bf16.mxu0 %v9846_v58  ;;  %v9897_v13 = vld [vmem:[%s14341_s1 + $0x1b64] ss:$16 sps:$4 sm:$0xff]   ;;  %v9892_v58 = vld [vmem:[%s14341_s1 + $0x1960] ss:$16 sps:$4 sm:$0xff]  }
 0x19b   : > { %7095 = vmatprep.subr.bf16.mxu1 %v9849_v59  ;;  %v9895_v59 = vld [vmem:[%s14341_s1 + $0x1b60] ss:$16 sps:$4 sm:$0xff]  }
 0x19d   : > { %7053 = vmatpush1.bf16.msra.mxu0 %v9844_v60  ;;  %v9900_v60 = vld [vmem:[%s14341_s1 + $0x1944] ss:$16 sps:$4 sm:$0xff]  }
 0x19e   : > { %7096 = vmatpush1.bf16.msra.mxu1 %v9847_v61  ;;  %7054 = vmatprep.subr.bf16.mxu0 %v9852_v62  ;;  %v9903_v61 = vld [vmem:[%s14341_s1 + $0x1b44] ss:$16 sps:$4 sm:$0xff]   ;;  %v9898_v62 = vld [vmem:[%s14341_s1 + $0x1940] ss:$16 sps:$4 sm:$0xff]  }
 0x19f   : > { %7097 = vmatprep.subr.bf16.mxu1 %v9855_v63  ;;  %v9901_v63 = vld [vmem:[%s14341_s1 + $0x1b40] ss:$16 sps:$4 sm:$0xff]  }
 0x1a1   : > { %7055 = vmatpush1.bf16.msra.mxu0 %v9850_v0  ;;  %v9906_v0 = vld [vmem:[%s14341_s1 + $0x1924] ss:$16 sps:$4 sm:$0xff]  }
 0x1a2   : > { %7098 = vmatpush1.bf16.msra.mxu1 %v9853_v1  ;;  %7056 = vmatprep.subr.bf16.mxu0 %v9858_v2  ;;  %v9909_v1 = vld [vmem:[%s14341_s1 + $0x1b24] ss:$16 sps:$4 sm:$0xff]   ;;  %v9904_v2 = vld [vmem:[%s14341_s1 + $0x1920] ss:$16 sps:$4 sm:$0xff]  }
 0x1a3   : > { %7099 = vmatprep.subr.bf16.mxu1 %v9861_v3  ;;  %v9907_v3 = vld [vmem:[%s14341_s1 + $0x1b20] ss:$16 sps:$4 sm:$0xff]  }
 0x1a5   : > { %7057 = vmatpush1.bf16.msra.mxu0 %v9856_v4  ;;  %v9912_v4 = vld [vmem:[%s14341_s1 + $0x1904] ss:$16 sps:$4 sm:$0xff]  }
 0x1a6   : > { %7100 = vmatpush1.bf16.msra.mxu1 %v9859_v5  ;;  %7058 = vmatprep.subr.bf16.mxu0 %v9864_v14  ;;  %v9915_v5 = vld [vmem:[%s14341_s1 + $0x1b04] ss:$16 sps:$4 sm:$0xff]   ;;  %v9910_v14 = vld [vmem:[%s14341_s1 + $0x1900] ss:$16 sps:$4 sm:$0xff]  }
 0x1a7   : > { %7101 = vmatprep.subr.bf16.mxu1 %v9867_v46  ;;  %v9913_v46 = vld [vmem:[%s14341_s1 + $0x1b00] ss:$16 sps:$4 sm:$0xff]  }
 0x1a9   : > { %7059 = vmatpush1.bf16.msra.mxu0 %v9862_v51  ;;  %v9918_v51 = vld [vmem:[%s14341_s1 + $0x1ce4] ss:$16 sps:$4 sm:$0xff]  }
 0x1aa   : > { %7102 = vmatpush1.bf16.msra.mxu1 %v9865_v15  ;;  %7060 = vmatprep.subr.bf16.mxu0 %v9870_v16  ;;  %v9921_v15 = vld [vmem:[%s14341_s1 + $0x1ee4] ss:$16 sps:$4 sm:$0xff]  }
 0x1ab   : > { %7103 = vmatprep.subr.bf16.mxu1 %v9873_v17  ;;  %v12377_v16 = vld [vmem:[%s10958_s5 + $0x70] sm:$0xff] }
 0x1ac   : > { %v12380_v17 = vld [vmem:[%s10958_s5 + $0xf0] sm:$0xff] }
 0x1ad   : > { %7061 = vmatpush2.bf16.msra.mxu0 %v9868_v18  ;;  %v12383_v18 = vld [vmem:[%s10958_s5 + $0x78] sm:$0xff] }
 0x1ae   : > { %7104 = vmatpush2.bf16.msra.mxu1 %v9871_v19  ;;  %7062 = vmatprep.subr.bf16.mxu0 %v9876_v23  ;;  %v12386_v19 = vld [vmem:[%s10958_s5 + $0xf8] sm:$0xff]  ;;  %v9916_v23 = vld [vmem:[%s14341_s1 + $0x1ce0] ss:$16 sps:$4 sm:$0xff]  }
 0x1af   : > { %7105 = vmatprep.subr.bf16.mxu1 %v9879_v34  ;;  %v9919_v34 = vld [vmem:[%s14341_s1 + $0x1ee0] ss:$16 sps:$4 sm:$0xff]  }
 0x1b1   : > { %7063 = vmatpush2.bf16.msra.mxu0 %v9874_v40  ;;  %v12396_v40 = vcombine.low %v12153_v22, %v12167_v26  ;;  %v9922_v22 = vld [vmem:[%s14341_s1 + $0x1cc0] ss:$16 sps:$4 sm:$0xff]  }
 0x1b2   : > { %7106 = vmatpush2.bf16.msra.mxu1 %v9877_v52  ;;  %7064 = vmatprep.subr.bf16.mxu0 %v9882_v28  ;;  %v12400_v52 = vcombine.low %v12170_v27, %v12173_v32  ;;  %v9924_v28 = vld [vmem:[%s14341_s1 + $0x1cc4] ss:$16 sps:$4 sm:$0xff]   ;;  %v9925_v26 = vld [vmem:[%s14341_s1 + $0x1ec0] ss:$16 sps:$4 sm:$0xff]   ;;  %v12416_v27 = vcombine.high %v12377_v16, %v12380_v17  ;;  %v12420_v32 = vcombine.high %v12383_v18, %v12386_v19 }
 0x1b3   : > { %7107 = vmatprep.subr.bf16.mxu1 %v9885_v31  ;;  %v9927_v31 = vld [vmem:[%s14341_s1 + $0x1ec4] ss:$16 sps:$4 sm:$0xff]  }
 0x1b4   : > { %14349 = vst [vmem:[#allocation2_spill] sm:$0xff] %v12400_v52  ;;  %14350 = vst [vmem:[#allocation3_spill] sm:$0xff] %v12416_v27 }
 0x1b5   : > { %7065 = vmatpush2.bf16.msra.mxu0 %v9880_v38  ;;  %14351 = vst [vmem:[#allocation4_spill] sm:$0xff] %v12420_v32  ;;  %v9930_v38 = vld [vmem:[%s14341_s1 + $0x1ca4] ss:$16 sps:$4 sm:$0xff]  }
 0x1b6   : > { %7108 = vmatpush2.bf16.msra.mxu1 %v9883_v39  ;;  %7066 = vmatprep.subr.bf16.mxu0 %v9888_v42  ;;  %v9933_v39 = vld [vmem:[%s14341_s1 + $0x1ea4] ss:$16 sps:$4 sm:$0xff]   ;;  %v9928_v42 = vld [vmem:[%s14341_s1 + $0x1ca0] ss:$16 sps:$4 sm:$0xff]  }
 0x1b7   : > { %7109 = vmatprep.subr.bf16.mxu1 %v9891_v54  ;;  %v9931_v54 = vld [vmem:[%s14341_s1 + $0x1ea0] ss:$16 sps:$4 sm:$0xff]  }
 0x1b9   : > { %7067 = vmatpush2.bf16.msra.mxu0 %v9886_v6  ;;  %v9936_v6 = vld [vmem:[%s14341_s1 + $0x1c84] ss:$16 sps:$4 sm:$0xff]  }
 0x1ba   : > { %7110 = vmatpush2.bf16.msra.mxu1 %v9889_v7  ;;  %7068 = vmatprep.subr.bf16.mxu0 %v9894_v12  ;;  %v9939_v7 = vld [vmem:[%s14341_s1 + $0x1e84] ss:$16 sps:$4 sm:$0xff]   ;;  %v9934_v12 = vld [vmem:[%s14341_s1 + $0x1c80] ss:$16 sps:$4 sm:$0xff]  }
 0x1bb   : > { %7111 = vmatprep.subr.bf16.mxu1 %v9897_v13  ;;  %v9937_v13 = vld [vmem:[%s14341_s1 + $0x1e80] ss:$16 sps:$4 sm:$0xff]  }
 0x1bd   : > { %7069 = vmatpush2.bf16.msra.mxu0 %v9892_v58  ;;  %v9942_v58 = vld [vmem:[%s14341_s1 + $0x1c64] ss:$16 sps:$4 sm:$0xff]  }
 0x1be   : > { %7112 = vmatpush2.bf16.msra.mxu1 %v9895_v59  ;;  %7070 = vmatprep.subr.bf16.mxu0 %v9900_v60  ;;  %v9945_v59 = vld [vmem:[%s14341_s1 + $0x1e64] ss:$16 sps:$4 sm:$0xff]   ;;  %v9940_v60 = vld [vmem:[%s14341_s1 + $0x1c60] ss:$16 sps:$4 sm:$0xff]  }
 0x1bf   : > { %7113 = vmatprep.subr.bf16.mxu1 %v9903_v61  ;;  %v9943_v61 = vld [vmem:[%s14341_s1 + $0x1e60] ss:$16 sps:$4 sm:$0xff]  }
 0x1c1   : > { %7071 = vmatpush2.bf16.msra.mxu0 %v9898_v62  ;;  %v9948_v62 = vld [vmem:[%s14341_s1 + $0x1c44] ss:$16 sps:$4 sm:$0xff]  }
 0x1c2   : > { %7114 = vmatpush2.bf16.msra.mxu1 %v9901_v63  ;;  %7072 = vmatprep.subr.bf16.mxu0 %v9906_v0  ;;  %v9951_v63 = vld [vmem:[%s14341_s1 + $0x1e44] ss:$16 sps:$4 sm:$0xff]   ;;  %v9946_v0 = vld [vmem:[%s14341_s1 + $0x1c40] ss:$16 sps:$4 sm:$0xff]  }
 0x1c3   : > { %7115 = vmatprep.subr.bf16.mxu1 %v9909_v1  ;;  %v9949_v1 = vld [vmem:[%s14341_s1 + $0x1e40] ss:$16 sps:$4 sm:$0xff]  }
 0x1c5   : > { %7073 = vmatpush2.bf16.msra.mxu0 %v9904_v2  ;;  %v9954_v2 = vld [vmem:[%s14341_s1 + $0x1c24] ss:$16 sps:$4 sm:$0xff]  }
 0x1c6   : > { %7116 = vmatpush2.bf16.msra.mxu1 %v9907_v3  ;;  %7074 = vmatprep.subr.bf16.mxu0 %v9912_v4  ;;  %v9957_v3 = vld [vmem:[%s14341_s1 + $0x1e24] ss:$16 sps:$4 sm:$0xff]   ;;  %v9952_v4 = vld [vmem:[%s14341_s1 + $0x1c20] ss:$16 sps:$4 sm:$0xff]  }
 0x1c7   : > { %7117 = vmatprep.subr.bf16.mxu1 %v9915_v5  ;;  %v9955_v5 = vld [vmem:[%s14341_s1 + $0x1e20] ss:$16 sps:$4 sm:$0xff]  }
 0x1c9   : > { %7075 = vmatpush2.bf16.msra.mxu0 %v9910_v14  ;;  %v9960_v14 = vld [vmem:[%s14341_s1 + $0x1c04] ss:$16 sps:$4 sm:$0xff]  }
 0x1ca   : > { %7118 = vmatpush2.bf16.msra.mxu1 %v9913_v46  ;;  %7130 = vmatprep.subr.bf16.mxu0 %v9918_v51  ;;  %v9963_v46 = vld [vmem:[%s14341_s1 + $0x1e04] ss:$16 sps:$4 sm:$0xff]   ;;  %v9958_v51 = vld [vmem:[%s14341_s1 + $0x1c00] ss:$16 sps:$4 sm:$0xff]  }
 0x1cb   : > { %7173 = vmatprep.subr.bf16.mxu1 %v9921_v15  ;;  %v9961_v15 = vld [vmem:[%s14341_s1 + $0x1e00] ss:$16 sps:$4 sm:$0xff]  }
 0x1cc   : > { %7077 = vmatmul.mubr.bf16.vlgmr.msra.gmra.mxu0 %v12396_v40 }
 0x1cd   : > { %7120 = vmatmul.mubr.bf16.vlgmr.msra.gmra.mxu1 %v12400_v52  ;;  %7131 = vmatpush1.bf16.msra.mxu0 %v9916_v23  ;;  %v9966_v23 = vld [vmem:[%s14341_s1 + $0x1de4] ss:$16 sps:$4 sm:$0xff]  }
 0x1ce   : > { %7174 = vmatpush1.bf16.msra.mxu1 %v9919_v34  ;;  %7132 = vmatprep.subr.bf16.mxu0 %v9924_v28  ;;  %v9969_v34 = vld [vmem:[%s14341_s1 + $0x1fe4] ss:$16 sps:$4 sm:$0xff]   ;;  %v9964_v28 = vld [vmem:[%s14341_s1 + $0x1de0] ss:$16 sps:$4 sm:$0xff]  }
 0x1cf   : > { %7175 = vmatprep.subr.bf16.mxu1 %v9927_v31  ;;  %7162 = vmatprep.mubr.bf16.mxu0 %v12416_v27  ;;  %v9967_v31 = vld [vmem:[%s14341_s1 + $0x1fe0] ss:$16 sps:$4 sm:$0xff]  }
 0x1d0   : > { %7205 = vmatprep.mubr.bf16.mxu1 %v12420_v32 }
 0x1d1   : > { %7133 = vmatpush1.bf16.msra.mxu0 %v9922_v22  ;;  %v9972_v22 = vld [vmem:[%s14341_s1 + $0x1dc4] ss:$16 sps:$4 sm:$0xff]  }
 0x1d2   : > { %7176 = vmatpush1.bf16.msra.mxu1 %v9925_v26  ;;  %7134 = vmatprep.subr.bf16.mxu0 %v9930_v38  ;;  %v9975_v26 = vld [vmem:[%s14341_s1 + $0x1fc4] ss:$16 sps:$4 sm:$0xff]   ;;  %v9970_v38 = vld [vmem:[%s14341_s1 + $0x1dc0] ss:$16 sps:$4 sm:$0xff]  }
 0x1d3   : > { %7177 = vmatprep.subr.bf16.mxu1 %v9933_v39  ;;  %v9973_v39 = vld [vmem:[%s14341_s1 + $0x1fc0] ss:$16 sps:$4 sm:$0xff]  }
 0x1d5   : > { %7135 = vmatpush1.bf16.msra.mxu0 %v9928_v42  ;;  %v9978_v42 = vld [vmem:[%s14341_s1 + $0x1da4] ss:$16 sps:$4 sm:$0xff]  }
 0x1d6   : > { %7178 = vmatpush1.bf16.msra.mxu1 %v9931_v54  ;;  %7136 = vmatprep.subr.bf16.mxu0 %v9936_v6  ;;  %v9981_v54 = vld [vmem:[%s14341_s1 + $0x1fa4] ss:$16 sps:$4 sm:$0xff]   ;;  %v9976_v6 = vld [vmem:[%s14341_s1 + $0x1da0] ss:$16 sps:$4 sm:$0xff]  }
 0x1d7   : > { %7179 = vmatprep.subr.bf16.mxu1 %v9939_v7  ;;  %v9979_v7 = vld [vmem:[%s14341_s1 + $0x1fa0] ss:$16 sps:$4 sm:$0xff]  }
 0x1d9   : > { %7137 = vmatpush1.bf16.msra.mxu0 %v9934_v12  ;;  %v9984_v12 = vld [vmem:[%s14341_s1 + $0x1d84] ss:$16 sps:$4 sm:$0xff]  }
 0x1da   : > { %7180 = vmatpush1.bf16.msra.mxu1 %v9937_v13  ;;  %7138 = vmatprep.subr.bf16.mxu0 %v9942_v58  ;;  %v9987_v13 = vld [vmem:[%s14341_s1 + $0x1f84] ss:$16 sps:$4 sm:$0xff]   ;;  %v9982_v58 = vld [vmem:[%s14341_s1 + $0x1d80] ss:$16 sps:$4 sm:$0xff]  }
 0x1db   : > { %7181 = vmatprep.subr.bf16.mxu1 %v9945_v59  ;;  %v9985_v59 = vld [vmem:[%s14341_s1 + $0x1f80] ss:$16 sps:$4 sm:$0xff]  }
 0x1dd   : > { %7139 = vmatpush1.bf16.msra.mxu0 %v9940_v60  ;;  %v9990_v60 = vld [vmem:[%s14341_s1 + $0x1d64] ss:$16 sps:$4 sm:$0xff]  }
 0x1de   : > { %7182 = vmatpush1.bf16.msra.mxu1 %v9943_v61  ;;  %7140 = vmatprep.subr.bf16.mxu0 %v9948_v62  ;;  %v9993_v61 = vld [vmem:[%s14341_s1 + $0x1f64] ss:$16 sps:$4 sm:$0xff]   ;;  %v9988_v62 = vld [vmem:[%s14341_s1 + $0x1d60] ss:$16 sps:$4 sm:$0xff]  }
 0x1df   : > { %7183 = vmatprep.subr.bf16.mxu1 %v9951_v63  ;;  %v9991_v63 = vld [vmem:[%s14341_s1 + $0x1f60] ss:$16 sps:$4 sm:$0xff]  }
 0x1e1   : > { %7141 = vmatpush1.bf16.msra.mxu0 %v9946_v0  ;;  %v9996_v0 = vld [vmem:[%s14341_s1 + $0x1d44] ss:$16 sps:$4 sm:$0xff]  }
 0x1e2   : > { %7184 = vmatpush1.bf16.msra.mxu1 %v9949_v1  ;;  %7142 = vmatprep.subr.bf16.mxu0 %v9954_v2  ;;  %v9999_v1 = vld [vmem:[%s14341_s1 + $0x1f44] ss:$16 sps:$4 sm:$0xff]   ;;  %v9994_v2 = vld [vmem:[%s14341_s1 + $0x1d40] ss:$16 sps:$4 sm:$0xff]  }
 0x1e3   : > { %7185 = vmatprep.subr.bf16.mxu1 %v9957_v3  ;;  %v9997_v3 = vld [vmem:[%s14341_s1 + $0x1f40] ss:$16 sps:$4 sm:$0xff]  }
 0x1e5   : > { %7143 = vmatpush1.bf16.msra.mxu0 %v9952_v4  ;;  %v10002_v4 = vld [vmem:[%s14341_s1 + $0x1d24] ss:$16 sps:$4 sm:$0xff]  }
 0x1e6   : > { %7186 = vmatpush1.bf16.msra.mxu1 %v9955_v5  ;;  %7144 = vmatprep.subr.bf16.mxu0 %v9960_v14  ;;  %v10005_v5 = vld [vmem:[%s14341_s1 + $0x1f24] ss:$16 sps:$4 sm:$0xff]   ;;  %v10000_v14 = vld [vmem:[%s14341_s1 + $0x1d20] ss:$16 sps:$4 sm:$0xff]  }
 0x1e7   : > { %7187 = vmatprep.subr.bf16.mxu1 %v9963_v46  ;;  %v10003_v46 = vld [vmem:[%s14341_s1 + $0x1f20] ss:$16 sps:$4 sm:$0xff]  }
 0x1e9   : > { %7145 = vmatpush1.bf16.msra.mxu0 %v9958_v51  ;;  %v10008_v51 = vld [vmem:[%s14341_s1 + $0x1d04] ss:$16 sps:$4 sm:$0xff]  }
 0x1ea   : > { %7188 = vmatpush1.bf16.msra.mxu1 %v9961_v15  ;;  %7146 = vmatprep.subr.bf16.mxu0 %v9966_v23  ;;  %v10011_v15 = vld [vmem:[%s14341_s1 + $0x1f04] ss:$16 sps:$4 sm:$0xff]   ;;  %v10006_v23 = vld [vmem:[%s14341_s1 + $0x1d00] ss:$16 sps:$4 sm:$0xff]  }
 0x1eb   : > { %7189 = vmatprep.subr.bf16.mxu1 %v9969_v34  ;;  %v10009_v34 = vld [vmem:[%s14341_s1 + $0x1f00] ss:$16 sps:$4 sm:$0xff]  }
 0x1ed   : > { %7147 = vmatpush2.bf16.msra.mxu0 %v9964_v28  ;;  %v10014_v28 = vld [vmem:[%s14341_s1 + $0xec] ss:$16 sps:$4 sm:$0xff]  }
 0x1ee   : > { %7190 = vmatpush2.bf16.msra.mxu1 %v9967_v31  ;;  %7148 = vmatprep.subr.bf16.mxu0 %v9972_v22  ;;  %v10017_v31 = vld [vmem:[%s14341_s1 + $0x2ec] ss:$16 sps:$4 sm:$0xff]   ;;  %v10012_v22 = vld [vmem:[%s14341_s1 + $0xe8] ss:$16 sps:$4 sm:$0xff]  }
 0x1ef   : > { %7191 = vmatprep.subr.bf16.mxu1 %v9975_v26  ;;  %v10015_v26 = vld [vmem:[%s14341_s1 + $0x2e8] ss:$16 sps:$4 sm:$0xff]  }
 0x1f1   : > { %7149 = vmatpush2.bf16.msra.mxu0 %v9970_v38  ;;  %v12608_v38 = vcombine.low %v12377_v16, %v12380_v17  ;;  %v10018_v16 = vld [vmem:[%s14341_s1 + $0xc8] ss:$16 sps:$4 sm:$0xff]  }
 0x1f2   : > { %7192 = vmatpush2.bf16.msra.mxu1 %v9973_v39  ;;  %7150 = vmatprep.subr.bf16.mxu0 %v9978_v42  ;;  %v12612_v39 = vcombine.low %v12383_v18, %v12386_v19  ;;  %v10020_v42 = vld [vmem:[%s14341_s1 + $0xcc] ss:$16 sps:$4 sm:$0xff]   ;;  %v10021_v17 = vld [vmem:[%s14341_s1 + $0x2c8] ss:$16 sps:$4 sm:$0xff]  }
 0x1f3   : > { %7193 = vmatprep.subr.bf16.mxu1 %v9981_v54  ;;  %14352 = vst [vmem:[#allocation5_spill] sm:$0xff] %v12608_v38  ;;  %v10023_v54 = vld [vmem:[%s14341_s1 + $0x2cc] ss:$16 sps:$4 sm:$0xff]  }
 0x1f4   : > { %14353 = vst [vmem:[#allocation6_spill] sm:$0xff] %v12612_v39  ;;  %v10026_v18 = vld [vmem:[%s14341_s1 + $0xac] ss:$16 sps:$4 sm:$0xff]  }
 0x1f5   : > { %7151 = vmatpush2.bf16.msra.mxu0 %v9976_v6  ;;  %v10029_v19 = vld [vmem:[%s14341_s1 + $0x2ac] ss:$16 sps:$4 sm:$0xff]   ;;  %v10024_v6 = vld [vmem:[%s14341_s1 + $0xa8] ss:$16 sps:$4 sm:$0xff]  }
 0x1f6   : > { %7194 = vmatpush2.bf16.msra.mxu1 %v9979_v7  ;;  %7152 = vmatprep.subr.bf16.mxu0 %v9984_v12  ;;  %v10027_v7 = vld [vmem:[%s14341_s1 + $0x2a8] ss:$16 sps:$4 sm:$0xff]   ;;  %v10032_v12 = vld [vmem:[%s14341_s1 + $0x8c] ss:$16 sps:$4 sm:$0xff]  }
 0x1f7   : > { %7195 = vmatprep.subr.bf16.mxu1 %v9987_v13  ;;  %v10035_v13 = vld [vmem:[%s14341_s1 + $0x28c] ss:$16 sps:$4 sm:$0xff]  }
 0x1f9   : > { %7153 = vmatpush2.bf16.msra.mxu0 %v9982_v58  ;;  %v10038_v58 = vld [vmem:[%s14341_s1 + $0x6c] ss:$16 sps:$4 sm:$0xff]  }
 0x1fa   : > { %7196 = vmatpush2.bf16.msra.mxu1 %v9985_v59  ;;  %7154 = vmatprep.subr.bf16.mxu0 %v9990_v60  ;;  %v10041_v59 = vld [vmem:[%s14341_s1 + $0x26c] ss:$16 sps:$4 sm:$0xff]   ;;  %v10036_v60 = vld [vmem:[%s14341_s1 + $0x68] ss:$16 sps:$4 sm:$0xff]  }
 0x1fb   : > { %7197 = vmatprep.subr.bf16.mxu1 %v9993_v61  ;;  %v10039_v61 = vld [vmem:[%s14341_s1 + $0x268] ss:$16 sps:$4 sm:$0xff]  }
 0x1fd   : > { %7155 = vmatpush2.bf16.msra.mxu0 %v9988_v62  ;;  %v10044_v62 = vld [vmem:[%s14341_s1 + $0x4c] ss:$16 sps:$4 sm:$0xff]  }
 0x1fe   : > { %7198 = vmatpush2.bf16.msra.mxu1 %v9991_v63  ;;  %7156 = vmatprep.subr.bf16.mxu0 %v9996_v0  ;;  %v10047_v63 = vld [vmem:[%s14341_s1 + $0x24c] ss:$16 sps:$4 sm:$0xff]   ;;  %v10042_v0 = vld [vmem:[%s14341_s1 + $0x48] ss:$16 sps:$4 sm:$0xff]  }
 0x1ff   : > { %7199 = vmatprep.subr.bf16.mxu1 %v9999_v1  ;;  %v10045_v1 = vld [vmem:[%s14341_s1 + $0x248] ss:$16 sps:$4 sm:$0xff]  }
 0x201   : > { %7157 = vmatpush2.bf16.msra.mxu0 %v9994_v2  ;;  %v10050_v2 = vld [vmem:[%s14341_s1 + $0x2c] ss:$16 sps:$4 sm:$0xff]  }
 0x202   : > { %7200 = vmatpush2.bf16.msra.mxu1 %v9997_v3  ;;  %7158 = vmatprep.subr.bf16.mxu0 %v10002_v4  ;;  %v10053_v3 = vld [vmem:[%s14341_s1 + $0x22c] ss:$16 sps:$4 sm:$0xff]   ;;  %v10048_v4 = vld [vmem:[%s14341_s1 + $0x28] ss:$16 sps:$4 sm:$0xff]  }
 0x203   : > { %7201 = vmatprep.subr.bf16.mxu1 %v10005_v5  ;;  %v10051_v5 = vld [vmem:[%s14341_s1 + $0x228] ss:$16 sps:$4 sm:$0xff]  }
 0x205   : > { %7159 = vmatpush2.bf16.msra.mxu0 %v10000_v14  ;;  %v10056_v14 = vld [vmem:[%s14341_s1 + $0xc] ss:$16 sps:$4 sm:$0xff]  }
 0x206   : > { %7202 = vmatpush2.bf16.msra.mxu1 %v10003_v46  ;;  %7160 = vmatprep.subr.bf16.mxu0 %v10008_v51  ;;  %v10059_v46 = vld [vmem:[%s14341_s1 + $0x20c] ss:$16 sps:$4 sm:$0xff]   ;;  %v10054_v51 = vld [vmem:[%s14341_s1 + $0x8] ss:$16 sps:$4 sm:$0xff]  }
 0x207   : > { %7203 = vmatprep.subr.bf16.mxu1 %v10011_v15  ;;  %v10057_v15 = vld [vmem:[%s14341_s1 + $0x208] ss:$16 sps:$4 sm:$0xff]  }
 0x209   : > { %7161 = vmatpush2.bf16.msra.mxu0 %v10006_v23  ;;  %v10062_v23 = vld [vmem:[%s14341_s1 + $0x1ec] ss:$16 sps:$4 sm:$0xff]  }
 0x20a   : > { %7204 = vmatpush2.bf16.msra.mxu1 %v10009_v34  ;;  %7216 = vmatprep.subr.bf16.mxu0 %v10014_v28  ;;  %v10065_v34 = vld [vmem:[%s14341_s1 + $0x3ec] ss:$16 sps:$4 sm:$0xff]   ;;  %v10060_v28 = vld [vmem:[%s14341_s1 + $0x1e8] ss:$16 sps:$4 sm:$0xff]  }
 0x20b   : > { %7259 = vmatprep.subr.bf16.mxu1 %v10017_v31  ;;  %v10063_v31 = vld [vmem:[%s14341_s1 + $0x3e8] ss:$16 sps:$4 sm:$0xff]  }
 0x20c   : > { %7163 = vmatmul.mubr.bf16.vlgmr.msra.gmra.mxu0 %v12608_v38 }
 0x20d   : > { %7206 = vmatmul.mubr.bf16.vlgmr.msra.gmra.mxu1 %v12612_v39  ;;  %7217 = vmatpush1.bf16.msra.mxu0 %v10012_v22  ;;  %v10068_v22 = vld [vmem:[%s14341_s1 + $0x1cc] ss:$16 sps:$4 sm:$0xff]  }
 0x20e   : > { %7260 = vmatpush1.bf16.msra.mxu1 %v10015_v26  ;;  %7218 = vmatprep.subr.bf16.mxu0 %v10020_v42  ;;  %v10071_v26 = vld [vmem:[%s14341_s1 + $0x3cc] ss:$16 sps:$4 sm:$0xff]   ;;  %v10066_v42 = vld [vmem:[%s14341_s1 + $0x1c8] ss:$16 sps:$4 sm:$0xff]  }
 0x20f   : > { %7261 = vmatprep.subr.bf16.mxu1 %v10023_v54  ;;  %7248 = vmatprep.mubr.bf16.mxu0 %v10979_v53  ;;  %v10030_v53 = vld [vmem:[%s14341_s1 + $0x88] ss:$16 sps:$4 sm:$0xff]   ;;  %v10254_v39 = vld [vmem:[%s14341_s1 + $0x9ec] ss:$16 sps:$4 sm:$0xff]  }
 0x210   : > { %7291 = vmatprep.mubr.bf16.mxu1 %v10984_v55  ;;  %v10033_v55 = vld [vmem:[%s14341_s1 + $0x288] ss:$16 sps:$4 sm:$0xff]  }
 0x211   : > { %7219 = vmatpush1.bf16.msra.mxu0 %v10018_v16  ;;  %v10069_v54 = vld [vmem:[%s14341_s1 + $0x3c8] ss:$16 sps:$4 sm:$0xff]   ;;  %v10074_v16 = vld [vmem:[%s14341_s1 + $0x1ac] ss:$16 sps:$4 sm:$0xff]  }
 0x212   : > { %7262 = vmatpush1.bf16.msra.mxu1 %v10021_v17  ;;  %7220 = vmatprep.subr.bf16.mxu0 %v10026_v18  ;;  %v10077_v17 = vld [vmem:[%s14341_s1 + $0x3ac] ss:$16 sps:$4 sm:$0xff]   ;;  %v10072_v18 = vld [vmem:[%s14341_s1 + $0x1a8] ss:$16 sps:$4 sm:$0xff]  }
 0x213   : > { %7263 = vmatprep.subr.bf16.mxu1 %v10029_v19  ;;  %v10075_v19 = vld [vmem:[%s14341_s1 + $0x3a8] ss:$16 sps:$4 sm:$0xff]  }
 0x215   : > { %7221 = vmatpush1.bf16.msra.mxu0 %v10024_v6  ;;  %v10080_v6 = vld [vmem:[%s14341_s1 + $0x18c] ss:$16 sps:$4 sm:$0xff]  }
 0x216   : > { %7264 = vmatpush1.bf16.msra.mxu1 %v10027_v7  ;;  %7222 = vmatprep.subr.bf16.mxu0 %v10032_v12  ;;  %v10083_v7 = vld [vmem:[%s14341_s1 + $0x38c] ss:$16 sps:$4 sm:$0xff]   ;;  %v10078_v12 = vld [vmem:[%s14341_s1 + $0x188] ss:$16 sps:$4 sm:$0xff]  }
 0x217   : > { %7265 = vmatprep.subr.bf16.mxu1 %v10035_v13  ;;  %v10081_v13 = vld [vmem:[%s14341_s1 + $0x388] ss:$16 sps:$4 sm:$0xff]  }
 0x219   : > { %7223 = vmatpush1.bf16.msra.mxu0 %v10030_v53  ;;  %v10086_v53 = vld [vmem:[%s14341_s1 + $0x16c] ss:$16 sps:$4 sm:$0xff]  }
 0x21a   : > { %7266 = vmatpush1.bf16.msra.mxu1 %v10033_v55  ;;  %7224 = vmatprep.subr.bf16.mxu0 %v10038_v58  ;;  %v10089_v55 = vld [vmem:[%s14341_s1 + $0x36c] ss:$16 sps:$4 sm:$0xff]   ;;  %v10084_v58 = vld [vmem:[%s14341_s1 + $0x168] ss:$16 sps:$4 sm:$0xff]  }
 0x21b   : > { %7267 = vmatprep.subr.bf16.mxu1 %v10041_v59  ;;  %v10087_v59 = vld [vmem:[%s14341_s1 + $0x368] ss:$16 sps:$4 sm:$0xff]  }
 0x21d   : > { %7225 = vmatpush1.bf16.msra.mxu0 %v10036_v60  ;;  %v10092_v60 = vld [vmem:[%s14341_s1 + $0x14c] ss:$16 sps:$4 sm:$0xff]  }
 0x21e   : > { %7268 = vmatpush1.bf16.msra.mxu1 %v10039_v61  ;;  %7226 = vmatprep.subr.bf16.mxu0 %v10044_v62  ;;  %v10095_v61 = vld [vmem:[%s14341_s1 + $0x34c] ss:$16 sps:$4 sm:$0xff]   ;;  %v10090_v62 = vld [vmem:[%s14341_s1 + $0x148] ss:$16 sps:$4 sm:$0xff]  }
 0x21f   : > { %7269 = vmatprep.subr.bf16.mxu1 %v10047_v63  ;;  %v10093_v63 = vld [vmem:[%s14341_s1 + $0x348] ss:$16 sps:$4 sm:$0xff]  }
 0x221   : > { %7227 = vmatpush1.bf16.msra.mxu0 %v10042_v0  ;;  %v10098_v0 = vld [vmem:[%s14341_s1 + $0x12c] ss:$16 sps:$4 sm:$0xff]  }
 0x222   : > { %7270 = vmatpush1.bf16.msra.mxu1 %v10045_v1  ;;  %7228 = vmatprep.subr.bf16.mxu0 %v10050_v2  ;;  %v10101_v1 = vld [vmem:[%s14341_s1 + $0x32c] ss:$16 sps:$4 sm:$0xff]   ;;  %v10096_v2 = vld [vmem:[%s14341_s1 + $0x128] ss:$16 sps:$4 sm:$0xff]  }
 0x223   : > { %7271 = vmatprep.subr.bf16.mxu1 %v10053_v3  ;;  %v10099_v3 = vld [vmem:[%s14341_s1 + $0x328] ss:$16 sps:$4 sm:$0xff]  }
 0x225   : > { %7229 = vmatpush1.bf16.msra.mxu0 %v10048_v4  ;;  %v10104_v4 = vld [vmem:[%s14341_s1 + $0x10c] ss:$16 sps:$4 sm:$0xff]  }
 0x226   : > { %7272 = vmatpush1.bf16.msra.mxu1 %v10051_v5  ;;  %7230 = vmatprep.subr.bf16.mxu0 %v10056_v14  ;;  %v10107_v5 = vld [vmem:[%s14341_s1 + $0x30c] ss:$16 sps:$4 sm:$0xff]   ;;  %v10102_v14 = vld [vmem:[%s14341_s1 + $0x108] ss:$16 sps:$4 sm:$0xff]  }
 0x227   : > { %7273 = vmatprep.subr.bf16.mxu1 %v10059_v46  ;;  %v10105_v46 = vld [vmem:[%s14341_s1 + $0x308] ss:$16 sps:$4 sm:$0xff]  }
 0x229   : > { %7231 = vmatpush1.bf16.msra.mxu0 %v10054_v51  ;;  %v10110_v51 = vld [vmem:[%s14341_s1 + $0x4ec] ss:$16 sps:$4 sm:$0xff]  }
 0x22a   : > { %7274 = vmatpush1.bf16.msra.mxu1 %v10057_v15  ;;  %7232 = vmatprep.subr.bf16.mxu0 %v10062_v23  ;;  %v10113_v15 = vld [vmem:[%s14341_s1 + $0x6ec] ss:$16 sps:$4 sm:$0xff]   ;;  %v10108_v23 = vld [vmem:[%s14341_s1 + $0x4e8] ss:$16 sps:$4 sm:$0xff]  }
 0x22b   : > { %7275 = vmatprep.subr.bf16.mxu1 %v10065_v34  ;;  %v10111_v34 = vld [vmem:[%s14341_s1 + $0x6e8] ss:$16 sps:$4 sm:$0xff]  }
 0x22d   : > { %7233 = vmatpush2.bf16.msra.mxu0 %v10060_v28  ;;  %v10116_v28 = vld [vmem:[%s14341_s1 + $0x4cc] ss:$16 sps:$4 sm:$0xff]  }
 0x22e   : > { %7276 = vmatpush2.bf16.msra.mxu1 %v10063_v31  ;;  %7234 = vmatprep.subr.bf16.mxu0 %v10068_v22  ;;  %v10119_v31 = vld [vmem:[%s14341_s1 + $0x6cc] ss:$16 sps:$4 sm:$0xff]   ;;  %v10114_v22 = vld [vmem:[%s14341_s1 + $0x4c8] ss:$16 sps:$4 sm:$0xff]  }
 0x22f   : > { %7277 = vmatprep.subr.bf16.mxu1 %v10071_v26  ;;  %v10117_v26 = vld [vmem:[%s14341_s1 + $0x6c8] ss:$16 sps:$4 sm:$0xff]  }
 0x231   : > { %7235 = vmatpush2.bf16.msra.mxu0 %v10066_v42  ;;  %v10122_v42 = vld [vmem:[%s14341_s1 + $0x4ac] ss:$16 sps:$4 sm:$0xff]  }
 0x232   : > { %7278 = vmatpush2.bf16.msra.mxu1 %v10069_v54  ;;  %7236 = vmatprep.subr.bf16.mxu0 %v10074_v16  ;;  %v10125_v54 = vld [vmem:[%s14341_s1 + $0x6ac] ss:$16 sps:$4 sm:$0xff]   ;;  %v10120_v16 = vld [vmem:[%s14341_s1 + $0x4a8] ss:$16 sps:$4 sm:$0xff]  }
 0x233   : > { %7279 = vmatprep.subr.bf16.mxu1 %v10077_v17  ;;  %v10131_v17 = vld [vmem:[%s14341_s1 + $0x68c] ss:$16 sps:$4 sm:$0xff]  }
 0x235   : > { %7237 = vmatpush2.bf16.msra.mxu0 %v10072_v18  ;;  %v10126_v18 = vld [vmem:[%s14341_s1 + $0x488] ss:$16 sps:$4 sm:$0xff]  }
 0x236   : > { %7280 = vmatpush2.bf16.msra.mxu1 %v10075_v19  ;;  %7238 = vmatprep.subr.bf16.mxu0 %v10080_v6  ;;  %v10137_v19 = vld [vmem:[%s14341_s1 + $0x66c] ss:$16 sps:$4 sm:$0xff]   ;;  %v10132_v6 = vld [vmem:[%s14341_s1 + $0x468] ss:$16 sps:$4 sm:$0xff]  }
 0x237   : > { %7281 = vmatprep.subr.bf16.mxu1 %v10083_v7  ;;  %v10135_v7 = vld [vmem:[%s14341_s1 + $0x668] ss:$16 sps:$4 sm:$0xff]  }
 0x239   : > { %7239 = vmatpush2.bf16.msra.mxu0 %v10078_v12  ;;  %v10140_v12 = vld [vmem:[%s14341_s1 + $0x44c] ss:$16 sps:$4 sm:$0xff]  }
 0x23a   : > { %7282 = vmatpush2.bf16.msra.mxu1 %v10081_v13  ;;  %7240 = vmatprep.subr.bf16.mxu0 %v10086_v53  ;;  %v10143_v13 = vld [vmem:[%s14341_s1 + $0x64c] ss:$16 sps:$4 sm:$0xff]   ;;  %v10138_v53 = vld [vmem:[%s14341_s1 + $0x448] ss:$16 sps:$4 sm:$0xff]  }
 0x23b   : > { %7283 = vmatprep.subr.bf16.mxu1 %v10089_v55  ;;  %v10141_v55 = vld [vmem:[%s14341_s1 + $0x648] ss:$16 sps:$4 sm:$0xff]  }
 0x23d   : > { %7241 = vmatpush2.bf16.msra.mxu0 %v10084_v58  ;;  %v10146_v58 = vld [vmem:[%s14341_s1 + $0x42c] ss:$16 sps:$4 sm:$0xff]  }
 0x23e   : > { %7284 = vmatpush2.bf16.msra.mxu1 %v10087_v59  ;;  %7242 = vmatprep.subr.bf16.mxu0 %v10092_v60  ;;  %v10149_v59 = vld [vmem:[%s14341_s1 + $0x62c] ss:$16 sps:$4 sm:$0xff]   ;;  %v10144_v60 = vld [vmem:[%s14341_s1 + $0x428] ss:$16 sps:$4 sm:$0xff]  }
 0x23f   : > { %7285 = vmatprep.subr.bf16.mxu1 %v10095_v61  ;;  %v10147_v61 = vld [vmem:[%s14341_s1 + $0x628] ss:$16 sps:$4 sm:$0xff]  }
 0x241   : > { %7243 = vmatpush2.bf16.msra.mxu0 %v10090_v62  ;;  %v10152_v62 = vld [vmem:[%s14341_s1 + $0x40c] ss:$16 sps:$4 sm:$0xff]  }
 0x242   : > { %7286 = vmatpush2.bf16.msra.mxu1 %v10093_v63  ;;  %7244 = vmatprep.subr.bf16.mxu0 %v10098_v0  ;;  %v10155_v63 = vld [vmem:[%s14341_s1 + $0x60c] ss:$16 sps:$4 sm:$0xff]   ;;  %v10150_v0 = vld [vmem:[%s14341_s1 + $0x408] ss:$16 sps:$4 sm:$0xff]  }
 0x243   : > { %7287 = vmatprep.subr.bf16.mxu1 %v10101_v1  ;;  %v10153_v1 = vld [vmem:[%s14341_s1 + $0x608] ss:$16 sps:$4 sm:$0xff]  }
 0x245   : > { %7245 = vmatpush2.bf16.msra.mxu0 %v10096_v2  ;;  %v10158_v2 = vld [vmem:[%s14341_s1 + $0x5ec] ss:$16 sps:$4 sm:$0xff]  }
 0x246   : > { %7288 = vmatpush2.bf16.msra.mxu1 %v10099_v3  ;;  %7246 = vmatprep.subr.bf16.mxu0 %v10104_v4  ;;  %v10161_v3 = vld [vmem:[%s14341_s1 + $0x7ec] ss:$16 sps:$4 sm:$0xff]   ;;  %v10156_v4 = vld [vmem:[%s14341_s1 + $0x5e8] ss:$16 sps:$4 sm:$0xff]  }
 0x247   : > { %7289 = vmatprep.subr.bf16.mxu1 %v10107_v5  ;;  %v10159_v5 = vld [vmem:[%s14341_s1 + $0x7e8] ss:$16 sps:$4 sm:$0xff]  }
 0x249   : > { %7247 = vmatpush2.bf16.msra.mxu0 %v10102_v14  ;;  %v12910_v14 = vpop.f32.mrf.mxu0 }
 0x24a   : > { %7290 = vmatpush2.bf16.msra.mxu1 %v10105_v46  ;;  %7302 = vmatprep.subr.bf16.mxu0 %v10110_v51  ;;  %v12912_v46 = vpop.f32.mrf.mxu1  ;;  %v10164_v51 = vld [vmem:[%s14341_s1 + $0x5cc] ss:$16 sps:$4 sm:$0xff]  }
 0x24b   : > { %7345 = vmatprep.subr.bf16.mxu1 %v10113_v15  ;;  %v10167_v15 = vld [vmem:[%s14341_s1 + $0x7cc] ss:$16 sps:$4 sm:$0xff]  }
 0x24c   : > { %7249 = vmatmul.mubr.bf16.vlgmr.msra.gmra.mxu0 %v11036_v8  ;;  %v10123_v8 = vld [vmem:[%s14341_s1 + $0x6a8] ss:$16 sps:$4 sm:$0xff]  }
 0x24d   : > { %7292 = vmatmul.mubr.bf16.vlgmr.msra.gmra.mxu1 %v11038_v9  ;;  %7303 = vmatpush1.bf16.msra.mxu0 %v10108_v23  ;;  %v10128_v9 = vld [vmem:[%s14341_s1 + $0x48c] ss:$16 sps:$4 sm:$0xff]   ;;  %v10162_v23 = vld [vmem:[%s14341_s1 + $0x5c8] ss:$16 sps:$4 sm:$0xff]  }
 0x24e   : > { %7346 = vmatpush1.bf16.msra.mxu1 %v10111_v34  ;;  %7304 = vmatprep.subr.bf16.mxu0 %v10116_v28  ;;  %v10165_v34 = vld [vmem:[%s14341_s1 + $0x7c8] ss:$16 sps:$4 sm:$0xff]   ;;  %v12926_v28 = vpop.f32.mrf.mxu0 }
 0x24f   : > { %7347 = vmatprep.subr.bf16.mxu1 %v10119_v31  ;;  %7334 = vmatprep.mubr.bf16.mxu0 %v11137_v41  ;;  %v10129_v41 = vld [vmem:[%s14341_s1 + $0x688] ss:$16 sps:$4 sm:$0xff]   ;;  %v12928_v31 = vpop.f32.mrf.mxu1 }
 0x250   : > { %7377 = vmatprep.mubr.bf16.mxu1 %v11144_v43  ;;  %v10134_v43 = vld [vmem:[%s14341_s1 + $0x46c] ss:$16 sps:$4 sm:$0xff]   ;;  %v6608_v38 = vadd.f32 %v12928_v31, %v12926_v28 }
 0x251   : > { %7305 = vmatpush1.bf16.msra.mxu0 %v10114_v22  ;;  %v10170_v22 = vld [vmem:[%s14341_s1 + $0x5ac] ss:$16 sps:$4 sm:$0xff]  }
 0x252   : > { %7348 = vmatpush1.bf16.msra.mxu1 %v10117_v26  ;;  %7306 = vmatprep.subr.bf16.mxu0 %v10122_v42  ;;  %v10173_v26 = vld [vmem:[%s14341_s1 + $0x7ac] ss:$16 sps:$4 sm:$0xff]   ;;  %v10168_v42 = vld [vmem:[%s14341_s1 + $0x5a8] ss:$16 sps:$4 sm:$0xff]  }
 0x253   : > { %7349 = vmatprep.subr.bf16.mxu1 %v10125_v54  ;;  %v10171_v54 = vld [vmem:[%s14341_s1 + $0x7a8] ss:$16 sps:$4 sm:$0xff]  }
 0x255   : > { %7307 = vmatpush1.bf16.msra.mxu0 %v10120_v16  ;;  %v12942_v16 = vpop.f32.mrf.mxu0 }
 0x256   : > { %7350 = vmatpush1.bf16.msra.mxu1 %v10123_v8  ;;  %7308 = vmatprep.subr.bf16.mxu0 %v10128_v9  ;;  %v12944_v8 = vpop.f32.mrf.mxu1  ;;  %v10176_v9 = vld [vmem:[%s14341_s1 + $0x58c] ss:$16 sps:$4 sm:$0xff]  }
 0x257   : > { %7351 = vmatprep.subr.bf16.mxu1 %v10131_v17  ;;  %v10179_v17 = vld [vmem:[%s14341_s1 + $0x78c] ss:$16 sps:$4 sm:$0xff]   ;;  %v6610_v28 = vadd.f32 %v12944_v8, %v12942_v16 }
 0x258   : > { %v10269_v8 = vld [vmem:[%s14341_s1 + $0xbac] ss:$16 sps:$4 sm:$0xff]  }
 0x259   : > { %7309 = vmatpush1.bf16.msra.mxu0 %v10126_v18  ;;  %v10174_v18 = vld [vmem:[%s14341_s1 + $0x588] ss:$16 sps:$4 sm:$0xff]  }
 0x25a   : > { %7352 = vmatpush1.bf16.msra.mxu1 %v10129_v41  ;;  %7310 = vmatprep.subr.bf16.mxu0 %v10134_v43  ;;  %v10177_v41 = vld [vmem:[%s14341_s1 + $0x788] ss:$16 sps:$4 sm:$0xff]   ;;  %v12958_v43 = vpop.f32.mrf.mxu0 }
 0x25b   : > { %7353 = vmatprep.subr.bf16.mxu1 %v10137_v19  ;;  %v12960_v19 = vpop.f32.mrf.mxu1 }
 0x25d   : > { %7311 = vmatpush1.bf16.msra.mxu0 %v10132_v6  ;;  %v10182_v6 = vld [vmem:[%s14341_s1 + $0x56c] ss:$16 sps:$4 sm:$0xff]  }
 0x25e   : > { %7354 = vmatpush1.bf16.msra.mxu1 %v10135_v7  ;;  %7312 = vmatprep.subr.bf16.mxu0 %v10140_v12  ;;  %v10185_v7 = vld [vmem:[%s14341_s1 + $0x76c] ss:$16 sps:$4 sm:$0xff]   ;;  %v12968_v12 = vpop.f32.mrf.mxu0 }
 0x25f   : > { %7355 = vmatprep.subr.bf16.mxu1 %v10143_v13  ;;  %v12970_v13 = vpop.f32.mrf.mxu1 }
 0x261   : > { %7313 = vmatpush1.bf16.msra.mxu0 %v10138_v53  ;;  %v10180_v53 = vld [vmem:[%s14341_s1 + $0x568] ss:$16 sps:$4 sm:$0xff]  }
 0x262   : > { %7356 = vmatpush1.bf16.msra.mxu1 %v10141_v55  ;;  %7314 = vmatprep.subr.bf16.mxu0 %v10146_v58  ;;  %v10183_v55 = vld [vmem:[%s14341_s1 + $0x768] ss:$16 sps:$4 sm:$0xff]   ;;  %v10188_v58 = vld [vmem:[%s14341_s1 + $0x54c] ss:$16 sps:$4 sm:$0xff]  }
 0x263   : > { %7357 = vmatprep.subr.bf16.mxu1 %v10149_v59  ;;  %v10191_v59 = vld [vmem:[%s14341_s1 + $0x74c] ss:$16 sps:$4 sm:$0xff]  }
 0x265   : > { %7315 = vmatpush1.bf16.msra.mxu0 %v10144_v60  ;;  %v12984_v60 = vpop.f32.mrf.mxu0 }
 0x266   : > { %7358 = vmatpush1.bf16.msra.mxu1 %v10147_v61  ;;  %7316 = vmatprep.subr.bf16.mxu0 %v10152_v62  ;;  %v12986_v61 = vpop.f32.mrf.mxu1  ;;  %v10186_v62 = vld [vmem:[%s14341_s1 + $0x548] ss:$16 sps:$4 sm:$0xff]   ;;  %v6651_v31 = vadd.f32 %v12984_v60, %v6608_v38 }
 0x267   : > { %7359 = vmatprep.subr.bf16.mxu1 %v10155_v63  ;;  %v10189_v63 = vld [vmem:[%s14341_s1 + $0x748] ss:$16 sps:$4 sm:$0xff]  }
 0x269   : > { %7317 = vmatpush1.bf16.msra.mxu0 %v10150_v0  ;;  %v10194_v0 = vld [vmem:[%s14341_s1 + $0x52c] ss:$16 sps:$4 sm:$0xff]  }
 0x26a   : > { %7360 = vmatpush1.bf16.msra.mxu1 %v10153_v1  ;;  %7318 = vmatprep.subr.bf16.mxu0 %v10158_v2  ;;  %v10197_v1 = vld [vmem:[%s14341_s1 + $0x72c] ss:$16 sps:$4 sm:$0xff]   ;;  %v13000_v2 = vpop.f32.mrf.mxu0 }
 0x26b   : > { %7361 = vmatprep.subr.bf16.mxu1 %v10161_v3  ;;  %v13002_v3 = vpop.f32.mrf.mxu1 }
 0x26d   : > { %7319 = vmatpush2.bf16.msra.mxu0 %v10156_v4  ;;  %v10192_v4 = vld [vmem:[%s14341_s1 + $0x528] ss:$16 sps:$4 sm:$0xff]  }
 0x26e   : > { %7362 = vmatpush2.bf16.msra.mxu1 %v10159_v5  ;;  %7320 = vmatprep.subr.bf16.mxu0 %v10164_v51  ;;  %v10195_v5 = vld [vmem:[%s14341_s1 + $0x728] ss:$16 sps:$4 sm:$0xff]   ;;  %v10200_v51 = vld [vmem:[%s14341_s1 + $0x50c] ss:$16 sps:$4 sm:$0xff]  }
 0x26f   : > { %7363 = vmatprep.subr.bf16.mxu1 %v10167_v15  ;;  %v10203_v15 = vld [vmem:[%s14341_s1 + $0x70c] ss:$16 sps:$4 sm:$0xff]  }
 0x271   : > { %7321 = vmatpush2.bf16.msra.mxu0 %v10162_v23  ;;  %v13016_v23 = vpop.f32.mrf.mxu0 }
 0x272   : > { %7364 = vmatpush2.bf16.msra.mxu1 %v10165_v34  ;;  %7322 = vmatprep.subr.bf16.mxu0 %v10170_v22  ;;  %v13018_v34 = vpop.f32.mrf.mxu1  ;;  %v10198_v22 = vld [vmem:[%s14341_s1 + $0x508] ss:$16 sps:$4 sm:$0xff]  }
 0x273   : > { %7365 = vmatprep.subr.bf16.mxu1 %v10173_v26  ;;  %v10201_v26 = vld [vmem:[%s14341_s1 + $0x708] ss:$16 sps:$4 sm:$0xff]  }
 0x275   : > { %7323 = vmatpush2.bf16.msra.mxu0 %v10168_v42  ;;  %v13026_v42 = vpop.f32.mrf.mxu0 }
 0x276   : > { %7366 = vmatpush2.bf16.msra.mxu1 %v10171_v54  ;;  %7324 = vmatprep.subr.bf16.mxu0 %v10176_v9  ;;  %v13028_v54 = vpop.f32.mrf.mxu1  ;;  %v10206_v9 = vld [vmem:[%s14341_s1 + $0x8ec] ss:$16 sps:$4 sm:$0xff]  }
 0x277   : > { %7367 = vmatprep.subr.bf16.mxu1 %v10179_v17  ;;  %v10209_v17 = vld [vmem:[%s14341_s1 + $0xaec] ss:$16 sps:$4 sm:$0xff]  }
 0x279   : > { %7325 = vmatpush2.bf16.msra.mxu0 %v10174_v18  ;;  %v10204_v18 = vld [vmem:[%s14341_s1 + $0x8e8] ss:$16 sps:$4 sm:$0xff]  }
 0x27a   : > { %7368 = vmatpush2.bf16.msra.mxu1 %v10177_v41  ;;  %7326 = vmatprep.subr.bf16.mxu0 %v10182_v6  ;;  %v10207_v41 = vld [vmem:[%s14341_s1 + $0xae8] ss:$16 sps:$4 sm:$0xff]   ;;  %v13042_v6 = vpop.f32.mrf.mxu0 }
 0x27b   : > { %7369 = vmatprep.subr.bf16.mxu1 %v10185_v7  ;;  %v13044_v7 = vpop.f32.mrf.mxu1 }
 0x27d   : > { %7327 = vmatpush2.bf16.msra.mxu0 %v10180_v53  ;;  %v10212_v53 = vld [vmem:[%s14341_s1 + $0x8cc] ss:$16 sps:$4 sm:$0xff]  }
 0x27e   : > { %7370 = vmatpush2.bf16.msra.mxu1 %v10183_v55  ;;  %7328 = vmatprep.subr.bf16.mxu0 %v10188_v58  ;;  %v10215_v55 = vld [vmem:[%s14341_s1 + $0xacc] ss:$16 sps:$4 sm:$0xff]   ;;  %v10210_v58 = vld [vmem:[%s14341_s1 + $0x8c8] ss:$16 sps:$4 sm:$0xff]  }
 0x27f   : > { %7371 = vmatprep.subr.bf16.mxu1 %v10191_v59  ;;  %v10213_v59 = vld [vmem:[%s14341_s1 + $0xac8] ss:$16 sps:$4 sm:$0xff]  }
 0x281   : > { %7329 = vmatpush2.bf16.msra.mxu0 %v10186_v62  ;;  %v13060_v62 = vpop.f32.mrf.mxu0 }
 0x282   : > { %7372 = vmatpush2.bf16.msra.mxu1 %v10189_v63  ;;  %7330 = vmatprep.subr.bf16.mxu0 %v10194_v0  ;;  %v13062_v63 = vpop.f32.mrf.mxu1  ;;  %v10216_v0 = vld [vmem:[%s14341_s1 + $0x8a8] ss:$16 sps:$4 sm:$0xff]  }
 0x283   : > { %7373 = vmatprep.subr.bf16.mxu1 %v10197_v1  ;;  %v10219_v1 = vld [vmem:[%s14341_s1 + $0xaa8] ss:$16 sps:$4 sm:$0xff]  }
 0x285   : > { %7331 = vmatpush2.bf16.msra.mxu0 %v10192_v4  ;;  %v13078_v4 = vpop.f32.mrf.mxu0 }
 0x286   : > { %7374 = vmatpush2.bf16.msra.mxu1 %v10195_v5  ;;  %7332 = vmatprep.subr.bf16.mxu0 %v10200_v51  ;;  %v13080_v5 = vpop.f32.mrf.mxu1 }
 0x287   : > { %7375 = vmatprep.subr.bf16.mxu1 %v10203_v15  ;;  %v13088_v51 = vpop.f32.mrf.mxu0 }
 0x288   : > { %v13090_v15 = vpop.f32.mrf.mxu1 }
 0x289   : > { %7333 = vmatpush2.bf16.msra.mxu0 %v10198_v22  ;;  %v10222_v22 = vld [vmem:[%s14341_s1 + $0x888] ss:$16 sps:$4 sm:$0xff]  }
 0x28a   : > { %7376 = vmatpush2.bf16.msra.mxu1 %v10201_v26  ;;  %7388 = vmatprep.subr.bf16.mxu0 %v10206_v9  ;;  %v10225_v26 = vld [vmem:[%s14341_s1 + $0xa88] ss:$16 sps:$4 sm:$0xff]   ;;  %v10230_v9 = vld [vmem:[%s14341_s1 + $0x86c] ss:$16 sps:$4 sm:$0xff]  }
 0x28b   : > { %7431 = vmatprep.subr.bf16.mxu1 %v10209_v17  ;;  %v10233_v17 = vld [vmem:[%s14341_s1 + $0xa6c] ss:$16 sps:$4 sm:$0xff]  }
 0x28c   : > { %7335 = vmatmul.mubr.bf16.vlgmr.msra.gmra.mxu0 %v11258_v20  ;;  %v10218_v20 = vld [vmem:[%s14341_s1 + $0x8ac] ss:$16 sps:$4 sm:$0xff]  }
 0x28d   : > { %7378 = vmatmul.mubr.bf16.vlgmr.msra.gmra.mxu1 %v11262_v21  ;;  %7389 = vmatpush1.bf16.msra.mxu0 %v10204_v18  ;;  %v10221_v21 = vld [vmem:[%s14341_s1 + $0xaac] ss:$16 sps:$4 sm:$0xff]   ;;  %v13104_v18 = vpop.f32.mrf.mxu0 }
 0x28e   : > { %7432 = vmatpush1.bf16.msra.mxu1 %v10207_v41  ;;  %7390 = vmatprep.subr.bf16.mxu0 %v10212_v53  ;;  %v13106_v41 = vpop.f32.mrf.mxu1  ;;  %v10228_v53 = vld [vmem:[%s14341_s1 + $0x868] ss:$16 sps:$4 sm:$0xff]  }
 0x28f   : > { %7433 = vmatprep.subr.bf16.mxu1 %v10215_v55  ;;  %7420 = vmatprep.mubr.bf16.mxu0 %v11301_v33  ;;  %v10224_v33 = vld [vmem:[%s14341_s1 + $0x88c] ss:$16 sps:$4 sm:$0xff]   ;;  %v10231_v55 = vld [vmem:[%s14341_s1 + $0xa68] ss:$16 sps:$4 sm:$0xff]  }
 0x290   : > { %7463 = vmatprep.mubr.bf16.mxu1 %v11308_v35  ;;  %v10227_v35 = vld [vmem:[%s14341_s1 + $0xa8c] ss:$16 sps:$4 sm:$0xff]  }
 0x291   : > { %7391 = vmatpush1.bf16.msra.mxu0 %v10210_v58  ;;  %v10236_v58 = vld [vmem:[%s14341_s1 + $0x84c] ss:$16 sps:$4 sm:$0xff]  }
 0x292   : > { %7434 = vmatpush1.bf16.msra.mxu1 %v10213_v59  ;;  %7392 = vmatprep.subr.bf16.mxu0 %v10218_v20  ;;  %v10239_v59 = vld [vmem:[%s14341_s1 + $0xa4c] ss:$16 sps:$4 sm:$0xff]   ;;  %v13120_v20 = vpop.f32.mrf.mxu0 }
 0x293   : > { %7435 = vmatprep.subr.bf16.mxu1 %v10221_v21  ;;  %v13122_v21 = vpop.f32.mrf.mxu1 }
 0x295   : > { %7393 = vmatpush1.bf16.msra.mxu0 %v10216_v0  ;;  %v10234_v0 = vld [vmem:[%s14341_s1 + $0x848] ss:$16 sps:$4 sm:$0xff]  }
 0x296   : > { %7436 = vmatpush1.bf16.msra.mxu1 %v10219_v1  ;;  %7394 = vmatprep.subr.bf16.mxu0 %v10224_v33  ;;  %v10237_v1 = vld [vmem:[%s14341_s1 + $0xa48] ss:$16 sps:$4 sm:$0xff]   ;;  %v10242_v33 = vld [vmem:[%s14341_s1 + $0x82c] ss:$16 sps:$4 sm:$0xff]  }
 0x297   : > { %7437 = vmatprep.subr.bf16.mxu1 %v10227_v35  ;;  %v10245_v35 = vld [vmem:[%s14341_s1 + $0xa2c] ss:$16 sps:$4 sm:$0xff]  }
 0x299   : > { %7395 = vmatpush1.bf16.msra.mxu0 %v10222_v22  ;;  %v13136_v22 = vpop.f32.mrf.mxu0 }
 0x29a   : > { %7438 = vmatpush1.bf16.msra.mxu1 %v10225_v26  ;;  %7396 = vmatprep.subr.bf16.mxu0 %v10230_v9  ;;  %v13138_v26 = vpop.f32.mrf.mxu1  ;;  %v10240_v9 = vld [vmem:[%s14341_s1 + $0x828] ss:$16 sps:$4 sm:$0xff]  }
 0x29b   : > { %7439 = vmatprep.subr.bf16.mxu1 %v10233_v17  ;;  %v10243_v17 = vld [vmem:[%s14341_s1 + $0xa28] ss:$16 sps:$4 sm:$0xff]  }
 0x29d   : > { %7397 = vmatpush1.bf16.msra.mxu0 %v10228_v53  ;;  %v13146_v53 = vpop.f32.mrf.mxu0 }
 0x29e   : > { %7440 = vmatpush1.bf16.msra.mxu1 %v10231_v55  ;;  %7398 = vmatprep.subr.bf16.mxu0 %v10236_v58  ;;  %v13148_v55 = vpop.f32.mrf.mxu1  ;;  %v10248_v58 = vld [vmem:[%s14341_s1 + $0x80c] ss:$16 sps:$4 sm:$0xff]  }
 0x29f   : > { %7441 = vmatprep.subr.bf16.mxu1 %v10239_v59  ;;  %v10251_v59 = vld [vmem:[%s14341_s1 + $0xa0c] ss:$16 sps:$4 sm:$0xff]  }
 0x2a1   : > { %7399 = vmatpush1.bf16.msra.mxu0 %v10234_v0  ;;  %v10246_v0 = vld [vmem:[%s14341_s1 + $0x808] ss:$16 sps:$4 sm:$0xff]  }
 0x2a2   : > { %7442 = vmatpush1.bf16.msra.mxu1 %v10237_v1  ;;  %7400 = vmatprep.subr.bf16.mxu0 %v10242_v33  ;;  %v10249_v1 = vld [vmem:[%s14341_s1 + $0xa08] ss:$16 sps:$4 sm:$0xff]   ;;  %v13162_v33 = vpop.f32.mrf.mxu0 }
 0x2a3   : > { %7443 = vmatprep.subr.bf16.mxu1 %v10245_v35  ;;  %v13164_v35 = vpop.f32.mrf.mxu1 }
 0x2a4   : > { %v13183_v27 = vpop.f32.mrf.mxu0 }
 0x2a5   : > { %7401 = vmatpush1.bf16.msra.mxu0 %v10240_v9  ;;  %v10257_v9 = vld [vmem:[%s14341_s1 + $0xbec] ss:$16 sps:$4 sm:$0xff]   ;;  %v13185_v52 = vpop.f32.mrf.mxu1 }
 0x2a6   : > { %7444 = vmatpush1.bf16.msra.mxu1 %v10243_v17  ;;  %7402 = vmatprep.subr.bf16.mxu0 %v10248_v58  ;;  %v6606_v17 = vadd.f32 %v12912_v46, %v12910_v14  ;;  %v10252_v58 = vld [vmem:[%s14341_s1 + $0x9e8] ss:$16 sps:$4 sm:$0xff]   ;;  %v10260_v14 = vld [vmem:[%s14341_s1 + $0x9cc] ss:$16 sps:$4 sm:$0xff]   ;;  %v13206_v16 = vpop.f32.mrf.mxu0 }
 0x2a7   : > { %7445 = vmatprep.subr.bf16.mxu1 %v10251_v59  ;;  %v10255_v59 = vld [vmem:[%s14341_s1 + $0xbe8] ss:$16 sps:$4 sm:$0xff]   ;;  %v10263_v46 = vld [vmem:[%s14341_s1 + $0xbcc] ss:$16 sps:$4 sm:$0xff]   ;;  %v13208_v38 = vpop.f32.mrf.mxu1 }
 0x2a8   : > { %v6649_v32 = vadd.f32 %v12968_v12, %v6606_v17  ;;  %v6612_v12 = vadd.f32 %v12960_v19, %v12958_v43  ;;  %v6694_v43 = vadd.f32 %v12986_v61, %v6651_v31  ;;  %v13219_v60 = vpop.f32.mrf.mxu0  ;;  %v10267_v61 = vld [vmem:[%s14341_s1 + $0xba8] ss:$16 sps:$4 sm:$0xff]  }
 0x2a9   : > { %7403 = vmatpush1.bf16.msra.mxu0 %v10246_v0 }
 0x2aa   : > { %7446 = vmatpush1.bf16.msra.mxu1 %v10249_v1  ;;  %7404 = vmatprep.subr.bf16.mxu0 %v10254_v39  ;;  %v6692_v0 = vadd.f32 %v12970_v13, %v6649_v32  ;;  %v6653_v39 = vadd.f32 %v13000_v2, %v6610_v28  ;;  %v10258_v1 = vld [vmem:[%s14341_s1 + $0x9c8] ss:$16 sps:$4 sm:$0xff]   ;;  %v10266_v32 = vld [vmem:[%s14341_s1 + $0x9ac] ss:$16 sps:$4 sm:$0xff]   ;;  %v6655_v19 = vadd.f32 %v13016_v23, %v6612_v12  ;;  %v13221_v2 = vpop.f32.mrf.mxu1 }
 0x2ab   : > { %7447 = vmatprep.subr.bf16.mxu1 %v10257_v9  ;;  %v10261_v9 = vld [vmem:[%s14341_s1 + $0xbc8] ss:$16 sps:$4 sm:$0xff]   ;;  %v10272_v23 = vld [vmem:[%s14341_s1 + $0x98c] ss:$16 sps:$4 sm:$0xff]  }
 0x2ac   : > { %v6735_v13 = vadd.f32 %v13026_v42, %v6692_v0  ;;  %v6696_v17 = vadd.f32 %v13002_v3, %v6653_v39  ;;  %v10275_v3 = vld [vmem:[%s14341_s1 + $0xb8c] ss:$16 sps:$4 sm:$0xff]   ;;  %v6698_v42 = vadd.f32 %v13018_v34, %v6655_v19  ;;  %v13240_v28 = vpop.f32.mrf.mxu1  ;;  %v10270_v39 = vld [vmem:[%s14341_s1 + $0x988] ss:$16 sps:$4 sm:$0xff]  }
 0x2ad   : > { %7405 = vmatpush2.bf16.msra.mxu0 %v10252_v58  ;;  %v6737_v58 = vadd.f32 %v13042_v6, %v6694_v43  ;;  %v10273_v34 = vld [vmem:[%s14341_s1 + $0xb88] ss:$16 sps:$4 sm:$0xff]  }
 0x2ae   : > { %7448 = vmatpush2.bf16.msra.mxu1 %v10255_v59  ;;  %7406 = vmatprep.subr.bf16.mxu0 %v10260_v14  ;;  %v10264_v59 = vld [vmem:[%s14341_s1 + $0x9a8] ss:$16 sps:$4 sm:$0xff]   ;;  %v6778_v6 = vadd.f32 %v13028_v54, %v6735_v13  ;;  %v6739_v14 = vadd.f32 %v13060_v62, %v6696_v17  ;;  %v6741_v12 = vadd.f32 %v13078_v4, %v6698_v42  ;;  %v10278_v54 = vld [vmem:[%s14341_s1 + $0x96c] ss:$16 sps:$4 sm:$0xff]  }
 0x2af   : > { %7449 = vmatprep.subr.bf16.mxu1 %v10263_v46  ;;  %v6994_v46 = vpop.f32.mrf.mxu0  ;;  %v6780_v31 = vadd.f32 %v13044_v7, %v6737_v58  ;;  %v10281_v7 = vld [vmem:[%s14341_s1 + $0xb6c] ss:$16 sps:$4 sm:$0xff]   ;;  %v10276_v43 = vld [vmem:[%s14341_s1 + $0x968] ss:$16 sps:$4 sm:$0xff]  }
 0x2b0   : > { %v6821_v0 = vadd.f32 %v13088_v51, %v6778_v6  ;;  %v6782_v62 = vadd.f32 %v13062_v63, %v6739_v14  ;;  %v10279_v63 = vld [vmem:[%s14341_s1 + $0xb68] ss:$16 sps:$4 sm:$0xff]  }
 0x2b1   : > { %7407 = vmatpush2.bf16.msra.mxu0 %v10258_v1  ;;  %v6823_v4 = vadd.f32 %v13104_v18, %v6780_v31  ;;  %v6996_v51 = vpop.f32.mrf.mxu0  ;;  %v13259_v1 = vpop.f32.mrf.mxu1 }
 0x2b2   : > { %7450 = vmatpush2.bf16.msra.mxu1 %v10261_v9  ;;  %7408 = vmatprep.subr.bf16.mxu0 %v10266_v32  ;;  %v6784_v9 = vadd.f32 %v13080_v5, %v6741_v12  ;;  %v6864_v32 = vadd.f32 %v13090_v15, %v6821_v0  ;;  %v10284_v5 = vld [vmem:[%s14341_s1 + $0x94c] ss:$16 sps:$4 sm:$0xff]   ;;  %v10288_v12 = vld [vmem:[%s14341_s1 + $0x928] ss:$16 sps:$4 sm:$0xff]  }
 0x2b3   : > { %7451 = vmatprep.subr.bf16.mxu1 %v10269_v8  ;;  %v6825_v8 = vadd.f32 %v13120_v20, %v6782_v62  ;;  %v10287_v15 = vld [vmem:[%s14341_s1 + $0xb4c] ss:$16 sps:$4 sm:$0xff]   ;;  %v6866_v18 = vadd.f32 %v13106_v41, %v6823_v4  ;;  %v6998_v13 = vpop.f32.mrf.mxu0  ;;  %v7041_v17 = vpop.f32.mrf.mxu1  ;;  %v10285_v41 = vld [vmem:[%s14341_s1 + $0xb48] ss:$16 sps:$4 sm:$0xff]  }
 0x2b4   : > { %v6827_v20 = vadd.f32 %v13136_v22, %v6784_v9  ;;  %v6907_v19 = vadd.f32 %v13146_v53, %v6864_v32  ;;  %v10293_v53 = vld [vmem:[%s14341_s1 + $0xb2c] ss:$16 sps:$4 sm:$0xff]   ;;  %v10297_v62 = vld [vmem:[%s14341_s1 + $0xb08] ss:$16 sps:$4 sm:$0xff]  }
 0x2b5   : > { %7409 = vmatpush2.bf16.msra.mxu0 %v10264_v59  ;;  %v6868_v58 = vadd.f32 %v13122_v21, %v6825_v8  ;;  %v6909_v59 = vadd.f32 %v13162_v33, %v6866_v18  ;;  %v7121_v22 = vpop.f32.mrf.mxu1  ;;  %v10290_v21 = vld [vmem:[%s14341_s1 + $0x92c] ss:$16 sps:$4 sm:$0xff]  }
 0x2b6   : > { %7452 = vmatpush2.bf16.msra.mxu1 %v10267_v61  ;;  %7410 = vmatprep.subr.bf16.mxu0 %v10272_v23  ;;  %v10282_v61 = vld [vmem:[%s14341_s1 + $0x948] ss:$16 sps:$4 sm:$0xff]   ;;  %v7078_v23 = vpop.f32.mrf.mxu0  ;;  %v6870_v33 = vadd.f32 %v13138_v26, %v6827_v20 }
 0x2b7   : > { %7453 = vmatprep.subr.bf16.mxu1 %v10275_v3  ;;  %v6950_v3 = vadd.f32 %v13148_v55, %v6907_v19  ;;  %v6911_v42 = vadd.f32 %v13183_v27, %v6868_v58  ;;  %v6952_v6 = vadd.f32 %v13164_v35, %v6909_v59  ;;  %v10291_v26 = vld [vmem:[%s14341_s1 + $0xb28] ss:$16 sps:$4 sm:$0xff]   ;;  %v7123_v55 = vpop.f32.mrf.mxu1  ;;  %v10296_v27 = vld [vmem:[%s14341_s1 + $0x90c] ss:$16 sps:$4 sm:$0xff]  }
 0x2b8   : > { %v6913_v14 = vadd.f32 %v13206_v16, %v6870_v33  ;;  %v7080_v0 = vpop.f32.mrf.mxu0  ;;  %v10299_v35 = vld [vmem:[%s14341_s1 + $0xb0c] ss:$16 sps:$4 sm:$0xff]  }
 0x2b9   : > { %7411 = vmatpush2.bf16.msra.mxu0 %v10270_v39  ;;  %v6993_v31 = vadd.f32 %v13219_v60, %v6950_v3  ;;  %v6954_v16 = vadd.f32 %v13185_v52, %v6911_v42  ;;  %v6995_v60 = vadd.f32 %v6994_v46, %v6952_v6  ;;  %v7125_v9 = vpop.f32.mrf.mxu1  ;;  %v10302_v52 = vld [vmem:[%s14341_s1 + $0xcec] ss:$16 sps:$4 sm:$0xff]  }
 0x2ba   : > { %7454 = vmatpush2.bf16.msra.mxu1 %v10273_v34  ;;  %7412 = vmatprep.subr.bf16.mxu0 %v10278_v54  ;;  %v6956_v39 = vadd.f32 %v13208_v38, %v6913_v14  ;;  %v7082_v4 = vpop.f32.mrf.mxu0  ;;  %v10305_v38 = vld [vmem:[%s14341_s1 + $0xeec] ss:$16 sps:$4 sm:$0xff]  }
 0x2bb   : > { %7455 = vmatprep.subr.bf16.mxu1 %v10281_v7  ;;  %v7036_v34 = vadd.f32 %v13221_v2, %v6993_v31  ;;  %v6997_v54 = vadd.f32 %v6996_v51, %v6954_v16  ;;  %v10294_v7 = vld [vmem:[%s14341_s1 + $0x908] ss:$16 sps:$4 sm:$0xff]   ;;  %v7038_v2 = vadd.f32 %v13240_v28, %v6995_v60  ;;  %v10308_v28 = vld [vmem:[%s14341_s1 + $0xccc] ss:$16 sps:$4 sm:$0xff]  }
 0x2bc   : > { %v6999_v46 = vadd.f32 %v6998_v13, %v6956_v39 }
 0x2bd   : > { %7413 = vmatpush2.bf16.msra.mxu0 %v10276_v43  ;;  %v7079_v51 = vadd.f32 %v7078_v23, %v7036_v34  ;;  %v7040_v32 = vadd.f32 %v13259_v1, %v6997_v54  ;;  %v7081_v8 = vadd.f32 %v7080_v0, %v7038_v2  ;;  %v10300_v43 = vld [vmem:[%s14341_s1 + $0xce8] ss:$16 sps:$4 sm:$0xff]   ;;  %v10311_v1 = vld [vmem:[%s14341_s1 + $0xecc] ss:$16 sps:$4 sm:$0xff]  }
 0x2be   : > { %7456 = vmatpush2.bf16.msra.mxu1 %v10279_v63  ;;  %7414 = vmatprep.subr.bf16.mxu0 %v10284_v5  ;;  %v10303_v63 = vld [vmem:[%s14341_s1 + $0xee8] ss:$16 sps:$4 sm:$0xff]   ;;  %v7084_v5 = vpop.f32.mrf.mxu0  ;;  %v7042_v18 = vadd.f32 %v7041_v17, %v6999_v46 }
 0x2bf   : > { %7457 = vmatprep.subr.bf16.mxu1 %v10287_v15  ;;  %v7127_v15 = vpop.f32.mrf.mxu1  ;;  %v7122_v20 = vadd.f32 %v7121_v22, %v7079_v51  ;;  %v7083_v19 = vadd.f32 %v7082_v4, %v7040_v32  ;;  %v7124_v59 = vadd.f32 %v7123_v55, %v7081_v8  ;;  %v10306_v23 = vld [vmem:[%s14341_s1 + $0xcc8] ss:$16 sps:$4 sm:$0xff]   ;;  %v10323_v55 = vld [vmem:[%s14341_s1 + $0xe8c] ss:$16 sps:$4 sm:$0xff]  }
 0x2c0   : > { %v10309_v17 = vld [vmem:[%s14341_s1 + $0xec8] ss:$16 sps:$4 sm:$0xff]  }
 0x2c1   : > { %7415 = vmatpush2.bf16.msra.mxu0 %v10282_v61  ;;  %v7085_v61 = vadd.f32 %v7084_v5, %v7042_v18  ;;  %v10315_v0 = vld [vmem:[%s14341_s1 + $0xea8] ss:$16 sps:$4 sm:$0xff]   ;;  %v10332_v18 = vld [vmem:[%s14341_s1 + $0xc4c] ss:$16 sps:$4 sm:$0xff]  }
 0x2c2   : > { %7458 = vmatpush2.bf16.msra.mxu1 %v10285_v41  ;;  %7416 = vmatprep.subr.bf16.mxu0 %v10290_v21  ;;  %v10321_v4 = vld [vmem:[%s14341_s1 + $0xe88] ss:$16 sps:$4 sm:$0xff]  }
 0x2c3   : > { %7459 = vmatprep.subr.bf16.mxu1 %v10293_v53  ;;  %v7126_v53 = vadd.f32 %v7125_v9, %v7083_v19  ;;  %v7128_v14 = vadd.f32 %v7127_v15, %v7085_v61  ;;  %v10326_v9 = vld [vmem:[%s14341_s1 + $0xc6c] ss:$16 sps:$4 sm:$0xff]   ;;  %v10324_v15 = vld [vmem:[%s14341_s1 + $0xc68] ss:$16 sps:$4 sm:$0xff]  }
 0x2c5   : > { %7417 = vmatpush2.bf16.msra.mxu0 %v10288_v12 }
 0x2c6   : > { %7460 = vmatpush2.bf16.msra.mxu1 %v10291_v26  ;;  %7418 = vmatprep.subr.bf16.mxu0 %v10296_v27  ;;  %v10312_v26 = vld [vmem:[%s14341_s1 + $0xca8] ss:$16 sps:$4 sm:$0xff]  }
 0x2c7   : > { %7461 = vmatprep.subr.bf16.mxu1 %v10299_v35 }
 0x2c9   : > { %7419 = vmatpush2.bf16.msra.mxu0 %v10294_v7 }
 0x2ca   : > { %7462 = vmatpush2.bf16.msra.mxu1 %v10297_v62  ;;  %7474 = vmatprep.subr.bf16.mxu0 %v10302_v52  ;;  %v10318_v62 = vld [vmem:[%s14341_s1 + $0xc88] ss:$16 sps:$4 sm:$0xff]   ;;  %v10329_v52 = vld [vmem:[%s14341_s1 + $0xe6c] ss:$16 sps:$4 sm:$0xff]  }
 0x2cb   : > { %7517 = vmatprep.subr.bf16.mxu1 %v10305_v38 }
 0x2cc   : > { %v7164_v13 = vpop.f32.mrf.mxu0  ;;  %7421 = vmatmul.mubr.bf16.vlgmr.msra.gmra.mxu0 %v11494_v48  ;;  %v10314_v48 = vld [vmem:[%s14341_s1 + $0xcac] ss:$16 sps:$4 sm:$0xff]  }
 0x2cd   : > { %v7207_v58 = vpop.f32.mrf.mxu1  ;;  %7464 = vmatmul.mubr.bf16.vlgmr.msra.gmra.mxu1 %v11498_v49  ;;  %v7165_v41 = vadd.f32 %v7164_v13, %v7122_v20  ;;  %7475 = vmatpush1.bf16.msra.mxu0 %v10300_v43  ;;  %v10317_v49 = vld [vmem:[%s14341_s1 + $0xeac] ss:$16 sps:$4 sm:$0xff]  }
 0x2ce   : > { %7518 = vmatpush1.bf16.msra.mxu1 %v10303_v63  ;;  %v7166_v22 = vpop.f32.mrf.mxu0  ;;  %7476 = vmatprep.subr.bf16.mxu0 %v10308_v28  ;;  %v10327_v28 = vld [vmem:[%s14341_s1 + $0xe68] ss:$16 sps:$4 sm:$0xff]   ;;  %v10335_v20 = vld [vmem:[%s14341_s1 + $0xe4c] ss:$16 sps:$4 sm:$0xff]  }
 0x2cf   : > { %v7209_v21 = vpop.f32.mrf.mxu1  ;;  %7519 = vmatprep.subr.bf16.mxu1 %v10311_v1  ;;  %v7167_v33 = vadd.f32 %v7166_v22, %v7124_v59  ;;  %7506 = vmatprep.mubr.bf16.mxu0 %v11514_v29  ;;  %v7208_v3 = vadd.f32 %v7207_v58, %v7165_v41  ;;  %v10333_v22 = vld [vmem:[%s14341_s1 + $0xe48] ss:$16 sps:$4 sm:$0xff]  }
 0x2d0   : > { %7549 = vmatprep.mubr.bf16.mxu1 %v11518_v30  ;;  %v7168_v42 = vpop.f32.mrf.mxu0  ;;  %v10320_v30 = vld [vmem:[%s14341_s1 + $0xc8c] ss:$16 sps:$4 sm:$0xff]  }
 0x2d1   : > { %v7211_v6 = vpop.f32.mrf.mxu1  ;;  %v7210_v31 = vadd.f32 %v7209_v21, %v7167_v33  ;;  %v7169_v12 = vadd.f32 %v7168_v42, %v7126_v53  ;;  %7477 = vmatpush1.bf16.msra.mxu0 %v10306_v23  ;;  %v7994_v60 = vmul.f32 %v7208_v3, %v7208_v3 }
 0x2d2   : > { %7520 = vmatpush1.bf16.msra.mxu1 %v10309_v17  ;;  %v7170_v29 = vpop.f32.mrf.mxu0  ;;  %7478 = vmatprep.subr.bf16.mxu0 %v10314_v48  ;;  %v10330_v17 = vld [vmem:[%s14341_s1 + $0xc48] ss:$16 sps:$4 sm:$0xff]   ;;  %v10338_v48 = vld [vmem:[%s14341_s1 + $0xc2c] ss:$16 sps:$4 sm:$0xff]  }
 0x2d3   : > { %7521 = vmatprep.subr.bf16.mxu1 %v10317_v49  ;;  %v9231_v27 = vpack.c.bf16 %v7210_v31, %v7208_v3  ;;  %v7212_v35 = vadd.f32 %v7211_v6, %v7169_v12  ;;  %v7171_v16 = vadd.f32 %v7170_v29, %v7128_v14  ;;  %v7213_v39 = vpop.f32.mrf.mxu1  ;;  %v7995_v32 = vmul.f32 %v7210_v31, %v7210_v31  ;;  %v10341_v49 = vld [vmem:[%s14341_s1 + $0xe2c] ss:$16 sps:$4 sm:$0xff]   ;;  %v10336_v14 = vld [vmem:[%s14341_s1 + $0xc28] ss:$16 sps:$4 sm:$0xff]  }
 0x2d4   : > { %v10347_v29 = vld [vmem:[%s14341_s1 + $0xe0c] ss:$16 sps:$4 sm:$0xff]  }
 0x2d5   : > { %7928 = vst [vmem:[%s13366_s20] sm:$0xff] %v9231_v27  ;;  %v7932_v34 = vadd.f32 %v7212_v35, %v7208_v3  ;;  %v7998_v54 = vmul.f32 %v7212_v35, %v7212_v35  ;;  %v7214_v7 = vadd.f32 %v7213_v39, %v7171_v16  ;;  %7479 = vmatpush1.bf16.msra.mxu0 %v10312_v26  ;;  %v10342_v16 = vld [vmem:[%s14341_s1 + $0xc08] ss:$16 sps:$4 sm:$0xff]  }
 0x2d6   : > { %7522 = vmatpush1.bf16.msra.mxu1 %v10315_v0  ;;  %7480 = vmatprep.subr.bf16.mxu0 %v10320_v30  ;;  %v10344_v0 = vld [vmem:[%s14341_s1 + $0xc0c] ss:$16 sps:$4 sm:$0xff]  }
 0x2d7   : > { %7523 = vmatprep.subr.bf16.mxu1 %v10323_v55  ;;  %v7933_v38 = vrot.slane %v7932_v34, 4  ;;  %v8002_v2 = vadd.f32 %v7998_v54, %v7994_v60  ;;  %v9233_v46 = vpack.c.bf16 %v7214_v7, %v7212_v35  ;;  %v7939_v51 = vadd.f32 %v7214_v7, %v7210_v31  ;;  %v10339_v31 = vld [vmem:[%s14341_s1 + $0xe28] ss:$16 sps:$4 sm:$0xff]   ;;  %v10350_v54 = vld [vmem:[%s14341_s1 + $0xdec] ss:$16 sps:$4 sm:$0xff]  }
 0x2d8   : > { %v7999_v8 = vmul.f32 %v7214_v7, %v7214_v7  ;;  %v10345_v60 = vld [vmem:[%s14341_s1 + $0xe08] ss:$16 sps:$4 sm:$0xff]   ;;  %v10353_v7 = vld [vmem:[%s14341_s1 + $0xfec] ss:$16 sps:$4 sm:$0xff]  }
 0x2d9   : > { %v7934_v43 = vadd.f32 %v7933_v38, %v7932_v34  ;;  %v8003_v63 = vrot.slane %v8002_v2, 4  ;;  %7930 = vst [vmem:[%s13366_s20 + $0x10] sm:$0xff] %v9233_v46  ;;  %v7940_v5 = vrot.slane %v7939_v51, 4  ;;  %7481 = vmatpush1.bf16.msra.mxu0 %v10318_v62  ;;  %v10359_v38 = vld [vmem:[%s14341_s1 + $0xfcc] ss:$16 sps:$4 sm:$0xff]  }
 0x2da   : > { %7524 = vmatpush1.bf16.msra.mxu1 %v10321_v4  ;;  %v8009_v1 = vadd.f32 %v7999_v8, %v7995_v32  ;;  %7482 = vmatprep.subr.bf16.mxu0 %v10326_v9  ;;  %v10348_v4 = vld [vmem:[%s14341_s1 + $0xde8] ss:$16 sps:$4 sm:$0xff]   ;;  %v10365_v32 = vld [vmem:[%s14341_s1 + $0xfac] ss:$16 sps:$4 sm:$0xff]  }
 0x2db   : > { %7525 = vmatprep.subr.bf16.mxu1 %v10329_v52  ;;  %v7935_v19 = vrot.slane %v7934_v43, 2  ;;  %v8004_v13 = vadd.f32 %v8003_v63, %v8002_v2  ;;  %v7941_v58 = vadd.f32 %v7940_v5, %v7939_v51  ;;  %v10351_v9 = vld [vmem:[%s14341_s1 + $0xfe8] ss:$16 sps:$4 sm:$0xff]   ;;  %v10356_v52 = vld [vmem:[%s14341_s1 + $0xdcc] ss:$16 sps:$4 sm:$0xff]  }
 0x2dc   : > { %v8010_v59 = vrot.slane %v8009_v1, 4  ;;  %v10354_v2 = vld [vmem:[%s14341_s1 + $0xdc8] ss:$16 sps:$4 sm:$0xff]   ;;  %v10362_v51 = vld [vmem:[%s14341_s1 + $0xdac] ss:$16 sps:$4 sm:$0xff]  }
 0x2dd   : > { %v7936_v61 = vadd.f32 %v7935_v19, %v7934_v43  ;;  %v8005_v41 = vrot.slane %v8004_v13, 2  ;;  %v7942_v23 = vrot.slane %v7941_v58, 2  ;;  %7483 = vmatpush1.bf16.msra.mxu0 %v10324_v15  ;;  %v10357_v46 = vld [vmem:[%s14341_s1 + $0xfc8] ss:$16 sps:$4 sm:$0xff]   ;;  %v10368_v63 = vld [vmem:[%s14341_s1 + $0xd8c] ss:$16 sps:$4 sm:$0xff]  }
 0x2de   : > { %7526 = vmatpush1.bf16.msra.mxu1 %v10327_v28  ;;  %v8011_v21 = vadd.f32 %v8010_v59, %v8009_v1  ;;  %7484 = vmatprep.subr.bf16.mxu0 %v10332_v18  ;;  %v10360_v8 = vld [vmem:[%s14341_s1 + $0xda8] ss:$16 sps:$4 sm:$0xff]   ;;  %v10371_v5 = vld [vmem:[%s14341_s1 + $0xf8c] ss:$16 sps:$4 sm:$0xff]  }
 0x2df   : > { %7527 = vmatprep.subr.bf16.mxu1 %v10335_v20  ;;  %v7937_v53 = vrot.slane %v7936_v61, 1  ;;  %v8006_v33 = vadd.f32 %v8005_v41, %v8004_v13  ;;  %v7943_v3 = vadd.f32 %v7942_v23, %v7941_v58  ;;  %v10363_v43 = vld [vmem:[%s14341_s1 + $0xfa8] ss:$16 sps:$4 sm:$0xff]   ;;  %v10374_v1 = vld [vmem:[%s14341_s1 + $0xd6c] ss:$16 sps:$4 sm:$0xff]  }
 0x2e0   : > { %v8012_v42 = vrot.slane %v8011_v21, 2  ;;  %v10366_v15 = vld [vmem:[%s14341_s1 + $0xd88] ss:$16 sps:$4 sm:$0xff]   ;;  %v10377_v18 = vld [vmem:[%s14341_s1 + $0xf6c] ss:$16 sps:$4 sm:$0xff]  }
 0x2e1   : > { %v7944_v6 = vrot.slane %v7943_v3, 1  ;;  %7485 = vmatpush1.bf16.msra.mxu0 %v10330_v17  ;;  %v8007_v12 = vrot.slane %v8006_v33, 1  ;;  %v13424_v30 = vadd.f32 %v7937_v53, %v7936_v61  ;;  %v10369_v28 = vld [vmem:[%s14341_s1 + $0xf88] ss:$16 sps:$4 sm:$0xff]   ;;  %v10380_v13 = vld [vmem:[%s14341_s1 + $0xd4c] ss:$16 sps:$4 sm:$0xff]  }
 0x2e2   : > { %7528 = vmatpush1.bf16.msra.mxu1 %v10333_v22  ;;  %v8013_v26 = vadd.f32 %v8012_v42, %v8011_v21  ;;  %7486 = vmatprep.subr.bf16.mxu0 %v10338_v48  ;;  %v10372_v20 = vld [vmem:[%s14341_s1 + $0xd68] ss:$16 sps:$4 sm:$0xff]   ;;  %v10383_v58 = vld [vmem:[%s14341_s1 + $0xf4c] ss:$16 sps:$4 sm:$0xff]  }
 0x2e3   : > { %7529 = vmatprep.subr.bf16.mxu1 %v10341_v49  ;;  %v13426_v55 = vadd.f32 %v7944_v6, %v7943_v3  ;;  %v13436_v39 = vadd.f32 %v8007_v12, %v8006_v33  ;;  %v10375_v19 = vld [vmem:[%s14341_s1 + $0xf68] ss:$16 sps:$4 sm:$0xff]   ;;  %v10386_v41 = vld [vmem:[%s14341_s1 + $0xd2c] ss:$16 sps:$4 sm:$0xff]  }
 0x2e4   : > { %v8014_v27 = vrot.slane %v8013_v26, 1  ;;  %v10378_v59 = vld [vmem:[%s14341_s1 + $0xd48] ss:$16 sps:$4 sm:$0xff]   ;;  %v10389_v23 = vld [vmem:[%s14341_s1 + $0xf2c] ss:$16 sps:$4 sm:$0xff]  }
 0x2e5   : > { %v7964_v35 = vcombine.low %v13424_v30, %v13426_v55  ;;  %7487 = vmatpush1.bf16.msra.mxu0 %v10336_v14  ;;  %v10381_v61 = vld [vmem:[%s14341_s1 + $0xf48] ss:$16 sps:$4 sm:$0xff]   ;;  %v10392_v21 = vld [vmem:[%s14341_s1 + $0xd0c] ss:$16 sps:$4 sm:$0xff]  }
 0x2e6   : > { %7530 = vmatpush1.bf16.msra.mxu1 %v10339_v31  ;;  %v13438_v34 = vadd.f32 %v8014_v27, %v8013_v26  ;;  %7488 = vmatprep.subr.bf16.mxu0 %v10344_v0  ;;  %v10384_v17 = vld [vmem:[%s14341_s1 + $0xd28] ss:$16 sps:$4 sm:$0xff]   ;;  %v10395_v48 = vld [vmem:[%s14341_s1 + $0xf0c] ss:$16 sps:$4 sm:$0xff]  }
 0x2e7   : > { %7531 = vmatprep.subr.bf16.mxu1 %v10347_v29  ;;  %v10387_v22 = vld [vmem:[%s14341_s1 + $0xf28] ss:$16 sps:$4 sm:$0xff]   ;;  %v10398_v33 = vld [vmem:[%s14341_s1 + $0x10ec] ss:$16 sps:$4 sm:$0xff]  }
 0x2e8   : > { %v8034_v62 = vcombine.low %v13436_v39, %v13438_v34  ;;  %v10390_v49 = vld [vmem:[%s14341_s1 + $0xd08] ss:$16 sps:$4 sm:$0xff]   ;;  %v10401_v3 = vld [vmem:[%s14341_s1 + $0x12ec] ss:$16 sps:$4 sm:$0xff]  }
 0x2e9   : > { %7489 = vmatpush1.bf16.msra.mxu0 %v10342_v16  ;;  %v10393_v53 = vld [vmem:[%s14341_s1 + $0xf08] ss:$16 sps:$4 sm:$0xff]   ;;  %v10404_v14 = vld [vmem:[%s14341_s1 + $0x10cc] ss:$16 sps:$4 sm:$0xff]  }
 0x2ea   : > { %7532 = vmatpush1.bf16.msra.mxu1 %v10345_v60  ;;  %7490 = vmatprep.subr.bf16.mxu0 %v10350_v54  ;;  %v10396_v42 = vld [vmem:[%s14341_s1 + $0x10e8] ss:$16 sps:$4 sm:$0xff]   ;;  %v10407_v31 = vld [vmem:[%s14341_s1 + $0x12cc] ss:$16 sps:$4 sm:$0xff]  }
 0x2eb   : > { %7533 = vmatprep.subr.bf16.mxu1 %v10353_v7  ;;  %v10399_v6 = vld [vmem:[%s14341_s1 + $0x12e8] ss:$16 sps:$4 sm:$0xff]   ;;  %v10410_v0 = vld [vmem:[%s14341_s1 + $0x10ac] ss:$16 sps:$4 sm:$0xff]  }
 0x2ec   : > { %v10402_v12 = vld [vmem:[%s14341_s1 + $0x10c8] ss:$16 sps:$4 sm:$0xff]   ;;  %v10416_v27 = vld [vmem:[%s14341_s1 + $0x108c] ss:$16 sps:$4 sm:$0xff]  }
 0x2ed   : > { %7491 = vmatpush2.bf16.msra.mxu0 %v10348_v4  ;;  %v10405_v26 = vld [vmem:[%s14341_s1 + $0x12c8] ss:$16 sps:$4 sm:$0xff]   ;;  %v10422_v60 = vld [vmem:[%s14341_s1 + $0x106c] ss:$16 sps:$4 sm:$0xff]  }
 0x2ee   : > { %7534 = vmatpush2.bf16.msra.mxu1 %v10351_v9  ;;  %7492 = vmatprep.subr.bf16.mxu0 %v10356_v52  ;;  %v10411_v29 = vld [vmem:[%s14341_s1 + $0x12a8] ss:$16 sps:$4 sm:$0xff]   ;;  %v10425_v54 = vld [vmem:[%s14341_s1 + $0x126c] ss:$16 sps:$4 sm:$0xff]  }
 0x2ef   : > { %7535 = vmatprep.subr.bf16.mxu1 %v10359_v38  ;;  %v10417_v16 = vld [vmem:[%s14341_s1 + $0x1288] ss:$16 sps:$4 sm:$0xff]   ;;  %v10428_v9 = vld [vmem:[%s14341_s1 + $0x104c] ss:$16 sps:$4 sm:$0xff]  }
 0x2f0   : > { %v10420_v7 = vld [vmem:[%s14341_s1 + $0x1068] ss:$16 sps:$4 sm:$0xff]   ;;  %v10431_v52 = vld [vmem:[%s14341_s1 + $0x124c] ss:$16 sps:$4 sm:$0xff]  }
 0x2f1   : > { %7493 = vmatpush2.bf16.msra.mxu0 %v10354_v2  ;;  %v10423_v4 = vld [vmem:[%s14341_s1 + $0x1268] ss:$16 sps:$4 sm:$0xff]  }
 0x2f2   : > { %7536 = vmatpush2.bf16.msra.mxu1 %v10357_v46  ;;  %7494 = vmatprep.subr.bf16.mxu0 %v10362_v51  ;;  %v10426_v38 = vld [vmem:[%s14341_s1 + $0x1048] ss:$16 sps:$4 sm:$0xff]   ;;  %v10434_v46 = vld [vmem:[%s14341_s1 + $0x102c] ss:$16 sps:$4 sm:$0xff]  }
 0x2f3   : > { %7537 = vmatprep.subr.bf16.mxu1 %v10365_v32  ;;  %v10429_v2 = vld [vmem:[%s14341_s1 + $0x1248] ss:$16 sps:$4 sm:$0xff]   ;;  %v10437_v51 = vld [vmem:[%s14341_s1 + $0x122c] ss:$16 sps:$4 sm:$0xff]  }
 0x2f4   : > { %v10432_v32 = vld [vmem:[%s14341_s1 + $0x1028] ss:$16 sps:$4 sm:$0xff]  }
 0x2f5   : > { %7495 = vmatpush2.bf16.msra.mxu0 %v10360_v8  ;;  %v10435_v8 = vld [vmem:[%s14341_s1 + $0x1228] ss:$16 sps:$4 sm:$0xff]  }
 0x2f6   : > { %7538 = vmatpush2.bf16.msra.mxu1 %v10363_v43  ;;  %7496 = vmatprep.subr.bf16.mxu0 %v10368_v63  ;;  %v10440_v43 = vld [vmem:[%s14341_s1 + $0x100c] ss:$16 sps:$4 sm:$0xff]  }
 0x2f7   : > { %7539 = vmatprep.subr.bf16.mxu1 %v10371_v5  ;;  %v10443_v63 = vld [vmem:[%s14341_s1 + $0x120c] ss:$16 sps:$4 sm:$0xff]   ;;  %v10438_v5 = vld [vmem:[%s14341_s1 + $0x1008] ss:$16 sps:$4 sm:$0xff]  }
 0x2f9   : > { %7497 = vmatpush2.bf16.msra.mxu0 %v10366_v15  ;;  %v10441_v15 = vld [vmem:[%s14341_s1 + $0x1208] ss:$16 sps:$4 sm:$0xff]  }
 0x2fa   : > { %7540 = vmatpush2.bf16.msra.mxu1 %v10369_v28  ;;  %7498 = vmatprep.subr.bf16.mxu0 %v10374_v1  ;;  %v10446_v28 = vld [vmem:[%s14341_s1 + $0x11ec] ss:$16 sps:$4 sm:$0xff]  }
 0x2fb   : > { %7541 = vmatprep.subr.bf16.mxu1 %v10377_v18  ;;  %v10449_v1 = vld [vmem:[%s14341_s1 + $0x13ec] ss:$16 sps:$4 sm:$0xff]   ;;  %v10444_v18 = vld [vmem:[%s14341_s1 + $0x11e8] ss:$16 sps:$4 sm:$0xff]  }
 0x2fd   : > { %7499 = vmatpush2.bf16.msra.mxu0 %v10372_v20  ;;  %v10447_v20 = vld [vmem:[%s14341_s1 + $0x13e8] ss:$16 sps:$4 sm:$0xff]  }
 0x2fe   : > { %7542 = vmatpush2.bf16.msra.mxu1 %v10375_v19  ;;  %7500 = vmatprep.subr.bf16.mxu0 %v10380_v13  ;;  %v10452_v19 = vld [vmem:[%s14341_s1 + $0x11cc] ss:$16 sps:$4 sm:$0xff]  }
 0x2ff   : > { %7543 = vmatprep.subr.bf16.mxu1 %v10383_v58  ;;  %v10455_v13 = vld [vmem:[%s14341_s1 + $0x13cc] ss:$16 sps:$4 sm:$0xff]   ;;  %v10450_v58 = vld [vmem:[%s14341_s1 + $0x11c8] ss:$16 sps:$4 sm:$0xff]  }
 0x301   : > { %7501 = vmatpush2.bf16.msra.mxu0 %v10378_v59  ;;  %v10453_v59 = vld [vmem:[%s14341_s1 + $0x13c8] ss:$16 sps:$4 sm:$0xff]  }
 0x302   : > { %7544 = vmatpush2.bf16.msra.mxu1 %v10381_v61  ;;  %7502 = vmatprep.subr.bf16.mxu0 %v10386_v41  ;;  %v10458_v61 = vld [vmem:[%s14341_s1 + $0x11ac] ss:$16 sps:$4 sm:$0xff]  }
 0x303   : > { %7545 = vmatprep.subr.bf16.mxu1 %v10389_v23  ;;  %v10461_v41 = vld [vmem:[%s14341_s1 + $0x13ac] ss:$16 sps:$4 sm:$0xff]   ;;  %v10456_v23 = vld [vmem:[%s14341_s1 + $0x11a8] ss:$16 sps:$4 sm:$0xff]  }
 0x305   : > { %7503 = vmatpush2.bf16.msra.mxu0 %v10384_v17  ;;  %v10459_v17 = vld [vmem:[%s14341_s1 + $0x13a8] ss:$16 sps:$4 sm:$0xff]  }
 0x306   : > { %7546 = vmatpush2.bf16.msra.mxu1 %v10387_v22  ;;  %7504 = vmatprep.subr.bf16.mxu0 %v10392_v21  ;;  %v10464_v22 = vld [vmem:[%s14341_s1 + $0x118c] ss:$16 sps:$4 sm:$0xff]  }
 0x307   : > { %7547 = vmatprep.subr.bf16.mxu1 %v10395_v48  ;;  %v10467_v21 = vld [vmem:[%s14341_s1 + $0x138c] ss:$16 sps:$4 sm:$0xff]   ;;  %v10462_v48 = vld [vmem:[%s14341_s1 + $0x1188] ss:$16 sps:$4 sm:$0xff]  }
 0x309   : > { %7505 = vmatpush2.bf16.msra.mxu0 %v10390_v49  ;;  %v10465_v49 = vld [vmem:[%s14341_s1 + $0x1388] ss:$16 sps:$4 sm:$0xff]  }
 0x30a   : > { %7548 = vmatpush2.bf16.msra.mxu1 %v10393_v53  ;;  %7560 = vmatprep.subr.bf16.mxu0 %v10398_v33  ;;  %v10470_v53 = vld [vmem:[%s14341_s1 + $0x116c] ss:$16 sps:$4 sm:$0xff]  }
 0x30b   : > { %7603 = vmatprep.subr.bf16.mxu1 %v10401_v3  ;;  %v10473_v33 = vld [vmem:[%s14341_s1 + $0x136c] ss:$16 sps:$4 sm:$0xff]   ;;  %v10468_v3 = vld [vmem:[%s14341_s1 + $0x1168] ss:$16 sps:$4 sm:$0xff]  }
 0x30c   : > { %7507 = vmatmul.mubr.bf16.vlgmr.msra.gmra.mxu0 %v11718_v10  ;;  %v10413_v10 = vld [vmem:[%s14341_s1 + $0x12ac] ss:$16 sps:$4 sm:$0xff]  }
 0x30d   : > { %7550 = vmatmul.mubr.bf16.vlgmr.msra.gmra.mxu1 %v11722_v11  ;;  %7561 = vmatpush1.bf16.msra.mxu0 %v10396_v42  ;;  %v10408_v11 = vld [vmem:[%s14341_s1 + $0x10a8] ss:$16 sps:$4 sm:$0xff]  }
 0x30e   : > { %7604 = vmatpush1.bf16.msra.mxu1 %v10399_v6  ;;  %7562 = vmatprep.subr.bf16.mxu0 %v10404_v14  ;;  %v10471_v42 = vld [vmem:[%s14341_s1 + $0x1368] ss:$16 sps:$4 sm:$0xff]   ;;  %v10476_v6 = vld [vmem:[%s14341_s1 + $0x114c] ss:$16 sps:$4 sm:$0xff]  }
 0x30f   : > { %7605 = vmatprep.subr.bf16.mxu1 %v10407_v31  ;;  %7592 = vmatprep.mubr.bf16.mxu0 %v11738_v47  ;;  %v10419_v47 = vld [vmem:[%s14341_s1 + $0x128c] ss:$16 sps:$4 sm:$0xff]   ;;  %v10474_v31 = vld [vmem:[%s14341_s1 + $0x1148] ss:$16 sps:$4 sm:$0xff]  }
 0x310   : > { %7635 = vmatprep.mubr.bf16.mxu1 %v11742_v50  ;;  %v10414_v50 = vld [vmem:[%s14341_s1 + $0x1088] ss:$16 sps:$4 sm:$0xff]   ;;  %v10479_v14 = vld [vmem:[%s14341_s1 + $0x134c] ss:$16 sps:$4 sm:$0xff]  }
 0x311   : > { %7563 = vmatpush1.bf16.msra.mxu0 %v10402_v12  ;;  %v10477_v12 = vld [vmem:[%s14341_s1 + $0x1348] ss:$16 sps:$4 sm:$0xff]  }
 0x312   : > { %7606 = vmatpush1.bf16.msra.mxu1 %v10405_v26  ;;  %7564 = vmatprep.subr.bf16.mxu0 %v10410_v0  ;;  %v10482_v26 = vld [vmem:[%s14341_s1 + $0x112c] ss:$16 sps:$4 sm:$0xff]  }
 0x313   : > { %7607 = vmatprep.subr.bf16.mxu1 %v10413_v10  ;;  %v10485_v0 = vld [vmem:[%s14341_s1 + $0x132c] ss:$16 sps:$4 sm:$0xff]   ;;  %v10480_v10 = vld [vmem:[%s14341_s1 + $0x1128] ss:$16 sps:$4 sm:$0xff]  }
 0x315   : > { %7565 = vmatpush1.bf16.msra.mxu0 %v10408_v11  ;;  %v10483_v11 = vld [vmem:[%s14341_s1 + $0x1328] ss:$16 sps:$4 sm:$0xff]  }
 0x316   : > { %7608 = vmatpush1.bf16.msra.mxu1 %v10411_v29  ;;  %7566 = vmatprep.subr.bf16.mxu0 %v10416_v27  ;;  %v10488_v29 = vld [vmem:[%s14341_s1 + $0x110c] ss:$16 sps:$4 sm:$0xff]  }
 0x317   : > { %7609 = vmatprep.subr.bf16.mxu1 %v10419_v47  ;;  %v10491_v27 = vld [vmem:[%s14341_s1 + $0x130c] ss:$16 sps:$4 sm:$0xff]   ;;  %v10486_v47 = vld [vmem:[%s14341_s1 + $0x1108] ss:$16 sps:$4 sm:$0xff]  }
 0x319   : > { %7567 = vmatpush1.bf16.msra.mxu0 %v10414_v50  ;;  %v10489_v50 = vld [vmem:[%s14341_s1 + $0x1308] ss:$16 sps:$4 sm:$0xff]  }
 0x31a   : > { %7610 = vmatpush1.bf16.msra.mxu1 %v10417_v16  ;;  %7568 = vmatprep.subr.bf16.mxu0 %v10422_v60  ;;  %v10494_v16 = vld [vmem:[%s14341_s1 + $0x14ec] ss:$16 sps:$4 sm:$0xff]  }
 0x31b   : > { %7611 = vmatprep.subr.bf16.mxu1 %v10425_v54  ;;  %v10497_v60 = vld [vmem:[%s14341_s1 + $0x16ec] ss:$16 sps:$4 sm:$0xff]   ;;  %v10492_v54 = vld [vmem:[%s14341_s1 + $0x14e8] ss:$16 sps:$4 sm:$0xff]  }
 0x31d   : > { %7569 = vmatpush1.bf16.msra.mxu0 %v10420_v7  ;;  %v10495_v7 = vld [vmem:[%s14341_s1 + $0x16e8] ss:$16 sps:$4 sm:$0xff]  }
 0x31e   : > { %7612 = vmatpush1.bf16.msra.mxu1 %v10423_v4  ;;  %7570 = vmatprep.subr.bf16.mxu0 %v10428_v9  ;;  %v10500_v4 = vld [vmem:[%s14341_s1 + $0x14cc] ss:$16 sps:$4 sm:$0xff]  }
 0x31f   : > { %7613 = vmatprep.subr.bf16.mxu1 %v10431_v52  ;;  %v10503_v9 = vld [vmem:[%s14341_s1 + $0x16cc] ss:$16 sps:$4 sm:$0xff]   ;;  %v10498_v52 = vld [vmem:[%s14341_s1 + $0x14c8] ss:$16 sps:$4 sm:$0xff]  }
 0x321   : > { %7571 = vmatpush1.bf16.msra.mxu0 %v10426_v38  ;;  %v10501_v38 = vld [vmem:[%s14341_s1 + $0x16c8] ss:$16 sps:$4 sm:$0xff]  }
 0x322   : > { %7614 = vmatpush1.bf16.msra.mxu1 %v10429_v2  ;;  %7572 = vmatprep.subr.bf16.mxu0 %v10434_v46  ;;  %v10506_v2 = vld [vmem:[%s14341_s1 + $0x14ac] ss:$16 sps:$4 sm:$0xff]   ;;  %v10507_v46 = vld [vmem:[%s14341_s1 + $0x16a8] ss:$16 sps:$4 sm:$0xff]  }
 0x323   : > { %7615 = vmatprep.subr.bf16.mxu1 %v10437_v51  ;;  %v10512_v51 = vld [vmem:[%s14341_s1 + $0x148c] ss:$16 sps:$4 sm:$0xff]  }
 0x325   : > { %7573 = vmatpush1.bf16.msra.mxu0 %v10432_v32  ;;  %v10513_v32 = vld [vmem:[%s14341_s1 + $0x1688] ss:$16 sps:$4 sm:$0xff]  }
 0x326   : > { %7616 = vmatpush1.bf16.msra.mxu1 %v10435_v8  ;;  %7574 = vmatprep.subr.bf16.mxu0 %v10440_v43  ;;  %v10518_v8 = vld [vmem:[%s14341_s1 + $0x146c] ss:$16 sps:$4 sm:$0xff]  }
 0x327   : > { %7617 = vmatprep.subr.bf16.mxu1 %v10443_v63  ;;  %v10521_v43 = vld [vmem:[%s14341_s1 + $0x166c] ss:$16 sps:$4 sm:$0xff]   ;;  %v10516_v63 = vld [vmem:[%s14341_s1 + $0x1468] ss:$16 sps:$4 sm:$0xff]  }
 0x329   : > { %7575 = vmatpush1.bf16.msra.mxu0 %v10438_v5  ;;  %v10519_v5 = vld [vmem:[%s14341_s1 + $0x1668] ss:$16 sps:$4 sm:$0xff]  }
 0x32a   : > { %7618 = vmatpush1.bf16.msra.mxu1 %v10441_v15  ;;  %7576 = vmatprep.subr.bf16.mxu0 %v10446_v28  ;;  %v10524_v15 = vld [vmem:[%s14341_s1 + $0x144c] ss:$16 sps:$4 sm:$0xff]  }
 0x32b   : > { %7619 = vmatprep.subr.bf16.mxu1 %v10449_v1  ;;  %v10527_v28 = vld [vmem:[%s14341_s1 + $0x164c] ss:$16 sps:$4 sm:$0xff]   ;;  %v10522_v1 = vld [vmem:[%s14341_s1 + $0x1448] ss:$16 sps:$4 sm:$0xff]  }
 0x32d   : > { %7577 = vmatpush2.bf16.msra.mxu0 %v10444_v18  ;;  %v10525_v18 = vld [vmem:[%s14341_s1 + $0x1648] ss:$16 sps:$4 sm:$0xff]  }
 0x32e   : > { %7620 = vmatpush2.bf16.msra.mxu1 %v10447_v20  ;;  %7578 = vmatprep.subr.bf16.mxu0 %v10452_v19  ;;  %v10530_v20 = vld [vmem:[%s14341_s1 + $0x142c] ss:$16 sps:$4 sm:$0xff]  }
 0x32f   : > { %7621 = vmatprep.subr.bf16.mxu1 %v10455_v13  ;;  %v10533_v19 = vld [vmem:[%s14341_s1 + $0x162c] ss:$16 sps:$4 sm:$0xff]   ;;  %v10528_v13 = vld [vmem:[%s14341_s1 + $0x1428] ss:$16 sps:$4 sm:$0xff]  }
 0x331   : > { %7579 = vmatpush2.bf16.msra.mxu0 %v10450_v58  ;;  %v10531_v58 = vld [vmem:[%s14341_s1 + $0x1628] ss:$16 sps:$4 sm:$0xff]  }
 0x332   : > { %7622 = vmatpush2.bf16.msra.mxu1 %v10453_v59  ;;  %7580 = vmatprep.subr.bf16.mxu0 %v10458_v61  ;;  %v10536_v59 = vld [vmem:[%s14341_s1 + $0x140c] ss:$16 sps:$4 sm:$0xff]  }
 0x333   : > { %7623 = vmatprep.subr.bf16.mxu1 %v10461_v41  ;;  %v10539_v61 = vld [vmem:[%s14341_s1 + $0x160c] ss:$16 sps:$4 sm:$0xff]   ;;  %v10534_v41 = vld [vmem:[%s14341_s1 + $0x1408] ss:$16 sps:$4 sm:$0xff]  }
 0x335   : > { %7581 = vmatpush2.bf16.msra.mxu0 %v10456_v23  ;;  %v10537_v23 = vld [vmem:[%s14341_s1 + $0x1608] ss:$16 sps:$4 sm:$0xff]  }
 0x336   : > { %7624 = vmatpush2.bf16.msra.mxu1 %v10459_v17  ;;  %7582 = vmatprep.subr.bf16.mxu0 %v10464_v22  ;;  %v10542_v17 = vld [vmem:[%s14341_s1 + $0x15ec] ss:$16 sps:$4 sm:$0xff]  }
 0x337   : > { %7625 = vmatprep.subr.bf16.mxu1 %v10467_v21  ;;  %v10545_v22 = vld [vmem:[%s14341_s1 + $0x17ec] ss:$16 sps:$4 sm:$0xff]   ;;  %v10540_v21 = vld [vmem:[%s14341_s1 + $0x15e8] ss:$16 sps:$4 sm:$0xff]  }
 0x339   : > { %7583 = vmatpush2.bf16.msra.mxu0 %v10462_v48  ;;  %v10543_v48 = vld [vmem:[%s14341_s1 + $0x17e8] ss:$16 sps:$4 sm:$0xff]  }
 0x33a   : > { %7626 = vmatpush2.bf16.msra.mxu1 %v10465_v49  ;;  %7584 = vmatprep.subr.bf16.mxu0 %v10470_v53  ;;  %v10548_v49 = vld [vmem:[%s14341_s1 + $0x15cc] ss:$16 sps:$4 sm:$0xff]  }
 0x33b   : > { %7627 = vmatprep.subr.bf16.mxu1 %v10473_v33  ;;  %v10551_v53 = vld [vmem:[%s14341_s1 + $0x17cc] ss:$16 sps:$4 sm:$0xff]   ;;  %v10546_v33 = vld [vmem:[%s14341_s1 + $0x15c8] ss:$16 sps:$4 sm:$0xff]  }
 0x33d   : > { %7585 = vmatpush2.bf16.msra.mxu0 %v10468_v3  ;;  %v10549_v3 = vld [vmem:[%s14341_s1 + $0x17c8] ss:$16 sps:$4 sm:$0xff]  }
 0x33e   : > { %7628 = vmatpush2.bf16.msra.mxu1 %v10471_v42  ;;  %7586 = vmatprep.subr.bf16.mxu0 %v10476_v6  ;;  %v10554_v42 = vld [vmem:[%s14341_s1 + $0x15ac] ss:$16 sps:$4 sm:$0xff]  }
 0x33f   : > { %7629 = vmatprep.subr.bf16.mxu1 %v10479_v14  ;;  %v10557_v6 = vld [vmem:[%s14341_s1 + $0x17ac] ss:$16 sps:$4 sm:$0xff]   ;;  %v10552_v14 = vld [vmem:[%s14341_s1 + $0x15a8] ss:$16 sps:$4 sm:$0xff]  }
 0x341   : > { %7587 = vmatpush2.bf16.msra.mxu0 %v10474_v31  ;;  %v10555_v31 = vld [vmem:[%s14341_s1 + $0x17a8] ss:$16 sps:$4 sm:$0xff]  }
 0x342   : > { %7630 = vmatpush2.bf16.msra.mxu1 %v10477_v12  ;;  %7588 = vmatprep.subr.bf16.mxu0 %v10482_v26  ;;  %v10560_v12 = vld [vmem:[%s14341_s1 + $0x158c] ss:$16 sps:$4 sm:$0xff]  }
 0x343   : > { %7631 = vmatprep.subr.bf16.mxu1 %v10485_v0  ;;  %v10563_v26 = vld [vmem:[%s14341_s1 + $0x178c] ss:$16 sps:$4 sm:$0xff]   ;;  %v10558_v0 = vld [vmem:[%s14341_s1 + $0x1588] ss:$16 sps:$4 sm:$0xff]  }
 0x345   : > { %7589 = vmatpush2.bf16.msra.mxu0 %v10480_v10  ;;  %v10561_v10 = vld [vmem:[%s14341_s1 + $0x1788] ss:$16 sps:$4 sm:$0xff]  }
 0x346   : > { %7632 = vmatpush2.bf16.msra.mxu1 %v10483_v11  ;;  %7590 = vmatprep.subr.bf16.mxu0 %v10488_v29  ;;  %v10566_v11 = vld [vmem:[%s14341_s1 + $0x156c] ss:$16 sps:$4 sm:$0xff]  }
 0x347   : > { %7633 = vmatprep.subr.bf16.mxu1 %v10491_v27  ;;  %v10569_v29 = vld [vmem:[%s14341_s1 + $0x176c] ss:$16 sps:$4 sm:$0xff]   ;;  %v10564_v27 = vld [vmem:[%s14341_s1 + $0x1568] ss:$16 sps:$4 sm:$0xff]  }
 0x349   : > { %7591 = vmatpush2.bf16.msra.mxu0 %v10486_v47  ;;  %v10567_v47 = vld [vmem:[%s14341_s1 + $0x1768] ss:$16 sps:$4 sm:$0xff]  }
 0x34a   : > { %7634 = vmatpush2.bf16.msra.mxu1 %v10489_v50  ;;  %7646 = vmatprep.subr.bf16.mxu0 %v10494_v16  ;;  %v10572_v50 = vld [vmem:[%s14341_s1 + $0x154c] ss:$16 sps:$4 sm:$0xff]  }
 0x34b   : > { %7689 = vmatprep.subr.bf16.mxu1 %v10497_v60  ;;  %v10575_v16 = vld [vmem:[%s14341_s1 + $0x174c] ss:$16 sps:$4 sm:$0xff]   ;;  %v10570_v60 = vld [vmem:[%s14341_s1 + $0x1548] ss:$16 sps:$4 sm:$0xff]  }
 0x34c   : > { %7593 = vmatmul.mubr.bf16.vlgmr.msra.gmra.mxu0 %v11936_v44  ;;  %v10509_v44 = vld [vmem:[%s14341_s1 + $0x16ac] ss:$16 sps:$4 sm:$0xff]  }
 0x34d   : > { %7636 = vmatmul.mubr.bf16.vlgmr.msra.gmra.mxu1 %v11940_v45  ;;  %7647 = vmatpush1.bf16.msra.mxu0 %v10492_v54  ;;  %v10504_v45 = vld [vmem:[%s14341_s1 + $0x14a8] ss:$16 sps:$4 sm:$0xff]  }
 0x34e   : > { %7690 = vmatpush1.bf16.msra.mxu1 %v10495_v7  ;;  %7648 = vmatprep.subr.bf16.mxu0 %v10500_v4  ;;  %v10573_v54 = vld [vmem:[%s14341_s1 + $0x1748] ss:$16 sps:$4 sm:$0xff]   ;;  %v10578_v7 = vld [vmem:[%s14341_s1 + $0x152c] ss:$16 sps:$4 sm:$0xff]  }
 0x34f   : > { %7691 = vmatprep.subr.bf16.mxu1 %v10503_v9  ;;  %7678 = vmatprep.mubr.bf16.mxu0 %v11968_v56  ;;  %v10515_v56 = vld [vmem:[%s14341_s1 + $0x168c] ss:$16 sps:$4 sm:$0xff]   ;;  %v10576_v9 = vld [vmem:[%s14341_s1 + $0x1528] ss:$16 sps:$4 sm:$0xff]  }
 0x350   : > { %7721 = vmatprep.mubr.bf16.mxu1 %v11972_v57  ;;  %v10510_v57 = vld [vmem:[%s14341_s1 + $0x1488] ss:$16 sps:$4 sm:$0xff]   ;;  %v10581_v4 = vld [vmem:[%s14341_s1 + $0x172c] ss:$16 sps:$4 sm:$0xff]  }
 0x351   : > { %7649 = vmatpush1.bf16.msra.mxu0 %v10498_v52  ;;  %v10579_v52 = vld [vmem:[%s14341_s1 + $0x1728] ss:$16 sps:$4 sm:$0xff]  }
 0x352   : > { %7692 = vmatpush1.bf16.msra.mxu1 %v10501_v38  ;;  %7650 = vmatprep.subr.bf16.mxu0 %v10506_v2  ;;  %v10584_v38 = vld [vmem:[%s14341_s1 + $0x150c] ss:$16 sps:$4 sm:$0xff]  }
 0x353   : > { %7693 = vmatprep.subr.bf16.mxu1 %v10509_v44  ;;  %v10587_v2 = vld [vmem:[%s14341_s1 + $0x170c] ss:$16 sps:$4 sm:$0xff]   ;;  %v10582_v44 = vld [vmem:[%s14341_s1 + $0x1508] ss:$16 sps:$4 sm:$0xff]  }
 0x355   : > { %7651 = vmatpush1.bf16.msra.mxu0 %v10504_v45  ;;  %v10585_v45 = vld [vmem:[%s14341_s1 + $0x1708] ss:$16 sps:$4 sm:$0xff]  }
 0x356   : > { %7694 = vmatpush1.bf16.msra.mxu1 %v10507_v46  ;;  %7652 = vmatprep.subr.bf16.mxu0 %v10512_v51  ;;  %v10590_v46 = vld [vmem:[%s14341_s1 + $0x18ec] ss:$16 sps:$4 sm:$0xff]  }
 0x357   : > { %7695 = vmatprep.subr.bf16.mxu1 %v10515_v56  ;;  %v10593_v51 = vld [vmem:[%s14341_s1 + $0x1aec] ss:$16 sps:$4 sm:$0xff]   ;;  %v10588_v56 = vld [vmem:[%s14341_s1 + $0x18e8] ss:$16 sps:$4 sm:$0xff]  }
 0x359   : > { %7653 = vmatpush1.bf16.msra.mxu0 %v10510_v57  ;;  %v10591_v57 = vld [vmem:[%s14341_s1 + $0x1ae8] ss:$16 sps:$4 sm:$0xff]  }
 0x35a   : > { %7696 = vmatpush1.bf16.msra.mxu1 %v10513_v32  ;;  %7654 = vmatprep.subr.bf16.mxu0 %v10518_v8  ;;  %v10596_v32 = vld [vmem:[%s14341_s1 + $0x18cc] ss:$16 sps:$4 sm:$0xff]  }
 0x35b   : > { %7697 = vmatprep.subr.bf16.mxu1 %v10521_v43  ;;  %v10599_v8 = vld [vmem:[%s14341_s1 + $0x1acc] ss:$16 sps:$4 sm:$0xff]   ;;  %v10594_v43 = vld [vmem:[%s14341_s1 + $0x18c8] ss:$16 sps:$4 sm:$0xff]  }
 0x35d   : > { %7655 = vmatpush1.bf16.msra.mxu0 %v10516_v63  ;;  %v10597_v63 = vld [vmem:[%s14341_s1 + $0x1ac8] ss:$16 sps:$4 sm:$0xff]  }
 0x35e   : > { %7698 = vmatpush1.bf16.msra.mxu1 %v10519_v5  ;;  %7656 = vmatprep.subr.bf16.mxu0 %v10524_v15  ;;  %v10602_v5 = vld [vmem:[%s14341_s1 + $0x18ac] ss:$16 sps:$4 sm:$0xff]   ;;  %v10603_v15 = vld [vmem:[%s14341_s1 + $0x1aa8] ss:$16 sps:$4 sm:$0xff]  }
 0x35f   : > { %7699 = vmatprep.subr.bf16.mxu1 %v10527_v28  ;;  %v10608_v28 = vld [vmem:[%s14341_s1 + $0x188c] ss:$16 sps:$4 sm:$0xff]  }
 0x361   : > { %7657 = vmatpush1.bf16.msra.mxu0 %v10522_v1  ;;  %v10609_v1 = vld [vmem:[%s14341_s1 + $0x1a88] ss:$16 sps:$4 sm:$0xff]  }
 0x362   : > { %7700 = vmatpush1.bf16.msra.mxu1 %v10525_v18  ;;  %7658 = vmatprep.subr.bf16.mxu0 %v10530_v20  ;;  %v10614_v18 = vld [vmem:[%s14341_s1 + $0x186c] ss:$16 sps:$4 sm:$0xff]  }
 0x363   : > { %7701 = vmatprep.subr.bf16.mxu1 %v10533_v19  ;;  %v10617_v20 = vld [vmem:[%s14341_s1 + $0x1a6c] ss:$16 sps:$4 sm:$0xff]   ;;  %v10612_v19 = vld [vmem:[%s14341_s1 + $0x1868] ss:$16 sps:$4 sm:$0xff]  }
 0x365   : > { %7659 = vmatpush1.bf16.msra.mxu0 %v10528_v13  ;;  %v10615_v13 = vld [vmem:[%s14341_s1 + $0x1a68] ss:$16 sps:$4 sm:$0xff]  }
 0x366   : > { %7702 = vmatpush1.bf16.msra.mxu1 %v10531_v58  ;;  %7660 = vmatprep.subr.bf16.mxu0 %v10536_v59  ;;  %v10620_v58 = vld [vmem:[%s14341_s1 + $0x184c] ss:$16 sps:$4 sm:$0xff]  }
 0x367   : > { %7703 = vmatprep.subr.bf16.mxu1 %v10539_v61  ;;  %v10623_v59 = vld [vmem:[%s14341_s1 + $0x1a4c] ss:$16 sps:$4 sm:$0xff]   ;;  %v10618_v61 = vld [vmem:[%s14341_s1 + $0x1848] ss:$16 sps:$4 sm:$0xff]  }
 0x369   : > { %7661 = vmatpush1.bf16.msra.mxu0 %v10534_v41  ;;  %v10621_v41 = vld [vmem:[%s14341_s1 + $0x1a48] ss:$16 sps:$4 sm:$0xff]  }
 0x36a   : > { %7704 = vmatpush1.bf16.msra.mxu1 %v10537_v23  ;;  %7662 = vmatprep.subr.bf16.mxu0 %v10542_v17  ;;  %v10626_v23 = vld [vmem:[%s14341_s1 + $0x182c] ss:$16 sps:$4 sm:$0xff]  }
 0x36b   : > { %7705 = vmatprep.subr.bf16.mxu1 %v10545_v22  ;;  %v10629_v17 = vld [vmem:[%s14341_s1 + $0x1a2c] ss:$16 sps:$4 sm:$0xff]   ;;  %v10624_v22 = vld [vmem:[%s14341_s1 + $0x1828] ss:$16 sps:$4 sm:$0xff]  }
 0x36d   : > { %7663 = vmatpush2.bf16.msra.mxu0 %v10540_v21  ;;  %v10627_v21 = vld [vmem:[%s14341_s1 + $0x1a28] ss:$16 sps:$4 sm:$0xff]  }
 0x36e   : > { %7706 = vmatpush2.bf16.msra.mxu1 %v10543_v48  ;;  %7664 = vmatprep.subr.bf16.mxu0 %v10548_v49  ;;  %v10632_v48 = vld [vmem:[%s14341_s1 + $0x180c] ss:$16 sps:$4 sm:$0xff]  }
 0x36f   : > { %7707 = vmatprep.subr.bf16.mxu1 %v10551_v53  ;;  %v10635_v49 = vld [vmem:[%s14341_s1 + $0x1a0c] ss:$16 sps:$4 sm:$0xff]   ;;  %v10630_v53 = vld [vmem:[%s14341_s1 + $0x1808] ss:$16 sps:$4 sm:$0xff]  }
 0x371   : > { %7665 = vmatpush2.bf16.msra.mxu0 %v10546_v33  ;;  %v10633_v33 = vld [vmem:[%s14341_s1 + $0x1a08] ss:$16 sps:$4 sm:$0xff]  }
 0x372   : > { %7708 = vmatpush2.bf16.msra.mxu1 %v10549_v3  ;;  %7666 = vmatprep.subr.bf16.mxu0 %v10554_v42  ;;  %v10638_v3 = vld [vmem:[%s14341_s1 + $0x19ec] ss:$16 sps:$4 sm:$0xff]  }
 0x373   : > { %7709 = vmatprep.subr.bf16.mxu1 %v10557_v6  ;;  %v10641_v42 = vld [vmem:[%s14341_s1 + $0x1bec] ss:$16 sps:$4 sm:$0xff]   ;;  %v10636_v6 = vld [vmem:[%s14341_s1 + $0x19e8] ss:$16 sps:$4 sm:$0xff]  }
 0x375   : > { %7667 = vmatpush2.bf16.msra.mxu0 %v10552_v14  ;;  %v10639_v14 = vld [vmem:[%s14341_s1 + $0x1be8] ss:$16 sps:$4 sm:$0xff]  }
 0x376   : > { %7710 = vmatpush2.bf16.msra.mxu1 %v10555_v31  ;;  %7668 = vmatprep.subr.bf16.mxu0 %v10560_v12  ;;  %v10644_v31 = vld [vmem:[%s14341_s1 + $0x19cc] ss:$16 sps:$4 sm:$0xff]  }
 0x377   : > { %7711 = vmatprep.subr.bf16.mxu1 %v10563_v26  ;;  %v10647_v12 = vld [vmem:[%s14341_s1 + $0x1bcc] ss:$16 sps:$4 sm:$0xff]   ;;  %v10642_v26 = vld [vmem:[%s14341_s1 + $0x19c8] ss:$16 sps:$4 sm:$0xff]  }
 0x379   : > { %7669 = vmatpush2.bf16.msra.mxu0 %v10558_v0  ;;  %v10645_v0 = vld [vmem:[%s14341_s1 + $0x1bc8] ss:$16 sps:$4 sm:$0xff]  }
 0x37a   : > { %7712 = vmatpush2.bf16.msra.mxu1 %v10561_v10  ;;  %7670 = vmatprep.subr.bf16.mxu0 %v10566_v11  ;;  %v10650_v10 = vld [vmem:[%s14341_s1 + $0x19ac] ss:$16 sps:$4 sm:$0xff]  }
 0x37b   : > { %7713 = vmatprep.subr.bf16.mxu1 %v10569_v29  ;;  %v10653_v11 = vld [vmem:[%s14341_s1 + $0x1bac] ss:$16 sps:$4 sm:$0xff]   ;;  %v10648_v29 = vld [vmem:[%s14341_s1 + $0x19a8] ss:$16 sps:$4 sm:$0xff]  }
 0x37d   : > { %7671 = vmatpush2.bf16.msra.mxu0 %v10564_v27  ;;  %v10651_v27 = vld [vmem:[%s14341_s1 + $0x1ba8] ss:$16 sps:$4 sm:$0xff]  }
 0x37e   : > { %7714 = vmatpush2.bf16.msra.mxu1 %v10567_v47  ;;  %7672 = vmatprep.subr.bf16.mxu0 %v10572_v50  ;;  %v10656_v47 = vld [vmem:[%s14341_s1 + $0x198c] ss:$16 sps:$4 sm:$0xff]  }
 0x37f   : > { %7715 = vmatprep.subr.bf16.mxu1 %v10575_v16  ;;  %v10659_v50 = vld [vmem:[%s14341_s1 + $0x1b8c] ss:$16 sps:$4 sm:$0xff]   ;;  %v10654_v16 = vld [vmem:[%s14341_s1 + $0x1988] ss:$16 sps:$4 sm:$0xff]  }
 0x381   : > { %7673 = vmatpush2.bf16.msra.mxu0 %v10570_v60  ;;  %v10657_v60 = vld [vmem:[%s14341_s1 + $0x1b88] ss:$16 sps:$4 sm:$0xff]  }
 0x382   : > { %7716 = vmatpush2.bf16.msra.mxu1 %v10573_v54  ;;  %7674 = vmatprep.subr.bf16.mxu0 %v10578_v7  ;;  %v10662_v54 = vld [vmem:[%s14341_s1 + $0x196c] ss:$16 sps:$4 sm:$0xff]  }
 0x383   : > { %7717 = vmatprep.subr.bf16.mxu1 %v10581_v4  ;;  %v10665_v7 = vld [vmem:[%s14341_s1 + $0x1b6c] ss:$16 sps:$4 sm:$0xff]   ;;  %v10660_v4 = vld [vmem:[%s14341_s1 + $0x1968] ss:$16 sps:$4 sm:$0xff]  }
 0x385   : > { %7675 = vmatpush2.bf16.msra.mxu0 %v10576_v9  ;;  %v10663_v9 = vld [vmem:[%s14341_s1 + $0x1b68] ss:$16 sps:$4 sm:$0xff]  }
 0x386   : > { %7718 = vmatpush2.bf16.msra.mxu1 %v10579_v52  ;;  %7676 = vmatprep.subr.bf16.mxu0 %v10584_v38  ;;  %v10668_v52 = vld [vmem:[%s14341_s1 + $0x194c] ss:$16 sps:$4 sm:$0xff]  }
 0x387   : > { %7719 = vmatprep.subr.bf16.mxu1 %v10587_v2  ;;  %v10671_v38 = vld [vmem:[%s14341_s1 + $0x1b4c] ss:$16 sps:$4 sm:$0xff]   ;;  %v10666_v2 = vld [vmem:[%s14341_s1 + $0x1948] ss:$16 sps:$4 sm:$0xff]  }
 0x389   : > { %7677 = vmatpush2.bf16.msra.mxu0 %v10582_v44  ;;  %v10669_v44 = vld [vmem:[%s14341_s1 + $0x1b48] ss:$16 sps:$4 sm:$0xff]  }
 0x38a   : > { %7720 = vmatpush2.bf16.msra.mxu1 %v10585_v45  ;;  %7732 = vmatprep.subr.bf16.mxu0 %v10590_v46  ;;  %v10674_v45 = vld [vmem:[%s14341_s1 + $0x192c] ss:$16 sps:$4 sm:$0xff]  }
 0x38b   : > { %7775 = vmatprep.subr.bf16.mxu1 %v10593_v51  ;;  %v10677_v46 = vld [vmem:[%s14341_s1 + $0x1b2c] ss:$16 sps:$4 sm:$0xff]   ;;  %v10672_v51 = vld [vmem:[%s14341_s1 + $0x1928] ss:$16 sps:$4 sm:$0xff]  }
 0x38c   : > { %7679 = vmatmul.mubr.bf16.vlgmr.msra.gmra.mxu0 %v12160_v24  ;;  %v10605_v24 = vld [vmem:[%s14341_s1 + $0x1aac] ss:$16 sps:$4 sm:$0xff]  }
 0x38d   : > { %7722 = vmatmul.mubr.bf16.vlgmr.msra.gmra.mxu1 %v12164_v25  ;;  %7733 = vmatpush1.bf16.msra.mxu0 %v10588_v56  ;;  %v10600_v25 = vld [vmem:[%s14341_s1 + $0x18a8] ss:$16 sps:$4 sm:$0xff]  }
 0x38e   : > { %7776 = vmatpush1.bf16.msra.mxu1 %v10591_v57  ;;  %7734 = vmatprep.subr.bf16.mxu0 %v10596_v32  ;;  %v10675_v56 = vld [vmem:[%s14341_s1 + $0x1b28] ss:$16 sps:$4 sm:$0xff]   ;;  %v10680_v57 = vld [vmem:[%s14341_s1 + $0x190c] ss:$16 sps:$4 sm:$0xff]  }
 0x38f   : > { %7777 = vmatprep.subr.bf16.mxu1 %v10599_v8  ;;  %7764 = vmatprep.mubr.bf16.mxu0 %v12192_v36  ;;  %v10611_v36 = vld [vmem:[%s14341_s1 + $0x1a8c] ss:$16 sps:$4 sm:$0xff]   ;;  %v10678_v8 = vld [vmem:[%s14341_s1 + $0x1908] ss:$16 sps:$4 sm:$0xff]  }
 0x390   : > { %7807 = vmatprep.mubr.bf16.mxu1 %v12196_v37  ;;  %v10606_v37 = vld [vmem:[%s14341_s1 + $0x1888] ss:$16 sps:$4 sm:$0xff]   ;;  %v10683_v32 = vld [vmem:[%s14341_s1 + $0x1b0c] ss:$16 sps:$4 sm:$0xff]  }
 0x391   : > { %7735 = vmatpush1.bf16.msra.mxu0 %v10594_v43  ;;  %v10681_v43 = vld [vmem:[%s14341_s1 + $0x1b08] ss:$16 sps:$4 sm:$0xff]  }
 0x392   : > { %7778 = vmatpush1.bf16.msra.mxu1 %v10597_v63  ;;  %7736 = vmatprep.subr.bf16.mxu0 %v10602_v5  ;;  %v10686_v63 = vld [vmem:[%s14341_s1 + $0x1cec] ss:$16 sps:$4 sm:$0xff]  }
 0x393   : > { %7779 = vmatprep.subr.bf16.mxu1 %v10605_v24  ;;  %v10689_v5 = vld [vmem:[%s14341_s1 + $0x1eec] ss:$16 sps:$4 sm:$0xff]   ;;  %v10684_v24 = vld [vmem:[%s14341_s1 + $0x1ce8] ss:$16 sps:$4 sm:$0xff]  }
 0x395   : > { %7737 = vmatpush1.bf16.msra.mxu0 %v10600_v25  ;;  %v10687_v25 = vld [vmem:[%s14341_s1 + $0x1ee8] ss:$16 sps:$4 sm:$0xff]  }
 0x396   : > { %7780 = vmatpush1.bf16.msra.mxu1 %v10603_v15  ;;  %7738 = vmatprep.subr.bf16.mxu0 %v10608_v28  ;;  %v10692_v15 = vld [vmem:[%s14341_s1 + $0x1ccc] ss:$16 sps:$4 sm:$0xff]  }
 0x397   : > { %7781 = vmatprep.subr.bf16.mxu1 %v10611_v36  ;;  %v10695_v28 = vld [vmem:[%s14341_s1 + $0x1ecc] ss:$16 sps:$4 sm:$0xff]   ;;  %v14354_v36 = vld [vmem:[#allocation2_spill] sm:$0xff] }
 0x399   : > { %7739 = vmatpush1.bf16.msra.mxu0 %v10606_v37  ;;  %v10690_v37 = vld [vmem:[%s14341_s1 + $0x1cc8] ss:$16 sps:$4 sm:$0xff]  }
 0x39a   : > { %7782 = vmatpush1.bf16.msra.mxu1 %v10609_v1  ;;  %7740 = vmatprep.subr.bf16.mxu0 %v10614_v18  ;;  %v10693_v1 = vld [vmem:[%s14341_s1 + $0x1ec8] ss:$16 sps:$4 sm:$0xff]   ;;  %v10698_v18 = vld [vmem:[%s14341_s1 + $0x1cac] ss:$16 sps:$4 sm:$0xff]  }
 0x39b   : > { %7783 = vmatprep.subr.bf16.mxu1 %v10617_v20  ;;  %v14355_v20 = vld [vmem:[#allocation3_spill] sm:$0xff] }
 0x39d   : > { %7741 = vmatpush1.bf16.msra.mxu0 %v10612_v19  ;;  %v14356_v19 = vld [vmem:[#allocation4_spill] sm:$0xff] }
 0x39e   : > { %7784 = vmatpush1.bf16.msra.mxu1 %v10615_v13  ;;  %7742 = vmatprep.subr.bf16.mxu0 %v10620_v58  ;;  %v10696_v13 = vld [vmem:[%s14341_s1 + $0x1ca8] ss:$16 sps:$4 sm:$0xff]  }
 0x39f   : > { %7785 = vmatprep.subr.bf16.mxu1 %v10623_v59  ;;  %v10699_v58 = vld [vmem:[%s14341_s1 + $0x1ea8] ss:$16 sps:$4 sm:$0xff]   ;;  %v10704_v59 = vld [vmem:[%s14341_s1 + $0x1c8c] ss:$16 sps:$4 sm:$0xff]  }
 0x3a1   : > { %7743 = vmatpush1.bf16.msra.mxu0 %v10618_v61  ;;  %v10707_v61 = vld [vmem:[%s14341_s1 + $0x1e8c] ss:$16 sps:$4 sm:$0xff]  }
 0x3a2   : > { %7786 = vmatpush1.bf16.msra.mxu1 %v10621_v41  ;;  %7744 = vmatprep.subr.bf16.mxu0 %v10626_v23  ;;  %v10702_v41 = vld [vmem:[%s14341_s1 + $0x1c88] ss:$16 sps:$4 sm:$0xff]  }
 0x3a3   : > { %7787 = vmatprep.subr.bf16.mxu1 %v10629_v17  ;;  %v10705_v23 = vld [vmem:[%s14341_s1 + $0x1e88] ss:$16 sps:$4 sm:$0xff]   ;;  %v10710_v17 = vld [vmem:[%s14341_s1 + $0x1c6c] ss:$16 sps:$4 sm:$0xff]  }
 0x3a5   : > { %7745 = vmatpush1.bf16.msra.mxu0 %v10624_v22  ;;  %v10713_v22 = vld [vmem:[%s14341_s1 + $0x1e6c] ss:$16 sps:$4 sm:$0xff]  }
 0x3a6   : > { %7788 = vmatpush1.bf16.msra.mxu1 %v10627_v21  ;;  %7746 = vmatprep.subr.bf16.mxu0 %v10632_v48  ;;  %v10708_v21 = vld [vmem:[%s14341_s1 + $0x1c68] ss:$16 sps:$4 sm:$0xff]  }
 0x3a7   : > { %7789 = vmatprep.subr.bf16.mxu1 %v10635_v49  ;;  %v10711_v48 = vld [vmem:[%s14341_s1 + $0x1e68] ss:$16 sps:$4 sm:$0xff]   ;;  %v10716_v49 = vld [vmem:[%s14341_s1 + $0x1c4c] ss:$16 sps:$4 sm:$0xff]  }
 0x3a9   : > { %7747 = vmatpush1.bf16.msra.mxu0 %v10630_v53  ;;  %v10719_v53 = vld [vmem:[%s14341_s1 + $0x1e4c] ss:$16 sps:$4 sm:$0xff]  }
 0x3aa   : > { %7790 = vmatpush1.bf16.msra.mxu1 %v10633_v33  ;;  %7748 = vmatprep.subr.bf16.mxu0 %v10638_v3  ;;  %v10714_v33 = vld [vmem:[%s14341_s1 + $0x1c48] ss:$16 sps:$4 sm:$0xff]  }
 0x3ab   : > { %7791 = vmatprep.subr.bf16.mxu1 %v10641_v42  ;;  %v10717_v3 = vld [vmem:[%s14341_s1 + $0x1e48] ss:$16 sps:$4 sm:$0xff]   ;;  %v10722_v42 = vld [vmem:[%s14341_s1 + $0x1c2c] ss:$16 sps:$4 sm:$0xff]  }
 0x3ad   : > { %7749 = vmatpush2.bf16.msra.mxu0 %v10636_v6  ;;  %v10725_v6 = vld [vmem:[%s14341_s1 + $0x1e2c] ss:$16 sps:$4 sm:$0xff]  }
 0x3ae   : > { %7792 = vmatpush2.bf16.msra.mxu1 %v10639_v14  ;;  %7750 = vmatprep.subr.bf16.mxu0 %v10644_v31  ;;  %v10720_v14 = vld [vmem:[%s14341_s1 + $0x1c28] ss:$16 sps:$4 sm:$0xff]  }
 0x3af   : > { %7793 = vmatprep.subr.bf16.mxu1 %v10647_v12  ;;  %v10723_v31 = vld [vmem:[%s14341_s1 + $0x1e28] ss:$16 sps:$4 sm:$0xff]   ;;  %v10728_v12 = vld [vmem:[%s14341_s1 + $0x1c0c] ss:$16 sps:$4 sm:$0xff]  }
 0x3b1   : > { %7751 = vmatpush2.bf16.msra.mxu0 %v10642_v26  ;;  %v10731_v26 = vld [vmem:[%s14341_s1 + $0x1e0c] ss:$16 sps:$4 sm:$0xff]  }
 0x3b2   : > { %7794 = vmatpush2.bf16.msra.mxu1 %v10645_v0  ;;  %7752 = vmatprep.subr.bf16.mxu0 %v10650_v10  ;;  %v10726_v0 = vld [vmem:[%s14341_s1 + $0x1c08] ss:$16 sps:$4 sm:$0xff]  }
 0x3b3   : > { %7795 = vmatprep.subr.bf16.mxu1 %v10653_v11  ;;  %v10729_v10 = vld [vmem:[%s14341_s1 + $0x1e08] ss:$16 sps:$4 sm:$0xff]   ;;  %v10734_v11 = vld [vmem:[%s14341_s1 + $0x1dec] ss:$16 sps:$4 sm:$0xff]  }
 0x3b5   : > { %7753 = vmatpush2.bf16.msra.mxu0 %v10648_v29  ;;  %v10737_v29 = vld [vmem:[%s14341_s1 + $0x1fec] ss:$16 sps:$4 sm:$0xff]  }
 0x3b6   : > { %7796 = vmatpush2.bf16.msra.mxu1 %v10651_v27  ;;  %7754 = vmatprep.subr.bf16.mxu0 %v10656_v47  ;;  %v10732_v27 = vld [vmem:[%s14341_s1 + $0x1de8] ss:$16 sps:$4 sm:$0xff]  }
 0x3b7   : > { %7797 = vmatprep.subr.bf16.mxu1 %v10659_v50  ;;  %v10735_v47 = vld [vmem:[%s14341_s1 + $0x1fe8] ss:$16 sps:$4 sm:$0xff]   ;;  %v10740_v50 = vld [vmem:[%s14341_s1 + $0x1dcc] ss:$16 sps:$4 sm:$0xff]  }
 0x3b9   : > { %7755 = vmatpush2.bf16.msra.mxu0 %v10654_v16  ;;  %v10743_v16 = vld [vmem:[%s14341_s1 + $0x1fcc] ss:$16 sps:$4 sm:$0xff]  }
 0x3ba   : > { %7798 = vmatpush2.bf16.msra.mxu1 %v10657_v60  ;;  %7756 = vmatprep.subr.bf16.mxu0 %v10662_v54  ;;  %v10738_v60 = vld [vmem:[%s14341_s1 + $0x1dc8] ss:$16 sps:$4 sm:$0xff]  }
 0x3bb   : > { %7799 = vmatprep.subr.bf16.mxu1 %v10665_v7  ;;  %v10741_v54 = vld [vmem:[%s14341_s1 + $0x1fc8] ss:$16 sps:$4 sm:$0xff]   ;;  %v10746_v7 = vld [vmem:[%s14341_s1 + $0x1dac] ss:$16 sps:$4 sm:$0xff]  }
 0x3bd   : > { %7757 = vmatpush2.bf16.msra.mxu0 %v10660_v4  ;;  %v10749_v4 = vld [vmem:[%s14341_s1 + $0x1fac] ss:$16 sps:$4 sm:$0xff]  }
 0x3be   : > { %7800 = vmatpush2.bf16.msra.mxu1 %v10663_v9  ;;  %7758 = vmatprep.subr.bf16.mxu0 %v10668_v52  ;;  %v10744_v9 = vld [vmem:[%s14341_s1 + $0x1da8] ss:$16 sps:$4 sm:$0xff]  }
 0x3bf   : > { %7801 = vmatprep.subr.bf16.mxu1 %v10671_v38  ;;  %v10747_v52 = vld [vmem:[%s14341_s1 + $0x1fa8] ss:$16 sps:$4 sm:$0xff]   ;;  %v10752_v38 = vld [vmem:[%s14341_s1 + $0x1d8c] ss:$16 sps:$4 sm:$0xff]  }
 0x3c1   : > { %7759 = vmatpush2.bf16.msra.mxu0 %v10666_v2  ;;  %v10755_v2 = vld [vmem:[%s14341_s1 + $0x1f8c] ss:$16 sps:$4 sm:$0xff]  }
 0x3c2   : > { %7802 = vmatpush2.bf16.msra.mxu1 %v10669_v44  ;;  %7760 = vmatprep.subr.bf16.mxu0 %v10674_v45  ;;  %v10750_v44 = vld [vmem:[%s14341_s1 + $0x1d88] ss:$16 sps:$4 sm:$0xff]  }
 0x3c3   : > { %7803 = vmatprep.subr.bf16.mxu1 %v10677_v46  ;;  %v10753_v45 = vld [vmem:[%s14341_s1 + $0x1f88] ss:$16 sps:$4 sm:$0xff]   ;;  %v10758_v46 = vld [vmem:[%s14341_s1 + $0x1d6c] ss:$16 sps:$4 sm:$0xff]  }
 0x3c5   : > { %7761 = vmatpush2.bf16.msra.mxu0 %v10672_v51  ;;  %v10761_v51 = vld [vmem:[%s14341_s1 + $0x1f6c] ss:$16 sps:$4 sm:$0xff]  }
 0x3c6   : > { %7804 = vmatpush2.bf16.msra.mxu1 %v10675_v56  ;;  %7762 = vmatprep.subr.bf16.mxu0 %v10680_v57  ;;  %v10756_v56 = vld [vmem:[%s14341_s1 + $0x1d68] ss:$16 sps:$4 sm:$0xff]  }
 0x3c7   : > { %7805 = vmatprep.subr.bf16.mxu1 %v10683_v32  ;;  %v10759_v57 = vld [vmem:[%s14341_s1 + $0x1f68] ss:$16 sps:$4 sm:$0xff]   ;;  %v10764_v32 = vld [vmem:[%s14341_s1 + $0x1d4c] ss:$16 sps:$4 sm:$0xff]  }
 0x3c9   : > { %7763 = vmatpush2.bf16.msra.mxu0 %v10678_v8  ;;  %v10767_v8 = vld [vmem:[%s14341_s1 + $0x1f4c] ss:$16 sps:$4 sm:$0xff]  }
 0x3ca   : > { %7806 = vmatpush2.bf16.msra.mxu1 %v10681_v43  ;;  %7818 = vmatprep.subr.bf16.mxu0 %v10686_v63  ;;  %v10762_v43 = vld [vmem:[%s14341_s1 + $0x1d48] ss:$16 sps:$4 sm:$0xff]  }
 0x3cb   : > { %7861 = vmatprep.subr.bf16.mxu1 %v10689_v5  ;;  %v10765_v63 = vld [vmem:[%s14341_s1 + $0x1f48] ss:$16 sps:$4 sm:$0xff]   ;;  %v10770_v5 = vld [vmem:[%s14341_s1 + $0x1d2c] ss:$16 sps:$4 sm:$0xff]  }
 0x3cc   : > { %7765 = vmatmul.mubr.bf16.vlgmr.msra.gmra.mxu0 %v12396_v40  ;;  %v10701_v40 = vld [vmem:[%s14341_s1 + $0x1eac] ss:$16 sps:$4 sm:$0xff]  }
 0x3cd   : > { %7808 = vmatmul.mubr.bf16.vlgmr.msra.gmra.mxu1 %v14354_v36  ;;  %7819 = vmatpush1.bf16.msra.mxu0 %v10684_v24  ;;  %v10773_v24 = vld [vmem:[%s14341_s1 + $0x1f2c] ss:$16 sps:$4 sm:$0xff]  }
 0x3ce   : > { %7862 = vmatpush1.bf16.msra.mxu1 %v10687_v25  ;;  %7820 = vmatprep.subr.bf16.mxu0 %v10692_v15  ;;  %v10768_v25 = vld [vmem:[%s14341_s1 + $0x1d28] ss:$16 sps:$4 sm:$0xff]   ;;  %v10779_v36 = vld [vmem:[%s14341_s1 + $0x1f0c] ss:$16 sps:$4 sm:$0xff]  }
 0x3cf   : > { %7863 = vmatprep.subr.bf16.mxu1 %v10695_v28  ;;  %7850 = vmatprep.mubr.bf16.mxu0 %v14355_v20  ;;  %v10771_v15 = vld [vmem:[%s14341_s1 + $0x1f28] ss:$16 sps:$4 sm:$0xff]   ;;  %v10776_v28 = vld [vmem:[%s14341_s1 + $0x1d0c] ss:$16 sps:$4 sm:$0xff]   ;;  %v7250_v20 = vpop.f32.mrf.mxu0 }
 0x3d0   : > { %7893 = vmatprep.mubr.bf16.mxu1 %v14356_v19  ;;  %v7293_v19 = vpop.f32.mrf.mxu1 }
 0x3d1   : > { %7821 = vmatpush1.bf16.msra.mxu0 %v10690_v37  ;;  %v10774_v37 = vld [vmem:[%s14341_s1 + $0x1d08] ss:$16 sps:$4 sm:$0xff]  }
 0x3d2   : > { %7864 = vmatpush1.bf16.msra.mxu1 %v10693_v1  ;;  %7822 = vmatprep.subr.bf16.mxu0 %v10698_v18  ;;  %v10777_v1 = vld [vmem:[%s14341_s1 + $0x1f08] ss:$16 sps:$4 sm:$0xff]  }
 0x3d3   : > { %7865 = vmatprep.subr.bf16.mxu1 %v10701_v40  ;;  %v14357_v18 = vld [vmem:[#allocation5_spill] sm:$0xff]  ;;  %v14358_v40 = vld [vmem:[#allocation6_spill] sm:$0xff] }
 0x3d5   : > { %7823 = vmatpush1.bf16.msra.mxu0 %v10696_v13  ;;  %v7252_v13 = vpop.f32.mrf.mxu0 }
 0x3d6   : > { %7866 = vmatpush1.bf16.msra.mxu1 %v10699_v58  ;;  %7824 = vmatprep.subr.bf16.mxu0 %v10704_v59  ;;  %v7295_v58 = vpop.f32.mrf.mxu1 }
 0x3d7   : > { %7867 = vmatprep.subr.bf16.mxu1 %v10707_v61  ;;  %v7254_v59 = vpop.f32.mrf.mxu0 }
 0x3d8   : > { %v7297_v61 = vpop.f32.mrf.mxu1 }
 0x3d9   : > { %7825 = vmatpush1.bf16.msra.mxu0 %v10702_v41  ;;  %v7256_v41 = vpop.f32.mrf.mxu0 }
 0x3da   : > { %7868 = vmatpush1.bf16.msra.mxu1 %v10705_v23  ;;  %7826 = vmatprep.subr.bf16.mxu0 %v10710_v17  ;;  %v7299_v23 = vpop.f32.mrf.mxu1 }
 0x3db   : > { %7869 = vmatprep.subr.bf16.mxu1 %v10713_v22  ;;  %v7336_v17 = vpop.f32.mrf.mxu0 }
 0x3dc   : > { %v7379_v22 = vpop.f32.mrf.mxu1 }
 0x3dd   : > { %7827 = vmatpush1.bf16.msra.mxu0 %v10708_v21  ;;  %v7338_v21 = vpop.f32.mrf.mxu0 }
 0x3de   : > { %7870 = vmatpush1.bf16.msra.mxu1 %v10711_v48  ;;  %7828 = vmatprep.subr.bf16.mxu0 %v10716_v49  ;;  %v7381_v48 = vpop.f32.mrf.mxu1 }
 0x3df   : > { %7871 = vmatprep.subr.bf16.mxu1 %v10719_v53  ;;  %v7340_v49 = vpop.f32.mrf.mxu0 }
 0x3e0   : > { %v7383_v53 = vpop.f32.mrf.mxu1 }
 0x3e1   : > { %7829 = vmatpush1.bf16.msra.mxu0 %v10714_v33  ;;  %v7342_v33 = vpop.f32.mrf.mxu0 }
 0x3e2   : > { %7872 = vmatpush1.bf16.msra.mxu1 %v10717_v3  ;;  %7830 = vmatprep.subr.bf16.mxu0 %v10722_v42  ;;  %v7385_v3 = vpop.f32.mrf.mxu1 }
 0x3e3   : > { %7873 = vmatprep.subr.bf16.mxu1 %v10725_v6  ;;  %v7422_v42 = vpop.f32.mrf.mxu0 }
 0x3e4   : > { %v7465_v6 = vpop.f32.mrf.mxu1 }
 0x3e5   : > { %7831 = vmatpush1.bf16.msra.mxu0 %v10720_v14  ;;  %v7424_v14 = vpop.f32.mrf.mxu0 }
 0x3e6   : > { %7874 = vmatpush1.bf16.msra.mxu1 %v10723_v31  ;;  %7832 = vmatprep.subr.bf16.mxu0 %v10728_v12  ;;  %v7467_v31 = vpop.f32.mrf.mxu1 }
 0x3e7   : > { %7875 = vmatprep.subr.bf16.mxu1 %v10731_v26  ;;  %v7426_v12 = vpop.f32.mrf.mxu0 }
 0x3e8   : > { %v7469_v26 = vpop.f32.mrf.mxu1 }
 0x3e9   : > { %7833 = vmatpush1.bf16.msra.mxu0 %v10726_v0  ;;  %v7428_v0 = vpop.f32.mrf.mxu0 }
 0x3ea   : > { %7876 = vmatpush1.bf16.msra.mxu1 %v10729_v10  ;;  %7834 = vmatprep.subr.bf16.mxu0 %v10734_v11  ;;  %v7471_v10 = vpop.f32.mrf.mxu1 }
 0x3eb   : > { %7877 = vmatprep.subr.bf16.mxu1 %v10737_v29  ;;  %v7508_v11 = vpop.f32.mrf.mxu0 }
 0x3ec   : > { %v7551_v29 = vpop.f32.mrf.mxu1 }
 0x3ed   : > { %7835 = vmatpush2.bf16.msra.mxu0 %v10732_v27  ;;  %v7510_v27 = vpop.f32.mrf.mxu0 }
 0x3ee   : > { %7878 = vmatpush2.bf16.msra.mxu1 %v10735_v47  ;;  %7836 = vmatprep.subr.bf16.mxu0 %v10740_v50  ;;  %v7553_v47 = vpop.f32.mrf.mxu1 }
 0x3ef   : > { %7879 = vmatprep.subr.bf16.mxu1 %v10743_v16  ;;  %v7512_v50 = vpop.f32.mrf.mxu0 }
 0x3f0   : > { %v7555_v16 = vpop.f32.mrf.mxu1 }
 0x3f1   : > { %7837 = vmatpush2.bf16.msra.mxu0 %v10738_v60  ;;  %v7514_v60 = vpop.f32.mrf.mxu0 }
 0x3f2   : > { %7880 = vmatpush2.bf16.msra.mxu1 %v10741_v54  ;;  %7838 = vmatprep.subr.bf16.mxu0 %v10746_v7  ;;  %v7557_v54 = vpop.f32.mrf.mxu1 }
 0x3f3   : > { %7881 = vmatprep.subr.bf16.mxu1 %v10749_v4 }
 0x3f5   : > { %7839 = vmatpush2.bf16.msra.mxu0 %v10744_v9 }
 0x3f6   : > { %7882 = vmatpush2.bf16.msra.mxu1 %v10747_v52  ;;  %7840 = vmatprep.subr.bf16.mxu0 %v10752_v38  ;;  %v7294_v38 = vadd.f32 %v7293_v19, %v7250_v20 }
 0x3f7   : > { %7883 = vmatprep.subr.bf16.mxu1 %v10755_v2  ;;  %v7296_v2 = vadd.f32 %v7295_v58, %v7252_v13 }
 0x3f9   : > { %7841 = vmatpush2.bf16.msra.mxu0 %v10750_v44  ;;  %v7337_v44 = vadd.f32 %v7336_v17, %v7294_v38 }
 0x3fa   : > { %7884 = vmatpush2.bf16.msra.mxu1 %v10753_v45  ;;  %7842 = vmatprep.subr.bf16.mxu0 %v10758_v46 }
 0x3fb   : > { %7885 = vmatprep.subr.bf16.mxu1 %v10761_v51  ;;  %v7298_v51 = vadd.f32 %v7297_v61, %v7254_v59 }
 0x3fd   : > { %7843 = vmatpush2.bf16.msra.mxu0 %v10756_v56  ;;  %v7339_v56 = vadd.f32 %v7338_v21, %v7296_v2 }
 0x3fe   : > { %7886 = vmatpush2.bf16.msra.mxu1 %v10759_v57  ;;  %7844 = vmatprep.subr.bf16.mxu0 %v10764_v32  ;;  %v7300_v57 = vadd.f32 %v7299_v23, %v7256_v41  ;;  %v7380_v32 = vadd.f32 %v7379_v22, %v7337_v44 }
 0x3ff   : > { %7887 = vmatprep.subr.bf16.mxu1 %v10767_v8  ;;  %v7341_v8 = vadd.f32 %v7340_v49, %v7298_v51 }
 0x401   : > { %7845 = vmatpush2.bf16.msra.mxu0 %v10762_v43 }
 0x402   : > { %7888 = vmatpush2.bf16.msra.mxu1 %v10765_v63  ;;  %7846 = vmatprep.subr.bf16.mxu0 %v10770_v5  ;;  %v7382_v5 = vadd.f32 %v7381_v48, %v7339_v56 }
 0x403   : > { %7889 = vmatprep.subr.bf16.mxu1 %v10773_v24  ;;  %v7343_v24 = vadd.f32 %v7342_v33, %v7300_v57 }
 0x405   : > { %7847 = vmatpush2.bf16.msra.mxu0 %v10768_v25  ;;  %v7423_v25 = vadd.f32 %v7422_v42, %v7380_v32 }
 0x406   : > { %7890 = vmatpush2.bf16.msra.mxu1 %v10771_v15  ;;  %7848 = vmatprep.subr.bf16.mxu0 %v10776_v28 }
 0x407   : > { %7891 = vmatprep.subr.bf16.mxu1 %v10779_v36  ;;  %v7384_v36 = vadd.f32 %v7383_v53, %v7341_v8 }
 0x409   : > { %7849 = vmatpush2.bf16.msra.mxu0 %v10774_v37  ;;  %v7425_v37 = vadd.f32 %v7424_v14, %v7382_v5 }
 0x40a   : > { %7892 = vmatpush2.bf16.msra.mxu1 %v10777_v1  ;;  %v7386_v1 = vadd.f32 %v7385_v3, %v7343_v24 }
 0x40b   : > { %v7468_v13 = vadd.f32 %v7467_v31, %v7425_v37 }
 0x40c   : > { %7851 = vmatmul.mubr.bf16.vlgmr.msra.gmra.mxu0 %v14357_v18  ;;  %v7594_v7 = vpop.f32.mrf.mxu0  ;;  %v7466_v18 = vadd.f32 %v7465_v6, %v7423_v25  ;;  %v7429_v58 = vadd.f32 %v7428_v0, %v7386_v1 }
 0x40d   : > { %7894 = vmatmul.mubr.bf16.vlgmr.msra.gmra.mxu1 %v14358_v40  ;;  %v7637_v4 = vpop.f32.mrf.mxu1  ;;  %v7427_v40 = vadd.f32 %v7426_v12, %v7384_v36  ;;  %v7511_v41 = vadd.f32 %v7510_v27, %v7468_v13 }
 0x40e   : > { %v7596_v9 = vpop.f32.mrf.mxu0  ;;  %v7509_v59 = vadd.f32 %v7508_v11, %v7466_v18  ;;  %v7472_v22 = vadd.f32 %v7471_v10, %v7429_v58 }
 0x40f   : > { %v7639_v52 = vpop.f32.mrf.mxu1  ;;  %v7470_v61 = vadd.f32 %v7469_v26, %v7427_v40  ;;  %v7554_v49 = vadd.f32 %v7553_v47, %v7511_v41 }
 0x410   : > { %v7598_v45 = vpop.f32.mrf.mxu0  ;;  %v7552_v21 = vadd.f32 %v7551_v29, %v7509_v59  ;;  %v7515_v33 = vadd.f32 %v7514_v60, %v7472_v22 }
 0x411   : > { %v7641_v46 = vpop.f32.mrf.mxu1  ;;  %v7513_v48 = vadd.f32 %v7512_v50, %v7470_v61  ;;  %v7597_v6 = vadd.f32 %v7596_v9, %v7554_v49 }
 0x412   : > { %v7600_v43 = vpop.f32.mrf.mxu0  ;;  %v7595_v42 = vadd.f32 %v7594_v7, %v7552_v21  ;;  %v7558_v2 = vadd.f32 %v7557_v54, %v7515_v33 }
 0x413   : > { %v7643_v63 = vpop.f32.mrf.mxu1  ;;  %v7556_v3 = vadd.f32 %v7555_v16, %v7513_v48  ;;  %v7640_v11 = vadd.f32 %v7639_v52, %v7597_v6 }
 0x414   : > { %v7638_v31 = vadd.f32 %v7637_v4, %v7595_v42  ;;  %v7601_v26 = vadd.f32 %v7600_v43, %v7558_v2  ;;  %v10788_v2 = vmov 1966171168  }
 0x415   : > { %v7599_v0 = vadd.f32 %v7598_v45, %v7556_v3 }
 0x416   : > { %v7644_v50 = vadd.f32 %v7643_v63, %v7601_v26 }
 0x417   : > { %v7642_v10 = vadd.f32 %v7641_v46, %v7599_v0 }
 0x44c   : > { %v7680_v15 = vpop.f32.mrf.mxu0 }
 0x44d   : > { %v7723_v28 = vpop.f32.mrf.mxu1  ;;  %v7681_v27 = vadd.f32 %v7680_v15, %v7638_v31  ;;  %v7967_v31 = vunpack.c.l.s4 %v10788_v2 }
 0x44e   : > { %v7682_v20 = vpop.f32.mrf.mxu0 }
 0x44f   : > { %v7725_v19 = vpop.f32.mrf.mxu1  ;;  %v7683_v29 = vadd.f32 %v7682_v20, %v7640_v11  ;;  %v7724_v47 = vadd.f32 %v7723_v28, %v7681_v27  ;;  %v7969_v11 = vlaneseq }
 0x450   : > { %v7684_v23 = vpop.f32.mrf.mxu0 }
 0x451   : > { %v7727_v17 = vpop.f32.mrf.mxu1  ;;  %v7685_v60 = vadd.f32 %v7684_v23, %v7642_v10  ;;  %v7726_v57 = vadd.f32 %v7725_v19, %v7683_v29  ;;  %vm7991_vm0 = vcmp.lt.s32.totalorder %v7969_v11, 512 }
 0x452   : > { %v7686_v53 = vpop.f32.mrf.mxu0 }
 0x453   : > { %v7729_v14 = vpop.f32.mrf.mxu1  ;;  %v7687_v16 = vadd.f32 %v7686_v53, %v7644_v50  ;;  %v7728_v32 = vadd.f32 %v7727_v17, %v7685_v60 }
 0x455   : > { %v7730_v45 = vadd.f32 %v7729_v14, %v7687_v16 }
 0x48c   : > { %v7766_v12 = vpop.f32.mrf.mxu0 }
 0x48d   : > { %v7809_v38 = vpop.f32.mrf.mxu1  ;;  %v7767_v9 = vadd.f32 %v7766_v12, %v7724_v47  ;;  %v7968_v47 = vunpack.c.0.s8 %v7967_v31 }
 0x48e   : > { %v7768_v44 = vpop.f32.mrf.mxu0 }
 0x48f   : > { %v7811_v51 = vpop.f32.mrf.mxu1  ;;  %v7769_v8 = vadd.f32 %v7768_v44, %v7726_v57  ;;  %v7810_v52 = vadd.f32 %v7809_v38, %v7767_v9 }
 0x490   : > { %v7770_v7 = vpop.f32.mrf.mxu0 }
 0x491   : > { %v7813_v56 = vpop.f32.mrf.mxu1  ;;  %v7771_v43 = vadd.f32 %v7770_v7, %v7728_v32  ;;  %v7812_v25 = vadd.f32 %v7811_v51, %v7769_v8  ;;  %v7970_v7 = vshrl.u32 %v7969_v11, 7 }
 0x492   : > { %v7772_v54 = vpop.f32.mrf.mxu0 }
 0x493   : > { %v7815_v4 = vpop.f32.mrf.mxu1  ;;  %v7773_v46 = vadd.f32 %v7772_v54, %v7730_v45  ;;  %v7814_v36 = vadd.f32 %v7813_v56, %v7771_v43 }
 0x495   : > { %v7816_v40 = vadd.f32 %v7815_v4, %v7773_v46  ;;  %v7971_v4 = vsub.s32 %v7968_v47, %v7970_v7 }
 0x497   : > { %v7972_v46 = vrot.slane %v7964_v35, %v7971_v4 }
 0x4cc   : > { %v7852_v5 = vpop.f32.mrf.mxu0 }
 0x4cd   : > { %v7895_v24 = vpop.f32.mrf.mxu1  ;;  %v7853_v15 = vadd.f32 %v7852_v5, %v7810_v52 }
 0x4ce   : > { %v7854_v63 = vpop.f32.mrf.mxu0 }
 0x4cf   : > { %v7897_v28 = vpop.f32.mrf.mxu1  ;;  %v7855_v37 = vadd.f32 %v7854_v63, %v7812_v25  ;;  %v7896_v20 = vadd.f32 %v7895_v24, %v7853_v15 }
 0x4d0   : > { %v7856_v1 = vpop.f32.mrf.mxu0 }
 0x4d1   : > { %v7899_v18 = vpop.f32.mrf.mxu1  ;;  %v7898_v19 = vadd.f32 %v7897_v28, %v7855_v37  ;;  %v7857_v13 = vadd.f32 %v7856_v1, %v7814_v36  ;;  %v7996_v17 = vmul.f32 %v7896_v20, %v7896_v20  ;;  %v8042_v36 = vrot.slane %v8034_v62, %v7971_v4 }
 0x4d2   : > { %v7858_v58 = vpop.f32.mrf.mxu0 }
 0x4d3   : > { %v9232_v59 = vpack.c.bf16 %v7898_v19, %v7896_v20  ;;  %v7900_v61 = vadd.f32 %v7899_v18, %v7857_v13  ;;  %v7859_v41 = vadd.f32 %v7858_v58, %v7816_v40  ;;  %v7901_v23 = vpop.f32.mrf.mxu1  ;;  %v7997_v14 = vmul.f32 %v7898_v19, %v7898_v19 }
 0x4d5   : > { %7929 = vst [vmem:[%s13366_s20 + $0x8] sm:$0xff] %v9232_v59  ;;  %v7946_v22 = vadd.f32 %v7900_v61, %v7896_v20  ;;  %v8000_v21 = vmul.f32 %v7900_v61, %v7900_v61  ;;  %v7902_v48 = vadd.f32 %v7901_v23, %v7859_v41 }
 0x4d7   : > { %v7947_v49 = vrot.slane %v7946_v22, 4  ;;  %v8016_v33 = vadd.f32 %v8000_v21, %v7996_v17  ;;  %v9234_v42 = vpack.c.bf16 %v7902_v48, %v7900_v61  ;;  %v7953_v53 = vadd.f32 %v7902_v48, %v7898_v19 }
 0x4d8   : > { %v8001_v3 = vmul.f32 %v7902_v48, %v7902_v48 }
 0x4d9   : > { %v7948_v6 = vadd.f32 %v7947_v49, %v7946_v22  ;;  %v8017_v12 = vrot.slane %v8016_v33, 4  ;;  %7931 = vst [vmem:[%s13366_s20 + $0x18] sm:$0xff] %v9234_v42  ;;  %v7954_v38 = vrot.slane %v7953_v53, 4  ;;  %s9230_s20 = sshll.u32 %s14362_s13, 3 }
 0x4da   : > { %v8023_v0 = vadd.f32 %v8001_v3, %v7997_v14  ;;  %s191_s16 = scalar_lea.vmem %s14343_s3, %s9230_s20 }
 0x4db   : > { %v7949_v26 = vrot.slane %v7948_v6, 2  ;;  %v8018_v27 = vadd.f32 %v8017_v12, %v8016_v33  ;;  %v7955_v44 = vadd.f32 %v7954_v38, %v7953_v53 }
 0x4dc   : > { %v8024_v51 = vrot.slane %v8023_v0, 4 }
 0x4dd   : > { %v7950_v10 = vadd.f32 %v7949_v26, %v7948_v6  ;;  %v8019_v29 = vrot.slane %v8018_v27, 2  ;;  %v7956_v50 = vrot.slane %v7955_v44, 2 }
 0x4de   : > { %v8025_v60 = vadd.f32 %v8024_v51, %v8023_v0 }
 0x4df   : > { %v7951_v56 = vrot.slane %v7950_v10, 1  ;;  %v8020_v57 = vadd.f32 %v8019_v29, %v8018_v27  ;;  %v7957_v16 = vadd.f32 %v7956_v50, %v7955_v44 }
 0x4e0   : > { %v8026_v9 = vrot.slane %v8025_v60, 2 }
 0x4e1   : > { %v7958_v32 = vrot.slane %v7957_v16, 1  ;;  %v8021_v8 = vrot.slane %v8020_v57, 1  ;;  %v7952_v45 = vadd.f32 %v7951_v56, %v7950_v10 }
 0x4e2   : > { %v8027_v54 = vadd.f32 %v8026_v9, %v8025_v60 }
 0x4e3   : > { %v7959_v52 = vadd.f32 %v7958_v32, %v7957_v16  ;;  %v8022_v24 = vadd.f32 %v8021_v8, %v8020_v57 }
 0x4e4   : > { %v8028_v43 = vrot.slane %v8027_v54, 1 }
 0x4e5   : > { %v7965_v5 = vcombine.low %v7952_v45, %v7959_v52 }
 0x4e6   : > { %v8029_v25 = vadd.f32 %v8028_v43, %v8027_v54 }
 0x4e7   : > { %v7979_v15 = vrot.slane %v7965_v5, %v7971_v4 }
 0x4e8   : > { %v8035_v63 = vcombine.low %v8022_v24, %v8029_v25 }
 0x4e9   : > { %v7980_v28 = vcombine.low %v7972_v46, %v7979_v15 }
 0x4ea   : > { %v8049_v37 = vrot.slane %v8035_v63, %v7971_v4 }
 0x4eb   : > { %v7987_v1 = vrot.slane %v7980_v28, %v7971_v4 }
 0x4ec   : > { %v8050_v18 = vcombine.low %v8042_v36, %v8049_v37 }
 0x4ed   : > { %7993 = vst.msk [vmem:[%s191_s16] ss:$2 sm:$0xf] %vm7991_vm0, %v7987_v1 }
 0x4ee   : > { %v8057_v40 = vrot.slane %v8050_v18, %v7971_v4 }
 0x4f0   : > { %9225 = vst.msk [vmem:[%s191_s16 + $0x1] ss:$2 sm:$0xf] %vm7991_vm0, %v8057_v40 }
 0x4f1 PF: > { %s14_s12 = sadd.s32 1, %s10786_s12  }
 0x4f2   : > { %p11_p5 = scmp.ge.s32.totalorder %s14_s12, 4  }
 0x4f4   :  { %13 = sbr.rel (!%p11_p5) target bundleno = 1 (0x1), region = 71 }

</bundles_post_ra>
